<compile_context>
chip_gen: v5e
topology: v5e:2x2
jax: 0.10.0
libtpu: 0.0.40
codegen_flags: <defaults>
</compile_context>

<pallas_src>
import functools

import jax
import jax.numpy as jnp
import numpy as np
from jax import lax
from jax.experimental import pallas as pl
from jax.experimental.pallas import tpu as pltpu

BN_EPS = 1e-5


def _vmem_limit_bytes():
    """Per-kernel VMEM budget sized from the actual chip (v5e/v6e: 128 MiB,
    v7x: 64 MiB), leaving headroom for compiler temps / double buffering."""
    cap = 64 * 1024 * 1024
    try:
        info = pltpu.get_tpu_info()
        cap = int(getattr(info, "vmem_capacity_bytes", cap))
    except Exception:
        pass
    return int(min(max(cap - 16 * 1024 * 1024, 32 * 1024 * 1024),
                   100 * 1024 * 1024))


_VMEM_LIMIT = _vmem_limit_bytes()


# ----------------------------------------------------------------------------
# Block 1: ConvTranspose2d(k=4, s=1, p=0) on a 1x1 input is a plain matmul
# (N, Cin) @ (Cin, 16*Cout); BatchNorm (batch stats) + ReLU fused in-kernel.
# ----------------------------------------------------------------------------
def _first_block_kernel(x_ref, w_ref, g_ref, gamma_ref, beta_ref, o_ref, *,
                        count, kk, eps):
    y = jnp.dot(x_ref[...], w_ref[...], preferred_element_type=jnp.float32)
    g = g_ref[...]                                  # (kk*Cout, Cout) 0/1 group map
    s1 = jnp.sum(jnp.dot(y, g, preferred_element_type=jnp.float32),
                 axis=0, keepdims=True)             # (1, Cout)  sum
    s2 = jnp.sum(jnp.dot(y * y, g, preferred_element_type=jnp.float32),
                 axis=0, keepdims=True)             # (1, Cout)  sum of squares
    mean = s1 / count
    var = jnp.maximum(s2 / count - mean * mean, 0.0)
    inv = lax.rsqrt(var + eps)
    scale = jnp.tile(gamma_ref[...] * inv, (1, kk))                   # (1, kk*C)
    shift = jnp.tile(beta_ref[...] - mean * gamma_ref[...] * inv, (1, kk))
    o_ref[...] = jnp.maximum(y * scale + shift, 0.0).astype(o_ref.dtype)


def first_block(x2d, w_pt, gamma, beta, eps=BN_EPS):
    """x2d: (N, Cin) bf16, w_pt: (Cin, Cout, 4, 4) f32 -> (N, 4, 4, Cout) bf16."""
    N, cin = x2d.shape
    cout, k = w_pt.shape[1], w_pt.shape[2]
    kk = k * k
    # columns ordered (kh, kw, co) so the output reshapes straight to NHWC.
    w2 = jnp.transpose(w_pt, (0, 2, 3, 1)).reshape(cin, kk * cout)
    w2 = w2.astype(jnp.bfloat16)
    # TODO(synk): for very large N/ngf this single-block layer should be batch
    # tiled with pl.when-accumulated stats; at DCGAN sizes it is negligible.
    g = jnp.tile(jnp.eye(cout, dtype=jnp.float32), (kk, 1))   # (kk*cout, cout)

    out = pl.pallas_call(
        functools.partial(_first_block_kernel, count=float(N * kk), kk=kk,
                          eps=eps),
        out_shape=jax.ShapeDtypeStruct((N, kk * cout), jnp.bfloat16),
        grid=(1,),
        in_specs=[
            pl.BlockSpec((N, cin), lambda i: (0, 0)),
            pl.BlockSpec((cin, kk * cout), lambda i: (0, 0)),
            pl.BlockSpec((kk * cout, cout), lambda i: (0, 0)),
            pl.BlockSpec((1, cout), lambda i: (0, 0)),
            pl.BlockSpec((1, cout), lambda i: (0, 0)),
        ],
        out_specs=pl.BlockSpec((N, kk * cout), lambda i: (0, 0)),
        compiler_params=pltpu.CompilerParams(
            dimension_semantics=("arbitrary",),
            vmem_limit_bytes=_VMEM_LIMIT),
    )(x2d, w2, g, gamma.reshape(1, cout).astype(jnp.float32),
      beta.reshape(1, cout).astype(jnp.float32))
    return out.reshape(N, k, k, cout)          # NHWC


# ----------------------------------------------------------------------------
# Blocks 2-5: ConvTranspose2d(k=4, s=2, p=1) via sub-pixel phase decomposition.
# Kernel 1: per (image, phase) fused 4-tap conv (local f32 accumulation) +
#           single-pass BN partial stats, bf16 channel-major output.
# Kernel 2: lane-dense scale/shift + ReLU with the finalized global stats.
# ----------------------------------------------------------------------------
def _convt_phase_kernel(x_ref, w_ref, y_ref, ps_ref, *, W, wp, m):
    # x_ref : (1, Cin, hp*wp)   bf16  channel-major zero-padded flattened image
    # w_ref : (1, 4, Cout, Cin) bf16  the 4 tap (Cout, Cin) sub-kernels of this
    #                                 phase (selected by the weight BlockSpec)
    # y_ref : (1, 1, Cout, m)   bf16  channel-major pre-BN conv output (phase)
    # ps_ref: (1, 1, Cout, 2)   f32   (sum, sum_sq) over real lanes
    p = pl.program_id(1)
    lane = lax.broadcasted_iota(jnp.int32, (1, m), 1)
    real = ((lane % wp) < W).astype(jnp.float32)        # mask out the junk lanes

    for phase in range(4):
        @pl.when(p == phase)
        def _(phase=phase):
            ph, pw = divmod(phase, 2)
            acc = None
            for dh in range(2):
                for dw in range(2):
                    start = (ph + dh) * wp + (pw + dw)       # static per branch
                    xwin = x_ref[0, :, pl.ds(start, m)]      # (Cin, m), no .T
                    wsub = w_ref[0, 2 * dh + dw, :, :]       # (Cout, Cin)
                    c = jnp.dot(wsub, xwin,
                                preferred_element_type=jnp.float32)
                    acc = c if acc is None else acc + c      # stays in vregs/MRB
            am = acc * real
            s = jnp.sum(am, axis=1, keepdims=True)           # (Cout, 1)
            q = jnp.sum(acc * am, axis=1, keepdims=True)     # (Cout, 1)
            y_ref[0, 0, :, :] = acc.astype(y_ref.dtype)      # single store
            ps_ref[0, 0, :, :] = jnp.concatenate([s, q], axis=1)


def _bn_relu_kernel(y_ref, scale_ref, shift_ref, o_ref):
    # y_ref/o_ref: (1, 1, Cout, m) bf16; scale/shift: (Cout, 1) f32 broadcast.
    z = y_ref[0, 0, :, :].astype(jnp.float32) * scale_ref[...] + shift_ref[...]
    o_ref[0, 0, :, :] = jnp.maximum(z, 0.0).astype(o_ref.dtype)


def up_block(x, w_pt, gamma, beta, eps=BN_EPS):
    """ConvTranspose2d(4, 2, 1, bias=False) + BatchNorm2d(train) + ReLU.

    x: (N, Cin, H, W) NCHW bf16 -> (N, Cout, 2H, 2W) NCHW bf16.
    """
    N, cin, H, W = x.shape
    cout = w_pt.shape[1]
    hp, wp = H + 3, W + 2
    m = H * wp
    ho, wo = 2 * H, 2 * W
    # TODO(synk): wp could be rounded up so m is a multiple of 128 for fully
    # unmasked lane-dense stores on the largest blocks.

    # phase (ph, pw) / tap (dh, dw) uses original kernel tap
    # (3 - ph - 2dh, 3 - pw - 2dw) applied at padded-input offset (ph+dh, pw+dw)
    wt = jnp.transpose(w_pt, (2, 3, 1, 0))                  # (kh, kw, Cout, Cin)
    phases = []
    for ph in range(2):
        for pw in range(2):
            taps = [wt[3 - ph - 2 * dh, 3 - pw - 2 * dw]
                    for dh in range(2) for dw in range(2)]
            phases.append(jnp.stack(taps, axis=0))
    wpk = jnp.stack(phases, axis=0).astype(jnp.bfloat16)    # (4, 4, Cout, Cin)

    # zero-pad (top 1, bottom 2, left 1, right 1), keep channel-major, flatten
    # spatial; the extra bottom row is slack for the flattened tap windows.
    xf = jnp.pad(x, ((0, 0), (0, 0), (1, 2), (1, 1))).reshape(N, cin, hp * wp)

    y, ps = pl.pallas_call(
        functools.partial(_convt_phase_kernel, W=W, wp=wp, m=m),
        out_shape=(jax.ShapeDtypeStruct((N, 4, cout, m), jnp.bfloat16),
                   jax.ShapeDtypeStruct((N, 4, cout, 2), jnp.float32)),
        grid=(N, 4),
        in_specs=[pl.BlockSpec((1, cin, hp * wp), lambda n, p: (n, 0, 0)),
                  pl.BlockSpec((1, 4, cout, cin), lambda n, p: (p, 0, 0, 0))],
        out_specs=(pl.BlockSpec((1, 1, cout, m), lambda n, p: (n, p, 0, 0)),
                   pl.BlockSpec((1, 1, cout, 2), lambda n, p: (n, p, 0, 0))),
        compiler_params=pltpu.CompilerParams(
            dimension_semantics=("parallel", "parallel"),
            vmem_limit_bytes=_VMEM_LIMIT),
    )(xf, wpk)

    # finalize global BatchNorm batch statistics (tiny cross-image reduction).
    count = float(N * ho * wo)
    sums = jnp.sum(ps[..., 0], axis=(0, 1))
    sqs = jnp.sum(ps[..., 1], axis=(0, 1))
    mean = sums / count
    var = jnp.maximum(sqs / count - mean * mean, 0.0)
    inv = lax.rsqrt(var + eps)
    scale = (gamma * inv).reshape(cout, 1).astype(jnp.float32)
    shift = (beta - mean * gamma * inv).reshape(cout, 1).astype(jnp.float32)

    yn = pl.pallas_call(
        _bn_relu_kernel,
        out_shape=jax.ShapeDtypeStruct((N, 4, cout, m), jnp.bfloat16),
        grid=(N, 4),
        in_specs=[pl.BlockSpec((1, 1, cout, m), lambda n, p: (n, p, 0, 0)),
                  pl.BlockSpec((cout, 1), lambda n, p: (0, 0)),
                  pl.BlockSpec((cout, 1), lambda n, p: (0, 0))],
        out_specs=pl.BlockSpec((1, 1, cout, m), lambda n, p: (n, p, 0, 0)),
        compiler_params=pltpu.CompilerParams(
            dimension_semantics=("parallel", "parallel"),
            vmem_limit_bytes=_VMEM_LIMIT),
    )(y, scale, shift)

    # TODO(synk): this phase de-interleave is XLA glue (one extra read+write of
    # the activation); fusing it needs strided lane scatters in the BN kernel.
    yn = yn.reshape(N, 2, 2, cout, H, wp)[..., :W]          # (n, ph, pw, c, j, l)
    return jnp.transpose(yn, (0, 3, 4, 1, 5, 2)).reshape(N, cout, ho, wo)


def _forward(params, noise_nchw):
    w0, g0, b0 = params[0]
    n = noise_nchw.shape[0]
    x2d = noise_nchw.reshape(n, -1).astype(jnp.bfloat16)
    x = first_block(x2d, w0, g0, b0)                 # (N, 4, 4, ngf*16) NHWC
    x = jnp.transpose(x, (0, 3, 1, 2))               # -> NCHW (tiny tensor)
    for (w, g, b) in params[1:]:
        x = up_block(x, w, g, b)                     # (N, C', 2H, 2W) NCHW bf16
    return x.astype(jnp.float32)                     # NCHW f32


# ----------------------------------------------------------------------------
# Generator (parameter setup + layer sequencing is plain JAX glue).
# ----------------------------------------------------------------------------
class Generator:
    def __init__(self, input_dim, output_dim, ngf, key):
        # (in_channels, out_channels, kernel, stride, padding) per block
        self.cfgs = [
            (input_dim, ngf * 16, 4, 1, 0),
            (ngf * 16, ngf * 8, 4, 2, 1),
            (ngf * 8, ngf * 4, 4, 2, 1),
            (ngf * 4, ngf * 2, 4, 2, 1),
            (ngf * 2, output_dim, 4, 2, 1),
        ]
        params = []
        for (cin, cout, k, _, _) in self.cfgs:
            key, wk = jax.random.split(key)
            w = 0.02 * jax.random.normal(wk, (cin, cout, k, k), jnp.float32)
            # store weights pre-rounded to bf16 so the bf16 kernels and the
            # f32 reference share identical parameters.
            w = w.astype(jnp.bfloat16).astype(jnp.float32)
            params.append((w, jnp.ones((cout,), jnp.float32),
                           jnp.zeros((cout,), jnp.float32)))
        self.params = params
        self._fwd = jax.jit(_forward)

    def __call__(self, noise_nchw):
        return self._fwd(self.params, noise_nchw)

    # Pure-JAX/XLA reference (f32, HIGHEST precision) for numerical validation.
    def reference(self, noise_nchw, eps=BN_EPS):
        x = jnp.transpose(noise_nchw, (0, 2, 3, 1))
        for (cin, cout, k, s, p), (w, g, b) in zip(self.cfgs, self.params):
            rhs = jnp.transpose(w[:, :, ::-1, ::-1], (2, 3, 0, 1))  # HWIO
            y = lax.conv_general_dilated(
                x, rhs, window_strides=(1, 1),
                padding=[(k - 1 - p, k - 1 - p)] * 2,
                lhs_dilation=(s, s),
                dimension_numbers=("NHWC", "HWIO", "NHWC"),
                precision=lax.Precision.HIGHEST)
            m = jnp.mean(y, axis=(0, 1, 2), keepdims=True)
            v = jnp.mean((y - m) ** 2, axis=(0, 1, 2), keepdims=True)
            z = (g.reshape(1, 1, 1, -1) * (y - m) * lax.rsqrt(v + eps)
                 + b.reshape(1, 1, 1, -1))
            x = jnp.maximum(z, 0.0)
        return jnp.transpose(x, (0, 3, 1, 2))


if __name__ == "__main__":
    key = jax.random.PRNGKey(0)
    key, nkey = jax.random.split(key)

    input_dim, output_dim, ngf = 16, 3, 4
    batch = 2

    gen = Generator(input_dim, output_dim, ngf, key)
    # DCGAN noise: (N, input_dim, 1, 1) NCHW, like the PyTorch module expects.
    noise = jax.random.normal(nkey, (batch, input_dim, 1, 1), jnp.float32)
    # round the test input to bf16 so kernel (bf16 path) and reference (f32)
    # see identical inputs; only arithmetic differences remain.
    noise = noise.astype(jnp.bfloat16).astype(jnp.float32)

    out = jax.block_until_ready(gen(noise))
    assert out.shape == (batch, output_dim, 64, 64), out.shape
    assert bool(jnp.all(jnp.isfinite(out)))

    ref = jax.block_until_ready(gen.reference(noise))
    np.testing.assert_allclose(np.asarray(out), np.asarray(ref),
                               rtol=5e-2, atol=5e-2)

    print("KERNEL_OK")
</pallas_src>

<mosaic_0001>
module attributes {stable_mosaic.version = 11 : i64} {
  func.func @_first_block_kernel(%arg0: i32, %arg1: memref<2x16xbf16, #tpu.memory_space<vmem>>, %arg2: memref<16x1024xbf16, #tpu.memory_space<vmem>>, %arg3: memref<1024x64xf32, #tpu.memory_space<vmem>>, %arg4: memref<1x64xf32, #tpu.memory_space<vmem>>, %arg5: memref<1x64xf32, #tpu.memory_space<vmem>>, %arg6: memref<2x1024xbf16, #tpu.memory_space<vmem>>) attributes {dimension_semantics = [#tpu.dimension_semantics<arbitrary>], iteration_bounds = array<i64: 1>, scalar_prefetch = 0 : i64, scratch_operands = 0 : i64, tpu.core_type = #tpu.core_type<tc>, window_params = [{pipeline_mode = #tpu.pipeline_mode<synchronous>, transform_indices = @transform_0, window_bounds = array<i64: 2, 16>}, {pipeline_mode = #tpu.pipeline_mode<synchronous>, transform_indices = @transform_1, window_bounds = array<i64: 16, 1024>}, {pipeline_mode = #tpu.pipeline_mode<synchronous>, transform_indices = @transform_2, window_bounds = array<i64: 1024, 64>}, {pipeline_mode = #tpu.pipeline_mode<synchronous>, transform_indices = @transform_3, window_bounds = array<i64: 1, 64>}, {pipeline_mode = #tpu.pipeline_mode<synchronous>, transform_indices = @transform_4, window_bounds = array<i64: 1, 64>}, {pipeline_mode = #tpu.pipeline_mode<synchronous>, transform_indices = @transform_5, window_bounds = array<i64: 2, 1024>}]} {
    %c0 = arith.constant 0 : index
    %c0_0 = arith.constant 0 : index
    %0 = vector.load %arg1[%c0, %c0_0] : memref<2x16xbf16, #tpu.memory_space<vmem>>, vector<2x16xbf16>
    %c0_1 = arith.constant 0 : index
    %c0_2 = arith.constant 0 : index
    %1 = vector.load %arg2[%c0_1, %c0_2] : memref<16x1024xbf16, #tpu.memory_space<vmem>>, vector<16x1024xbf16>
    %cst = arith.constant dense<0.000000e+00> : vector<2x1024xf32>
    %2 = tpu.matmul %0, %1, %cst {dimension_numbers = #tpu.dot_dimension_numbers<[1], [0], [0], [1], [0, 0, 1, 1], [], []>} : vector<2x16xbf16>, vector<16x1024xbf16>, vector<2x1024xf32> -> vector<2x1024xf32>
    %c0_3 = arith.constant 0 : index
    %c0_4 = arith.constant 0 : index
    %3 = vector.load %arg3[%c0_3, %c0_4] : memref<1024x64xf32, #tpu.memory_space<vmem>>, vector<1024x64xf32>
    %cst_5 = arith.constant dense<0.000000e+00> : vector<2x64xf32>
    %4 = tpu.matmul %2, %3, %cst_5 {dimension_numbers = #tpu.dot_dimension_numbers<[1], [0], [0], [1], [0, 0, 1, 1], [], []>} : vector<2x1024xf32>, vector<1024x64xf32>, vector<2x64xf32> -> vector<2x64xf32>
    %cst_6 = arith.constant dense<0.000000e+00> : vector<64xf32>
    %5 = vector.multi_reduction <add>, %4, %cst_6 [0] : vector<2x64xf32> to vector<64xf32>
    %6 = vector.shape_cast %5 : vector<64xf32> to vector<1x64xf32>
    %7 = arith.mulf %2, %2 : vector<2x1024xf32>
    %cst_7 = arith.constant dense<0.000000e+00> : vector<2x64xf32>
    %8 = tpu.matmul %7, %3, %cst_7 {dimension_numbers = #tpu.dot_dimension_numbers<[1], [0], [0], [1], [0, 0, 1, 1], [], []>} : vector<2x1024xf32>, vector<1024x64xf32>, vector<2x64xf32> -> vector<2x64xf32>
    %cst_8 = arith.constant dense<0.000000e+00> : vector<64xf32>
    %9 = vector.multi_reduction <add>, %8, %cst_8 [0] : vector<2x64xf32> to vector<64xf32>
    %10 = vector.shape_cast %9 : vector<64xf32> to vector<1x64xf32>
    %cst_9 = arith.constant 3.200000e+01 : f32
    %11 = vector.broadcast %cst_9 : f32 to vector<1x64xf32>
    %12 = arith.divf %6, %11 : vector<1x64xf32>
    %cst_10 = arith.constant 3.200000e+01 : f32
    %13 = vector.broadcast %cst_10 : f32 to vector<1x64xf32>
    %14 = arith.divf %10, %13 : vector<1x64xf32>
    %15 = arith.mulf %12, %12 : vector<1x64xf32>
    %16 = arith.subf %14, %15 : vector<1x64xf32>
    %cst_11 = arith.constant 0.000000e+00 : f32
    %17 = vector.broadcast %cst_11 : f32 to vector<1x64xf32>
    %18 = arith.maximumf %16, %17 : vector<1x64xf32>
    %cst_12 = arith.constant 9.99999974E-6 : f32
    %19 = vector.broadcast %cst_12 : f32 to vector<1x64xf32>
    %20 = arith.addf %18, %19 : vector<1x64xf32>
    %21 = math.rsqrt %20 : vector<1x64xf32>
    %c0_13 = arith.constant 0 : index
    %c0_14 = arith.constant 0 : index
    %22 = vector.load %arg4[%c0_13, %c0_14] : memref<1x64xf32, #tpu.memory_space<vmem>>, vector<1x64xf32>
    %23 = arith.mulf %22, %21 : vector<1x64xf32>
    %24 = tpu.concatenate %23, %23, %23, %23, %23, %23, %23, %23, %23, %23, %23, %23, %23, %23, %23, %23 in 1 : vector<1x64xf32>, vector<1x64xf32>, vector<1x64xf32>, vector<1x64xf32>, vector<1x64xf32>, vector<1x64xf32>, vector<1x64xf32>, vector<1x64xf32>, vector<1x64xf32>, vector<1x64xf32>, vector<1x64xf32>, vector<1x64xf32>, vector<1x64xf32>, vector<1x64xf32>, vector<1x64xf32>, vector<1x64xf32> -> vector<1x1024xf32>
    %c0_15 = arith.constant 0 : index
    %c0_16 = arith.constant 0 : index
    %25 = vector.load %arg5[%c0_15, %c0_16] : memref<1x64xf32, #tpu.memory_space<vmem>>, vector<1x64xf32>
    %c0_17 = arith.constant 0 : index
    %c0_18 = arith.constant 0 : index
    %26 = vector.load %arg4[%c0_17, %c0_18] : memref<1x64xf32, #tpu.memory_space<vmem>>, vector<1x64xf32>
    %27 = arith.mulf %12, %26 : vector<1x64xf32>
    %28 = arith.mulf %27, %21 : vector<1x64xf32>
    %29 = arith.subf %25, %28 : vector<1x64xf32>
    %30 = tpu.concatenate %29, %29, %29, %29, %29, %29, %29, %29, %29, %29, %29, %29, %29, %29, %29, %29 in 1 : vector<1x64xf32>, vector<1x64xf32>, vector<1x64xf32>, vector<1x64xf32>, vector<1x64xf32>, vector<1x64xf32>, vector<1x64xf32>, vector<1x64xf32>, vector<1x64xf32>, vector<1x64xf32>, vector<1x64xf32>, vector<1x64xf32>, vector<1x64xf32>, vector<1x64xf32>, vector<1x64xf32>, vector<1x64xf32> -> vector<1x1024xf32>
    %31 = vector.broadcast %24 : vector<1x1024xf32> to vector<2x1024xf32>
    %32 = arith.mulf %2, %31 : vector<2x1024xf32>
    %33 = vector.broadcast %30 : vector<1x1024xf32> to vector<2x1024xf32>
    %34 = arith.addf %32, %33 : vector<2x1024xf32>
    %cst_19 = arith.constant 0.000000e+00 : f32
    %35 = vector.broadcast %cst_19 : f32 to vector<2x1024xf32>
    %36 = arith.maximumf %34, %35 : vector<2x1024xf32>
    %37 = arith.truncf %36 : vector<2x1024xf32> to vector<2x1024xbf16>
    %c0_20 = arith.constant 0 : index
    %c0_21 = arith.constant 0 : index
    %38 = vector.load %arg6[%c0_20, %c0_21] : memref<2x1024xbf16, #tpu.memory_space<vmem>>, vector<2x1024xbf16>
    tpu.vector_store %arg6[%c0_20, %c0_21], %37 {strides = array<i32>} : memref<2x1024xbf16, #tpu.memory_space<vmem>>, vector<2x1024xbf16>,
    return
  }
  func.func @transform_0(%arg0: i32) -> (i32, i32) {
    %c0_i32 = arith.constant 0 : i32
    %c0_i32_0 = arith.constant 0 : i32
    %c0_i32_1 = arith.constant 0 : i32
    return %c0_i32, %c0_i32_0 : i32, i32
  }
  func.func @transform_1(%arg0: i32) -> (i32, i32) {
    %c0_i32 = arith.constant 0 : i32
    %c0_i32_0 = arith.constant 0 : i32
    %c0_i32_1 = arith.constant 0 : i32
    return %c0_i32, %c0_i32_0 : i32, i32
  }
  func.func @transform_2(%arg0: i32) -> (i32, i32) {
    %c0_i32 = arith.constant 0 : i32
    %c0_i32_0 = arith.constant 0 : i32
    %c0_i32_1 = arith.constant 0 : i32
    return %c0_i32, %c0_i32_0 : i32, i32
  }
  func.func @transform_3(%arg0: i32) -> (i32, i32) {
    %c0_i32 = arith.constant 0 : i32
    %c0_i32_0 = arith.constant 0 : i32
    %c0_i32_1 = arith.constant 0 : i32
    return %c0_i32, %c0_i32_0 : i32, i32
  }
  func.func @transform_4(%arg0: i32) -> (i32, i32) {
    %c0_i32 = arith.constant 0 : i32
    %c0_i32_0 = arith.constant 0 : i32
    %c0_i32_1 = arith.constant 0 : i32
    return %c0_i32, %c0_i32_0 : i32, i32
  }
  func.func @transform_5(%arg0: i32) -> (i32, i32) {
    %c0_i32 = arith.constant 0 : i32
    %c0_i32_0 = arith.constant 0 : i32
    %c0_i32_1 = arith.constant 0 : i32
    return %c0_i32, %c0_i32_0 : i32, i32
  }
}

module attributes {stable_mosaic.version = 11 : i64} {
  func.func @_convt_phase_kernel(%arg0: i32, %arg1: i32, %arg2: memref<1x64x42xbf16, #tpu.memory_space<vmem>>, %arg3: memref<1x4x32x64xbf16, #tpu.memory_space<vmem>>, %arg4: memref<1x1x32x24xbf16, #tpu.memory_space<vmem>>, %arg5: memref<1x1x32x2xf32, #tpu.memory_space<vmem>>) attributes {dimension_semantics = [#tpu.dimension_semantics<parallel>, #tpu.dimension_semantics<parallel>], iteration_bounds = array<i64: 2, 4>, scalar_prefetch = 0 : i64, scratch_operands = 0 : i64, tpu.core_type = #tpu.core_type<tc>, window_params = [{transform_indices = @transform_0, window_bounds = array<i64: 1, 64, 42>}, {transform_indices = @transform_1, window_bounds = array<i64: 1, 4, 32, 64>}, {transform_indices = @transform_2, window_bounds = array<i64: 1, 1, 32, 24>}, {transform_indices = @transform_3, window_bounds = array<i64: 1, 1, 32, 2>}]} {
    %0 = tpu.iota {dimensions = array<i32: 1>} : vector<1x24xi32>
    %c6_i32 = arith.constant 6 : i32
    %c0_i32 = arith.constant 0 : i32
    %1 = arith.cmpi eq, %c6_i32, %c0_i32 : i32
    %c1_i32 = arith.constant 1 : i32
    %2 = arith.select %1, %c1_i32, %c6_i32 : i32
    %3 = vector.broadcast %2 : i32 to vector<1x24xi32>
    %4 = arith.remsi %0, %3 : vector<1x24xi32>
    %c0_i32_0 = arith.constant 0 : i32
    %5 = vector.broadcast %c0_i32_0 : i32 to vector<1x24xi32>
    %6 = arith.cmpi ne, %4, %5 : vector<1x24xi32>
    %c0_i32_1 = arith.constant 0 : i32
    %7 = vector.broadcast %c0_i32_1 : i32 to vector<1x24xi32>
    %8 = arith.cmpi slt, %4, %7 : vector<1x24xi32>
    %c0_i32_2 = arith.constant 0 : i32
    %9 = arith.cmpi slt, %2, %c0_i32_2 : i32
    %10 = vector.broadcast %9 : i1 to vector<1x24xi1>
    %11 = vector.broadcast %10 : vector<1x24xi1> to vector<1x24xi1>
    %12 = arith.xori %8, %11 : vector<1x24xi1>
    %13 = arith.andi %12, %6 : vector<1x24xi1>
    %14 = vector.broadcast %2 : i32 to vector<1x24xi32>
    %15 = arith.addi %4, %14 : vector<1x24xi32>
    %16 = arith.select %13, %15, %4 : vector<1x24xi1>, vector<1x24xi32>
    %c4_i32 = arith.constant 4 : i32
    %17 = vector.broadcast %c4_i32 : i32 to vector<1x24xi32>
    %18 = arith.cmpi slt, %16, %17 : vector<1x24xi32>
    %19 = arith.extui %18 : vector<1x24xi1> to vector<1x24xi32>
    %20 = arith.sitofp %19 : vector<1x24xi32> to vector<1x24xf32>
    %c0_i32_3 = arith.constant 0 : i32
    %21 = arith.cmpi eq, %arg1, %c0_i32_3 : i32
    %22 = arith.extui %21 : i1 to i32
    %c0_i32_4 = arith.constant 0 : i32
    %23 = arith.cmpi ne, %22, %c0_i32_4 : i32
    scf.if %23 {
      %c0 = arith.constant 0 : index
      %c0_9 = arith.constant 0 : index
      %c0_10 = arith.constant 0 : index
      %33 = vector.load %arg2[%c0, %c0_9, %c0_10] : memref<1x64x42xbf16, #tpu.memory_space<vmem>>, vector<1x64x24xbf16>
      %34 = vector.shape_cast %33 : vector<1x64x24xbf16> to vector<64x24xbf16>
      %c0_11 = arith.constant 0 : index
      %c0_12 = arith.constant 0 : index
      %c0_13 = arith.constant 0 : index
      %c0_14 = arith.constant 0 : index
      %35 = vector.load %arg3[%c0_11, %c0_12, %c0_13, %c0_14] : memref<1x4x32x64xbf16, #tpu.memory_space<vmem>>, vector<1x1x32x64xbf16>
      %36 = vector.shape_cast %35 : vector<1x1x32x64xbf16> to vector<32x64xbf16>
      %cst = arith.constant dense<0.000000e+00> : vector<32x24xf32>
      %37 = tpu.matmul %36, %34, %cst {dimension_numbers = #tpu.dot_dimension_numbers<[1], [0], [0], [1], [0, 0, 1, 1], [], []>} : vector<32x64xbf16>, vector<64x24xbf16>, vector<32x24xf32> -> vector<32x24xf32>
      %c0_15 = arith.constant 0 : index
      %c0_16 = arith.constant 0 : index
      %c1 = arith.constant 1 : index
      %38 = vector.load %arg2[%c0_15, %c0_16, %c1] : memref<1x64x42xbf16, #tpu.memory_space<vmem>>, vector<1x64x24xbf16>
      %39 = vector.shape_cast %38 : vector<1x64x24xbf16> to vector<64x24xbf16>
      %c0_17 = arith.constant 0 : index
      %c1_18 = arith.constant 1 : index
      %c0_19 = arith.constant 0 : index
      %c0_20 = arith.constant 0 : index
      %40 = vector.load %arg3[%c0_17, %c1_18, %c0_19, %c0_20] : memref<1x4x32x64xbf16, #tpu.memory_space<vmem>>, vector<1x1x32x64xbf16>
      %41 = vector.shape_cast %40 : vector<1x1x32x64xbf16> to vector<32x64xbf16>
      %cst_21 = arith.constant dense<0.000000e+00> : vector<32x24xf32>
      %42 = tpu.matmul %41, %39, %cst_21 {dimension_numbers = #tpu.dot_dimension_numbers<[1], [0], [0], [1], [0, 0, 1, 1], [], []>} : vector<32x64xbf16>, vector<64x24xbf16>, vector<32x24xf32> -> vector<32x24xf32>
      %43 = arith.addf %37, %42 : vector<32x24xf32>
      %c0_22 = arith.constant 0 : index
      %c0_23 = arith.constant 0 : index
      %c6 = arith.constant 6 : index
      %44 = vector.load %arg2[%c0_22, %c0_23, %c6] : memref<1x64x42xbf16, #tpu.memory_space<vmem>>, vector<1x64x24xbf16>
      %45 = vector.shape_cast %44 : vector<1x64x24xbf16> to vector<64x24xbf16>
      %c0_24 = arith.constant 0 : index
      %c2 = arith.constant 2 : index
      %c0_25 = arith.constant 0 : index
      %c0_26 = arith.constant 0 : index
      %46 = vector.load %arg3[%c0_24, %c2, %c0_25, %c0_26] : memref<1x4x32x64xbf16, #tpu.memory_space<vmem>>, vector<1x1x32x64xbf16>
      %47 = vector.shape_cast %46 : vector<1x1x32x64xbf16> to vector<32x64xbf16>
      %cst_27 = arith.constant dense<0.000000e+00> : vector<32x24xf32>
      %48 = tpu.matmul %47, %45, %cst_27 {dimension_numbers = #tpu.dot_dimension_numbers<[1], [0], [0], [1], [0, 0, 1, 1], [], []>} : vector<32x64xbf16>, vector<64x24xbf16>, vector<32x24xf32> -> vector<32x24xf32>
      %49 = arith.addf %43, %48 : vector<32x24xf32>
      %c0_28 = arith.constant 0 : index
      %c0_29 = arith.constant 0 : index
      %c7 = arith.constant 7 : index
      %50 = vector.load %arg2[%c0_28, %c0_29, %c7] : memref<1x64x42xbf16, #tpu.memory_space<vmem>>, vector<1x64x24xbf16>
      %51 = vector.shape_cast %50 : vector<1x64x24xbf16> to vector<64x24xbf16>
      %c0_30 = arith.constant 0 : index
      %c3 = arith.constant 3 : index
      %c0_31 = arith.constant 0 : index
      %c0_32 = arith.constant 0 : index
      %52 = vector.load %arg3[%c0_30, %c3, %c0_31, %c0_32] : memref<1x4x32x64xbf16, #tpu.memory_space<vmem>>, vector<1x1x32x64xbf16>
      %53 = vector.shape_cast %52 : vector<1x1x32x64xbf16> to vector<32x64xbf16>
      %cst_33 = arith.constant dense<0.000000e+00> : vector<32x24xf32>
      %54 = tpu.matmul %53, %51, %cst_33 {dimension_numbers = #tpu.dot_dimension_numbers<[1], [0], [0], [1], [0, 0, 1, 1], [], []>} : vector<32x64xbf16>, vector<64x24xbf16>, vector<32x24xf32> -> vector<32x24xf32>
      %55 = arith.addf %49, %54 : vector<32x24xf32>
      %56 = vector.broadcast %20 : vector<1x24xf32> to vector<32x24xf32>
      %57 = arith.mulf %55, %56 : vector<32x24xf32>
      %cst_34 = arith.constant dense<0.000000e+00> : vector<32xf32>
      %58 = vector.multi_reduction <add>, %57, %cst_34 [1] : vector<32x24xf32> to vector<32xf32>
      %59 = vector.shape_cast %58 : vector<32xf32> to vector<32x1xf32>
      %60 = arith.mulf %55, %57 : vector<32x24xf32>
      %cst_35 = arith.constant dense<0.000000e+00> : vector<32xf32>
      %61 = vector.multi_reduction <add>, %60, %cst_35 [1] : vector<32x24xf32> to vector<32xf32>
      %62 = vector.shape_cast %61 : vector<32xf32> to vector<32x1xf32>
      %63 = arith.truncf %55 : vector<32x24xf32> to vector<32x24xbf16>
      %c0_36 = arith.constant 0 : index
      %c0_37 = arith.constant 0 : index
      %c0_38 = arith.constant 0 : index
      %c0_39 = arith.constant 0 : index
      %64 = vector.load %arg4[%c0_36, %c0_37, %c0_38, %c0_39] : memref<1x1x32x24xbf16, #tpu.memory_space<vmem>>, vector<1x1x32x24xbf16>
      %65 = vector.shape_cast %64 : vector<1x1x32x24xbf16> to vector<32x24xbf16>
      %66 = vector.shape_cast %63 : vector<32x24xbf16> to vector<1x1x32x24xbf16>
      tpu.vector_store %arg4[%c0_36, %c0_37, %c0_38, %c0_39], %66 {strides = array<i32>} : memref<1x1x32x24xbf16, #tpu.memory_space<vmem>>, vector<1x1x32x24xbf16>,
      %67 = tpu.concatenate %59, %62 in 1 : vector<32x1xf32>, vector<32x1xf32> -> vector<32x2xf32>
      %c0_40 = arith.constant 0 : index
      %c0_41 = arith.constant 0 : index
      %c0_42 = arith.constant 0 : index
      %c0_43 = arith.constant 0 : index
      %68 = vector.load %arg5[%c0_40, %c0_41, %c0_42, %c0_43] : memref<1x1x32x2xf32, #tpu.memory_space<vmem>>, vector<1x1x32x2xf32>
      %69 = vector.shape_cast %68 : vector<1x1x32x2xf32> to vector<32x2xf32>
      %70 = vector.shape_cast %67 : vector<32x2xf32> to vector<1x1x32x2xf32>
      tpu.vector_store %arg5[%c0_40, %c0_41, %c0_42, %c0_43], %70 {strides = array<i32>} : memref<1x1x32x2xf32, #tpu.memory_space<vmem>>, vector<1x1x32x2xf32>,
    } else {
    }
    %c1_i32_5 = arith.constant 1 : i32
    %24 = arith.cmpi eq, %arg1, %c1_i32_5 : i32
    %25 = arith.extui %24 : i1 to i32
    %c0_i32_6 = arith.constant 0 : i32
    %26 = arith.cmpi ne, %25, %c0_i32_6 : i32
    scf.if %26 {
      %c0 = arith.constant 0 : index
      %c0_9 = arith.constant 0 : index
      %c1 = arith.constant 1 : index
      %33 = vector.load %arg2[%c0, %c0_9, %c1] : memref<1x64x42xbf16, #tpu.memory_space<vmem>>, vector<1x64x24xbf16>
      %34 = vector.shape_cast %33 : vector<1x64x24xbf16> to vector<64x24xbf16>
      %c0_10 = arith.constant 0 : index
      %c0_11 = arith.constant 0 : index
      %c0_12 = arith.constant 0 : index
      %c0_13 = arith.constant 0 : index
      %35 = vector.load %arg3[%c0_10, %c0_11, %c0_12, %c0_13] : memref<1x4x32x64xbf16, #tpu.memory_space<vmem>>, vector<1x1x32x64xbf16>
      %36 = vector.shape_cast %35 : vector<1x1x32x64xbf16> to vector<32x64xbf16>
      %cst = arith.constant dense<0.000000e+00> : vector<32x24xf32>
      %37 = tpu.matmul %36, %34, %cst {dimension_numbers = #tpu.dot_dimension_numbers<[1], [0], [0], [1], [0, 0, 1, 1], [], []>} : vector<32x64xbf16>, vector<64x24xbf16>, vector<32x24xf32> -> vector<32x24xf32>
      %c0_14 = arith.constant 0 : index
      %c0_15 = arith.constant 0 : index
      %c2 = arith.constant 2 : index
      %38 = vector.load %arg2[%c0_14, %c0_15, %c2] : memref<1x64x42xbf16, #tpu.memory_space<vmem>>, vector<1x64x24xbf16>
      %39 = vector.shape_cast %38 : vector<1x64x24xbf16> to vector<64x24xbf16>
      %c0_16 = arith.constant 0 : index
      %c1_17 = arith.constant 1 : index
      %c0_18 = arith.constant 0 : index
      %c0_19 = arith.constant 0 : index
      %40 = vector.load %arg3[%c0_16, %c1_17, %c0_18, %c0_19] : memref<1x4x32x64xbf16, #tpu.memory_space<vmem>>, vector<1x1x32x64xbf16>
      %41 = vector.shape_cast %40 : vector<1x1x32x64xbf16> to vector<32x64xbf16>
      %cst_20 = arith.constant dense<0.000000e+00> : vector<32x24xf32>
      %42 = tpu.matmul %41, %39, %cst_20 {dimension_numbers = #tpu.dot_dimension_numbers<[1], [0], [0], [1], [0, 0, 1, 1], [], []>} : vector<32x64xbf16>, vector<64x24xbf16>, vector<32x24xf32> -> vector<32x24xf32>
      %43 = arith.addf %37, %42 : vector<32x24xf32>
      %c0_21 = arith.constant 0 : index
      %c0_22 = arith.constant 0 : index
      %c7 = arith.constant 7 : index
      %44 = vector.load %arg2[%c0_21, %c0_22, %c7] : memref<1x64x42xbf16, #tpu.memory_space<vmem>>, vector<1x64x24xbf16>
      %45 = vector.shape_cast %44 : vector<1x64x24xbf16> to vector<64x24xbf16>
      %c0_23 = arith.constant 0 : index
      %c2_24 = arith.constant 2 : index
      %c0_25 = arith.constant 0 : index
      %c0_26 = arith.constant 0 : index
      %46 = vector.load %arg3[%c0_23, %c2_24, %c0_25, %c0_26] : memref<1x4x32x64xbf16, #tpu.memory_space<vmem>>, vector<1x1x32x64xbf16>
      %47 = vector.shape_cast %46 : vector<1x1x32x64xbf16> to vector<32x64xbf16>
      %cst_27 = arith.constant dense<0.000000e+00> : vector<32x24xf32>
      %48 = tpu.matmul %47, %45, %cst_27 {dimension_numbers = #tpu.dot_dimension_numbers<[1], [0], [0], [1], [0, 0, 1, 1], [], []>} : vector<32x64xbf16>, vector<64x24xbf16>, vector<32x24xf32> -> vector<32x24xf32>
      %49 = arith.addf %43, %48 : vector<32x24xf32>
      %c0_28 = arith.constant 0 : index
      %c0_29 = arith.constant 0 : index
      %c8 = arith.constant 8 : index
      %50 = vector.load %arg2[%c0_28, %c0_29, %c8] : memref<1x64x42xbf16, #tpu.memory_space<vmem>>, vector<1x64x24xbf16>
      %51 = vector.shape_cast %50 : vector<1x64x24xbf16> to vector<64x24xbf16>
      %c0_30 = arith.constant 0 : index
      %c3 = arith.constant 3 : index
      %c0_31 = arith.constant 0 : index
      %c0_32 = arith.constant 0 : index
      %52 = vector.load %arg3[%c0_30, %c3, %c0_31, %c0_32] : memref<1x4x32x64xbf16, #tpu.memory_space<vmem>>, vector<1x1x32x64xbf16>
      %53 = vector.shape_cast %52 : vector<1x1x32x64xbf16> to vector<32x64xbf16>
      %cst_33 = arith.constant dense<0.000000e+00> : vector<32x24xf32>
      %54 = tpu.matmul %53, %51, %cst_33 {dimension_numbers = #tpu.dot_dimension_numbers<[1], [0], [0], [1], [0, 0, 1, 1], [], []>} : vector<32x64xbf16>, vector<64x24xbf16>, vector<32x24xf32> -> vector<32x24xf32>
      %55 = arith.addf %49, %54 : vector<32x24xf32>
      %56 = vector.broadcast %20 : vector<1x24xf32> to vector<32x24xf32>
      %57 = arith.mulf %55, %56 : vector<32x24xf32>
      %cst_34 = arith.constant dense<0.000000e+00> : vector<32xf32>
      %58 = vector.multi_reduction <add>, %57, %cst_34 [1] : vector<32x24xf32> to vector<32xf32>
      %59 = vector.shape_cast %58 : vector<32xf32> to vector<32x1xf32>
      %60 = arith.mulf %55, %57 : vector<32x24xf32>
      %cst_35 = arith.constant dense<0.000000e+00> : vector<32xf32>
      %61 = vector.multi_reduction <add>, %60, %cst_35 [1] : vector<32x24xf32> to vector<32xf32>
      %62 = vector.shape_cast %61 : vector<32xf32> to vector<32x1xf32>
      %63 = arith.truncf %55 : vector<32x24xf32> to vector<32x24xbf16>
      %c0_36 = arith.constant 0 : index
      %c0_37 = arith.constant 0 : index
      %c0_38 = arith.constant 0 : index
      %c0_39 = arith.constant 0 : index
      %64 = vector.load %arg4[%c0_36, %c0_37, %c0_38, %c0_39] : memref<1x1x32x24xbf16, #tpu.memory_space<vmem>>, vector<1x1x32x24xbf16>
      %65 = vector.shape_cast %64 : vector<1x1x32x24xbf16> to vector<32x24xbf16>
      %66 = vector.shape_cast %63 : vector<32x24xbf16> to vector<1x1x32x24xbf16>
      tpu.vector_store %arg4[%c0_36, %c0_37, %c0_38, %c0_39], %66 {strides = array<i32>} : memref<1x1x32x24xbf16, #tpu.memory_space<vmem>>, vector<1x1x32x24xbf16>,
      %67 = tpu.concatenate %59, %62 in 1 : vector<32x1xf32>, vector<32x1xf32> -> vector<32x2xf32>
      %c0_40 = arith.constant 0 : index
      %c0_41 = arith.constant 0 : index
      %c0_42 = arith.constant 0 : index
      %c0_43 = arith.constant 0 : index
      %68 = vector.load %arg5[%c0_40, %c0_41, %c0_42, %c0_43] : memref<1x1x32x2xf32, #tpu.memory_space<vmem>>, vector<1x1x32x2xf32>
      %69 = vector.shape_cast %68 : vector<1x1x32x2xf32> to vector<32x2xf32>
      %70 = vector.shape_cast %67 : vector<32x2xf32> to vector<1x1x32x2xf32>
      tpu.vector_store %arg5[%c0_40, %c0_41, %c0_42, %c0_43], %70 {strides = array<i32>} : memref<1x1x32x2xf32, #tpu.memory_space<vmem>>, vector<1x1x32x2xf32>,
    } else {
    }
    %c2_i32 = arith.constant 2 : i32
    %27 = arith.cmpi eq, %arg1, %c2_i32 : i32
    %28 = arith.extui %27 : i1 to i32
    %c0_i32_7 = arith.constant 0 : i32
    %29 = arith.cmpi ne, %28, %c0_i32_7 : i32
    scf.if %29 {
      %c0 = arith.constant 0 : index
      %c0_9 = arith.constant 0 : index
      %c6 = arith.constant 6 : index
      %33 = vector.load %arg2[%c0, %c0_9, %c6] : memref<1x64x42xbf16, #tpu.memory_space<vmem>>, vector<1x64x24xbf16>
      %34 = vector.shape_cast %33 : vector<1x64x24xbf16> to vector<64x24xbf16>
      %c0_10 = arith.constant 0 : index
      %c0_11 = arith.constant 0 : index
      %c0_12 = arith.constant 0 : index
      %c0_13 = arith.constant 0 : index
      %35 = vector.load %arg3[%c0_10, %c0_11, %c0_12, %c0_13] : memref<1x4x32x64xbf16, #tpu.memory_space<vmem>>, vector<1x1x32x64xbf16>
      %36 = vector.shape_cast %35 : vector<1x1x32x64xbf16> to vector<32x64xbf16>
      %cst = arith.constant dense<0.000000e+00> : vector<32x24xf32>
      %37 = tpu.matmul %36, %34, %cst {dimension_numbers = #tpu.dot_dimension_numbers<[1], [0], [0], [1], [0, 0, 1, 1], [], []>} : vector<32x64xbf16>, vector<64x24xbf16>, vector<32x24xf32> -> vector<32x24xf32>
      %c0_14 = arith.constant 0 : index
      %c0_15 = arith.constant 0 : index
      %c7 = arith.constant 7 : index
      %38 = vector.load %arg2[%c0_14, %c0_15, %c7] : memref<1x64x42xbf16, #tpu.memory_space<vmem>>, vector<1x64x24xbf16>
      %39 = vector.shape_cast %38 : vector<1x64x24xbf16> to vector<64x24xbf16>
      %c0_16 = arith.constant 0 : index
      %c1 = arith.constant 1 : index
      %c0_17 = arith.constant 0 : index
      %c0_18 = arith.constant 0 : index
      %40 = vector.load %arg3[%c0_16, %c1, %c0_17, %c0_18] : memref<1x4x32x64xbf16, #tpu.memory_space<vmem>>, vector<1x1x32x64xbf16>
      %41 = vector.shape_cast %40 : vector<1x1x32x64xbf16> to vector<32x64xbf16>
      %cst_19 = arith.constant dense<0.000000e+00> : vector<32x24xf32>
      %42 = tpu.matmul %41, %39, %cst_19 {dimension_numbers = #tpu.dot_dimension_numbers<[1], [0], [0], [1], [0, 0, 1, 1], [], []>} : vector<32x64xbf16>, vector<64x24xbf16>, vector<32x24xf32> -> vector<32x24xf32>
      %43 = arith.addf %37, %42 : vector<32x24xf32>
      %c0_20 = arith.constant 0 : index
      %c0_21 = arith.constant 0 : index
      %c12 = arith.constant 12 : index
      %44 = vector.load %arg2[%c0_20, %c0_21, %c12] : memref<1x64x42xbf16, #tpu.memory_space<vmem>>, vector<1x64x24xbf16>
      %45 = vector.shape_cast %44 : vector<1x64x24xbf16> to vector<64x24xbf16>
      %c0_22 = arith.constant 0 : index
      %c2 = arith.constant 2 : index
      %c0_23 = arith.constant 0 : index
      %c0_24 = arith.constant 0 : index
      %46 = vector.load %arg3[%c0_22, %c2, %c0_23, %c0_24] : memref<1x4x32x64xbf16, #tpu.memory_space<vmem>>, vector<1x1x32x64xbf16>
      %47 = vector.shape_cast %46 : vector<1x1x32x64xbf16> to vector<32x64xbf16>
      %cst_25 = arith.constant dense<0.000000e+00> : vector<32x24xf32>
      %48 = tpu.matmul %47, %45, %cst_25 {dimension_numbers = #tpu.dot_dimension_numbers<[1], [0], [0], [1], [0, 0, 1, 1], [], []>} : vector<32x64xbf16>, vector<64x24xbf16>, vector<32x24xf32> -> vector<32x24xf32>
      %49 = arith.addf %43, %48 : vector<32x24xf32>
      %c0_26 = arith.constant 0 : index
      %c0_27 = arith.constant 0 : index
      %c13 = arith.constant 13 : index
      %50 = vector.load %arg2[%c0_26, %c0_27, %c13] : memref<1x64x42xbf16, #tpu.memory_space<vmem>>, vector<1x64x24xbf16>
      %51 = vector.shape_cast %50 : vector<1x64x24xbf16> to vector<64x24xbf16>
      %c0_28 = arith.constant 0 : index
      %c3 = arith.constant 3 : index
      %c0_29 = arith.constant 0 : index
      %c0_30 = arith.constant 0 : index
      %52 = vector.load %arg3[%c0_28, %c3, %c0_29, %c0_30] : memref<1x4x32x64xbf16, #tpu.memory_space<vmem>>, vector<1x1x32x64xbf16>
      %53 = vector.shape_cast %52 : vector<1x1x32x64xbf16> to vector<32x64xbf16>
      %cst_31 = arith.constant dense<0.000000e+00> : vector<32x24xf32>
      %54 = tpu.matmul %53, %51, %cst_31 {dimension_numbers = #tpu.dot_dimension_numbers<[1], [0], [0], [1], [0, 0, 1, 1], [], []>} : vector<32x64xbf16>, vector<64x24xbf16>, vector<32x24xf32> -> vector<32x24xf32>
      %55 = arith.addf %49, %54 : vector<32x24xf32>
      %56 = vector.broadcast %20 : vector<1x24xf32> to vector<32x24xf32>
      %57 = arith.mulf %55, %56 : vector<32x24xf32>
      %cst_32 = arith.constant dense<0.000000e+00> : vector<32xf32>
      %58 = vector.multi_reduction <add>, %57, %cst_32 [1] : vector<32x24xf32> to vector<32xf32>
      %59 = vector.shape_cast %58 : vector<32xf32> to vector<32x1xf32>
      %60 = arith.mulf %55, %57 : vector<32x24xf32>
      %cst_33 = arith.constant dense<0.000000e+00> : vector<32xf32>
      %61 = vector.multi_reduction <add>, %60, %cst_33 [1] : vector<32x24xf32> to vector<32xf32>
      %62 = vector.shape_cast %61 : vector<32xf32> to vector<32x1xf32>
      %63 = arith.truncf %55 : vector<32x24xf32> to vector<32x24xbf16>
      %c0_34 = arith.constant 0 : index
      %c0_35 = arith.constant 0 : index
      %c0_36 = arith.constant 0 : index
      %c0_37 = arith.constant 0 : index
      %64 = vector.load %arg4[%c0_34, %c0_35, %c0_36, %c0_37] : memref<1x1x32x24xbf16, #tpu.memory_space<vmem>>, vector<1x1x32x24xbf16>
      %65 = vector.shape_cast %64 : vector<1x1x32x24xbf16> to vector<32x24xbf16>
      %66 = vector.shape_cast %63 : vector<32x24xbf16> to vector<1x1x32x24xbf16>
      tpu.vector_store %arg4[%c0_34, %c0_35, %c0_36, %c0_37], %66 {strides = array<i32>} : memref<1x1x32x24xbf16, #tpu.memory_space<vmem>>, vector<1x1x32x24xbf16>,
      %67 = tpu.concatenate %59, %62 in 1 : vector<32x1xf32>, vector<32x1xf32> -> vector<32x2xf32>
      %c0_38 = arith.constant 0 : index
      %c0_39 = arith.constant 0 : index
      %c0_40 = arith.constant 0 : index
      %c0_41 = arith.constant 0 : index
      %68 = vector.load %arg5[%c0_38, %c0_39, %c0_40, %c0_41] : memref<1x1x32x2xf32, #tpu.memory_space<vmem>>, vector<1x1x32x2xf32>
      %69 = vector.shape_cast %68 : vector<1x1x32x2xf32> to vector<32x2xf32>
      %70 = vector.shape_cast %67 : vector<32x2xf32> to vector<1x1x32x2xf32>
      tpu.vector_store %arg5[%c0_38, %c0_39, %c0_40, %c0_41], %70 {strides = array<i32>} : memref<1x1x32x2xf32, #tpu.memory_space<vmem>>, vector<1x1x32x2xf32>,
    } else {
    }
    %c3_i32 = arith.constant 3 : i32
    %30 = arith.cmpi eq, %arg1, %c3_i32 : i32
    %31 = arith.extui %30 : i1 to i32
    %c0_i32_8 = arith.constant 0 : i32
    %32 = arith.cmpi ne, %31, %c0_i32_8 : i32
    scf.if %32 {
      %c0 = arith.constant 0 : index
      %c0_9 = arith.constant 0 : index
      %c7 = arith.constant 7 : index
      %33 = vector.load %arg2[%c0, %c0_9, %c7] : memref<1x64x42xbf16, #tpu.memory_space<vmem>>, vector<1x64x24xbf16>
      %34 = vector.shape_cast %33 : vector<1x64x24xbf16> to vector<64x24xbf16>
      %c0_10 = arith.constant 0 : index
      %c0_11 = arith.constant 0 : index
      %c0_12 = arith.constant 0 : index
      %c0_13 = arith.constant 0 : index
      %35 = vector.load %arg3[%c0_10, %c0_11, %c0_12, %c0_13] : memref<1x4x32x64xbf16, #tpu.memory_space<vmem>>, vector<1x1x32x64xbf16>
      %36 = vector.shape_cast %35 : vector<1x1x32x64xbf16> to vector<32x64xbf16>
      %cst = arith.constant dense<0.000000e+00> : vector<32x24xf32>
      %37 = tpu.matmul %36, %34, %cst {dimension_numbers = #tpu.dot_dimension_numbers<[1], [0], [0], [1], [0, 0, 1, 1], [], []>} : vector<32x64xbf16>, vector<64x24xbf16>, vector<32x24xf32> -> vector<32x24xf32>
      %c0_14 = arith.constant 0 : index
      %c0_15 = arith.constant 0 : index
      %c8 = arith.constant 8 : index
      %38 = vector.load %arg2[%c0_14, %c0_15, %c8] : memref<1x64x42xbf16, #tpu.memory_space<vmem>>, vector<1x64x24xbf16>
      %39 = vector.shape_cast %38 : vector<1x64x24xbf16> to vector<64x24xbf16>
      %c0_16 = arith.constant 0 : index
      %c1 = arith.constant 1 : index
      %c0_17 = arith.constant 0 : index
      %c0_18 = arith.constant 0 : index
      %40 = vector.load %arg3[%c0_16, %c1, %c0_17, %c0_18] : memref<1x4x32x64xbf16, #tpu.memory_space<vmem>>, vector<1x1x32x64xbf16>
      %41 = vector.shape_cast %40 : vector<1x1x32x64xbf16> to vector<32x64xbf16>
      %cst_19 = arith.constant dense<0.000000e+00> : vector<32x24xf32>
      %42 = tpu.matmul %41, %39, %cst_19 {dimension_numbers = #tpu.dot_dimension_numbers<[1], [0], [0], [1], [0, 0, 1, 1], [], []>} : vector<32x64xbf16>, vector<64x24xbf16>, vector<32x24xf32> -> vector<32x24xf32>
      %43 = arith.addf %37, %42 : vector<32x24xf32>
      %c0_20 = arith.constant 0 : index
      %c0_21 = arith.constant 0 : index
      %c13 = arith.constant 13 : index
      %44 = vector.load %arg2[%c0_20, %c0_21, %c13] : memref<1x64x42xbf16, #tpu.memory_space<vmem>>, vector<1x64x24xbf16>
      %45 = vector.shape_cast %44 : vector<1x64x24xbf16> to vector<64x24xbf16>
      %c0_22 = arith.constant 0 : index
      %c2 = arith.constant 2 : index
      %c0_23 = arith.constant 0 : index
      %c0_24 = arith.constant 0 : index
      %46 = vector.load %arg3[%c0_22, %c2, %c0_23, %c0_24] : memref<1x4x32x64xbf16, #tpu.memory_space<vmem>>, vector<1x1x32x64xbf16>
      %47 = vector.shape_cast %46 : vector<1x1x32x64xbf16> to vector<32x64xbf16>
      %cst_25 = arith.constant dense<0.000000e+00> : vector<32x24xf32>
      %48 = tpu.matmul %47, %45, %cst_25 {dimension_numbers = #tpu.dot_dimension_numbers<[1], [0], [0], [1], [0, 0, 1, 1], [], []>} : vector<32x64xbf16>, vector<64x24xbf16>, vector<32x24xf32> -> vector<32x24xf32>
      %49 = arith.addf %43, %48 : vector<32x24xf32>
      %c0_26 = arith.constant 0 : index
      %c0_27 = arith.constant 0 : index
      %c14 = arith.constant 14 : index
      %50 = vector.load %arg2[%c0_26, %c0_27, %c14] : memref<1x64x42xbf16, #tpu.memory_space<vmem>>, vector<1x64x24xbf16>
      %51 = vector.shape_cast %50 : vector<1x64x24xbf16> to vector<64x24xbf16>
      %c0_28 = arith.constant 0 : index
      %c3 = arith.constant 3 : index
      %c0_29 = arith.constant 0 : index
      %c0_30 = arith.constant 0 : index
      %52 = vector.load %arg3[%c0_28, %c3, %c0_29, %c0_30] : memref<1x4x32x64xbf16, #tpu.memory_space<vmem>>, vector<1x1x32x64xbf16>
      %53 = vector.shape_cast %52 : vector<1x1x32x64xbf16> to vector<32x64xbf16>
      %cst_31 = arith.constant dense<0.000000e+00> : vector<32x24xf32>
      %54 = tpu.matmul %53, %51, %cst_31 {dimension_numbers = #tpu.dot_dimension_numbers<[1], [0], [0], [1], [0, 0, 1, 1], [], []>} : vector<32x64xbf16>, vector<64x24xbf16>, vector<32x24xf32> -> vector<32x24xf32>
      %55 = arith.addf %49, %54 : vector<32x24xf32>
      %56 = vector.broadcast %20 : vector<1x24xf32> to vector<32x24xf32>
      %57 = arith.mulf %55, %56 : vector<32x24xf32>
      %cst_32 = arith.constant dense<0.000000e+00> : vector<32xf32>
      %58 = vector.multi_reduction <add>, %57, %cst_32 [1] : vector<32x24xf32> to vector<32xf32>
      %59 = vector.shape_cast %58 : vector<32xf32> to vector<32x1xf32>
      %60 = arith.mulf %55, %57 : vector<32x24xf32>
      %cst_33 = arith.constant dense<0.000000e+00> : vector<32xf32>
      %61 = vector.multi_reduction <add>, %60, %cst_33 [1] : vector<32x24xf32> to vector<32xf32>
      %62 = vector.shape_cast %61 : vector<32xf32> to vector<32x1xf32>
      %63 = arith.truncf %55 : vector<32x24xf32> to vector<32x24xbf16>
      %c0_34 = arith.constant 0 : index
      %c0_35 = arith.constant 0 : index
      %c0_36 = arith.constant 0 : index
      %c0_37 = arith.constant 0 : index
      %64 = vector.load %arg4[%c0_34, %c0_35, %c0_36, %c0_37] : memref<1x1x32x24xbf16, #tpu.memory_space<vmem>>, vector<1x1x32x24xbf16>
      %65 = vector.shape_cast %64 : vector<1x1x32x24xbf16> to vector<32x24xbf16>
      %66 = vector.shape_cast %63 : vector<32x24xbf16> to vector<1x1x32x24xbf16>
      tpu.vector_store %arg4[%c0_34, %c0_35, %c0_36, %c0_37], %66 {strides = array<i32>} : memref<1x1x32x24xbf16, #tpu.memory_space<vmem>>, vector<1x1x32x24xbf16>,
      %67 = tpu.concatenate %59, %62 in 1 : vector<32x1xf32>, vector<32x1xf32> -> vector<32x2xf32>
      %c0_38 = arith.constant 0 : index
      %c0_39 = arith.constant 0 : index
      %c0_40 = arith.constant 0 : index
      %c0_41 = arith.constant 0 : index
      %68 = vector.load %arg5[%c0_38, %c0_39, %c0_40, %c0_41] : memref<1x1x32x2xf32, #tpu.memory_space<vmem>>, vector<1x1x32x2xf32>
      %69 = vector.shape_cast %68 : vector<1x1x32x2xf32> to vector<32x2xf32>
      %70 = vector.shape_cast %67 : vector<32x2xf32> to vector<1x1x32x2xf32>
      tpu.vector_store %arg5[%c0_38, %c0_39, %c0_40, %c0_41], %70 {strides = array<i32>} : memref<1x1x32x2xf32, #tpu.memory_space<vmem>>, vector<1x1x32x2xf32>,
    } else {
    }
    return
  }
  func.func @transform_0(%arg0: i32, %arg1: i32) -> (i32, i32, i32) {
    %c0_i32 = arith.constant 0 : i32
    %c0_i32_0 = arith.constant 0 : i32
    %c0_i32_1 = arith.constant 0 : i32
    return %arg0, %c0_i32, %c0_i32_0 : i32, i32, i32
  }
  func.func @transform_1(%arg0: i32, %arg1: i32) -> (i32, i32, i32, i32) {
    %c0_i32 = arith.constant 0 : i32
    %c0_i32_0 = arith.constant 0 : i32
    %c0_i32_1 = arith.constant 0 : i32
    %c0_i32_2 = arith.constant 0 : i32
    return %arg1, %c0_i32, %c0_i32_0, %c0_i32_1 : i32, i32, i32, i32
  }
  func.func @transform_2(%arg0: i32, %arg1: i32) -> (i32, i32, i32, i32) {
    %c0_i32 = arith.constant 0 : i32
    %c0_i32_0 = arith.constant 0 : i32
    %c0_i32_1 = arith.constant 0 : i32
    return %arg0, %arg1, %c0_i32, %c0_i32_0 : i32, i32, i32, i32
  }
  func.func @transform_3(%arg0: i32, %arg1: i32) -> (i32, i32, i32, i32) {
    %c0_i32 = arith.constant 0 : i32
    %c0_i32_0 = arith.constant 0 : i32
    %c0_i32_1 = arith.constant 0 : i32
    return %arg0, %arg1, %c0_i32, %c0_i32_0 : i32, i32, i32, i32
  }
}

module attributes {stable_mosaic.version = 11 : i64} {
  func.func @_bn_relu_kernel(%arg0: i32, %arg1: i32, %arg2: memref<1x1x32x24xbf16, #tpu.memory_space<vmem>>, %arg3: memref<32x1xf32, #tpu.memory_space<vmem>>, %arg4: memref<32x1xf32, #tpu.memory_space<vmem>>, %arg5: memref<1x1x32x24xbf16, #tpu.memory_space<vmem>>) attributes {dimension_semantics = [#tpu.dimension_semantics<parallel>, #tpu.dimension_semantics<parallel>], iteration_bounds = array<i64: 2, 4>, scalar_prefetch = 0 : i64, scratch_operands = 0 : i64, tpu.core_type = #tpu.core_type<tc>, window_params = [{transform_indices = @transform_0, window_bounds = array<i64: 1, 1, 32, 24>}, {pipeline_mode = #tpu.pipeline_mode<synchronous>, transform_indices = @transform_1, window_bounds = array<i64: 32, 1>}, {pipeline_mode = #tpu.pipeline_mode<synchronous>, transform_indices = @transform_2, window_bounds = array<i64: 32, 1>}, {transform_indices = @transform_3, window_bounds = array<i64: 1, 1, 32, 24>}]} {
    %c0 = arith.constant 0 : index
    %c0_0 = arith.constant 0 : index
    %c0_1 = arith.constant 0 : index
    %c0_2 = arith.constant 0 : index
    %0 = vector.load %arg2[%c0, %c0_0, %c0_1, %c0_2] : memref<1x1x32x24xbf16, #tpu.memory_space<vmem>>, vector<1x1x32x24xbf16>
    %1 = vector.shape_cast %0 : vector<1x1x32x24xbf16> to vector<32x24xbf16>
    %2 = arith.extf %1 : vector<32x24xbf16> to vector<32x24xf32>
    %c0_3 = arith.constant 0 : index
    %c0_4 = arith.constant 0 : index
    %3 = vector.load %arg3[%c0_3, %c0_4] : memref<32x1xf32, #tpu.memory_space<vmem>>, vector<32x1xf32>
    %4 = vector.broadcast %3 : vector<32x1xf32> to vector<32x24xf32>
    %5 = arith.mulf %2, %4 : vector<32x24xf32>
    %c0_5 = arith.constant 0 : index
    %c0_6 = arith.constant 0 : index
    %6 = vector.load %arg4[%c0_5, %c0_6] : memref<32x1xf32, #tpu.memory_space<vmem>>, vector<32x1xf32>
    %7 = vector.broadcast %6 : vector<32x1xf32> to vector<32x24xf32>
    %8 = arith.addf %5, %7 : vector<32x24xf32>
    %cst = arith.constant 0.000000e+00 : f32
    %9 = vector.broadcast %cst : f32 to vector<32x24xf32>
    %10 = arith.maximumf %8, %9 : vector<32x24xf32>
    %11 = arith.truncf %10 : vector<32x24xf32> to vector<32x24xbf16>
    %c0_7 = arith.constant 0 : index
    %c0_8 = arith.constant 0 : index
    %c0_9 = arith.constant 0 : index
    %c0_10 = arith.constant 0 : index
    %12 = vector.load %arg5[%c0_7, %c0_8, %c0_9, %c0_10] : memref<1x1x32x24xbf16, #tpu.memory_space<vmem>>, vector<1x1x32x24xbf16>
    %13 = vector.shape_cast %12 : vector<1x1x32x24xbf16> to vector<32x24xbf16>
    %14 = vector.shape_cast %11 : vector<32x24xbf16> to vector<1x1x32x24xbf16>
    tpu.vector_store %arg5[%c0_7, %c0_8, %c0_9, %c0_10], %14 {strides = array<i32>} : memref<1x1x32x24xbf16, #tpu.memory_space<vmem>>, vector<1x1x32x24xbf16>,
    return
  }
  func.func @transform_0(%arg0: i32, %arg1: i32) -> (i32, i32, i32, i32) {
    %c0_i32 = arith.constant 0 : i32
    %c0_i32_0 = arith.constant 0 : i32
    %c0_i32_1 = arith.constant 0 : i32
    return %arg0, %arg1, %c0_i32, %c0_i32_0 : i32, i32, i32, i32
  }
  func.func @transform_1(%arg0: i32, %arg1: i32) -> (i32, i32) {
    %c0_i32 = arith.constant 0 : i32
    %c0_i32_0 = arith.constant 0 : i32
    %c0_i32_1 = arith.constant 0 : i32
    return %c0_i32, %c0_i32_0 : i32, i32
  }
  func.func @transform_2(%arg0: i32, %arg1: i32) -> (i32, i32) {
    %c0_i32 = arith.constant 0 : i32
    %c0_i32_0 = arith.constant 0 : i32
    %c0_i32_1 = arith.constant 0 : i32
    return %c0_i32, %c0_i32_0 : i32, i32
  }
  func.func @transform_3(%arg0: i32, %arg1: i32) -> (i32, i32, i32, i32) {
    %c0_i32 = arith.constant 0 : i32
    %c0_i32_0 = arith.constant 0 : i32
    %c0_i32_1 = arith.constant 0 : i32
    return %arg0, %arg1, %c0_i32, %c0_i32_0 : i32, i32, i32, i32
  }
}

module attributes {stable_mosaic.version = 11 : i64} {
  func.func @_convt_phase_kernel(%arg0: i32, %arg1: i32, %arg2: memref<1x32x110xbf16, #tpu.memory_space<vmem>>, %arg3: memref<1x4x16x32xbf16, #tpu.memory_space<vmem>>, %arg4: memref<1x1x16x80xbf16, #tpu.memory_space<vmem>>, %arg5: memref<1x1x16x2xf32, #tpu.memory_space<vmem>>) attributes {dimension_semantics = [#tpu.dimension_semantics<parallel>, #tpu.dimension_semantics<parallel>], iteration_bounds = array<i64: 2, 4>, scalar_prefetch = 0 : i64, scratch_operands = 0 : i64, tpu.core_type = #tpu.core_type<tc>, window_params = [{transform_indices = @transform_0, window_bounds = array<i64: 1, 32, 110>}, {transform_indices = @transform_1, window_bounds = array<i64: 1, 4, 16, 32>}, {transform_indices = @transform_2, window_bounds = array<i64: 1, 1, 16, 80>}, {transform_indices = @transform_3, window_bounds = array<i64: 1, 1, 16, 2>}]} {
    %0 = tpu.iota {dimensions = array<i32: 1>} : vector<1x80xi32>
    %c10_i32 = arith.constant 10 : i32
    %c0_i32 = arith.constant 0 : i32
    %1 = arith.cmpi eq, %c10_i32, %c0_i32 : i32
    %c1_i32 = arith.constant 1 : i32
    %2 = arith.select %1, %c1_i32, %c10_i32 : i32
    %3 = vector.broadcast %2 : i32 to vector<1x80xi32>
    %4 = arith.remsi %0, %3 : vector<1x80xi32>
    %c0_i32_0 = arith.constant 0 : i32
    %5 = vector.broadcast %c0_i32_0 : i32 to vector<1x80xi32>
    %6 = arith.cmpi ne, %4, %5 : vector<1x80xi32>
    %c0_i32_1 = arith.constant 0 : i32
    %7 = vector.broadcast %c0_i32_1 : i32 to vector<1x80xi32>
    %8 = arith.cmpi slt, %4, %7 : vector<1x80xi32>
    %c0_i32_2 = arith.constant 0 : i32
    %9 = arith.cmpi slt, %2, %c0_i32_2 : i32
    %10 = vector.broadcast %9 : i1 to vector<1x80xi1>
    %11 = vector.broadcast %10 : vector<1x80xi1> to vector<1x80xi1>
    %12 = arith.xori %8, %11 : vector<1x80xi1>
    %13 = arith.andi %12, %6 : vector<1x80xi1>
    %14 = vector.broadcast %2 : i32 to vector<1x80xi32>
    %15 = arith.addi %4, %14 : vector<1x80xi32>
    %16 = arith.select %13, %15, %4 : vector<1x80xi1>, vector<1x80xi32>
    %c8_i32 = arith.constant 8 : i32
    %17 = vector.broadcast %c8_i32 : i32 to vector<1x80xi32>
    %18 = arith.cmpi slt, %16, %17 : vector<1x80xi32>
    %19 = arith.extui %18 : vector<1x80xi1> to vector<1x80xi32>
    %20 = arith.sitofp %19 : vector<1x80xi32> to vector<1x80xf32>
    %c0_i32_3 = arith.constant 0 : i32
    %21 = arith.cmpi eq, %arg1, %c0_i32_3 : i32
    %22 = arith.extui %21 : i1 to i32
    %c0_i32_4 = arith.constant 0 : i32
    %23 = arith.cmpi ne, %22, %c0_i32_4 : i32
    scf.if %23 {
      %c0 = arith.constant 0 : index
      %c0_9 = arith.constant 0 : index
      %c0_10 = arith.constant 0 : index
      %33 = vector.load %arg2[%c0, %c0_9, %c0_10] : memref<1x32x110xbf16, #tpu.memory_space<vmem>>, vector<1x32x80xbf16>
      %34 = vector.shape_cast %33 : vector<1x32x80xbf16> to vector<32x80xbf16>
      %c0_11 = arith.constant 0 : index
      %c0_12 = arith.constant 0 : index
      %c0_13 = arith.constant 0 : index
      %c0_14 = arith.constant 0 : index
      %35 = vector.load %arg3[%c0_11, %c0_12, %c0_13, %c0_14] : memref<1x4x16x32xbf16, #tpu.memory_space<vmem>>, vector<1x1x16x32xbf16>
      %36 = vector.shape_cast %35 : vector<1x1x16x32xbf16> to vector<16x32xbf16>
      %cst = arith.constant dense<0.000000e+00> : vector<16x80xf32>
      %37 = tpu.matmul %36, %34, %cst {dimension_numbers = #tpu.dot_dimension_numbers<[1], [0], [0], [1], [0, 0, 1, 1], [], []>} : vector<16x32xbf16>, vector<32x80xbf16>, vector<16x80xf32> -> vector<16x80xf32>
      %c0_15 = arith.constant 0 : index
      %c0_16 = arith.constant 0 : index
      %c1 = arith.constant 1 : index
      %38 = vector.load %arg2[%c0_15, %c0_16, %c1] : memref<1x32x110xbf16, #tpu.memory_space<vmem>>, vector<1x32x80xbf16>
      %39 = vector.shape_cast %38 : vector<1x32x80xbf16> to vector<32x80xbf16>
      %c0_17 = arith.constant 0 : index
      %c1_18 = arith.constant 1 : index
      %c0_19 = arith.constant 0 : index
      %c0_20 = arith.constant 0 : index
      %40 = vector.load %arg3[%c0_17, %c1_18, %c0_19, %c0_20] : memref<1x4x16x32xbf16, #tpu.memory_space<vmem>>, vector<1x1x16x32xbf16>
      %41 = vector.shape_cast %40 : vector<1x1x16x32xbf16> to vector<16x32xbf16>
      %cst_21 = arith.constant dense<0.000000e+00> : vector<16x80xf32>
      %42 = tpu.matmul %41, %39, %cst_21 {dimension_numbers = #tpu.dot_dimension_numbers<[1], [0], [0], [1], [0, 0, 1, 1], [], []>} : vector<16x32xbf16>, vector<32x80xbf16>, vector<16x80xf32> -> vector<16x80xf32>
      %43 = arith.addf %37, %42 : vector<16x80xf32>
      %c0_22 = arith.constant 0 : index
      %c0_23 = arith.constant 0 : index
      %c10 = arith.constant 10 : index
      %44 = vector.load %arg2[%c0_22, %c0_23, %c10] : memref<1x32x110xbf16, #tpu.memory_space<vmem>>, vector<1x32x80xbf16>
      %45 = vector.shape_cast %44 : vector<1x32x80xbf16> to vector<32x80xbf16>
      %c0_24 = arith.constant 0 : index
      %c2 = arith.constant 2 : index
      %c0_25 = arith.constant 0 : index
      %c0_26 = arith.constant 0 : index
      %46 = vector.load %arg3[%c0_24, %c2, %c0_25, %c0_26] : memref<1x4x16x32xbf16, #tpu.memory_space<vmem>>, vector<1x1x16x32xbf16>
      %47 = vector.shape_cast %46 : vector<1x1x16x32xbf16> to vector<16x32xbf16>
      %cst_27 = arith.constant dense<0.000000e+00> : vector<16x80xf32>
      %48 = tpu.matmul %47, %45, %cst_27 {dimension_numbers = #tpu.dot_dimension_numbers<[1], [0], [0], [1], [0, 0, 1, 1], [], []>} : vector<16x32xbf16>, vector<32x80xbf16>, vector<16x80xf32> -> vector<16x80xf32>
      %49 = arith.addf %43, %48 : vector<16x80xf32>
      %c0_28 = arith.constant 0 : index
      %c0_29 = arith.constant 0 : index
      %c11 = arith.constant 11 : index
      %50 = vector.load %arg2[%c0_28, %c0_29, %c11] : memref<1x32x110xbf16, #tpu.memory_space<vmem>>, vector<1x32x80xbf16>
      %51 = vector.shape_cast %50 : vector<1x32x80xbf16> to vector<32x80xbf16>
      %c0_30 = arith.constant 0 : index
      %c3 = arith.constant 3 : index
      %c0_31 = arith.constant 0 : index
      %c0_32 = arith.constant 0 : index
      %52 = vector.load %arg3[%c0_30, %c3, %c0_31, %c0_32] : memref<1x4x16x32xbf16, #tpu.memory_space<vmem>>, vector<1x1x16x32xbf16>
      %53 = vector.shape_cast %52 : vector<1x1x16x32xbf16> to vector<16x32xbf16>
      %cst_33 = arith.constant dense<0.000000e+00> : vector<16x80xf32>
      %54 = tpu.matmul %53, %51, %cst_33 {dimension_numbers = #tpu.dot_dimension_numbers<[1], [0], [0], [1], [0, 0, 1, 1], [], []>} : vector<16x32xbf16>, vector<32x80xbf16>, vector<16x80xf32> -> vector<16x80xf32>
      %55 = arith.addf %49, %54 : vector<16x80xf32>
      %56 = vector.broadcast %20 : vector<1x80xf32> to vector<16x80xf32>
      %57 = arith.mulf %55, %56 : vector<16x80xf32>
      %cst_34 = arith.constant dense<0.000000e+00> : vector<16xf32>
      %58 = vector.multi_reduction <add>, %57, %cst_34 [1] : vector<16x80xf32> to vector<16xf32>
      %59 = vector.shape_cast %58 : vector<16xf32> to vector<16x1xf32>
      %60 = arith.mulf %55, %57 : vector<16x80xf32>
      %cst_35 = arith.constant dense<0.000000e+00> : vector<16xf32>
      %61 = vector.multi_reduction <add>, %60, %cst_35 [1] : vector<16x80xf32> to vector<16xf32>
      %62 = vector.shape_cast %61 : vector<16xf32> to vector<16x1xf32>
      %63 = arith.truncf %55 : vector<16x80xf32> to vector<16x80xbf16>
      %c0_36 = arith.constant 0 : index
      %c0_37 = arith.constant 0 : index
      %c0_38 = arith.constant 0 : index
      %c0_39 = arith.constant 0 : index
      %64 = vector.load %arg4[%c0_36, %c0_37, %c0_38, %c0_39] : memref<1x1x16x80xbf16, #tpu.memory_space<vmem>>, vector<1x1x16x80xbf16>
      %65 = vector.shape_cast %64 : vector<1x1x16x80xbf16> to vector<16x80xbf16>
      %66 = vector.shape_cast %63 : vector<16x80xbf16> to vector<1x1x16x80xbf16>
      tpu.vector_store %arg4[%c0_36, %c0_37, %c0_38, %c0_39], %66 {strides = array<i32>} : memref<1x1x16x80xbf16, #tpu.memory_space<vmem>>, vector<1x1x16x80xbf16>,
      %67 = tpu.concatenate %59, %62 in 1 : vector<16x1xf32>, vector<16x1xf32> -> vector<16x2xf32>
      %c0_40 = arith.constant 0 : index
      %c0_41 = arith.constant 0 : index
      %c0_42 = arith.constant 0 : index
      %c0_43 = arith.constant 0 : index
      %68 = vector.load %arg5[%c0_40, %c0_41, %c0_42, %c0_43] : memref<1x1x16x2xf32, #tpu.memory_space<vmem>>, vector<1x1x16x2xf32>
      %69 = vector.shape_cast %68 : vector<1x1x16x2xf32> to vector<16x2xf32>
      %70 = vector.shape_cast %67 : vector<16x2xf32> to vector<1x1x16x2xf32>
      tpu.vector_store %arg5[%c0_40, %c0_41, %c0_42, %c0_43], %70 {strides = array<i32>} : memref<1x1x16x2xf32, #tpu.memory_space<vmem>>, vector<1x1x16x2xf32>,
    } else {
    }
    %c1_i32_5 = arith.constant 1 : i32
    %24 = arith.cmpi eq, %arg1, %c1_i32_5 : i32
    %25 = arith.extui %24 : i1 to i32
    %c0_i32_6 = arith.constant 0 : i32
    %26 = arith.cmpi ne, %25, %c0_i32_6 : i32
    scf.if %26 {
      %c0 = arith.constant 0 : index
      %c0_9 = arith.constant 0 : index
      %c1 = arith.constant 1 : index
      %33 = vector.load %arg2[%c0, %c0_9, %c1] : memref<1x32x110xbf16, #tpu.memory_space<vmem>>, vector<1x32x80xbf16>
      %34 = vector.shape_cast %33 : vector<1x32x80xbf16> to vector<32x80xbf16>
      %c0_10 = arith.constant 0 : index
      %c0_11 = arith.constant 0 : index
      %c0_12 = arith.constant 0 : index
      %c0_13 = arith.constant 0 : index
      %35 = vector.load %arg3[%c0_10, %c0_11, %c0_12, %c0_13] : memref<1x4x16x32xbf16, #tpu.memory_space<vmem>>, vector<1x1x16x32xbf16>
      %36 = vector.shape_cast %35 : vector<1x1x16x32xbf16> to vector<16x32xbf16>
      %cst = arith.constant dense<0.000000e+00> : vector<16x80xf32>
      %37 = tpu.matmul %36, %34, %cst {dimension_numbers = #tpu.dot_dimension_numbers<[1], [0], [0], [1], [0, 0, 1, 1], [], []>} : vector<16x32xbf16>, vector<32x80xbf16>, vector<16x80xf32> -> vector<16x80xf32>
      %c0_14 = arith.constant 0 : index
      %c0_15 = arith.constant 0 : index
      %c2 = arith.constant 2 : index
      %38 = vector.load %arg2[%c0_14, %c0_15, %c2] : memref<1x32x110xbf16, #tpu.memory_space<vmem>>, vector<1x32x80xbf16>
      %39 = vector.shape_cast %38 : vector<1x32x80xbf16> to vector<32x80xbf16>
      %c0_16 = arith.constant 0 : index
      %c1_17 = arith.constant 1 : index
      %c0_18 = arith.constant 0 : index
      %c0_19 = arith.constant 0 : index
      %40 = vector.load %arg3[%c0_16, %c1_17, %c0_18, %c0_19] : memref<1x4x16x32xbf16, #tpu.memory_space<vmem>>, vector<1x1x16x32xbf16>
      %41 = vector.shape_cast %40 : vector<1x1x16x32xbf16> to vector<16x32xbf16>
      %cst_20 = arith.constant dense<0.000000e+00> : vector<16x80xf32>
      %42 = tpu.matmul %41, %39, %cst_20 {dimension_numbers = #tpu.dot_dimension_numbers<[1], [0], [0], [1], [0, 0, 1, 1], [], []>} : vector<16x32xbf16>, vector<32x80xbf16>, vector<16x80xf32> -> vector<16x80xf32>
      %43 = arith.addf %37, %42 : vector<16x80xf32>
      %c0_21 = arith.constant 0 : index
      %c0_22 = arith.constant 0 : index
      %c11 = arith.constant 11 : index
      %44 = vector.load %arg2[%c0_21, %c0_22, %c11] : memref<1x32x110xbf16, #tpu.memory_space<vmem>>, vector<1x32x80xbf16>
      %45 = vector.shape_cast %44 : vector<1x32x80xbf16> to vector<32x80xbf16>
      %c0_23 = arith.constant 0 : index
      %c2_24 = arith.constant 2 : index
      %c0_25 = arith.constant 0 : index
      %c0_26 = arith.constant 0 : index
      %46 = vector.load %arg3[%c0_23, %c2_24, %c0_25, %c0_26] : memref<1x4x16x32xbf16, #tpu.memory_space<vmem>>, vector<1x1x16x32xbf16>
      %47 = vector.shape_cast %46 : vector<1x1x16x32xbf16> to vector<16x32xbf16>
      %cst_27 = arith.constant dense<0.000000e+00> : vector<16x80xf32>
      %48 = tpu.matmul %47, %45, %cst_27 {dimension_numbers = #tpu.dot_dimension_numbers<[1], [0], [0], [1], [0, 0, 1, 1], [], []>} : vector<16x32xbf16>, vector<32x80xbf16>, vector<16x80xf32> -> vector<16x80xf32>
      %49 = arith.addf %43, %48 : vector<16x80xf32>
      %c0_28 = arith.constant 0 : index
      %c0_29 = arith.constant 0 : index
      %c12 = arith.constant 12 : index
      %50 = vector.load %arg2[%c0_28, %c0_29, %c12] : memref<1x32x110xbf16, #tpu.memory_space<vmem>>, vector<1x32x80xbf16>
      %51 = vector.shape_cast %50 : vector<1x32x80xbf16> to vector<32x80xbf16>
      %c0_30 = arith.constant 0 : index
      %c3 = arith.constant 3 : index
      %c0_31 = arith.constant 0 : index
      %c0_32 = arith.constant 0 : index
      %52 = vector.load %arg3[%c0_30, %c3, %c0_31, %c0_32] : memref<1x4x16x32xbf16, #tpu.memory_space<vmem>>, vector<1x1x16x32xbf16>
      %53 = vector.shape_cast %52 : vector<1x1x16x32xbf16> to vector<16x32xbf16>
      %cst_33 = arith.constant dense<0.000000e+00> : vector<16x80xf32>
      %54 = tpu.matmul %53, %51, %cst_33 {dimension_numbers = #tpu.dot_dimension_numbers<[1], [0], [0], [1], [0, 0, 1, 1], [], []>} : vector<16x32xbf16>, vector<32x80xbf16>, vector<16x80xf32> -> vector<16x80xf32>
      %55 = arith.addf %49, %54 : vector<16x80xf32>
      %56 = vector.broadcast %20 : vector<1x80xf32> to vector<16x80xf32>
      %57 = arith.mulf %55, %56 : vector<16x80xf32>
      %cst_34 = arith.constant dense<0.000000e+00> : vector<16xf32>
      %58 = vector.multi_reduction <add>, %57, %cst_34 [1] : vector<16x80xf32> to vector<16xf32>
      %59 = vector.shape_cast %58 : vector<16xf32> to vector<16x1xf32>
      %60 = arith.mulf %55, %57 : vector<16x80xf32>
      %cst_35 = arith.constant dense<0.000000e+00> : vector<16xf32>
      %61 = vector.multi_reduction <add>, %60, %cst_35 [1] : vector<16x80xf32> to vector<16xf32>
      %62 = vector.shape_cast %61 : vector<16xf32> to vector<16x1xf32>
      %63 = arith.truncf %55 : vector<16x80xf32> to vector<16x80xbf16>
      %c0_36 = arith.constant 0 : index
      %c0_37 = arith.constant 0 : index
      %c0_38 = arith.constant 0 : index
      %c0_39 = arith.constant 0 : index
      %64 = vector.load %arg4[%c0_36, %c0_37, %c0_38, %c0_39] : memref<1x1x16x80xbf16, #tpu.memory_space<vmem>>, vector<1x1x16x80xbf16>
      %65 = vector.shape_cast %64 : vector<1x1x16x80xbf16> to vector<16x80xbf16>
      %66 = vector.shape_cast %63 : vector<16x80xbf16> to vector<1x1x16x80xbf16>
      tpu.vector_store %arg4[%c0_36, %c0_37, %c0_38, %c0_39], %66 {strides = array<i32>} : memref<1x1x16x80xbf16, #tpu.memory_space<vmem>>, vector<1x1x16x80xbf16>,
      %67 = tpu.concatenate %59, %62 in 1 : vector<16x1xf32>, vector<16x1xf32> -> vector<16x2xf32>
      %c0_40 = arith.constant 0 : index
      %c0_41 = arith.constant 0 : index
      %c0_42 = arith.constant 0 : index
      %c0_43 = arith.constant 0 : index
      %68 = vector.load %arg5[%c0_40, %c0_41, %c0_42, %c0_43] : memref<1x1x16x2xf32, #tpu.memory_space<vmem>>, vector<1x1x16x2xf32>
      %69 = vector.shape_cast %68 : vector<1x1x16x2xf32> to vector<16x2xf32>
      %70 = vector.shape_cast %67 : vector<16x2xf32> to vector<1x1x16x2xf32>
      tpu.vector_store %arg5[%c0_40, %c0_41, %c0_42, %c0_43], %70 {strides = array<i32>} : memref<1x1x16x2xf32, #tpu.memory_space<vmem>>, vector<1x1x16x2xf32>,
    } else {
    }
    %c2_i32 = arith.constant 2 : i32
    %27 = arith.cmpi eq, %arg1, %c2_i32 : i32
    %28 = arith.extui %27 : i1 to i32
    %c0_i32_7 = arith.constant 0 : i32
    %29 = arith.cmpi ne, %28, %c0_i32_7 : i32
    scf.if %29 {
      %c0 = arith.constant 0 : index
      %c0_9 = arith.constant 0 : index
      %c10 = arith.constant 10 : index
      %33 = vector.load %arg2[%c0, %c0_9, %c10] : memref<1x32x110xbf16, #tpu.memory_space<vmem>>, vector<1x32x80xbf16>
      %34 = vector.shape_cast %33 : vector<1x32x80xbf16> to vector<32x80xbf16>
      %c0_10 = arith.constant 0 : index
      %c0_11 = arith.constant 0 : index
      %c0_12 = arith.constant 0 : index
      %c0_13 = arith.constant 0 : index
      %35 = vector.load %arg3[%c0_10, %c0_11, %c0_12, %c0_13] : memref<1x4x16x32xbf16, #tpu.memory_space<vmem>>, vector<1x1x16x32xbf16>
      %36 = vector.shape_cast %35 : vector<1x1x16x32xbf16> to vector<16x32xbf16>
      %cst = arith.constant dense<0.000000e+00> : vector<16x80xf32>
      %37 = tpu.matmul %36, %34, %cst {dimension_numbers = #tpu.dot_dimension_numbers<[1], [0], [0], [1], [0, 0, 1, 1], [], []>} : vector<16x32xbf16>, vector<32x80xbf16>, vector<16x80xf32> -> vector<16x80xf32>
      %c0_14 = arith.constant 0 : index
      %c0_15 = arith.constant 0 : index
      %c11 = arith.constant 11 : index
      %38 = vector.load %arg2[%c0_14, %c0_15, %c11] : memref<1x32x110xbf16, #tpu.memory_space<vmem>>, vector<1x32x80xbf16>
      %39 = vector.shape_cast %38 : vector<1x32x80xbf16> to vector<32x80xbf16>
      %c0_16 = arith.constant 0 : index
      %c1 = arith.constant 1 : index
      %c0_17 = arith.constant 0 : index
      %c0_18 = arith.constant 0 : index
      %40 = vector.load %arg3[%c0_16, %c1, %c0_17, %c0_18] : memref<1x4x16x32xbf16, #tpu.memory_space<vmem>>, vector<1x1x16x32xbf16>
      %41 = vector.shape_cast %40 : vector<1x1x16x32xbf16> to vector<16x32xbf16>
      %cst_19 = arith.constant dense<0.000000e+00> : vector<16x80xf32>
      %42 = tpu.matmul %41, %39, %cst_19 {dimension_numbers = #tpu.dot_dimension_numbers<[1], [0], [0], [1], [0, 0, 1, 1], [], []>} : vector<16x32xbf16>, vector<32x80xbf16>, vector<16x80xf32> -> vector<16x80xf32>
      %43 = arith.addf %37, %42 : vector<16x80xf32>
      %c0_20 = arith.constant 0 : index
      %c0_21 = arith.constant 0 : index
      %c20 = arith.constant 20 : index
      %44 = vector.load %arg2[%c0_20, %c0_21, %c20] : memref<1x32x110xbf16, #tpu.memory_space<vmem>>, vector<1x32x80xbf16>
      %45 = vector.shape_cast %44 : vector<1x32x80xbf16> to vector<32x80xbf16>
      %c0_22 = arith.constant 0 : index
      %c2 = arith.constant 2 : index
      %c0_23 = arith.constant 0 : index
      %c0_24 = arith.constant 0 : index
      %46 = vector.load %arg3[%c0_22, %c2, %c0_23, %c0_24] : memref<1x4x16x32xbf16, #tpu.memory_space<vmem>>, vector<1x1x16x32xbf16>
      %47 = vector.shape_cast %46 : vector<1x1x16x32xbf16> to vector<16x32xbf16>
      %cst_25 = arith.constant dense<0.000000e+00> : vector<16x80xf32>
      %48 = tpu.matmul %47, %45, %cst_25 {dimension_numbers = #tpu.dot_dimension_numbers<[1], [0], [0], [1], [0, 0, 1, 1], [], []>} : vector<16x32xbf16>, vector<32x80xbf16>, vector<16x80xf32> -> vector<16x80xf32>
      %49 = arith.addf %43, %48 : vector<16x80xf32>
      %c0_26 = arith.constant 0 : index
      %c0_27 = arith.constant 0 : index
      %c21 = arith.constant 21 : index
      %50 = vector.load %arg2[%c0_26, %c0_27, %c21] : memref<1x32x110xbf16, #tpu.memory_space<vmem>>, vector<1x32x80xbf16>
      %51 = vector.shape_cast %50 : vector<1x32x80xbf16> to vector<32x80xbf16>
      %c0_28 = arith.constant 0 : index
      %c3 = arith.constant 3 : index
      %c0_29 = arith.constant 0 : index
      %c0_30 = arith.constant 0 : index
      %52 = vector.load %arg3[%c0_28, %c3, %c0_29, %c0_30] : memref<1x4x16x32xbf16, #tpu.memory_space<vmem>>, vector<1x1x16x32xbf16>
      %53 = vector.shape_cast %52 : vector<1x1x16x32xbf16> to vector<16x32xbf16>
      %cst_31 = arith.constant dense<0.000000e+00> : vector<16x80xf32>
      %54 = tpu.matmul %53, %51, %cst_31 {dimension_numbers = #tpu.dot_dimension_numbers<[1], [0], [0], [1], [0, 0, 1, 1], [], []>} : vector<16x32xbf16>, vector<32x80xbf16>, vector<16x80xf32> -> vector<16x80xf32>
      %55 = arith.addf %49, %54 : vector<16x80xf32>
      %56 = vector.broadcast %20 : vector<1x80xf32> to vector<16x80xf32>
      %57 = arith.mulf %55, %56 : vector<16x80xf32>
      %cst_32 = arith.constant dense<0.000000e+00> : vector<16xf32>
      %58 = vector.multi_reduction <add>, %57, %cst_32 [1] : vector<16x80xf32> to vector<16xf32>
      %59 = vector.shape_cast %58 : vector<16xf32> to vector<16x1xf32>
      %60 = arith.mulf %55, %57 : vector<16x80xf32>
      %cst_33 = arith.constant dense<0.000000e+00> : vector<16xf32>
      %61 = vector.multi_reduction <add>, %60, %cst_33 [1] : vector<16x80xf32> to vector<16xf32>
      %62 = vector.shape_cast %61 : vector<16xf32> to vector<16x1xf32>
      %63 = arith.truncf %55 : vector<16x80xf32> to vector<16x80xbf16>
      %c0_34 = arith.constant 0 : index
      %c0_35 = arith.constant 0 : index
      %c0_36 = arith.constant 0 : index
      %c0_37 = arith.constant 0 : index
      %64 = vector.load %arg4[%c0_34, %c0_35, %c0_36, %c0_37] : memref<1x1x16x80xbf16, #tpu.memory_space<vmem>>, vector<1x1x16x80xbf16>
      %65 = vector.shape_cast %64 : vector<1x1x16x80xbf16> to vector<16x80xbf16>
      %66 = vector.shape_cast %63 : vector<16x80xbf16> to vector<1x1x16x80xbf16>
      tpu.vector_store %arg4[%c0_34, %c0_35, %c0_36, %c0_37], %66 {strides = array<i32>} : memref<1x1x16x80xbf16, #tpu.memory_space<vmem>>, vector<1x1x16x80xbf16>,
      %67 = tpu.concatenate %59, %62 in 1 : vector<16x1xf32>, vector<16x1xf32> -> vector<16x2xf32>
      %c0_38 = arith.constant 0 : index
      %c0_39 = arith.constant 0 : index
      %c0_40 = arith.constant 0 : index
      %c0_41 = arith.constant 0 : index
      %68 = vector.load %arg5[%c0_38, %c0_39, %c0_40, %c0_41] : memref<1x1x16x2xf32, #tpu.memory_space<vmem>>, vector<1x1x16x2xf32>
      %69 = vector.shape_cast %68 : vector<1x1x16x2xf32> to vector<16x2xf32>
      %70 = vector.shape_cast %67 : vector<16x2xf32> to vector<1x1x16x2xf32>
      tpu.vector_store %arg5[%c0_38, %c0_39, %c0_40, %c0_41], %70 {strides = array<i32>} : memref<1x1x16x2xf32, #tpu.memory_space<vmem>>, vector<1x1x16x2xf32>,
    } else {
    }
    %c3_i32 = arith.constant 3 : i32
    %30 = arith.cmpi eq, %arg1, %c3_i32 : i32
    %31 = arith.extui %30 : i1 to i32
    %c0_i32_8 = arith.constant 0 : i32
    %32 = arith.cmpi ne, %31, %c0_i32_8 : i32
    scf.if %32 {
      %c0 = arith.constant 0 : index
      %c0_9 = arith.constant 0 : index
      %c11 = arith.constant 11 : index
      %33 = vector.load %arg2[%c0, %c0_9, %c11] : memref<1x32x110xbf16, #tpu.memory_space<vmem>>, vector<1x32x80xbf16>
      %34 = vector.shape_cast %33 : vector<1x32x80xbf16> to vector<32x80xbf16>
      %c0_10 = arith.constant 0 : index
      %c0_11 = arith.constant 0 : index
      %c0_12 = arith.constant 0 : index
      %c0_13 = arith.constant 0 : index
      %35 = vector.load %arg3[%c0_10, %c0_11, %c0_12, %c0_13] : memref<1x4x16x32xbf16, #tpu.memory_space<vmem>>, vector<1x1x16x32xbf16>
      %36 = vector.shape_cast %35 : vector<1x1x16x32xbf16> to vector<16x32xbf16>
      %cst = arith.constant dense<0.000000e+00> : vector<16x80xf32>
      %37 = tpu.matmul %36, %34, %cst {dimension_numbers = #tpu.dot_dimension_numbers<[1], [0], [0], [1], [0, 0, 1, 1], [], []>} : vector<16x32xbf16>, vector<32x80xbf16>, vector<16x80xf32> -> vector<16x80xf32>
      %c0_14 = arith.constant 0 : index
      %c0_15 = arith.constant 0 : index
      %c12 = arith.constant 12 : index
      %38 = vector.load %arg2[%c0_14, %c0_15, %c12] : memref<1x32x110xbf16, #tpu.memory_space<vmem>>, vector<1x32x80xbf16>
      %39 = vector.shape_cast %38 : vector<1x32x80xbf16> to vector<32x80xbf16>
      %c0_16 = arith.constant 0 : index
      %c1 = arith.constant 1 : index
      %c0_17 = arith.constant 0 : index
      %c0_18 = arith.constant 0 : index
      %40 = vector.load %arg3[%c0_16, %c1, %c0_17, %c0_18] : memref<1x4x16x32xbf16, #tpu.memory_space<vmem>>, vector<1x1x16x32xbf16>
      %41 = vector.shape_cast %40 : vector<1x1x16x32xbf16> to vector<16x32xbf16>
      %cst_19 = arith.constant dense<0.000000e+00> : vector<16x80xf32>
      %42 = tpu.matmul %41, %39, %cst_19 {dimension_numbers = #tpu.dot_dimension_numbers<[1], [0], [0], [1], [0, 0, 1, 1], [], []>} : vector<16x32xbf16>, vector<32x80xbf16>, vector<16x80xf32> -> vector<16x80xf32>
      %43 = arith.addf %37, %42 : vector<16x80xf32>
      %c0_20 = arith.constant 0 : index
      %c0_21 = arith.constant 0 : index
      %c21 = arith.constant 21 : index
      %44 = vector.load %arg2[%c0_20, %c0_21, %c21] : memref<1x32x110xbf16, #tpu.memory_space<vmem>>, vector<1x32x80xbf16>
      %45 = vector.shape_cast %44 : vector<1x32x80xbf16> to vector<32x80xbf16>
      %c0_22 = arith.constant 0 : index
      %c2 = arith.constant 2 : index
      %c0_23 = arith.constant 0 : index
      %c0_24 = arith.constant 0 : index
      %46 = vector.load %arg3[%c0_22, %c2, %c0_23, %c0_24] : memref<1x4x16x32xbf16, #tpu.memory_space<vmem>>, vector<1x1x16x32xbf16>
      %47 = vector.shape_cast %46 : vector<1x1x16x32xbf16> to vector<16x32xbf16>
      %cst_25 = arith.constant dense<0.000000e+00> : vector<16x80xf32>
      %48 = tpu.matmul %47, %45, %cst_25 {dimension_numbers = #tpu.dot_dimension_numbers<[1], [0], [0], [1], [0, 0, 1, 1], [], []>} : vector<16x32xbf16>, vector<32x80xbf16>, vector<16x80xf32> -> vector<16x80xf32>
      %49 = arith.addf %43, %48 : vector<16x80xf32>
      %c0_26 = arith.constant 0 : index
      %c0_27 = arith.constant 0 : index
      %c22 = arith.constant 22 : index
      %50 = vector.load %arg2[%c0_26, %c0_27, %c22] : memref<1x32x110xbf16, #tpu.memory_space<vmem>>, vector<1x32x80xbf16>
      %51 = vector.shape_cast %50 : vector<1x32x80xbf16> to vector<32x80xbf16>
      %c0_28 = arith.constant 0 : index
      %c3 = arith.constant 3 : index
      %c0_29 = arith.constant 0 : index
      %c0_30 = arith.constant 0 : index
      %52 = vector.load %arg3[%c0_28, %c3, %c0_29, %c0_30] : memref<1x4x16x32xbf16, #tpu.memory_space<vmem>>, vector<1x1x16x32xbf16>
      %53 = vector.shape_cast %52 : vector<1x1x16x32xbf16> to vector<16x32xbf16>
      %cst_31 = arith.constant dense<0.000000e+00> : vector<16x80xf32>
      %54 = tpu.matmul %53, %51, %cst_31 {dimension_numbers = #tpu.dot_dimension_numbers<[1], [0], [0], [1], [0, 0, 1, 1], [], []>} : vector<16x32xbf16>, vector<32x80xbf16>, vector<16x80xf32> -> vector<16x80xf32>
      %55 = arith.addf %49, %54 : vector<16x80xf32>
      %56 = vector.broadcast %20 : vector<1x80xf32> to vector<16x80xf32>
      %57 = arith.mulf %55, %56 : vector<16x80xf32>
      %cst_32 = arith.constant dense<0.000000e+00> : vector<16xf32>
      %58 = vector.multi_reduction <add>, %57, %cst_32 [1] : vector<16x80xf32> to vector<16xf32>
      %59 = vector.shape_cast %58 : vector<16xf32> to vector<16x1xf32>
      %60 = arith.mulf %55, %57 : vector<16x80xf32>
      %cst_33 = arith.constant dense<0.000000e+00> : vector<16xf32>
      %61 = vector.multi_reduction <add>, %60, %cst_33 [1] : vector<16x80xf32> to vector<16xf32>
      %62 = vector.shape_cast %61 : vector<16xf32> to vector<16x1xf32>
      %63 = arith.truncf %55 : vector<16x80xf32> to vector<16x80xbf16>
      %c0_34 = arith.constant 0 : index
      %c0_35 = arith.constant 0 : index
      %c0_36 = arith.constant 0 : index
      %c0_37 = arith.constant 0 : index
      %64 = vector.load %arg4[%c0_34, %c0_35, %c0_36, %c0_37] : memref<1x1x16x80xbf16, #tpu.memory_space<vmem>>, vector<1x1x16x80xbf16>
      %65 = vector.shape_cast %64 : vector<1x1x16x80xbf16> to vector<16x80xbf16>
      %66 = vector.shape_cast %63 : vector<16x80xbf16> to vector<1x1x16x80xbf16>
      tpu.vector_store %arg4[%c0_34, %c0_35, %c0_36, %c0_37], %66 {strides = array<i32>} : memref<1x1x16x80xbf16, #tpu.memory_space<vmem>>, vector<1x1x16x80xbf16>,
      %67 = tpu.concatenate %59, %62 in 1 : vector<16x1xf32>, vector<16x1xf32> -> vector<16x2xf32>
      %c0_38 = arith.constant 0 : index
      %c0_39 = arith.constant 0 : index
      %c0_40 = arith.constant 0 : index
      %c0_41 = arith.constant 0 : index
      %68 = vector.load %arg5[%c0_38, %c0_39, %c0_40, %c0_41] : memref<1x1x16x2xf32, #tpu.memory_space<vmem>>, vector<1x1x16x2xf32>
      %69 = vector.shape_cast %68 : vector<1x1x16x2xf32> to vector<16x2xf32>
      %70 = vector.shape_cast %67 : vector<16x2xf32> to vector<1x1x16x2xf32>
      tpu.vector_store %arg5[%c0_38, %c0_39, %c0_40, %c0_41], %70 {strides = array<i32>} : memref<1x1x16x2xf32, #tpu.memory_space<vmem>>, vector<1x1x16x2xf32>,
    } else {
    }
    return
  }
  func.func @transform_0(%arg0: i32, %arg1: i32) -> (i32, i32, i32) {
    %c0_i32 = arith.constant 0 : i32
    %c0_i32_0 = arith.constant 0 : i32
    %c0_i32_1 = arith.constant 0 : i32
    return %arg0, %c0_i32, %c0_i32_0 : i32, i32, i32
  }
  func.func @transform_1(%arg0: i32, %arg1: i32) -> (i32, i32, i32, i32) {
    %c0_i32 = arith.constant 0 : i32
    %c0_i32_0 = arith.constant 0 : i32
    %c0_i32_1 = arith.constant 0 : i32
    %c0_i32_2 = arith.constant 0 : i32
    return %arg1, %c0_i32, %c0_i32_0, %c0_i32_1 : i32, i32, i32, i32
  }
  func.func @transform_2(%arg0: i32, %arg1: i32) -> (i32, i32, i32, i32) {
    %c0_i32 = arith.constant 0 : i32
    %c0_i32_0 = arith.constant 0 : i32
    %c0_i32_1 = arith.constant 0 : i32
    return %arg0, %arg1, %c0_i32, %c0_i32_0 : i32, i32, i32, i32
  }
  func.func @transform_3(%arg0: i32, %arg1: i32) -> (i32, i32, i32, i32) {
    %c0_i32 = arith.constant 0 : i32
    %c0_i32_0 = arith.constant 0 : i32
    %c0_i32_1 = arith.constant 0 : i32
    return %arg0, %arg1, %c0_i32, %c0_i32_0 : i32, i32, i32, i32
  }
}

module attributes {stable_mosaic.version = 11 : i64} {
  func.func @_bn_relu_kernel(%arg0: i32, %arg1: i32, %arg2: memref<1x1x16x80xbf16, #tpu.memory_space<vmem>>, %arg3: memref<16x1xf32, #tpu.memory_space<vmem>>, %arg4: memref<16x1xf32, #tpu.memory_space<vmem>>, %arg5: memref<1x1x16x80xbf16, #tpu.memory_space<vmem>>) attributes {dimension_semantics = [#tpu.dimension_semantics<parallel>, #tpu.dimension_semantics<parallel>], iteration_bounds = array<i64: 2, 4>, scalar_prefetch = 0 : i64, scratch_operands = 0 : i64, tpu.core_type = #tpu.core_type<tc>, window_params = [{transform_indices = @transform_0, window_bounds = array<i64: 1, 1, 16, 80>}, {pipeline_mode = #tpu.pipeline_mode<synchronous>, transform_indices = @transform_1, window_bounds = array<i64: 16, 1>}, {pipeline_mode = #tpu.pipeline_mode<synchronous>, transform_indices = @transform_2, window_bounds = array<i64: 16, 1>}, {transform_indices = @transform_3, window_bounds = array<i64: 1, 1, 16, 80>}]} {
    %c0 = arith.constant 0 : index
    %c0_0 = arith.constant 0 : index
    %c0_1 = arith.constant 0 : index
    %c0_2 = arith.constant 0 : index
    %0 = vector.load %arg2[%c0, %c0_0, %c0_1, %c0_2] : memref<1x1x16x80xbf16, #tpu.memory_space<vmem>>, vector<1x1x16x80xbf16>
    %1 = vector.shape_cast %0 : vector<1x1x16x80xbf16> to vector<16x80xbf16>
    %2 = arith.extf %1 : vector<16x80xbf16> to vector<16x80xf32>
    %c0_3 = arith.constant 0 : index
    %c0_4 = arith.constant 0 : index
    %3 = vector.load %arg3[%c0_3, %c0_4] : memref<16x1xf32, #tpu.memory_space<vmem>>, vector<16x1xf32>
    %4 = vector.broadcast %3 : vector<16x1xf32> to vector<16x80xf32>
    %5 = arith.mulf %2, %4 : vector<16x80xf32>
    %c0_5 = arith.constant 0 : index
    %c0_6 = arith.constant 0 : index
    %6 = vector.load %arg4[%c0_5, %c0_6] : memref<16x1xf32, #tpu.memory_space<vmem>>, vector<16x1xf32>
    %7 = vector.broadcast %6 : vector<16x1xf32> to vector<16x80xf32>
    %8 = arith.addf %5, %7 : vector<16x80xf32>
    %cst = arith.constant 0.000000e+00 : f32
    %9 = vector.broadcast %cst : f32 to vector<16x80xf32>
    %10 = arith.maximumf %8, %9 : vector<16x80xf32>
    %11 = arith.truncf %10 : vector<16x80xf32> to vector<16x80xbf16>
    %c0_7 = arith.constant 0 : index
    %c0_8 = arith.constant 0 : index
    %c0_9 = arith.constant 0 : index
    %c0_10 = arith.constant 0 : index
    %12 = vector.load %arg5[%c0_7, %c0_8, %c0_9, %c0_10] : memref<1x1x16x80xbf16, #tpu.memory_space<vmem>>, vector<1x1x16x80xbf16>
    %13 = vector.shape_cast %12 : vector<1x1x16x80xbf16> to vector<16x80xbf16>
    %14 = vector.shape_cast %11 : vector<16x80xbf16> to vector<1x1x16x80xbf16>
    tpu.vector_store %arg5[%c0_7, %c0_8, %c0_9, %c0_10], %14 {strides = array<i32>} : memref<1x1x16x80xbf16, #tpu.memory_space<vmem>>, vector<1x1x16x80xbf16>,
    return
  }
  func.func @transform_0(%arg0: i32, %arg1: i32) -> (i32, i32, i32, i32) {
    %c0_i32 = arith.constant 0 : i32
    %c0_i32_0 = arith.constant 0 : i32
    %c0_i32_1 = arith.constant 0 : i32
    return %arg0, %arg1, %c0_i32, %c0_i32_0 : i32, i32, i32, i32
  }
  func.func @transform_1(%arg0: i32, %arg1: i32) -> (i32, i32) {
    %c0_i32 = arith.constant 0 : i32
    %c0_i32_0 = arith.constant 0 : i32
    %c0_i32_1 = arith.constant 0 : i32
    return %c0_i32, %c0_i32_0 : i32, i32
  }
  func.func @transform_2(%arg0: i32, %arg1: i32) -> (i32, i32) {
    %c0_i32 = arith.constant 0 : i32
    %c0_i32_0 = arith.constant 0 : i32
    %c0_i32_1 = arith.constant 0 : i32
    return %c0_i32, %c0_i32_0 : i32, i32
  }
  func.func @transform_3(%arg0: i32, %arg1: i32) -> (i32, i32, i32, i32) {
    %c0_i32 = arith.constant 0 : i32
    %c0_i32_0 = arith.constant 0 : i32
    %c0_i32_1 = arith.constant 0 : i32
    return %arg0, %arg1, %c0_i32, %c0_i32_0 : i32, i32, i32, i32
  }
}

module attributes {stable_mosaic.version = 11 : i64} {
  func.func @_convt_phase_kernel(%arg0: i32, %arg1: i32, %arg2: memref<1x16x342xbf16, #tpu.memory_space<vmem>>, %arg3: memref<1x4x8x16xbf16, #tpu.memory_space<vmem>>, %arg4: memref<1x1x8x288xbf16, #tpu.memory_space<vmem>>, %arg5: memref<1x1x8x2xf32, #tpu.memory_space<vmem>>) attributes {dimension_semantics = [#tpu.dimension_semantics<parallel>, #tpu.dimension_semantics<parallel>], iteration_bounds = array<i64: 2, 4>, scalar_prefetch = 0 : i64, scratch_operands = 0 : i64, tpu.core_type = #tpu.core_type<tc>, window_params = [{transform_indices = @transform_0, window_bounds = array<i64: 1, 16, 342>}, {transform_indices = @transform_1, window_bounds = array<i64: 1, 4, 8, 16>}, {transform_indices = @transform_2, window_bounds = array<i64: 1, 1, 8, 288>}, {transform_indices = @transform_3, window_bounds = array<i64: 1, 1, 8, 2>}]} {
    %0 = tpu.iota {dimensions = array<i32: 1>} : vector<1x288xi32>
    %c18_i32 = arith.constant 18 : i32
    %c0_i32 = arith.constant 0 : i32
    %1 = arith.cmpi eq, %c18_i32, %c0_i32 : i32
    %c1_i32 = arith.constant 1 : i32
    %2 = arith.select %1, %c1_i32, %c18_i32 : i32
    %3 = vector.broadcast %2 : i32 to vector<1x288xi32>
    %4 = arith.remsi %0, %3 : vector<1x288xi32>
    %c0_i32_0 = arith.constant 0 : i32
    %5 = vector.broadcast %c0_i32_0 : i32 to vector<1x288xi32>
    %6 = arith.cmpi ne, %4, %5 : vector<1x288xi32>
    %c0_i32_1 = arith.constant 0 : i32
    %7 = vector.broadcast %c0_i32_1 : i32 to vector<1x288xi32>
    %8 = arith.cmpi slt, %4, %7 : vector<1x288xi32>
    %c0_i32_2 = arith.constant 0 : i32
    %9 = arith.cmpi slt, %2, %c0_i32_2 : i32
    %10 = vector.broadcast %9 : i1 to vector<1x288xi1>
    %11 = vector.broadcast %10 : vector<1x288xi1> to vector<1x288xi1>
    %12 = arith.xori %8, %11 : vector<1x288xi1>
    %13 = arith.andi %12, %6 : vector<1x288xi1>
    %14 = vector.broadcast %2 : i32 to vector<1x288xi32>
    %15 = arith.addi %4, %14 : vector<1x288xi32>
    %16 = arith.select %13, %15, %4 : vector<1x288xi1>, vector<1x288xi32>
    %c16_i32 = arith.constant 16 : i32
    %17 = vector.broadcast %c16_i32 : i32 to vector<1x288xi32>
    %18 = arith.cmpi slt, %16, %17 : vector<1x288xi32>
    %19 = arith.extui %18 : vector<1x288xi1> to vector<1x288xi32>
    %20 = arith.sitofp %19 : vector<1x288xi32> to vector<1x288xf32>
    %c0_i32_3 = arith.constant 0 : i32
    %21 = arith.cmpi eq, %arg1, %c0_i32_3 : i32
    %22 = arith.extui %21 : i1 to i32
    %c0_i32_4 = arith.constant 0 : i32
    %23 = arith.cmpi ne, %22, %c0_i32_4 : i32
    scf.if %23 {
      %c0 = arith.constant 0 : index
      %c0_9 = arith.constant 0 : index
      %c0_10 = arith.constant 0 : index
      %33 = vector.load %arg2[%c0, %c0_9, %c0_10] : memref<1x16x342xbf16, #tpu.memory_space<vmem>>, vector<1x16x288xbf16>
      %34 = vector.shape_cast %33 : vector<1x16x288xbf16> to vector<16x288xbf16>
      %c0_11 = arith.constant 0 : index
      %c0_12 = arith.constant 0 : index
      %c0_13 = arith.constant 0 : index
      %c0_14 = arith.constant 0 : index
      %35 = vector.load %arg3[%c0_11, %c0_12, %c0_13, %c0_14] : memref<1x4x8x16xbf16, #tpu.memory_space<vmem>>, vector<1x1x8x16xbf16>
      %36 = vector.shape_cast %35 : vector<1x1x8x16xbf16> to vector<8x16xbf16>
      %cst = arith.constant dense<0.000000e+00> : vector<8x288xf32>
      %37 = tpu.matmul %36, %34, %cst {dimension_numbers = #tpu.dot_dimension_numbers<[1], [0], [0], [1], [0, 0, 1, 1], [], []>} : vector<8x16xbf16>, vector<16x288xbf16>, vector<8x288xf32> -> vector<8x288xf32>
      %c0_15 = arith.constant 0 : index
      %c0_16 = arith.constant 0 : index
      %c1 = arith.constant 1 : index
      %38 = vector.load %arg2[%c0_15, %c0_16, %c1] : memref<1x16x342xbf16, #tpu.memory_space<vmem>>, vector<1x16x288xbf16>
      %39 = vector.shape_cast %38 : vector<1x16x288xbf16> to vector<16x288xbf16>
      %c0_17 = arith.constant 0 : index
      %c1_18 = arith.constant 1 : index
      %c0_19 = arith.constant 0 : index
      %c0_20 = arith.constant 0 : index
      %40 = vector.load %arg3[%c0_17, %c1_18, %c0_19, %c0_20] : memref<1x4x8x16xbf16, #tpu.memory_space<vmem>>, vector<1x1x8x16xbf16>
      %41 = vector.shape_cast %40 : vector<1x1x8x16xbf16> to vector<8x16xbf16>
      %cst_21 = arith.constant dense<0.000000e+00> : vector<8x288xf32>
      %42 = tpu.matmul %41, %39, %cst_21 {dimension_numbers = #tpu.dot_dimension_numbers<[1], [0], [0], [1], [0, 0, 1, 1], [], []>} : vector<8x16xbf16>, vector<16x288xbf16>, vector<8x288xf32> -> vector<8x288xf32>
      %43 = arith.addf %37, %42 : vector<8x288xf32>
      %c0_22 = arith.constant 0 : index
      %c0_23 = arith.constant 0 : index
      %c18 = arith.constant 18 : index
      %44 = vector.load %arg2[%c0_22, %c0_23, %c18] : memref<1x16x342xbf16, #tpu.memory_space<vmem>>, vector<1x16x288xbf16>
      %45 = vector.shape_cast %44 : vector<1x16x288xbf16> to vector<16x288xbf16>
      %c0_24 = arith.constant 0 : index
      %c2 = arith.constant 2 : index
      %c0_25 = arith.constant 0 : index
      %c0_26 = arith.constant 0 : index
      %46 = vector.load %arg3[%c0_24, %c2, %c0_25, %c0_26] : memref<1x4x8x16xbf16, #tpu.memory_space<vmem>>, vector<1x1x8x16xbf16>
      %47 = vector.shape_cast %46 : vector<1x1x8x16xbf16> to vector<8x16xbf16>
      %cst_27 = arith.constant dense<0.000000e+00> : vector<8x288xf32>
      %48 = tpu.matmul %47, %45, %cst_27 {dimension_numbers = #tpu.dot_dimension_numbers<[1], [0], [0], [1], [0, 0, 1, 1], [], []>} : vector<8x16xbf16>, vector<16x288xbf16>, vector<8x288xf32> -> vector<8x288xf32>
      %49 = arith.addf %43, %48 : vector<8x288xf32>
      %c0_28 = arith.constant 0 : index
      %c0_29 = arith.constant 0 : index
      %c19 = arith.constant 19 : index
      %50 = vector.load %arg2[%c0_28, %c0_29, %c19] : memref<1x16x342xbf16, #tpu.memory_space<vmem>>, vector<1x16x288xbf16>
      %51 = vector.shape_cast %50 : vector<1x16x288xbf16> to vector<16x288xbf16>
      %c0_30 = arith.constant 0 : index
      %c3 = arith.constant 3 : index
      %c0_31 = arith.constant 0 : index
      %c0_32 = arith.constant 0 : index
      %52 = vector.load %arg3[%c0_30, %c3, %c0_31, %c0_32] : memref<1x4x8x16xbf16, #tpu.memory_space<vmem>>, vector<1x1x8x16xbf16>
      %53 = vector.shape_cast %52 : vector<1x1x8x16xbf16> to vector<8x16xbf16>
      %cst_33 = arith.constant dense<0.000000e+00> : vector<8x288xf32>
      %54 = tpu.matmul %53, %51, %cst_33 {dimension_numbers = #tpu.dot_dimension_numbers<[1], [0], [0], [1], [0, 0, 1, 1], [], []>} : vector<8x16xbf16>, vector<16x288xbf16>, vector<8x288xf32> -> vector<8x288xf32>
      %55 = arith.addf %49, %54 : vector<8x288xf32>
      %56 = vector.broadcast %20 : vector<1x288xf32> to vector<8x288xf32>
      %57 = arith.mulf %55, %56 : vector<8x288xf32>
      %cst_34 = arith.constant dense<0.000000e+00> : vector<8xf32>
      %58 = vector.multi_reduction <add>, %57, %cst_34 [1] : vector<8x288xf32> to vector<8xf32>
      %59 = vector.shape_cast %58 : vector<8xf32> to vector<8x1xf32>
      %60 = arith.mulf %55, %57 : vector<8x288xf32>
      %cst_35 = arith.constant dense<0.000000e+00> : vector<8xf32>
      %61 = vector.multi_reduction <add>, %60, %cst_35 [1] : vector<8x288xf32> to vector<8xf32>
      %62 = vector.shape_cast %61 : vector<8xf32> to vector<8x1xf32>
      %63 = arith.truncf %55 : vector<8x288xf32> to vector<8x288xbf16>
      %c0_36 = arith.constant 0 : index
      %c0_37 = arith.constant 0 : index
      %c0_38 = arith.constant 0 : index
      %c0_39 = arith.constant 0 : index
      %64 = vector.load %arg4[%c0_36, %c0_37, %c0_38, %c0_39] : memref<1x1x8x288xbf16, #tpu.memory_space<vmem>>, vector<1x1x8x288xbf16>
      %65 = vector.shape_cast %64 : vector<1x1x8x288xbf16> to vector<8x288xbf16>
      %66 = vector.shape_cast %63 : vector<8x288xbf16> to vector<1x1x8x288xbf16>
      tpu.vector_store %arg4[%c0_36, %c0_37, %c0_38, %c0_39], %66 {strides = array<i32>} : memref<1x1x8x288xbf16, #tpu.memory_space<vmem>>, vector<1x1x8x288xbf16>,
      %67 = tpu.concatenate %59, %62 in 1 : vector<8x1xf32>, vector<8x1xf32> -> vector<8x2xf32>
      %c0_40 = arith.constant 0 : index
      %c0_41 = arith.constant 0 : index
      %c0_42 = arith.constant 0 : index
      %c0_43 = arith.constant 0 : index
      %68 = vector.load %arg5[%c0_40, %c0_41, %c0_42, %c0_43] : memref<1x1x8x2xf32, #tpu.memory_space<vmem>>, vector<1x1x8x2xf32>
      %69 = vector.shape_cast %68 : vector<1x1x8x2xf32> to vector<8x2xf32>
      %70 = vector.shape_cast %67 : vector<8x2xf32> to vector<1x1x8x2xf32>
      tpu.vector_store %arg5[%c0_40, %c0_41, %c0_42, %c0_43], %70 {strides = array<i32>} : memref<1x1x8x2xf32, #tpu.memory_space<vmem>>, vector<1x1x8x2xf32>,
    } else {
    }
    %c1_i32_5 = arith.constant 1 : i32
    %24 = arith.cmpi eq, %arg1, %c1_i32_5 : i32
    %25 = arith.extui %24 : i1 to i32
    %c0_i32_6 = arith.constant 0 : i32
    %26 = arith.cmpi ne, %25, %c0_i32_6 : i32
    scf.if %26 {
      %c0 = arith.constant 0 : index
      %c0_9 = arith.constant 0 : index
      %c1 = arith.constant 1 : index
      %33 = vector.load %arg2[%c0, %c0_9, %c1] : memref<1x16x342xbf16, #tpu.memory_space<vmem>>, vector<1x16x288xbf16>
      %34 = vector.shape_cast %33 : vector<1x16x288xbf16> to vector<16x288xbf16>
      %c0_10 = arith.constant 0 : index
      %c0_11 = arith.constant 0 : index
      %c0_12 = arith.constant 0 : index
      %c0_13 = arith.constant 0 : index
      %35 = vector.load %arg3[%c0_10, %c0_11, %c0_12, %c0_13] : memref<1x4x8x16xbf16, #tpu.memory_space<vmem>>, vector<1x1x8x16xbf16>
      %36 = vector.shape_cast %35 : vector<1x1x8x16xbf16> to vector<8x16xbf16>
      %cst = arith.constant dense<0.000000e+00> : vector<8x288xf32>
      %37 = tpu.matmul %36, %34, %cst {dimension_numbers = #tpu.dot_dimension_numbers<[1], [0], [0], [1], [0, 0, 1, 1], [], []>} : vector<8x16xbf16>, vector<16x288xbf16>, vector<8x288xf32> -> vector<8x288xf32>
      %c0_14 = arith.constant 0 : index
      %c0_15 = arith.constant 0 : index
      %c2 = arith.constant 2 : index
      %38 = vector.load %arg2[%c0_14, %c0_15, %c2] : memref<1x16x342xbf16, #tpu.memory_space<vmem>>, vector<1x16x288xbf16>
      %39 = vector.shape_cast %38 : vector<1x16x288xbf16> to vector<16x288xbf16>
      %c0_16 = arith.constant 0 : index
      %c1_17 = arith.constant 1 : index
      %c0_18 = arith.constant 0 : index
      %c0_19 = arith.constant 0 : index
      %40 = vector.load %arg3[%c0_16, %c1_17, %c0_18, %c0_19] : memref<1x4x8x16xbf16, #tpu.memory_space<vmem>>, vector<1x1x8x16xbf16>
      %41 = vector.shape_cast %40 : vector<1x1x8x16xbf16> to vector<8x16xbf16>
      %cst_20 = arith.constant dense<0.000000e+00> : vector<8x288xf32>
      %42 = tpu.matmul %41, %39, %cst_20 {dimension_numbers = #tpu.dot_dimension_numbers<[1], [0], [0], [1], [0, 0, 1, 1], [], []>} : vector<8x16xbf16>, vector<16x288xbf16>, vector<8x288xf32> -> vector<8x288xf32>
      %43 = arith.addf %37, %42 : vector<8x288xf32>
      %c0_21 = arith.constant 0 : index
      %c0_22 = arith.constant 0 : index
      %c19 = arith.constant 19 : index
      %44 = vector.load %arg2[%c0_21, %c0_22, %c19] : memref<1x16x342xbf16, #tpu.memory_space<vmem>>, vector<1x16x288xbf16>
      %45 = vector.shape_cast %44 : vector<1x16x288xbf16> to vector<16x288xbf16>
      %c0_23 = arith.constant 0 : index
      %c2_24 = arith.constant 2 : index
      %c0_25 = arith.constant 0 : index
      %c0_26 = arith.constant 0 : index
      %46 = vector.load %arg3[%c0_23, %c2_24, %c0_25, %c0_26] : memref<1x4x8x16xbf16, #tpu.memory_space<vmem>>, vector<1x1x8x16xbf16>
      %47 = vector.shape_cast %46 : vector<1x1x8x16xbf16> to vector<8x16xbf16>
      %cst_27 = arith.constant dense<0.000000e+00> : vector<8x288xf32>
      %48 = tpu.matmul %47, %45, %cst_27 {dimension_numbers = #tpu.dot_dimension_numbers<[1], [0], [0], [1], [0, 0, 1, 1], [], []>} : vector<8x16xbf16>, vector<16x288xbf16>, vector<8x288xf32> -> vector<8x288xf32>
      %49 = arith.addf %43, %48 : vector<8x288xf32>
      %c0_28 = arith.constant 0 : index
      %c0_29 = arith.constant 0 : index
      %c20 = arith.constant 20 : index
      %50 = vector.load %arg2[%c0_28, %c0_29, %c20] : memref<1x16x342xbf16, #tpu.memory_space<vmem>>, vector<1x16x288xbf16>
      %51 = vector.shape_cast %50 : vector<1x16x288xbf16> to vector<16x288xbf16>
      %c0_30 = arith.constant 0 : index
      %c3 = arith.constant 3 : index
      %c0_31 = arith.constant 0 : index
      %c0_32 = arith.constant 0 : index
      %52 = vector.load %arg3[%c0_30, %c3, %c0_31, %c0_32] : memref<1x4x8x16xbf16, #tpu.memory_space<vmem>>, vector<1x1x8x16xbf16>
      %53 = vector.shape_cast %52 : vector<1x1x8x16xbf16> to vector<8x16xbf16>
      %cst_33 = arith.constant dense<0.000000e+00> : vector<8x288xf32>
      %54 = tpu.matmul %53, %51, %cst_33 {dimension_numbers = #tpu.dot_dimension_numbers<[1], [0], [0], [1], [0, 0, 1, 1], [], []>} : vector<8x16xbf16>, vector<16x288xbf16>, vector<8x288xf32> -> vector<8x288xf32>
      %55 = arith.addf %49, %54 : vector<8x288xf32>
      %56 = vector.broadcast %20 : vector<1x288xf32> to vector<8x288xf32>
      %57 = arith.mulf %55, %56 : vector<8x288xf32>
      %cst_34 = arith.constant dense<0.000000e+00> : vector<8xf32>
      %58 = vector.multi_reduction <add>, %57, %cst_34 [1] : vector<8x288xf32> to vector<8xf32>
      %59 = vector.shape_cast %58 : vector<8xf32> to vector<8x1xf32>
      %60 = arith.mulf %55, %57 : vector<8x288xf32>
      %cst_35 = arith.constant dense<0.000000e+00> : vector<8xf32>
      %61 = vector.multi_reduction <add>, %60, %cst_35 [1] : vector<8x288xf32> to vector<8xf32>
      %62 = vector.shape_cast %61 : vector<8xf32> to vector<8x1xf32>
      %63 = arith.truncf %55 : vector<8x288xf32> to vector<8x288xbf16>
      %c0_36 = arith.constant 0 : index
      %c0_37 = arith.constant 0 : index
      %c0_38 = arith.constant 0 : index
      %c0_39 = arith.constant 0 : index
      %64 = vector.load %arg4[%c0_36, %c0_37, %c0_38, %c0_39] : memref<1x1x8x288xbf16, #tpu.memory_space<vmem>>, vector<1x1x8x288xbf16>
      %65 = vector.shape_cast %64 : vector<1x1x8x288xbf16> to vector<8x288xbf16>
      %66 = vector.shape_cast %63 : vector<8x288xbf16> to vector<1x1x8x288xbf16>
      tpu.vector_store %arg4[%c0_36, %c0_37, %c0_38, %c0_39], %66 {strides = array<i32>} : memref<1x1x8x288xbf16, #tpu.memory_space<vmem>>, vector<1x1x8x288xbf16>,
      %67 = tpu.concatenate %59, %62 in 1 : vector<8x1xf32>, vector<8x1xf32> -> vector<8x2xf32>
      %c0_40 = arith.constant 0 : index
      %c0_41 = arith.constant 0 : index
      %c0_42 = arith.constant 0 : index
      %c0_43 = arith.constant 0 : index
      %68 = vector.load %arg5[%c0_40, %c0_41, %c0_42, %c0_43] : memref<1x1x8x2xf32, #tpu.memory_space<vmem>>, vector<1x1x8x2xf32>
      %69 = vector.shape_cast %68 : vector<1x1x8x2xf32> to vector<8x2xf32>
      %70 = vector.shape_cast %67 : vector<8x2xf32> to vector<1x1x8x2xf32>
      tpu.vector_store %arg5[%c0_40, %c0_41, %c0_42, %c0_43], %70 {strides = array<i32>} : memref<1x1x8x2xf32, #tpu.memory_space<vmem>>, vector<1x1x8x2xf32>,
    } else {
    }
    %c2_i32 = arith.constant 2 : i32
    %27 = arith.cmpi eq, %arg1, %c2_i32 : i32
    %28 = arith.extui %27 : i1 to i32
    %c0_i32_7 = arith.constant 0 : i32
    %29 = arith.cmpi ne, %28, %c0_i32_7 : i32
    scf.if %29 {
      %c0 = arith.constant 0 : index
      %c0_9 = arith.constant 0 : index
      %c18 = arith.constant 18 : index
      %33 = vector.load %arg2[%c0, %c0_9, %c18] : memref<1x16x342xbf16, #tpu.memory_space<vmem>>, vector<1x16x288xbf16>
      %34 = vector.shape_cast %33 : vector<1x16x288xbf16> to vector<16x288xbf16>
      %c0_10 = arith.constant 0 : index
      %c0_11 = arith.constant 0 : index
      %c0_12 = arith.constant 0 : index
      %c0_13 = arith.constant 0 : index
      %35 = vector.load %arg3[%c0_10, %c0_11, %c0_12, %c0_13] : memref<1x4x8x16xbf16, #tpu.memory_space<vmem>>, vector<1x1x8x16xbf16>
      %36 = vector.shape_cast %35 : vector<1x1x8x16xbf16> to vector<8x16xbf16>
      %cst = arith.constant dense<0.000000e+00> : vector<8x288xf32>
      %37 = tpu.matmul %36, %34, %cst {dimension_numbers = #tpu.dot_dimension_numbers<[1], [0], [0], [1], [0, 0, 1, 1], [], []>} : vector<8x16xbf16>, vector<16x288xbf16>, vector<8x288xf32> -> vector<8x288xf32>
      %c0_14 = arith.constant 0 : index
      %c0_15 = arith.constant 0 : index
      %c19 = arith.constant 19 : index
      %38 = vector.load %arg2[%c0_14, %c0_15, %c19] : memref<1x16x342xbf16, #tpu.memory_space<vmem>>, vector<1x16x288xbf16>
      %39 = vector.shape_cast %38 : vector<1x16x288xbf16> to vector<16x288xbf16>
      %c0_16 = arith.constant 0 : index
      %c1 = arith.constant 1 : index
      %c0_17 = arith.constant 0 : index
      %c0_18 = arith.constant 0 : index
      %40 = vector.load %arg3[%c0_16, %c1, %c0_17, %c0_18] : memref<1x4x8x16xbf16, #tpu.memory_space<vmem>>, vector<1x1x8x16xbf16>
      %41 = vector.shape_cast %40 : vector<1x1x8x16xbf16> to vector<8x16xbf16>
      %cst_19 = arith.constant dense<0.000000e+00> : vector<8x288xf32>
      %42 = tpu.matmul %41, %39, %cst_19 {dimension_numbers = #tpu.dot_dimension_numbers<[1], [0], [0], [1], [0, 0, 1, 1], [], []>} : vector<8x16xbf16>, vector<16x288xbf16>, vector<8x288xf32> -> vector<8x288xf32>
      %43 = arith.addf %37, %42 : vector<8x288xf32>
      %c0_20 = arith.constant 0 : index
      %c0_21 = arith.constant 0 : index
      %c36 = arith.constant 36 : index
      %44 = vector.load %arg2[%c0_20, %c0_21, %c36] : memref<1x16x342xbf16, #tpu.memory_space<vmem>>, vector<1x16x288xbf16>
      %45 = vector.shape_cast %44 : vector<1x16x288xbf16> to vector<16x288xbf16>
      %c0_22 = arith.constant 0 : index
      %c2 = arith.constant 2 : index
      %c0_23 = arith.constant 0 : index
      %c0_24 = arith.constant 0 : index
      %46 = vector.load %arg3[%c0_22, %c2, %c0_23, %c0_24] : memref<1x4x8x16xbf16, #tpu.memory_space<vmem>>, vector<1x1x8x16xbf16>
      %47 = vector.shape_cast %46 : vector<1x1x8x16xbf16> to vector<8x16xbf16>
      %cst_25 = arith.constant dense<0.000000e+00> : vector<8x288xf32>
      %48 = tpu.matmul %47, %45, %cst_25 {dimension_numbers = #tpu.dot_dimension_numbers<[1], [0], [0], [1], [0, 0, 1, 1], [], []>} : vector<8x16xbf16>, vector<16x288xbf16>, vector<8x288xf32> -> vector<8x288xf32>
      %49 = arith.addf %43, %48 : vector<8x288xf32>
      %c0_26 = arith.constant 0 : index
      %c0_27 = arith.constant 0 : index
      %c37 = arith.constant 37 : index
      %50 = vector.load %arg2[%c0_26, %c0_27, %c37] : memref<1x16x342xbf16, #tpu.memory_space<vmem>>, vector<1x16x288xbf16>
      %51 = vector.shape_cast %50 : vector<1x16x288xbf16> to vector<16x288xbf16>
      %c0_28 = arith.constant 0 : index
      %c3 = arith.constant 3 : index
      %c0_29 = arith.constant 0 : index
      %c0_30 = arith.constant 0 : index
      %52 = vector.load %arg3[%c0_28, %c3, %c0_29, %c0_30] : memref<1x4x8x16xbf16, #tpu.memory_space<vmem>>, vector<1x1x8x16xbf16>
      %53 = vector.shape_cast %52 : vector<1x1x8x16xbf16> to vector<8x16xbf16>
      %cst_31 = arith.constant dense<0.000000e+00> : vector<8x288xf32>
      %54 = tpu.matmul %53, %51, %cst_31 {dimension_numbers = #tpu.dot_dimension_numbers<[1], [0], [0], [1], [0, 0, 1, 1], [], []>} : vector<8x16xbf16>, vector<16x288xbf16>, vector<8x288xf32> -> vector<8x288xf32>
      %55 = arith.addf %49, %54 : vector<8x288xf32>
      %56 = vector.broadcast %20 : vector<1x288xf32> to vector<8x288xf32>
      %57 = arith.mulf %55, %56 : vector<8x288xf32>
      %cst_32 = arith.constant dense<0.000000e+00> : vector<8xf32>
      %58 = vector.multi_reduction <add>, %57, %cst_32 [1] : vector<8x288xf32> to vector<8xf32>
      %59 = vector.shape_cast %58 : vector<8xf32> to vector<8x1xf32>
      %60 = arith.mulf %55, %57 : vector<8x288xf32>
      %cst_33 = arith.constant dense<0.000000e+00> : vector<8xf32>
      %61 = vector.multi_reduction <add>, %60, %cst_33 [1] : vector<8x288xf32> to vector<8xf32>
      %62 = vector.shape_cast %61 : vector<8xf32> to vector<8x1xf32>
      %63 = arith.truncf %55 : vector<8x288xf32> to vector<8x288xbf16>
      %c0_34 = arith.constant 0 : index
      %c0_35 = arith.constant 0 : index
      %c0_36 = arith.constant 0 : index
      %c0_37 = arith.constant 0 : index
      %64 = vector.load %arg4[%c0_34, %c0_35, %c0_36, %c0_37] : memref<1x1x8x288xbf16, #tpu.memory_space<vmem>>, vector<1x1x8x288xbf16>
      %65 = vector.shape_cast %64 : vector<1x1x8x288xbf16> to vector<8x288xbf16>
      %66 = vector.shape_cast %63 : vector<8x288xbf16> to vector<1x1x8x288xbf16>
      tpu.vector_store %arg4[%c0_34, %c0_35, %c0_36, %c0_37], %66 {strides = array<i32>} : memref<1x1x8x288xbf16, #tpu.memory_space<vmem>>, vector<1x1x8x288xbf16>,
      %67 = tpu.concatenate %59, %62 in 1 : vector<8x1xf32>, vector<8x1xf32> -> vector<8x2xf32>
      %c0_38 = arith.constant 0 : index
      %c0_39 = arith.constant 0 : index
      %c0_40 = arith.constant 0 : index
      %c0_41 = arith.constant 0 : index
      %68 = vector.load %arg5[%c0_38, %c0_39, %c0_40, %c0_41] : memref<1x1x8x2xf32, #tpu.memory_space<vmem>>, vector<1x1x8x2xf32>
      %69 = vector.shape_cast %68 : vector<1x1x8x2xf32> to vector<8x2xf32>
      %70 = vector.shape_cast %67 : vector<8x2xf32> to vector<1x1x8x2xf32>
      tpu.vector_store %arg5[%c0_38, %c0_39, %c0_40, %c0_41], %70 {strides = array<i32>} : memref<1x1x8x2xf32, #tpu.memory_space<vmem>>, vector<1x1x8x2xf32>,
    } else {
    }
    %c3_i32 = arith.constant 3 : i32
    %30 = arith.cmpi eq, %arg1, %c3_i32 : i32
    %31 = arith.extui %30 : i1 to i32
    %c0_i32_8 = arith.constant 0 : i32
    %32 = arith.cmpi ne, %31, %c0_i32_8 : i32
    scf.if %32 {
      %c0 = arith.constant 0 : index
      %c0_9 = arith.constant 0 : index
      %c19 = arith.constant 19 : index
      %33 = vector.load %arg2[%c0, %c0_9, %c19] : memref<1x16x342xbf16, #tpu.memory_space<vmem>>, vector<1x16x288xbf16>
      %34 = vector.shape_cast %33 : vector<1x16x288xbf16> to vector<16x288xbf16>
      %c0_10 = arith.constant 0 : index
      %c0_11 = arith.constant 0 : index
      %c0_12 = arith.constant 0 : index
      %c0_13 = arith.constant 0 : index
      %35 = vector.load %arg3[%c0_10, %c0_11, %c0_12, %c0_13] : memref<1x4x8x16xbf16, #tpu.memory_space<vmem>>, vector<1x1x8x16xbf16>
      %36 = vector.shape_cast %35 : vector<1x1x8x16xbf16> to vector<8x16xbf16>
      %cst = arith.constant dense<0.000000e+00> : vector<8x288xf32>
      %37 = tpu.matmul %36, %34, %cst {dimension_numbers = #tpu.dot_dimension_numbers<[1], [0], [0], [1], [0, 0, 1, 1], [], []>} : vector<8x16xbf16>, vector<16x288xbf16>, vector<8x288xf32> -> vector<8x288xf32>
      %c0_14 = arith.constant 0 : index
      %c0_15 = arith.constant 0 : index
      %c20 = arith.constant 20 : index
      %38 = vector.load %arg2[%c0_14, %c0_15, %c20] : memref<1x16x342xbf16, #tpu.memory_space<vmem>>, vector<1x16x288xbf16>
      %39 = vector.shape_cast %38 : vector<1x16x288xbf16> to vector<16x288xbf16>
      %c0_16 = arith.constant 0 : index
      %c1 = arith.constant 1 : index
      %c0_17 = arith.constant 0 : index
      %c0_18 = arith.constant 0 : index
      %40 = vector.load %arg3[%c0_16, %c1, %c0_17, %c0_18] : memref<1x4x8x16xbf16, #tpu.memory_space<vmem>>, vector<1x1x8x16xbf16>
      %41 = vector.shape_cast %40 : vector<1x1x8x16xbf16> to vector<8x16xbf16>
      %cst_19 = arith.constant dense<0.000000e+00> : vector<8x288xf32>
      %42 = tpu.matmul %41, %39, %cst_19 {dimension_numbers = #tpu.dot_dimension_numbers<[1], [0], [0], [1], [0, 0, 1, 1], [], []>} : vector<8x16xbf16>, vector<16x288xbf16>, vector<8x288xf32> -> vector<8x288xf32>
      %43 = arith.addf %37, %42 : vector<8x288xf32>
      %c0_20 = arith.constant 0 : index
      %c0_21 = arith.constant 0 : index
      %c37 = arith.constant 37 : index
      %44 = vector.load %arg2[%c0_20, %c0_21, %c37] : memref<1x16x342xbf16, #tpu.memory_space<vmem>>, vector<1x16x288xbf16>
      %45 = vector.shape_cast %44 : vector<1x16x288xbf16> to vector<16x288xbf16>
      %c0_22 = arith.constant 0 : index
      %c2 = arith.constant 2 : index
      %c0_23 = arith.constant 0 : index
      %c0_24 = arith.constant 0 : index
      %46 = vector.load %arg3[%c0_22, %c2, %c0_23, %c0_24] : memref<1x4x8x16xbf16, #tpu.memory_space<vmem>>, vector<1x1x8x16xbf16>
      %47 = vector.shape_cast %46 : vector<1x1x8x16xbf16> to vector<8x16xbf16>
      %cst_25 = arith.constant dense<0.000000e+00> : vector<8x288xf32>
      %48 = tpu.matmul %47, %45, %cst_25 {dimension_numbers = #tpu.dot_dimension_numbers<[1], [0], [0], [1], [0, 0, 1, 1], [], []>} : vector<8x16xbf16>, vector<16x288xbf16>, vector<8x288xf32> -> vector<8x288xf32>
      %49 = arith.addf %43, %48 : vector<8x288xf32>
      %c0_26 = arith.constant 0 : index
      %c0_27 = arith.constant 0 : index
      %c38 = arith.constant 38 : index
      %50 = vector.load %arg2[%c0_26, %c0_27, %c38] : memref<1x16x342xbf16, #tpu.memory_space<vmem>>, vector<1x16x288xbf16>
      %51 = vector.shape_cast %50 : vector<1x16x288xbf16> to vector<16x288xbf16>
      %c0_28 = arith.constant 0 : index
      %c3 = arith.constant 3 : index
      %c0_29 = arith.constant 0 : index
      %c0_30 = arith.constant 0 : index
      %52 = vector.load %arg3[%c0_28, %c3, %c0_29, %c0_30] : memref<1x4x8x16xbf16, #tpu.memory_space<vmem>>, vector<1x1x8x16xbf16>
      %53 = vector.shape_cast %52 : vector<1x1x8x16xbf16> to vector<8x16xbf16>
      %cst_31 = arith.constant dense<0.000000e+00> : vector<8x288xf32>
      %54 = tpu.matmul %53, %51, %cst_31 {dimension_numbers = #tpu.dot_dimension_numbers<[1], [0], [0], [1], [0, 0, 1, 1], [], []>} : vector<8x16xbf16>, vector<16x288xbf16>, vector<8x288xf32> -> vector<8x288xf32>
      %55 = arith.addf %49, %54 : vector<8x288xf32>
      %56 = vector.broadcast %20 : vector<1x288xf32> to vector<8x288xf32>
      %57 = arith.mulf %55, %56 : vector<8x288xf32>
      %cst_32 = arith.constant dense<0.000000e+00> : vector<8xf32>
      %58 = vector.multi_reduction <add>, %57, %cst_32 [1] : vector<8x288xf32> to vector<8xf32>
      %59 = vector.shape_cast %58 : vector<8xf32> to vector<8x1xf32>
      %60 = arith.mulf %55, %57 : vector<8x288xf32>
      %cst_33 = arith.constant dense<0.000000e+00> : vector<8xf32>
      %61 = vector.multi_reduction <add>, %60, %cst_33 [1] : vector<8x288xf32> to vector<8xf32>
      %62 = vector.shape_cast %61 : vector<8xf32> to vector<8x1xf32>
      %63 = arith.truncf %55 : vector<8x288xf32> to vector<8x288xbf16>
      %c0_34 = arith.constant 0 : index
      %c0_35 = arith.constant 0 : index
      %c0_36 = arith.constant 0 : index
      %c0_37 = arith.constant 0 : index
      %64 = vector.load %arg4[%c0_34, %c0_35, %c0_36, %c0_37] : memref<1x1x8x288xbf16, #tpu.memory_space<vmem>>, vector<1x1x8x288xbf16>
      %65 = vector.shape_cast %64 : vector<1x1x8x288xbf16> to vector<8x288xbf16>
      %66 = vector.shape_cast %63 : vector<8x288xbf16> to vector<1x1x8x288xbf16>
      tpu.vector_store %arg4[%c0_34, %c0_35, %c0_36, %c0_37], %66 {strides = array<i32>} : memref<1x1x8x288xbf16, #tpu.memory_space<vmem>>, vector<1x1x8x288xbf16>,
      %67 = tpu.concatenate %59, %62 in 1 : vector<8x1xf32>, vector<8x1xf32> -> vector<8x2xf32>
      %c0_38 = arith.constant 0 : index
      %c0_39 = arith.constant 0 : index
      %c0_40 = arith.constant 0 : index
      %c0_41 = arith.constant 0 : index
      %68 = vector.load %arg5[%c0_38, %c0_39, %c0_40, %c0_41] : memref<1x1x8x2xf32, #tpu.memory_space<vmem>>, vector<1x1x8x2xf32>
      %69 = vector.shape_cast %68 : vector<1x1x8x2xf32> to vector<8x2xf32>
      %70 = vector.shape_cast %67 : vector<8x2xf32> to vector<1x1x8x2xf32>
      tpu.vector_store %arg5[%c0_38, %c0_39, %c0_40, %c0_41], %70 {strides = array<i32>} : memref<1x1x8x2xf32, #tpu.memory_space<vmem>>, vector<1x1x8x2xf32>,
    } else {
    }
    return
  }
  func.func @transform_0(%arg0: i32, %arg1: i32) -> (i32, i32, i32) {
    %c0_i32 = arith.constant 0 : i32
    %c0_i32_0 = arith.constant 0 : i32
    %c0_i32_1 = arith.constant 0 : i32
    return %arg0, %c0_i32, %c0_i32_0 : i32, i32, i32
  }
  func.func @transform_1(%arg0: i32, %arg1: i32) -> (i32, i32, i32, i32) {
    %c0_i32 = arith.constant 0 : i32
    %c0_i32_0 = arith.constant 0 : i32
    %c0_i32_1 = arith.constant 0 : i32
    %c0_i32_2 = arith.constant 0 : i32
    return %arg1, %c0_i32, %c0_i32_0, %c0_i32_1 : i32, i32, i32, i32
  }
  func.func @transform_2(%arg0: i32, %arg1: i32) -> (i32, i32, i32, i32) {
    %c0_i32 = arith.constant 0 : i32
    %c0_i32_0 = arith.constant 0 : i32
    %c0_i32_1 = arith.constant 0 : i32
    return %arg0, %arg1, %c0_i32, %c0_i32_0 : i32, i32, i32, i32
  }
  func.func @transform_3(%arg0: i32, %arg1: i32) -> (i32, i32, i32, i32) {
    %c0_i32 = arith.constant 0 : i32
    %c0_i32_0 = arith.constant 0 : i32
    %c0_i32_1 = arith.constant 0 : i32
    return %arg0, %arg1, %c0_i32, %c0_i32_0 : i32, i32, i32, i32
  }
}

module attributes {stable_mosaic.version = 11 : i64} {
  func.func @_bn_relu_kernel(%arg0: i32, %arg1: i32, %arg2: memref<1x1x8x288xbf16, #tpu.memory_space<vmem>>, %arg3: memref<8x1xf32, #tpu.memory_space<vmem>>, %arg4: memref<8x1xf32, #tpu.memory_space<vmem>>, %arg5: memref<1x1x8x288xbf16, #tpu.memory_space<vmem>>) attributes {dimension_semantics = [#tpu.dimension_semantics<parallel>, #tpu.dimension_semantics<parallel>], iteration_bounds = array<i64: 2, 4>, scalar_prefetch = 0 : i64, scratch_operands = 0 : i64, tpu.core_type = #tpu.core_type<tc>, window_params = [{transform_indices = @transform_0, window_bounds = array<i64: 1, 1, 8, 288>}, {pipeline_mode = #tpu.pipeline_mode<synchronous>, transform_indices = @transform_1, window_bounds = array<i64: 8, 1>}, {pipeline_mode = #tpu.pipeline_mode<synchronous>, transform_indices = @transform_2, window_bounds = array<i64: 8, 1>}, {transform_indices = @transform_3, window_bounds = array<i64: 1, 1, 8, 288>}]} {
    %c0 = arith.constant 0 : index
    %c0_0 = arith.constant 0 : index
    %c0_1 = arith.constant 0 : index
    %c0_2 = arith.constant 0 : index
    %0 = vector.load %arg2[%c0, %c0_0, %c0_1, %c0_2] : memref<1x1x8x288xbf16, #tpu.memory_space<vmem>>, vector<1x1x8x288xbf16>
    %1 = vector.shape_cast %0 : vector<1x1x8x288xbf16> to vector<8x288xbf16>
    %2 = arith.extf %1 : vector<8x288xbf16> to vector<8x288xf32>
    %c0_3 = arith.constant 0 : index
    %c0_4 = arith.constant 0 : index
    %3 = vector.load %arg3[%c0_3, %c0_4] : memref<8x1xf32, #tpu.memory_space<vmem>>, vector<8x1xf32>
    %4 = vector.broadcast %3 : vector<8x1xf32> to vector<8x288xf32>
    %5 = arith.mulf %2, %4 : vector<8x288xf32>
    %c0_5 = arith.constant 0 : index
    %c0_6 = arith.constant 0 : index
    %6 = vector.load %arg4[%c0_5, %c0_6] : memref<8x1xf32, #tpu.memory_space<vmem>>, vector<8x1xf32>
    %7 = vector.broadcast %6 : vector<8x1xf32> to vector<8x288xf32>
    %8 = arith.addf %5, %7 : vector<8x288xf32>
    %cst = arith.constant 0.000000e+00 : f32
    %9 = vector.broadcast %cst : f32 to vector<8x288xf32>
    %10 = arith.maximumf %8, %9 : vector<8x288xf32>
    %11 = arith.truncf %10 : vector<8x288xf32> to vector<8x288xbf16>
    %c0_7 = arith.constant 0 : index
    %c0_8 = arith.constant 0 : index
    %c0_9 = arith.constant 0 : index
    %c0_10 = arith.constant 0 : index
    %12 = vector.load %arg5[%c0_7, %c0_8, %c0_9, %c0_10] : memref<1x1x8x288xbf16, #tpu.memory_space<vmem>>, vector<1x1x8x288xbf16>
    %13 = vector.shape_cast %12 : vector<1x1x8x288xbf16> to vector<8x288xbf16>
    %14 = vector.shape_cast %11 : vector<8x288xbf16> to vector<1x1x8x288xbf16>
    tpu.vector_store %arg5[%c0_7, %c0_8, %c0_9, %c0_10], %14 {strides = array<i32>} : memref<1x1x8x288xbf16, #tpu.memory_space<vmem>>, vector<1x1x8x288xbf16>,
    return
  }
  func.func @transform_0(%arg0: i32, %arg1: i32) -> (i32, i32, i32, i32) {
    %c0_i32 = arith.constant 0 : i32
    %c0_i32_0 = arith.constant 0 : i32
    %c0_i32_1 = arith.constant 0 : i32
    return %arg0, %arg1, %c0_i32, %c0_i32_0 : i32, i32, i32, i32
  }
  func.func @transform_1(%arg0: i32, %arg1: i32) -> (i32, i32) {
    %c0_i32 = arith.constant 0 : i32
    %c0_i32_0 = arith.constant 0 : i32
    %c0_i32_1 = arith.constant 0 : i32
    return %c0_i32, %c0_i32_0 : i32, i32
  }
  func.func @transform_2(%arg0: i32, %arg1: i32) -> (i32, i32) {
    %c0_i32 = arith.constant 0 : i32
    %c0_i32_0 = arith.constant 0 : i32
    %c0_i32_1 = arith.constant 0 : i32
    return %c0_i32, %c0_i32_0 : i32, i32
  }
  func.func @transform_3(%arg0: i32, %arg1: i32) -> (i32, i32, i32, i32) {
    %c0_i32 = arith.constant 0 : i32
    %c0_i32_0 = arith.constant 0 : i32
    %c0_i32_1 = arith.constant 0 : i32
    return %arg0, %arg1, %c0_i32, %c0_i32_0 : i32, i32, i32, i32
  }
}

module attributes {stable_mosaic.version = 11 : i64} {
  func.func @_convt_phase_kernel(%arg0: i32, %arg1: i32, %arg2: memref<1x8x1190xbf16, #tpu.memory_space<vmem>>, %arg3: memref<1x4x3x8xbf16, #tpu.memory_space<vmem>>, %arg4: memref<1x1x3x1088xbf16, #tpu.memory_space<vmem>>, %arg5: memref<1x1x3x2xf32, #tpu.memory_space<vmem>>) attributes {dimension_semantics = [#tpu.dimension_semantics<parallel>, #tpu.dimension_semantics<parallel>], iteration_bounds = array<i64: 2, 4>, scalar_prefetch = 0 : i64, scratch_operands = 0 : i64, tpu.core_type = #tpu.core_type<tc>, window_params = [{transform_indices = @transform_0, window_bounds = array<i64: 1, 8, 1190>}, {transform_indices = @transform_1, window_bounds = array<i64: 1, 4, 3, 8>}, {transform_indices = @transform_2, window_bounds = array<i64: 1, 1, 3, 1088>}, {transform_indices = @transform_3, window_bounds = array<i64: 1, 1, 3, 2>}]} {
    %0 = tpu.iota {dimensions = array<i32: 1>} : vector<1x1088xi32>
    %c34_i32 = arith.constant 34 : i32
    %c0_i32 = arith.constant 0 : i32
    %1 = arith.cmpi eq, %c34_i32, %c0_i32 : i32
    %c1_i32 = arith.constant 1 : i32
    %2 = arith.select %1, %c1_i32, %c34_i32 : i32
    %3 = vector.broadcast %2 : i32 to vector<1x1088xi32>
    %4 = arith.remsi %0, %3 : vector<1x1088xi32>
    %c0_i32_0 = arith.constant 0 : i32
    %5 = vector.broadcast %c0_i32_0 : i32 to vector<1x1088xi32>
    %6 = arith.cmpi ne, %4, %5 : vector<1x1088xi32>
    %c0_i32_1 = arith.constant 0 : i32
    %7 = vector.broadcast %c0_i32_1 : i32 to vector<1x1088xi32>
    %8 = arith.cmpi slt, %4, %7 : vector<1x1088xi32>
    %c0_i32_2 = arith.constant 0 : i32
    %9 = arith.cmpi slt, %2, %c0_i32_2 : i32
    %10 = vector.broadcast %9 : i1 to vector<1x1088xi1>
    %11 = vector.broadcast %10 : vector<1x1088xi1> to vector<1x1088xi1>
    %12 = arith.xori %8, %11 : vector<1x1088xi1>
    %13 = arith.andi %12, %6 : vector<1x1088xi1>
    %14 = vector.broadcast %2 : i32 to vector<1x1088xi32>
    %15 = arith.addi %4, %14 : vector<1x1088xi32>
    %16 = arith.select %13, %15, %4 : vector<1x1088xi1>, vector<1x1088xi32>
    %c32_i32 = arith.constant 32 : i32
    %17 = vector.broadcast %c32_i32 : i32 to vector<1x1088xi32>
    %18 = arith.cmpi slt, %16, %17 : vector<1x1088xi32>
    %19 = arith.extui %18 : vector<1x1088xi1> to vector<1x1088xi32>
    %20 = arith.sitofp %19 : vector<1x1088xi32> to vector<1x1088xf32>
    %c0_i32_3 = arith.constant 0 : i32
    %21 = arith.cmpi eq, %arg1, %c0_i32_3 : i32
    %22 = arith.extui %21 : i1 to i32
    %c0_i32_4 = arith.constant 0 : i32
    %23 = arith.cmpi ne, %22, %c0_i32_4 : i32
    scf.if %23 {
      %c0 = arith.constant 0 : index
      %c0_9 = arith.constant 0 : index
      %c0_10 = arith.constant 0 : index
      %33 = vector.load %arg2[%c0, %c0_9, %c0_10] : memref<1x8x1190xbf16, #tpu.memory_space<vmem>>, vector<1x8x1088xbf16>
      %34 = vector.shape_cast %33 : vector<1x8x1088xbf16> to vector<8x1088xbf16>
      %c0_11 = arith.constant 0 : index
      %c0_12 = arith.constant 0 : index
      %c0_13 = arith.constant 0 : index
      %c0_14 = arith.constant 0 : index
      %35 = vector.load %arg3[%c0_11, %c0_12, %c0_13, %c0_14] : memref<1x4x3x8xbf16, #tpu.memory_space<vmem>>, vector<1x1x3x8xbf16>
      %36 = vector.shape_cast %35 : vector<1x1x3x8xbf16> to vector<3x8xbf16>
      %cst = arith.constant dense<0.000000e+00> : vector<3x1088xf32>
      %37 = tpu.matmul %36, %34, %cst {dimension_numbers = #tpu.dot_dimension_numbers<[1], [0], [0], [1], [0, 0, 1, 1], [], []>} : vector<3x8xbf16>, vector<8x1088xbf16>, vector<3x1088xf32> -> vector<3x1088xf32>
      %c0_15 = arith.constant 0 : index
      %c0_16 = arith.constant 0 : index
      %c1 = arith.constant 1 : index
      %38 = vector.load %arg2[%c0_15, %c0_16, %c1] : memref<1x8x1190xbf16, #tpu.memory_space<vmem>>, vector<1x8x1088xbf16>
      %39 = vector.shape_cast %38 : vector<1x8x1088xbf16> to vector<8x1088xbf16>
      %c0_17 = arith.constant 0 : index
      %c1_18 = arith.constant 1 : index
      %c0_19 = arith.constant 0 : index
      %c0_20 = arith.constant 0 : index
      %40 = vector.load %arg3[%c0_17, %c1_18, %c0_19, %c0_20] : memref<1x4x3x8xbf16, #tpu.memory_space<vmem>>, vector<1x1x3x8xbf16>
      %41 = vector.shape_cast %40 : vector<1x1x3x8xbf16> to vector<3x8xbf16>
      %cst_21 = arith.constant dense<0.000000e+00> : vector<3x1088xf32>
      %42 = tpu.matmul %41, %39, %cst_21 {dimension_numbers = #tpu.dot_dimension_numbers<[1], [0], [0], [1], [0, 0, 1, 1], [], []>} : vector<3x8xbf16>, vector<8x1088xbf16>, vector<3x1088xf32> -> vector<3x1088xf32>
      %43 = arith.addf %37, %42 : vector<3x1088xf32>
      %c0_22 = arith.constant 0 : index
      %c0_23 = arith.constant 0 : index
      %c34 = arith.constant 34 : index
      %44 = vector.load %arg2[%c0_22, %c0_23, %c34] : memref<1x8x1190xbf16, #tpu.memory_space<vmem>>, vector<1x8x1088xbf16>
      %45 = vector.shape_cast %44 : vector<1x8x1088xbf16> to vector<8x1088xbf16>
      %c0_24 = arith.constant 0 : index
      %c2 = arith.constant 2 : index
      %c0_25 = arith.constant 0 : index
      %c0_26 = arith.constant 0 : index
      %46 = vector.load %arg3[%c0_24, %c2, %c0_25, %c0_26] : memref<1x4x3x8xbf16, #tpu.memory_space<vmem>>, vector<1x1x3x8xbf16>
      %47 = vector.shape_cast %46 : vector<1x1x3x8xbf16> to vector<3x8xbf16>
      %cst_27 = arith.constant dense<0.000000e+00> : vector<3x1088xf32>
      %48 = tpu.matmul %47, %45, %cst_27 {dimension_numbers = #tpu.dot_dimension_numbers<[1], [0], [0], [1], [0, 0, 1, 1], [], []>} : vector<3x8xbf16>, vector<8x1088xbf16>, vector<3x1088xf32> -> vector<3x1088xf32>
      %49 = arith.addf %43, %48 : vector<3x1088xf32>
      %c0_28 = arith.constant 0 : index
      %c0_29 = arith.constant 0 : index
      %c35 = arith.constant 35 : index
      %50 = vector.load %arg2[%c0_28, %c0_29, %c35] : memref<1x8x1190xbf16, #tpu.memory_space<vmem>>, vector<1x8x1088xbf16>
      %51 = vector.shape_cast %50 : vector<1x8x1088xbf16> to vector<8x1088xbf16>
      %c0_30 = arith.constant 0 : index
      %c3 = arith.constant 3 : index
      %c0_31 = arith.constant 0 : index
      %c0_32 = arith.constant 0 : index
      %52 = vector.load %arg3[%c0_30, %c3, %c0_31, %c0_32] : memref<1x4x3x8xbf16, #tpu.memory_space<vmem>>, vector<1x1x3x8xbf16>
      %53 = vector.shape_cast %52 : vector<1x1x3x8xbf16> to vector<3x8xbf16>
      %cst_33 = arith.constant dense<0.000000e+00> : vector<3x1088xf32>
      %54 = tpu.matmul %53, %51, %cst_33 {dimension_numbers = #tpu.dot_dimension_numbers<[1], [0], [0], [1], [0, 0, 1, 1], [], []>} : vector<3x8xbf16>, vector<8x1088xbf16>, vector<3x1088xf32> -> vector<3x1088xf32>
      %55 = arith.addf %49, %54 : vector<3x1088xf32>
      %56 = vector.broadcast %20 : vector<1x1088xf32> to vector<3x1088xf32>
      %57 = arith.mulf %55, %56 : vector<3x1088xf32>
      %cst_34 = arith.constant dense<0.000000e+00> : vector<3xf32>
      %58 = vector.multi_reduction <add>, %57, %cst_34 [1] : vector<3x1088xf32> to vector<3xf32>
      %59 = vector.shape_cast %58 : vector<3xf32> to vector<3x1xf32>
      %60 = arith.mulf %55, %57 : vector<3x1088xf32>
      %cst_35 = arith.constant dense<0.000000e+00> : vector<3xf32>
      %61 = vector.multi_reduction <add>, %60, %cst_35 [1] : vector<3x1088xf32> to vector<3xf32>
      %62 = vector.shape_cast %61 : vector<3xf32> to vector<3x1xf32>
      %63 = arith.truncf %55 : vector<3x1088xf32> to vector<3x1088xbf16>
      %c0_36 = arith.constant 0 : index
      %c0_37 = arith.constant 0 : index
      %c0_38 = arith.constant 0 : index
      %c0_39 = arith.constant 0 : index
      %64 = vector.load %arg4[%c0_36, %c0_37, %c0_38, %c0_39] : memref<1x1x3x1088xbf16, #tpu.memory_space<vmem>>, vector<1x1x3x1088xbf16>
      %65 = vector.shape_cast %64 : vector<1x1x3x1088xbf16> to vector<3x1088xbf16>
      %66 = vector.shape_cast %63 : vector<3x1088xbf16> to vector<1x1x3x1088xbf16>
      tpu.vector_store %arg4[%c0_36, %c0_37, %c0_38, %c0_39], %66 {strides = array<i32>} : memref<1x1x3x1088xbf16, #tpu.memory_space<vmem>>, vector<1x1x3x1088xbf16>,
      %67 = tpu.concatenate %59, %62 in 1 : vector<3x1xf32>, vector<3x1xf32> -> vector<3x2xf32>
      %c0_40 = arith.constant 0 : index
      %c0_41 = arith.constant 0 : index
      %c0_42 = arith.constant 0 : index
      %c0_43 = arith.constant 0 : index
      %68 = vector.load %arg5[%c0_40, %c0_41, %c0_42, %c0_43] : memref<1x1x3x2xf32, #tpu.memory_space<vmem>>, vector<1x1x3x2xf32>
      %69 = vector.shape_cast %68 : vector<1x1x3x2xf32> to vector<3x2xf32>
      %70 = vector.shape_cast %67 : vector<3x2xf32> to vector<1x1x3x2xf32>
      tpu.vector_store %arg5[%c0_40, %c0_41, %c0_42, %c0_43], %70 {strides = array<i32>} : memref<1x1x3x2xf32, #tpu.memory_space<vmem>>, vector<1x1x3x2xf32>,
    } else {
    }
    %c1_i32_5 = arith.constant 1 : i32
    %24 = arith.cmpi eq, %arg1, %c1_i32_5 : i32
    %25 = arith.extui %24 : i1 to i32
    %c0_i32_6 = arith.constant 0 : i32
    %26 = arith.cmpi ne, %25, %c0_i32_6 : i32
    scf.if %26 {
      %c0 = arith.constant 0 : index
      %c0_9 = arith.constant 0 : index
      %c1 = arith.constant 1 : index
      %33 = vector.load %arg2[%c0, %c0_9, %c1] : memref<1x8x1190xbf16, #tpu.memory_space<vmem>>, vector<1x8x1088xbf16>
      %34 = vector.shape_cast %33 : vector<1x8x1088xbf16> to vector<8x1088xbf16>
      %c0_10 = arith.constant 0 : index
      %c0_11 = arith.constant 0 : index
      %c0_12 = arith.constant 0 : index
      %c0_13 = arith.constant 0 : index
      %35 = vector.load %arg3[%c0_10, %c0_11, %c0_12, %c0_13] : memref<1x4x3x8xbf16, #tpu.memory_space<vmem>>, vector<1x1x3x8xbf16>
      %36 = vector.shape_cast %35 : vector<1x1x3x8xbf16> to vector<3x8xbf16>
      %cst = arith.constant dense<0.000000e+00> : vector<3x1088xf32>
      %37 = tpu.matmul %36, %34, %cst {dimension_numbers = #tpu.dot_dimension_numbers<[1], [0], [0], [1], [0, 0, 1, 1], [], []>} : vector<3x8xbf16>, vector<8x1088xbf16>, vector<3x1088xf32> -> vector<3x1088xf32>
      %c0_14 = arith.constant 0 : index
      %c0_15 = arith.constant 0 : index
      %c2 = arith.constant 2 : index
      %38 = vector.load %arg2[%c0_14, %c0_15, %c2] : memref<1x8x1190xbf16, #tpu.memory_space<vmem>>, vector<1x8x1088xbf16>
      %39 = vector.shape_cast %38 : vector<1x8x1088xbf16> to vector<8x1088xbf16>
      %c0_16 = arith.constant 0 : index
      %c1_17 = arith.constant 1 : index
      %c0_18 = arith.constant 0 : index
      %c0_19 = arith.constant 0 : index
      %40 = vector.load %arg3[%c0_16, %c1_17, %c0_18, %c0_19] : memref<1x4x3x8xbf16, #tpu.memory_space<vmem>>, vector<1x1x3x8xbf16>
      %41 = vector.shape_cast %40 : vector<1x1x3x8xbf16> to vector<3x8xbf16>
      %cst_20 = arith.constant dense<0.000000e+00> : vector<3x1088xf32>
      %42 = tpu.matmul %41, %39, %cst_20 {dimension_numbers = #tpu.dot_dimension_numbers<[1], [0], [0], [1], [0, 0, 1, 1], [], []>} : vector<3x8xbf16>, vector<8x1088xbf16>, vector<3x1088xf32> -> vector<3x1088xf32>
      %43 = arith.addf %37, %42 : vector<3x1088xf32>
      %c0_21 = arith.constant 0 : index
      %c0_22 = arith.constant 0 : index
      %c35 = arith.constant 35 : index
      %44 = vector.load %arg2[%c0_21, %c0_22, %c35] : memref<1x8x1190xbf16, #tpu.memory_space<vmem>>, vector<1x8x1088xbf16>
      %45 = vector.shape_cast %44 : vector<1x8x1088xbf16> to vector<8x1088xbf16>
      %c0_23 = arith.constant 0 : index
      %c2_24 = arith.constant 2 : index
      %c0_25 = arith.constant 0 : index
      %c0_26 = arith.constant 0 : index
      %46 = vector.load %arg3[%c0_23, %c2_24, %c0_25, %c0_26] : memref<1x4x3x8xbf16, #tpu.memory_space<vmem>>, vector<1x1x3x8xbf16>
      %47 = vector.shape_cast %46 : vector<1x1x3x8xbf16> to vector<3x8xbf16>
      %cst_27 = arith.constant dense<0.000000e+00> : vector<3x1088xf32>
      %48 = tpu.matmul %47, %45, %cst_27 {dimension_numbers = #tpu.dot_dimension_numbers<[1], [0], [0], [1], [0, 0, 1, 1], [], []>} : vector<3x8xbf16>, vector<8x1088xbf16>, vector<3x1088xf32> -> vector<3x1088xf32>
      %49 = arith.addf %43, %48 : vector<3x1088xf32>
      %c0_28 = arith.constant 0 : index
      %c0_29 = arith.constant 0 : index
      %c36 = arith.constant 36 : index
      %50 = vector.load %arg2[%c0_28, %c0_29, %c36] : memref<1x8x1190xbf16, #tpu.memory_space<vmem>>, vector<1x8x1088xbf16>
      %51 = vector.shape_cast %50 : vector<1x8x1088xbf16> to vector<8x1088xbf16>
      %c0_30 = arith.constant 0 : index
      %c3 = arith.constant 3 : index
      %c0_31 = arith.constant 0 : index
      %c0_32 = arith.constant 0 : index
      %52 = vector.load %arg3[%c0_30, %c3, %c0_31, %c0_32] : memref<1x4x3x8xbf16, #tpu.memory_space<vmem>>, vector<1x1x3x8xbf16>
      %53 = vector.shape_cast %52 : vector<1x1x3x8xbf16> to vector<3x8xbf16>
      %cst_33 = arith.constant dense<0.000000e+00> : vector<3x1088xf32>
      %54 = tpu.matmul %53, %51, %cst_33 {dimension_numbers = #tpu.dot_dimension_numbers<[1], [0], [0], [1], [0, 0, 1, 1], [], []>} : vector<3x8xbf16>, vector<8x1088xbf16>, vector<3x1088xf32> -> vector<3x1088xf32>
      %55 = arith.addf %49, %54 : vector<3x1088xf32>
      %56 = vector.broadcast %20 : vector<1x1088xf32> to vector<3x1088xf32>
      %57 = arith.mulf %55, %56 : vector<3x1088xf32>
      %cst_34 = arith.constant dense<0.000000e+00> : vector<3xf32>
      %58 = vector.multi_reduction <add>, %57, %cst_34 [1] : vector<3x1088xf32> to vector<3xf32>
      %59 = vector.shape_cast %58 : vector<3xf32> to vector<3x1xf32>
      %60 = arith.mulf %55, %57 : vector<3x1088xf32>
      %cst_35 = arith.constant dense<0.000000e+00> : vector<3xf32>
      %61 = vector.multi_reduction <add>, %60, %cst_35 [1] : vector<3x1088xf32> to vector<3xf32>
      %62 = vector.shape_cast %61 : vector<3xf32> to vector<3x1xf32>
      %63 = arith.truncf %55 : vector<3x1088xf32> to vector<3x1088xbf16>
      %c0_36 = arith.constant 0 : index
      %c0_37 = arith.constant 0 : index
      %c0_38 = arith.constant 0 : index
      %c0_39 = arith.constant 0 : index
      %64 = vector.load %arg4[%c0_36, %c0_37, %c0_38, %c0_39] : memref<1x1x3x1088xbf16, #tpu.memory_space<vmem>>, vector<1x1x3x1088xbf16>
      %65 = vector.shape_cast %64 : vector<1x1x3x1088xbf16> to vector<3x1088xbf16>
      %66 = vector.shape_cast %63 : vector<3x1088xbf16> to vector<1x1x3x1088xbf16>
      tpu.vector_store %arg4[%c0_36, %c0_37, %c0_38, %c0_39], %66 {strides = array<i32>} : memref<1x1x3x1088xbf16, #tpu.memory_space<vmem>>, vector<1x1x3x1088xbf16>,
      %67 = tpu.concatenate %59, %62 in 1 : vector<3x1xf32>, vector<3x1xf32> -> vector<3x2xf32>
      %c0_40 = arith.constant 0 : index
      %c0_41 = arith.constant 0 : index
      %c0_42 = arith.constant 0 : index
      %c0_43 = arith.constant 0 : index
      %68 = vector.load %arg5[%c0_40, %c0_41, %c0_42, %c0_43] : memref<1x1x3x2xf32, #tpu.memory_space<vmem>>, vector<1x1x3x2xf32>
      %69 = vector.shape_cast %68 : vector<1x1x3x2xf32> to vector<3x2xf32>
      %70 = vector.shape_cast %67 : vector<3x2xf32> to vector<1x1x3x2xf32>
      tpu.vector_store %arg5[%c0_40, %c0_41, %c0_42, %c0_43], %70 {strides = array<i32>} : memref<1x1x3x2xf32, #tpu.memory_space<vmem>>, vector<1x1x3x2xf32>,
    } else {
    }
    %c2_i32 = arith.constant 2 : i32
    %27 = arith.cmpi eq, %arg1, %c2_i32 : i32
    %28 = arith.extui %27 : i1 to i32
    %c0_i32_7 = arith.constant 0 : i32
    %29 = arith.cmpi ne, %28, %c0_i32_7 : i32
    scf.if %29 {
      %c0 = arith.constant 0 : index
      %c0_9 = arith.constant 0 : index
      %c34 = arith.constant 34 : index
      %33 = vector.load %arg2[%c0, %c0_9, %c34] : memref<1x8x1190xbf16, #tpu.memory_space<vmem>>, vector<1x8x1088xbf16>
      %34 = vector.shape_cast %33 : vector<1x8x1088xbf16> to vector<8x1088xbf16>
      %c0_10 = arith.constant 0 : index
      %c0_11 = arith.constant 0 : index
      %c0_12 = arith.constant 0 : index
      %c0_13 = arith.constant 0 : index
      %35 = vector.load %arg3[%c0_10, %c0_11, %c0_12, %c0_13] : memref<1x4x3x8xbf16, #tpu.memory_space<vmem>>, vector<1x1x3x8xbf16>
      %36 = vector.shape_cast %35 : vector<1x1x3x8xbf16> to vector<3x8xbf16>
      %cst = arith.constant dense<0.000000e+00> : vector<3x1088xf32>
      %37 = tpu.matmul %36, %34, %cst {dimension_numbers = #tpu.dot_dimension_numbers<[1], [0], [0], [1], [0, 0, 1, 1], [], []>} : vector<3x8xbf16>, vector<8x1088xbf16>, vector<3x1088xf32> -> vector<3x1088xf32>
      %c0_14 = arith.constant 0 : index
      %c0_15 = arith.constant 0 : index
      %c35 = arith.constant 35 : index
      %38 = vector.load %arg2[%c0_14, %c0_15, %c35] : memref<1x8x1190xbf16, #tpu.memory_space<vmem>>, vector<1x8x1088xbf16>
      %39 = vector.shape_cast %38 : vector<1x8x1088xbf16> to vector<8x1088xbf16>
      %c0_16 = arith.constant 0 : index
      %c1 = arith.constant 1 : index
      %c0_17 = arith.constant 0 : index
      %c0_18 = arith.constant 0 : index
      %40 = vector.load %arg3[%c0_16, %c1, %c0_17, %c0_18] : memref<1x4x3x8xbf16, #tpu.memory_space<vmem>>, vector<1x1x3x8xbf16>
      %41 = vector.shape_cast %40 : vector<1x1x3x8xbf16> to vector<3x8xbf16>
      %cst_19 = arith.constant dense<0.000000e+00> : vector<3x1088xf32>
      %42 = tpu.matmul %41, %39, %cst_19 {dimension_numbers = #tpu.dot_dimension_numbers<[1], [0], [0], [1], [0, 0, 1, 1], [], []>} : vector<3x8xbf16>, vector<8x1088xbf16>, vector<3x1088xf32> -> vector<3x1088xf32>
      %43 = arith.addf %37, %42 : vector<3x1088xf32>
      %c0_20 = arith.constant 0 : index
      %c0_21 = arith.constant 0 : index
      %c68 = arith.constant 68 : index
      %44 = vector.load %arg2[%c0_20, %c0_21, %c68] : memref<1x8x1190xbf16, #tpu.memory_space<vmem>>, vector<1x8x1088xbf16>
      %45 = vector.shape_cast %44 : vector<1x8x1088xbf16> to vector<8x1088xbf16>
      %c0_22 = arith.constant 0 : index
      %c2 = arith.constant 2 : index
      %c0_23 = arith.constant 0 : index
      %c0_24 = arith.constant 0 : index
      %46 = vector.load %arg3[%c0_22, %c2, %c0_23, %c0_24] : memref<1x4x3x8xbf16, #tpu.memory_space<vmem>>, vector<1x1x3x8xbf16>
      %47 = vector.shape_cast %46 : vector<1x1x3x8xbf16> to vector<3x8xbf16>
      %cst_25 = arith.constant dense<0.000000e+00> : vector<3x1088xf32>
      %48 = tpu.matmul %47, %45, %cst_25 {dimension_numbers = #tpu.dot_dimension_numbers<[1], [0], [0], [1], [0, 0, 1, 1], [], []>} : vector<3x8xbf16>, vector<8x1088xbf16>, vector<3x1088xf32> -> vector<3x1088xf32>
      %49 = arith.addf %43, %48 : vector<3x1088xf32>
      %c0_26 = arith.constant 0 : index
      %c0_27 = arith.constant 0 : index
      %c69 = arith.constant 69 : index
      %50 = vector.load %arg2[%c0_26, %c0_27, %c69] : memref<1x8x1190xbf16, #tpu.memory_space<vmem>>, vector<1x8x1088xbf16>
      %51 = vector.shape_cast %50 : vector<1x8x1088xbf16> to vector<8x1088xbf16>
      %c0_28 = arith.constant 0 : index
      %c3 = arith.constant 3 : index
      %c0_29 = arith.constant 0 : index
      %c0_30 = arith.constant 0 : index
      %52 = vector.load %arg3[%c0_28, %c3, %c0_29, %c0_30] : memref<1x4x3x8xbf16, #tpu.memory_space<vmem>>, vector<1x1x3x8xbf16>
      %53 = vector.shape_cast %52 : vector<1x1x3x8xbf16> to vector<3x8xbf16>
      %cst_31 = arith.constant dense<0.000000e+00> : vector<3x1088xf32>
      %54 = tpu.matmul %53, %51, %cst_31 {dimension_numbers = #tpu.dot_dimension_numbers<[1], [0], [0], [1], [0, 0, 1, 1], [], []>} : vector<3x8xbf16>, vector<8x1088xbf16>, vector<3x1088xf32> -> vector<3x1088xf32>
      %55 = arith.addf %49, %54 : vector<3x1088xf32>
      %56 = vector.broadcast %20 : vector<1x1088xf32> to vector<3x1088xf32>
      %57 = arith.mulf %55, %56 : vector<3x1088xf32>
      %cst_32 = arith.constant dense<0.000000e+00> : vector<3xf32>
      %58 = vector.multi_reduction <add>, %57, %cst_32 [1] : vector<3x1088xf32> to vector<3xf32>
      %59 = vector.shape_cast %58 : vector<3xf32> to vector<3x1xf32>
      %60 = arith.mulf %55, %57 : vector<3x1088xf32>
      %cst_33 = arith.constant dense<0.000000e+00> : vector<3xf32>
      %61 = vector.multi_reduction <add>, %60, %cst_33 [1] : vector<3x1088xf32> to vector<3xf32>
      %62 = vector.shape_cast %61 : vector<3xf32> to vector<3x1xf32>
      %63 = arith.truncf %55 : vector<3x1088xf32> to vector<3x1088xbf16>
      %c0_34 = arith.constant 0 : index
      %c0_35 = arith.constant 0 : index
      %c0_36 = arith.constant 0 : index
      %c0_37 = arith.constant 0 : index
      %64 = vector.load %arg4[%c0_34, %c0_35, %c0_36, %c0_37] : memref<1x1x3x1088xbf16, #tpu.memory_space<vmem>>, vector<1x1x3x1088xbf16>
      %65 = vector.shape_cast %64 : vector<1x1x3x1088xbf16> to vector<3x1088xbf16>
      %66 = vector.shape_cast %63 : vector<3x1088xbf16> to vector<1x1x3x1088xbf16>
      tpu.vector_store %arg4[%c0_34, %c0_35, %c0_36, %c0_37], %66 {strides = array<i32>} : memref<1x1x3x1088xbf16, #tpu.memory_space<vmem>>, vector<1x1x3x1088xbf16>,
      %67 = tpu.concatenate %59, %62 in 1 : vector<3x1xf32>, vector<3x1xf32> -> vector<3x2xf32>
      %c0_38 = arith.constant 0 : index
      %c0_39 = arith.constant 0 : index
      %c0_40 = arith.constant 0 : index
      %c0_41 = arith.constant 0 : index
      %68 = vector.load %arg5[%c0_38, %c0_39, %c0_40, %c0_41] : memref<1x1x3x2xf32, #tpu.memory_space<vmem>>, vector<1x1x3x2xf32>
      %69 = vector.shape_cast %68 : vector<1x1x3x2xf32> to vector<3x2xf32>
      %70 = vector.shape_cast %67 : vector<3x2xf32> to vector<1x1x3x2xf32>
      tpu.vector_store %arg5[%c0_38, %c0_39, %c0_40, %c0_41], %70 {strides = array<i32>} : memref<1x1x3x2xf32, #tpu.memory_space<vmem>>, vector<1x1x3x2xf32>,
    } else {
    }
    %c3_i32 = arith.constant 3 : i32
    %30 = arith.cmpi eq, %arg1, %c3_i32 : i32
    %31 = arith.extui %30 : i1 to i32
    %c0_i32_8 = arith.constant 0 : i32
    %32 = arith.cmpi ne, %31, %c0_i32_8 : i32
    scf.if %32 {
      %c0 = arith.constant 0 : index
      %c0_9 = arith.constant 0 : index
      %c35 = arith.constant 35 : index
      %33 = vector.load %arg2[%c0, %c0_9, %c35] : memref<1x8x1190xbf16, #tpu.memory_space<vmem>>, vector<1x8x1088xbf16>
      %34 = vector.shape_cast %33 : vector<1x8x1088xbf16> to vector<8x1088xbf16>
      %c0_10 = arith.constant 0 : index
      %c0_11 = arith.constant 0 : index
      %c0_12 = arith.constant 0 : index
      %c0_13 = arith.constant 0 : index
      %35 = vector.load %arg3[%c0_10, %c0_11, %c0_12, %c0_13] : memref<1x4x3x8xbf16, #tpu.memory_space<vmem>>, vector<1x1x3x8xbf16>
      %36 = vector.shape_cast %35 : vector<1x1x3x8xbf16> to vector<3x8xbf16>
      %cst = arith.constant dense<0.000000e+00> : vector<3x1088xf32>
      %37 = tpu.matmul %36, %34, %cst {dimension_numbers = #tpu.dot_dimension_numbers<[1], [0], [0], [1], [0, 0, 1, 1], [], []>} : vector<3x8xbf16>, vector<8x1088xbf16>, vector<3x1088xf32> -> vector<3x1088xf32>
      %c0_14 = arith.constant 0 : index
      %c0_15 = arith.constant 0 : index
      %c36 = arith.constant 36 : index
      %38 = vector.load %arg2[%c0_14, %c0_15, %c36] : memref<1x8x1190xbf16, #tpu.memory_space<vmem>>, vector<1x8x1088xbf16>
      %39 = vector.shape_cast %38 : vector<1x8x1088xbf16> to vector<8x1088xbf16>
      %c0_16 = arith.constant 0 : index
      %c1 = arith.constant 1 : index
      %c0_17 = arith.constant 0 : index
      %c0_18 = arith.constant 0 : index
      %40 = vector.load %arg3[%c0_16, %c1, %c0_17, %c0_18] : memref<1x4x3x8xbf16, #tpu.memory_space<vmem>>, vector<1x1x3x8xbf16>
      %41 = vector.shape_cast %40 : vector<1x1x3x8xbf16> to vector<3x8xbf16>
      %cst_19 = arith.constant dense<0.000000e+00> : vector<3x1088xf32>
      %42 = tpu.matmul %41, %39, %cst_19 {dimension_numbers = #tpu.dot_dimension_numbers<[1], [0], [0], [1], [0, 0, 1, 1], [], []>} : vector<3x8xbf16>, vector<8x1088xbf16>, vector<3x1088xf32> -> vector<3x1088xf32>
      %43 = arith.addf %37, %42 : vector<3x1088xf32>
      %c0_20 = arith.constant 0 : index
      %c0_21 = arith.constant 0 : index
      %c69 = arith.constant 69 : index
      %44 = vector.load %arg2[%c0_20, %c0_21, %c69] : memref<1x8x1190xbf16, #tpu.memory_space<vmem>>, vector<1x8x1088xbf16>
      %45 = vector.shape_cast %44 : vector<1x8x1088xbf16> to vector<8x1088xbf16>
      %c0_22 = arith.constant 0 : index
      %c2 = arith.constant 2 : index
      %c0_23 = arith.constant 0 : index
      %c0_24 = arith.constant 0 : index
      %46 = vector.load %arg3[%c0_22, %c2, %c0_23, %c0_24] : memref<1x4x3x8xbf16, #tpu.memory_space<vmem>>, vector<1x1x3x8xbf16>
      %47 = vector.shape_cast %46 : vector<1x1x3x8xbf16> to vector<3x8xbf16>
      %cst_25 = arith.constant dense<0.000000e+00> : vector<3x1088xf32>
      %48 = tpu.matmul %47, %45, %cst_25 {dimension_numbers = #tpu.dot_dimension_numbers<[1], [0], [0], [1], [0, 0, 1, 1], [], []>} : vector<3x8xbf16>, vector<8x1088xbf16>, vector<3x1088xf32> -> vector<3x1088xf32>
      %49 = arith.addf %43, %48 : vector<3x1088xf32>
      %c0_26 = arith.constant 0 : index
      %c0_27 = arith.constant 0 : index
      %c70 = arith.constant 70 : index
      %50 = vector.load %arg2[%c0_26, %c0_27, %c70] : memref<1x8x1190xbf16, #tpu.memory_space<vmem>>, vector<1x8x1088xbf16>
      %51 = vector.shape_cast %50 : vector<1x8x1088xbf16> to vector<8x1088xbf16>
      %c0_28 = arith.constant 0 : index
      %c3 = arith.constant 3 : index
      %c0_29 = arith.constant 0 : index
      %c0_30 = arith.constant 0 : index
      %52 = vector.load %arg3[%c0_28, %c3, %c0_29, %c0_30] : memref<1x4x3x8xbf16, #tpu.memory_space<vmem>>, vector<1x1x3x8xbf16>
      %53 = vector.shape_cast %52 : vector<1x1x3x8xbf16> to vector<3x8xbf16>
      %cst_31 = arith.constant dense<0.000000e+00> : vector<3x1088xf32>
      %54 = tpu.matmul %53, %51, %cst_31 {dimension_numbers = #tpu.dot_dimension_numbers<[1], [0], [0], [1], [0, 0, 1, 1], [], []>} : vector<3x8xbf16>, vector<8x1088xbf16>, vector<3x1088xf32> -> vector<3x1088xf32>
      %55 = arith.addf %49, %54 : vector<3x1088xf32>
      %56 = vector.broadcast %20 : vector<1x1088xf32> to vector<3x1088xf32>
      %57 = arith.mulf %55, %56 : vector<3x1088xf32>
      %cst_32 = arith.constant dense<0.000000e+00> : vector<3xf32>
      %58 = vector.multi_reduction <add>, %57, %cst_32 [1] : vector<3x1088xf32> to vector<3xf32>
      %59 = vector.shape_cast %58 : vector<3xf32> to vector<3x1xf32>
      %60 = arith.mulf %55, %57 : vector<3x1088xf32>
      %cst_33 = arith.constant dense<0.000000e+00> : vector<3xf32>
      %61 = vector.multi_reduction <add>, %60, %cst_33 [1] : vector<3x1088xf32> to vector<3xf32>
      %62 = vector.shape_cast %61 : vector<3xf32> to vector<3x1xf32>
      %63 = arith.truncf %55 : vector<3x1088xf32> to vector<3x1088xbf16>
      %c0_34 = arith.constant 0 : index
      %c0_35 = arith.constant 0 : index
      %c0_36 = arith.constant 0 : index
      %c0_37 = arith.constant 0 : index
      %64 = vector.load %arg4[%c0_34, %c0_35, %c0_36, %c0_37] : memref<1x1x3x1088xbf16, #tpu.memory_space<vmem>>, vector<1x1x3x1088xbf16>
      %65 = vector.shape_cast %64 : vector<1x1x3x1088xbf16> to vector<3x1088xbf16>
      %66 = vector.shape_cast %63 : vector<3x1088xbf16> to vector<1x1x3x1088xbf16>
      tpu.vector_store %arg4[%c0_34, %c0_35, %c0_36, %c0_37], %66 {strides = array<i32>} : memref<1x1x3x1088xbf16, #tpu.memory_space<vmem>>, vector<1x1x3x1088xbf16>,
      %67 = tpu.concatenate %59, %62 in 1 : vector<3x1xf32>, vector<3x1xf32> -> vector<3x2xf32>
      %c0_38 = arith.constant 0 : index
      %c0_39 = arith.constant 0 : index
      %c0_40 = arith.constant 0 : index
      %c0_41 = arith.constant 0 : index
      %68 = vector.load %arg5[%c0_38, %c0_39, %c0_40, %c0_41] : memref<1x1x3x2xf32, #tpu.memory_space<vmem>>, vector<1x1x3x2xf32>
      %69 = vector.shape_cast %68 : vector<1x1x3x2xf32> to vector<3x2xf32>
      %70 = vector.shape_cast %67 : vector<3x2xf32> to vector<1x1x3x2xf32>
      tpu.vector_store %arg5[%c0_38, %c0_39, %c0_40, %c0_41], %70 {strides = array<i32>} : memref<1x1x3x2xf32, #tpu.memory_space<vmem>>, vector<1x1x3x2xf32>,
    } else {
    }
    return
  }
  func.func @transform_0(%arg0: i32, %arg1: i32) -> (i32, i32, i32) {
    %c0_i32 = arith.constant 0 : i32
    %c0_i32_0 = arith.constant 0 : i32
    %c0_i32_1 = arith.constant 0 : i32
    return %arg0, %c0_i32, %c0_i32_0 : i32, i32, i32
  }
  func.func @transform_1(%arg0: i32, %arg1: i32) -> (i32, i32, i32, i32) {
    %c0_i32 = arith.constant 0 : i32
    %c0_i32_0 = arith.constant 0 : i32
    %c0_i32_1 = arith.constant 0 : i32
    %c0_i32_2 = arith.constant 0 : i32
    return %arg1, %c0_i32, %c0_i32_0, %c0_i32_1 : i32, i32, i32, i32
  }
  func.func @transform_2(%arg0: i32, %arg1: i32) -> (i32, i32, i32, i32) {
    %c0_i32 = arith.constant 0 : i32
    %c0_i32_0 = arith.constant 0 : i32
    %c0_i32_1 = arith.constant 0 : i32
    return %arg0, %arg1, %c0_i32, %c0_i32_0 : i32, i32, i32, i32
  }
  func.func @transform_3(%arg0: i32, %arg1: i32) -> (i32, i32, i32, i32) {
    %c0_i32 = arith.constant 0 : i32
    %c0_i32_0 = arith.constant 0 : i32
    %c0_i32_1 = arith.constant 0 : i32
    return %arg0, %arg1, %c0_i32, %c0_i32_0 : i32, i32, i32, i32
  }
}

module attributes {stable_mosaic.version = 11 : i64} {
  func.func @_bn_relu_kernel(%arg0: i32, %arg1: i32, %arg2: memref<1x1x3x1088xbf16, #tpu.memory_space<vmem>>, %arg3: memref<3x1xf32, #tpu.memory_space<vmem>>, %arg4: memref<3x1xf32, #tpu.memory_space<vmem>>, %arg5: memref<1x1x3x1088xbf16, #tpu.memory_space<vmem>>) attributes {dimension_semantics = [#tpu.dimension_semantics<parallel>, #tpu.dimension_semantics<parallel>], iteration_bounds = array<i64: 2, 4>, scalar_prefetch = 0 : i64, scratch_operands = 0 : i64, tpu.core_type = #tpu.core_type<tc>, window_params = [{transform_indices = @transform_0, window_bounds = array<i64: 1, 1, 3, 1088>}, {pipeline_mode = #tpu.pipeline_mode<synchronous>, transform_indices = @transform_1, window_bounds = array<i64: 3, 1>}, {pipeline_mode = #tpu.pipeline_mode<synchronous>, transform_indices = @transform_2, window_bounds = array<i64: 3, 1>}, {transform_indices = @transform_3, window_bounds = array<i64: 1, 1, 3, 1088>}]} {
    %c0 = arith.constant 0 : index
    %c0_0 = arith.constant 0 : index
    %c0_1 = arith.constant 0 : index
    %c0_2 = arith.constant 0 : index
    %0 = vector.load %arg2[%c0, %c0_0, %c0_1, %c0_2] : memref<1x1x3x1088xbf16, #tpu.memory_space<vmem>>, vector<1x1x3x1088xbf16>
    %1 = vector.shape_cast %0 : vector<1x1x3x1088xbf16> to vector<3x1088xbf16>
    %2 = arith.extf %1 : vector<3x1088xbf16> to vector<3x1088xf32>
    %c0_3 = arith.constant 0 : index
    %c0_4 = arith.constant 0 : index
    %3 = vector.load %arg3[%c0_3, %c0_4] : memref<3x1xf32, #tpu.memory_space<vmem>>, vector<3x1xf32>
    %4 = vector.broadcast %3 : vector<3x1xf32> to vector<3x1088xf32>
    %5 = arith.mulf %2, %4 : vector<3x1088xf32>
    %c0_5 = arith.constant 0 : index
    %c0_6 = arith.constant 0 : index
    %6 = vector.load %arg4[%c0_5, %c0_6] : memref<3x1xf32, #tpu.memory_space<vmem>>, vector<3x1xf32>
    %7 = vector.broadcast %6 : vector<3x1xf32> to vector<3x1088xf32>
    %8 = arith.addf %5, %7 : vector<3x1088xf32>
    %cst = arith.constant 0.000000e+00 : f32
    %9 = vector.broadcast %cst : f32 to vector<3x1088xf32>
    %10 = arith.maximumf %8, %9 : vector<3x1088xf32>
    %11 = arith.truncf %10 : vector<3x1088xf32> to vector<3x1088xbf16>
    %c0_7 = arith.constant 0 : index
    %c0_8 = arith.constant 0 : index
    %c0_9 = arith.constant 0 : index
    %c0_10 = arith.constant 0 : index
    %12 = vector.load %arg5[%c0_7, %c0_8, %c0_9, %c0_10] : memref<1x1x3x1088xbf16, #tpu.memory_space<vmem>>, vector<1x1x3x1088xbf16>
    %13 = vector.shape_cast %12 : vector<1x1x3x1088xbf16> to vector<3x1088xbf16>
    %14 = vector.shape_cast %11 : vector<3x1088xbf16> to vector<1x1x3x1088xbf16>
    tpu.vector_store %arg5[%c0_7, %c0_8, %c0_9, %c0_10], %14 {strides = array<i32>} : memref<1x1x3x1088xbf16, #tpu.memory_space<vmem>>, vector<1x1x3x1088xbf16>,
    return
  }
  func.func @transform_0(%arg0: i32, %arg1: i32) -> (i32, i32, i32, i32) {
    %c0_i32 = arith.constant 0 : i32
    %c0_i32_0 = arith.constant 0 : i32
    %c0_i32_1 = arith.constant 0 : i32
    return %arg0, %arg1, %c0_i32, %c0_i32_0 : i32, i32, i32, i32
  }
  func.func @transform_1(%arg0: i32, %arg1: i32) -> (i32, i32) {
    %c0_i32 = arith.constant 0 : i32
    %c0_i32_0 = arith.constant 0 : i32
    %c0_i32_1 = arith.constant 0 : i32
    return %c0_i32, %c0_i32_0 : i32, i32
  }
  func.func @transform_2(%arg0: i32, %arg1: i32) -> (i32, i32) {
    %c0_i32 = arith.constant 0 : i32
    %c0_i32_0 = arith.constant 0 : i32
    %c0_i32_1 = arith.constant 0 : i32
    return %c0_i32, %c0_i32_0 : i32, i32
  }
  func.func @transform_3(%arg0: i32, %arg1: i32) -> (i32, i32, i32, i32) {
    %c0_i32 = arith.constant 0 : i32
    %c0_i32_0 = arith.constant 0 : i32
    %c0_i32_1 = arith.constant 0 : i32
    return %arg0, %arg1, %c0_i32, %c0_i32_0 : i32, i32, i32, i32
  }
}

</mosaic_0001>

<bundles_post_ra>
// kernel: _forward.11
= control target key start
LH: loop header
LB: loop body
LE: loop exit
PB: predicated region body
PF: predicated region fallthrough
CT: control target
= control target key end

     0   :  { %s506_s12 = smov 0   ;;  %s508_s13 = smov 0   ;;  %s593_s0 = inlined_call_operand.vmem [shape: bf16[2,4,32,24], index: 0, kind: input, shape index: {}]   ;;  %s594_s1 = inlined_call_operand.vmem [shape: f32[32,1], index: 1, kind: input, shape index: {}]   ;;  %s595_s2 = inlined_call_operand.vmem [shape: f32[32,1], index: 2, kind: input, shape index: {}]   ;;  %s596_s3 = inlined_call_operand.vmem [shape: bf16[2,4,32,24], index: 3, kind: output, shape index: {}]  }
   0x1   :  { %s510_s14 = smov 0   ;;  %s512_s15 = smov 0  }
   0x2   :  { %s514_s16 = smov 0  }
   0x3 LB: > { %s22_s17 = sadd.s32 1, %s475_s14  ;;  %s25_s18 = sadd.s32 1, %s479_s15  ;;  %s483_s16 = sphi %s514_s16, %s13_s16   ;;  %s479_s15 = sphi %s512_s15, %s600_s15   ;;  %s475_s14 = sphi %s510_s14, %s599_s14   ;;  %s471_s13 = sphi %s508_s13, %s598_s13   ;;  %s467_s12 = sphi %s506_s12, %s597_s12  }
   0x4   : > { %p23_p0 = scmp.ge.s32.totalorder %s22_s17, 4  ;;  %p383_p1 = scmp.ge.s32.totalorder %s483_s16, 1 }
   0x5   : > { %p157_p2 = scmp.lt.s32.totalorder %s483_s16, 9 }
   0x6   : > { %s602_s17 = smov (%p23_p0, %s22_s17), 0  ;;  %s604_s18 = smov (!%p23_p0, %s25_s18), %s479_s15 }
   0x7   : > { %p158_p3 = pnand %p383_p1, %p157_p2  ;;  %p27_p4 = scmp.ge.s32.totalorder %s604_s18, 2 }
   0x8   : > { %p189_p5 = scmp.lt.s32.totalorder (!%p158_p3), %s471_s13, 1  ;;  %p191_p6 = scmp.lt.s32.totalorder (!%p158_p3), %s467_s12, 3 }
   0x9   : > { %s606_s18 = smov (%p27_p4, %s604_s18), 0  ;;  %161 = sbr.rel (%p158_p3) target bundleno = 155 (0x9b), region = 32 }
   0xe   : > { %v217_v0 = vld [vmem:[%s594_s1 + $0x10] sm:$0xff]  ;;  %v215_v1 = vld [vmem:[%s594_s1] sm:$0xff]  ;;  %v485_v2 = vmov 0   ;;  %v218_v4 = vld [vmem:[%s594_s1 + $0x18] sm:$0xff]  ;;  %s608_s13 = smov (!%p189_p5, %s471_s13), 1  ;;  %s610_s12 = smov (!%p191_p6, %s467_s12), 3 }
   0xf   : > { %443 = vset.pattern.permute.xlu1 %v485_v2  ;;  %442 = vset.pattern.permute.xlu0 %v485_v2  ;;  %v243_v3 = vld [vmem:[%s595_s2] sm:$0xff]  ;;  %v216_v5 = vld [vmem:[%s594_s1 + $0x8] sm:$0xff]  ;;  %v246_v7 = vld [vmem:[%s595_s2 + $0x18] sm:$0xff]  ;;  %s384_s8 = sshll.u32 %s610_s12, 2  ;;  %s385_s9 = sshll.u32 %s608_s13, 4  ;;  %vm279_vm0 = vcmask 191488  }
  0x10   : > { %231 = vperm.xlu1 %443, %v217_v0   ;;  %221 = vperm.xlu0 %442, %v215_v1   ;;  %v244_v6 = vld [vmem:[%s595_s2 + $0x8] sm:$0xff]  ;;  %v245_v8 = vld [vmem:[%s595_s2 + $0x10] sm:$0xff]  ;;  %s195_s10 = sadd.s32 %s385_s9, %s384_s8 }
  0x11   : > { %444 = vset.pattern.permute.xlu2 %v485_v2  ;;  %s386_s11 = sshll.u32 %s195_s10, 2 }
  0x12   : > { %249 = vperm.xlu2 %444, %v243_v3   ;;  %s197_s21 = scalar_lea.vmem %s593_s0, %s386_s11  ;;  %s206_s12 = scalar_lea.vmem %s596_s3, %s386_s11 }
  0x13   : > { %v393_v9 = vld [vmem:[%s197_s21] sm:$0xff]   ;;  %v400_v19 = vld [vmem:[%s197_s21 + $0x8] sm:$0xff]  }
  0x14   : > { %v394_v10 = vunpack.c.l.bf16 %v393_v9  ;;  %v395_v17 = vunpack.c.h.bf16 %v393_v9  ;;  %v398_v24 = vunpack.c.l.bf16 %v400_v19  ;;  %v399_v25 = vunpack.c.h.bf16 %v400_v19 }
  0x18   : > { %236 = vperm.xlu1 %443, %v218_v4   ;;  %226 = vperm.xlu0 %442, %v216_v5  }
  0x1a   : > { %254 = vperm.xlu2 %444, %v244_v6  }
  0x20   : > { %264 = vperm.xlu1 %443, %v246_v7   ;;  %259 = vperm.xlu0 %442, %v245_v8  }
  0x6c   : > { %v250_v11 = vpop.permute.xlu2 %249 }
  0x74   : > { %v255_v23 = vpop.permute.xlu2 %254 }
  0x82   : > { %v232_v12 = vpop.permute.xlu1 %231  ;;  %v222_v13 = vpop.permute.xlu0 %221 }
  0x83   : > { %v239_v14 = vmul.f32 %v394_v10, %v222_v13  ;;  %v241_v28 = vmul.f32 %v398_v24, %v232_v12 }
  0x85   : > { %v267_v15 = vadd.f32 %v250_v11, %v239_v14 }
  0x87   : > { %v271_v16 = vmax.f32 %v267_v15, 0.0 }
  0x89   : > { %v275_v18 = vpack.c.bf16 %v271_v16, %v271_v16 }
  0x8a   : > { %v237_v20 = vpop.permute.xlu1 %236  ;;  %v227_v21 = vpop.permute.xlu0 %226 }
  0x8b   : > { %280 = vst.msk [vmem:[%s206_s12] sm:$0xf] %vm279_vm0, %v275_v18  ;;  %v240_v22 = vmul.f32 %v395_v17, %v227_v21  ;;  %v242_v29 = vmul.f32 %v399_v25, %v237_v20 }
  0x8d   : > { %v268_v26 = vadd.f32 %v255_v23, %v240_v22 }
  0x8f   : > { %v272_v27 = vmax.f32 %v268_v26, 0.0 }
  0x91   : > { %v276_v30 = vpack.c.bf16 %v272_v27, %v272_v27 }
  0x92   : > { %v265_v31 = vpop.permute.xlu1 %264  ;;  %v260_v32 = vpop.permute.xlu0 %259 }
  0x93   : > { %281 = vst.msk [vmem:[%s206_s12 + $0x4] sm:$0xf] %vm279_vm0, %v276_v30  ;;  %v270_v33 = vadd.f32 %v265_v31, %v242_v29  ;;  %v269_v34 = vadd.f32 %v260_v32, %v241_v28 }
  0x95   : > { %v274_v35 = vmax.f32 %v270_v33, 0.0  ;;  %v273_v36 = vmax.f32 %v269_v34, 0.0 }
  0x97   : > { %v278_v37 = vpack.c.bf16 %v274_v35, %v274_v35  ;;  %v277_v38 = vpack.c.bf16 %v273_v36, %v273_v36 }
  0x99   : > { %283 = vst.msk [vmem:[%s206_s12 + $0xc] sm:$0xf] %vm279_vm0, %v278_v37 }
  0x9a   : > { %282 = vst.msk [vmem:[%s206_s12 + $0x8] sm:$0xf] %vm279_vm0, %v277_v38 }
  0x9b PF: > { %s13_s16 = sadd.s32 1, %s483_s16   ;;  %s597_s12 = smov %s475_s14 }
  0x9c   : > { %p10_p7 = scmp.ge.s32.totalorder %s13_s16, 10   ;;  %s598_s13 = smov %s479_s15 }
  0x9d   : > { %s599_s14 = smov %s602_s17  ;;  %s600_s15 = smov %s606_s18 }
  0x9e   :  { %12 = sbr.rel (!%p10_p7) target bundleno = 3 (0x3), region = 62 }

// kernel: _forward.9
= control target key start
LH: loop header
LB: loop body
LE: loop exit
PB: predicated region body
PF: predicated region fallthrough
CT: control target
= control target key end

     0   :  { %10 = vsyncpa [#allocation3], 0  ;;  %s1961_s0 = inlined_call_operand.vmem [shape: bf16[2,16], index: 0, kind: input, shape index: {}]   ;;  %s1962_s1 = inlined_call_operand.vmem [shape: bf16[16,1024], index: 1, kind: input, shape index: {}]   ;;  %s1963_s2 = inlined_call_operand.vmem [shape: f32[1024,64], index: 2, kind: input, shape index: {}]   ;;  %s1964_s3 = inlined_call_operand.hbm [shape: f32[1,64], index: 3, kind: input, shape index: {}]   ;;  %s1965_s4 = inlined_call_operand.hbm [shape: f32[1,64], index: 4, kind: input, shape index: {}]   ;;  %s1966_s5 = inlined_call_operand.vmem [shape: bf16[2,1024], index: 5, kind: output, shape index: {}]  }
   0x1   :  { %s23_s20 = sshll.u32 %s1964_s3, 4  ;;  %s24_s20 = int_to_ptr.hbm [resolvable:$true] %s23_s20 }
   0x2   :  { %11 = vsyncpa [#allocation5], 0  ;;  %s898_s21 = smov [#allocation2]   ;;  %s34_s25 = sshll.u32 %s1965_s4, 4  ;;  %s35_s25 = int_to_ptr.hbm [resolvable:$true] %s34_s25 }
   0x3   :  { %s25_s22 = sshll.u32 %s898_s21, 4  ;;  %s899_s26 = smov [#allocation4]   ;;  %s26_s22 = int_to_ptr.vmem [resolvable:$true] %s25_s22 }
   0x4   :  { %28 = dma.hbm_to_vmem [thread:$0]  %s24_s20, 16, %s26_s22, [#allocation3]  }
   0x5   :  { %s36_s27 = sshll.u32 %s899_s26, 4  ;;  %s37_s27 = int_to_ptr.vmem [resolvable:$true] %s36_s27 }
   0x6   :  { %39 = dma.hbm_to_vmem [thread:$0]  %s35_s25, 16, %s37_s27, [#allocation5]  }
   0x7   :  { %894 = dma.done.wait [#allocation3], 16  }
   0x8   :  { %895 = vsyncadd [#allocation3], 4294967280 }
   0x9   :  { %896 = dma.done.wait [#allocation5], 16  }
   0xa   :  { %897 = vsyncadd [#allocation5], 4294967280  ;;  %vm98_vm0 = vcmask 130048   ;;  %v792_v0 = vld [vmem:[%s1962_s1] sm:$0xf]  ;;  %v1000_v25 = vld [vmem:[%s1963_s2 + $0x78] sm:$0xff] }
   0xb   :  { %v834_v1 = vld [vmem:[%s1962_s1 + $0x1c] sm:$0xf0]  ;;  %v830_v2 = vld [vmem:[%s1962_s1 + $0x4] sm:$0xf]  ;;  %v800_v5 = vld [vmem:[%s1962_s1 + $0x8] sm:$0xf] }
   0xc   :  { %v793_v3 = vor.u32 %v834_v1, %v792_v0  ;;  %v794_v4 = vld [vmem:[%s1962_s1 + $0x20] sm:$0xf0]  ;;  %v835_v6 = vld [vmem:[%s1962_s1 + $0x24] sm:$0xf0]  ;;  %v831_v9 = vld [vmem:[%s1962_s1 + $0xc] sm:$0xf] }
   0xd   :  { %v797_v7 = vor.u32 %v830_v2, %v794_v4  ;;  %v801_v8 = vor.u32 %v835_v6, %v800_v5  ;;  %v802_v10 = vld [vmem:[%s1962_s1 + $0x28] sm:$0xf0]  ;;  %v965_v11 = vld [vmem:[%s1961_s0] sm:$0x1]  ;;  %v808_v13 = vld [vmem:[%s1962_s1 + $0x10] sm:$0xf] }
   0xe   :  { %109 = vmatpush.bf16.msra.mxu0 %v793_v3  ;;  %v805_v12 = vor.u32 %v831_v9, %v802_v10  ;;  %v836_v14 = vld [vmem:[%s1962_s1 + $0x2c] sm:$0xf0]  ;;  %v816_v15 = vld [vmem:[%s1962_s1 + $0x18] sm:$0xf]  ;;  %v832_v18 = vld [vmem:[%s1962_s1 + $0x14] sm:$0xf] }
   0xf   :  { %122 = vmatpush.bf16.msra.mxu1 %v797_v7  ;;  %135 = vmatpush.bf16.msra.mxu2 %v801_v8  ;;  %v809_v16 = vor.u32 %v836_v14, %v808_v13  ;;  %v837_v17 = vld [vmem:[%s1962_s1 + $0x34] sm:$0xf0]  ;;  %v810_v19 = vld [vmem:[%s1962_s1 + $0x30] sm:$0xf0]  ;;  %v833_v22 = vld [vmem:[%s1962_s1 + $0x1c] sm:$0xf] }
  0x10   :  { %148 = vmatpush.bf16.msra.mxu3 %v805_v12  ;;  %v817_v20 = vor.u32 %v837_v17, %v816_v15  ;;  %v813_v21 = vor.u32 %v832_v18, %v810_v19  ;;  %v818_v23 = vld [vmem:[%s1962_s1 + $0x38] sm:$0xf0]  ;;  %v1017_v28 = vld [vmem:[%s1963_s2 + $0x70] sm:$0xff]  ;;  %v1039_v32 = vld [vmem:[%s1963_s2 + $0x68] sm:$0xff]  ;;  %vm494_vm1 = vcmask 517120   ;;  %vm707_vm6 = vcmask 523264  }
  0x11   :  { %822 = vmatmul.msk.bf16.vlgmr.msra.gmra.mxu0 %vm98_vm0, %v965_v11  ;;  %v821_v24 = vor.u32 %v833_v22, %v818_v23  ;;  %v1007_v26 = vld [vmem:[%s1963_s2 + $0xf8] sm:$0xff]  ;;  %v1028_v30 = vld [vmem:[%s1963_s2 + $0xf0] sm:$0xff]  ;;  %v1051_v34 = vld [vmem:[%s1963_s2 + $0xe8] sm:$0xff]  ;;  %vm760_vm7 = vcmask 1040384   ;;  %vm764_vm8 = vcmask 1042434   ;;  %vm768_vm9 = vcmask 1041408  }
  0x12   :  { %823 = vmatmul.msk.bf16.vlgmr.msra.gmra.mxu1 %vm98_vm0, %v965_v11  ;;  %824 = vmatmul.msk.bf16.vlgmr.msra.gmra.mxu2 %vm98_vm0, %v965_v11  ;;  %v1012_v27 = vld [vmem:[%s1963_s2 + $0x178] sm:$0xff]  ;;  %v1033_v31 = vld [vmem:[%s1963_s2 + $0x170] sm:$0xff]  ;;  %v1057_v35 = vld [vmem:[%s1963_s2 + $0x168] sm:$0xff]  ;;  %vm770_vm10 = vcmask 1044484   ;;  %vm774_vm11 = vcmask 1046534   ;;  %vm778_vm12 = vcmask 1045508  }
  0x13   :  { %825 = vmatmul.msk.bf16.vlgmr.msra.gmra.mxu3 %vm98_vm0, %v965_v11  ;;  %161 = vmatpush.bf16.msrb.mxu0 %v809_v16  ;;  %v1022_v29 = vld [vmem:[%s1963_s2 + $0x1f8] sm:$0xff]  ;;  %v1045_v33 = vld [vmem:[%s1963_s2 + $0x1f0] sm:$0xff]  ;;  %v1063_v36 = vld [vmem:[%s1963_s2 + $0x60] sm:$0xff]  ;;  %vm780_vm13 = vcmask 1043456  }
  0x14   :  { %187 = vmatpush.bf16.msrb.mxu2 %v817_v20  ;;  %174 = vmatpush.bf16.msrb.mxu1 %v813_v21  ;;  %v1069_v37 = vld [vmem:[%s1963_s2 + $0x1e8] sm:$0xff]  ;;  %v1075_v38 = vld [vmem:[%s1963_s2 + $0xe0] sm:$0xff]  ;;  %v1087_v40 = vld [vmem:[%s1963_s2 + $0x58] sm:$0xff] }
  0x15   :  { %200 = vmatpush.bf16.msrb.mxu3 %v821_v24  ;;  %v1081_v39 = vld [vmem:[%s1963_s2 + $0x160] sm:$0xff]  ;;  %v1099_v42 = vld [vmem:[%s1963_s2 + $0xd8] sm:$0xff]  ;;  %v1111_v44 = vld [vmem:[%s1963_s2 + $0x50] sm:$0xff] }
  0x16   :  { %v1093_v41 = vld [vmem:[%s1963_s2 + $0x1e0] sm:$0xff]  ;;  %v1105_v43 = vld [vmem:[%s1963_s2 + $0x158] sm:$0xff]  ;;  %v1123_v46 = vld [vmem:[%s1963_s2 + $0xd0] sm:$0xff] }
  0x17   :  { %334 = vmatpush.msra.mxu0 %v1000_v25  ;;  %v1117_v45 = vld [vmem:[%s1963_s2 + $0x1d8] sm:$0xff]  ;;  %v1129_v47 = vld [vmem:[%s1963_s2 + $0x150] sm:$0xff]  ;;  %v1144_v49 = vld [vmem:[%s1963_s2 + $0x48] sm:$0xff] }
  0x18   :  { %354 = vmatpush.msra.mxu1 %v1007_v26  ;;  %374 = vmatpush.msra.mxu2 %v1012_v27  ;;  %v1136_v48 = vld [vmem:[%s1963_s2 + $0x1d0] sm:$0xff]  ;;  %v1152_v50 = vld [vmem:[%s1963_s2 + $0xc8] sm:$0xff]  ;;  %v1167_v52 = vld [vmem:[%s1963_s2 + $0x40] sm:$0xff] }
  0x19   :  { %335 = vmatpush.msra.mxu0 %v1017_v28  ;;  %394 = vmatpush.msra.mxu3 %v1022_v29  ;;  %v1158_v51 = vld [vmem:[%s1963_s2 + $0x148] sm:$0xff]  ;;  %v1180_v54 = vld [vmem:[%s1963_s2 + $0xc0] sm:$0xff]  ;;  %v1191_v56 = vld [vmem:[%s1963_s2 + $0x38] sm:$0xff] }
  0x1a   :  { %355 = vmatpush.msra.mxu1 %v1028_v30  ;;  %375 = vmatpush.msra.mxu2 %v1033_v31  ;;  %v1172_v53 = vld [vmem:[%s1963_s2 + $0x1c8] sm:$0xff]  ;;  %v1185_v55 = vld [vmem:[%s1963_s2 + $0x140] sm:$0xff]  ;;  %v1203_v58 = vld [vmem:[%s1963_s2 + $0xb8] sm:$0xff] }
  0x1b   :  { %336 = vmatpush.msra.mxu0 %v1039_v32  ;;  %395 = vmatpush.msra.mxu3 %v1045_v33  ;;  %v1197_v57 = vld [vmem:[%s1963_s2 + $0x1c0] sm:$0xff]  ;;  %v1209_v59 = vld [vmem:[%s1963_s2 + $0x138] sm:$0xff]  ;;  %v1215_v60 = vld [vmem:[%s1963_s2 + $0x30] sm:$0xff] }
  0x1c   :  { %356 = vmatpush.msra.mxu1 %v1051_v34  ;;  %376 = vmatpush.msra.mxu2 %v1057_v35  ;;  %v1221_v61 = vld [vmem:[%s1963_s2 + $0x1b8] sm:$0xff]  ;;  %v1227_v62 = vld [vmem:[%s1963_s2 + $0xb0] sm:$0xff]  ;;  %v1239_v0 = vld [vmem:[%s1963_s2 + $0x28] sm:$0xff] }
  0x1d   :  { %337 = vmatpush.msra.mxu0 %v1063_v36  ;;  %396 = vmatpush.msra.mxu3 %v1069_v37  ;;  %v1233_v63 = vld [vmem:[%s1963_s2 + $0x130] sm:$0xff]  ;;  %v1251_v2 = vld [vmem:[%s1963_s2 + $0xa8] sm:$0xff]  ;;  %v1263_v4 = vld [vmem:[%s1963_s2 + $0x20] sm:$0xff] }
  0x1e   :  { %357 = vmatpush.msra.mxu1 %v1075_v38  ;;  %377 = vmatpush.msra.mxu2 %v1081_v39  ;;  %v1245_v1 = vld [vmem:[%s1963_s2 + $0x1b0] sm:$0xff]  ;;  %v1257_v3 = vld [vmem:[%s1963_s2 + $0x128] sm:$0xff]  ;;  %v1275_v6 = vld [vmem:[%s1963_s2 + $0xa0] sm:$0xff] }
  0x1f   :  { %338 = vmatpush.msra.mxu0 %v1087_v40  ;;  %397 = vmatpush.msra.mxu3 %v1093_v41  ;;  %v1269_v5 = vld [vmem:[%s1963_s2 + $0x1a8] sm:$0xff]  ;;  %v1281_v7 = vld [vmem:[%s1963_s2 + $0x120] sm:$0xff]  ;;  %v1287_v8 = vld [vmem:[%s1963_s2 + $0x18] sm:$0xff] }
  0x20   :  { %358 = vmatpush.msra.mxu1 %v1099_v42  ;;  %378 = vmatpush.msra.mxu2 %v1105_v43  ;;  %v1293_v9 = vld [vmem:[%s1963_s2 + $0x1a0] sm:$0xff]  ;;  %v1299_v10 = vld [vmem:[%s1963_s2 + $0x98] sm:$0xff]  ;;  %v1311_v12 = vld [vmem:[%s1963_s2 + $0x10] sm:$0xff] }
  0x21   :  { %339 = vmatpush.msra.mxu0 %v1111_v44  ;;  %398 = vmatpush.msra.mxu3 %v1117_v45  ;;  %v1317_v13 = vld [vmem:[%s1963_s2 + $0x198] sm:$0xff]  ;;  %v1323_v14 = vld [vmem:[%s1963_s2 + $0x90] sm:$0xff]  ;;  %v1335_v16 = vld [vmem:[%s1963_s2 + $0x8] sm:$0xff] }
  0x22   :  { %359 = vmatpush.msra.mxu1 %v1123_v46  ;;  %379 = vmatpush.msra.mxu2 %v1129_v47  ;;  %2037 = vst [vmem:[#allocation9_spill] sm:$0xff] %v1317_v13  ;;  %v1329_v15 = vld [vmem:[%s1963_s2 + $0x110] sm:$0xff]  ;;  %v1347_v18 = vld [vmem:[%s1963_s2 + $0x88] sm:$0xff]  ;;  %v1359_v20 = vld [vmem:[%s1963_s2] sm:$0xff] }
  0x23   :  { %826 = vmatmul.msk.bf16.vlgmr.msrb.gmra.mxu0 %vm98_vm0, %v965_v11  ;;  %399 = vmatpush.msra.mxu3 %v1136_v48  ;;  %2038 = vst [vmem:[#allocation10_spill] sm:$0xff] %v1329_v15  ;;  %v1341_v17 = vld [vmem:[%s1963_s2 + $0x190] sm:$0xff]  ;;  %v1353_v19 = vld [vmem:[%s1963_s2 + $0x108] sm:$0xff]  ;;  %v1371_v22 = vld [vmem:[%s1963_s2 + $0x80] sm:$0xff] }
  0x24   :  { %828 = vmatmul.msk.bf16.vlgmr.msrb.gmra.mxu2 %vm98_vm0, %v965_v11  ;;  %827 = vmatmul.msk.bf16.vlgmr.msrb.gmra.mxu1 %vm98_vm0, %v965_v11  ;;  %2039 = vst [vmem:[#allocation11_spill] sm:$0xff] %v1341_v17  ;;  %v1365_v21 = vld [vmem:[%s1963_s2 + $0x188] sm:$0xff]  ;;  %v1376_v23 = vld [vmem:[%s1963_s2 + $0x278] sm:$0xff] }
  0x25   :  { %829 = vmatmul.msk.bf16.vlgmr.msrb.gmra.mxu3 %vm98_vm0, %v965_v11  ;;  %340 = vmatpush.msra.mxu0 %v1144_v49  ;;  %v1305_v11 = vld [vmem:[%s1963_s2 + $0x118] sm:$0xff]  ;;  %2040 = vst [vmem:[#allocation12_spill] sm:$0xff] %v1353_v19 }
  0x26   :  { %360 = vmatpush.msra.mxu1 %v1152_v50  ;;  %380 = vmatpush.msra.mxu2 %v1158_v51  ;;  %2036 = vst [vmem:[#allocation8_spill] sm:$0xff] %v1305_v11  ;;  %v1383_v24 = vld [vmem:[%s1963_s2 + $0x2f8] sm:$0xff] }
  0x27   :  { %341 = vmatpush.msra.mxu0 %v1167_v52  ;;  %400 = vmatpush.msra.mxu3 %v1172_v53  ;;  %2041 = vst [vmem:[#allocation13_spill] sm:$0xff] %v1365_v21 }
  0x28   :  { %361 = vmatpush.msra.mxu1 %v1180_v54  ;;  %381 = vmatpush.msra.mxu2 %v1185_v55  ;;  %2042 = vst [vmem:[#allocation14_spill] sm:$0xff] %v1371_v22 }
  0x29   :  { %342 = vmatpush.msra.mxu0 %v1191_v56  ;;  %401 = vmatpush.msra.mxu3 %v1197_v57  ;;  %2043 = vst [vmem:[#allocation15_spill] sm:$0xff] %v1376_v23 }
  0x2a   :  { %362 = vmatpush.msra.mxu1 %v1203_v58  ;;  %382 = vmatpush.msra.mxu2 %v1209_v59  ;;  %2044 = vst [vmem:[#allocation16_spill] sm:$0xff] %v1383_v24 }
  0x2b   :  { %343 = vmatpush.msra.mxu0 %v1215_v60  ;;  %402 = vmatpush.msra.mxu3 %v1221_v61 }
  0x2c   :  { %363 = vmatpush.msra.mxu1 %v1227_v62  ;;  %383 = vmatpush.msra.mxu2 %v1233_v63 }
  0x2d   :  { %344 = vmatpush.msra.mxu0 %v1239_v0  ;;  %403 = vmatpush.msra.mxu3 %v1245_v1 }
  0x2e   :  { %364 = vmatpush.msra.mxu1 %v1251_v2  ;;  %384 = vmatpush.msra.mxu2 %v1257_v3 }
  0x2f   :  { %345 = vmatpush.msra.mxu0 %v1263_v4  ;;  %404 = vmatpush.msra.mxu3 %v1269_v5 }
  0x30   :  { %365 = vmatpush.msra.mxu1 %v1275_v6  ;;  %385 = vmatpush.msra.mxu2 %v1281_v7 }
  0x31   :  { %346 = vmatpush.msra.mxu0 %v1287_v8  ;;  %405 = vmatpush.msra.mxu3 %v1293_v9 }
  0x32   :  { %366 = vmatpush.msra.mxu1 %v1299_v10  ;;  %386 = vmatpush.msra.mxu2 %v1305_v11  ;;  %v1413_v11 = vld [vmem:[%s1963_s2 + $0x378] sm:$0xff] }
  0x33   :  { %347 = vmatpush.msra.mxu0 %v1311_v12  ;;  %406 = vmatpush.msra.mxu3 %v1317_v13  ;;  %v1401_v13 = vld [vmem:[%s1963_s2 + $0x180] sm:$0xff]  ;;  %2049 = vst [vmem:[#allocation21_spill] sm:$0xff] %v1413_v11 }
  0x34   :  { %367 = vmatpush.msra.mxu1 %v1323_v14  ;;  %387 = vmatpush.msra.mxu2 %v1329_v15  ;;  %v1389_v15 = vld [vmem:[%s1963_s2 + $0x100] sm:$0xff]  ;;  %2047 = vst [vmem:[#allocation19_spill] sm:$0xff] %v1401_v13 }
  0x35   :  { %348 = vmatpush.msra.mxu0 %v1335_v16  ;;  %407 = vmatpush.msra.mxu3 %v1341_v17  ;;  %2045 = vst [vmem:[#allocation17_spill] sm:$0xff] %v1389_v15  ;;  %v1395_v17 = vld [vmem:[%s1963_s2 + $0x270] sm:$0xff] }
  0x36   :  { %368 = vmatpush.msra.mxu1 %v1347_v18  ;;  %388 = vmatpush.msra.mxu2 %v1353_v19  ;;  %2046 = vst [vmem:[#allocation18_spill] sm:$0xff] %v1395_v17  ;;  %v1408_v19 = vld [vmem:[%s1963_s2 + $0x2f0] sm:$0xff] }
  0x37   :  { %349 = vmatpush.msra.mxu0 %v1359_v20  ;;  %408 = vmatpush.msra.mxu3 %v1365_v21  ;;  %2048 = vst [vmem:[#allocation20_spill] sm:$0xff] %v1408_v19  ;;  %v1419_v21 = vld [vmem:[%s1963_s2 + $0x268] sm:$0xff] }
  0x38   :  { %369 = vmatpush.msra.mxu1 %v1371_v22  ;;  %2050 = vst [vmem:[#allocation22_spill] sm:$0xff] %v1419_v21  ;;  %389 = vmatpush.msra.mxu2 %v1389_v15  ;;  %v1431_v22 = vld [vmem:[%s1963_s2 + $0x2e8] sm:$0xff]  ;;  %v1443_v15 = vld [vmem:[%s1963_s2 + $0x260] sm:$0xff] }
  0x39   :  { %414 = vmatpush.msrb.mxu0 %v1376_v23  ;;  %v1425_v23 = vld [vmem:[%s1963_s2 + $0x3f8] sm:$0xff]  ;;  %2052 = vst [vmem:[#allocation24_spill] sm:$0xff] %v1431_v22  ;;  %409 = vmatpush.msra.mxu3 %v1401_v13  ;;  %v1455_v13 = vld [vmem:[%s1963_s2 + $0x2e0] sm:$0xff] }
  0x3a   :  { %434 = vmatpush.msrb.mxu1 %v1383_v24  ;;  %2051 = vst [vmem:[#allocation23_spill] sm:$0xff] %v1425_v23  ;;  %v1437_v24 = vld [vmem:[%s1963_s2 + $0x370] sm:$0xff]  ;;  %454 = vmatpush.msrb.mxu2 %v1413_v11  ;;  %v1467_v11 = vld [vmem:[%s1963_s2 + $0x258] sm:$0xff] }
  0x3b   :  { %415 = vmatpush.msrb.mxu0 %v1395_v17  ;;  %2053 = vst [vmem:[#allocation25_spill] sm:$0xff] %v1437_v24  ;;  %v1449_v17 = vld [vmem:[%s1963_s2 + $0x3f0] sm:$0xff]  ;;  %474 = vmatpush.msrb.mxu3 %v1425_v23  ;;  %v1479_v23 = vld [vmem:[%s1963_s2 + $0x2d8] sm:$0xff] }
  0x3c   :  { %435 = vmatpush.msrb.mxu1 %v1408_v19  ;;  %2054 = vst [vmem:[#allocation26_spill] sm:$0xff] %v1443_v15  ;;  %v1461_v19 = vld [vmem:[%s1963_s2 + $0x368] sm:$0xff]  ;;  %455 = vmatpush.msrb.mxu2 %v1437_v24  ;;  %v1491_v24 = vld [vmem:[%s1963_s2 + $0x250] sm:$0xff] }
  0x3d   :  { %2055 = vst [vmem:[#allocation27_spill] sm:$0xff] %v1449_v17  ;;  %416 = vmatpush.msrb.mxu0 %v1419_v21  ;;  %v1473_v21 = vld [vmem:[%s1963_s2 + $0x3e8] sm:$0xff]  ;;  %475 = vmatpush.msrb.mxu3 %v1449_v17  ;;  %v1503_v17 = vld [vmem:[%s1963_s2 + $0x2d0] sm:$0xff] }
  0x3e   :  { %2056 = vst [vmem:[#allocation28_spill] sm:$0xff] %v1455_v13  ;;  %436 = vmatpush.msrb.mxu1 %v1431_v22  ;;  %v1485_v22 = vld [vmem:[%s1963_s2 + $0x360] sm:$0xff]  ;;  %456 = vmatpush.msrb.mxu2 %v1461_v19 }
  0x3f   :  { %2057 = vst [vmem:[#allocation29_spill] sm:$0xff] %v1461_v19  ;;  %417 = vmatpush.msrb.mxu0 %v1443_v15  ;;  %v1497_v15 = vld [vmem:[%s1963_s2 + $0x3e0] sm:$0xff]  ;;  %476 = vmatpush.msrb.mxu3 %v1473_v21  ;;  %v1515_v19 = vld [vmem:[%s1963_s2 + $0x248] sm:$0xff] }
  0x40   :  { %2058 = vst [vmem:[#allocation30_spill] sm:$0xff] %v1467_v11  ;;  %437 = vmatpush.msrb.mxu1 %v1455_v13  ;;  %v1509_v13 = vld [vmem:[%s1963_s2 + $0x358] sm:$0xff]  ;;  %457 = vmatpush.msrb.mxu2 %v1485_v22 }
  0x41   :  { %2059 = vst [vmem:[#allocation31_spill] sm:$0xff] %v1473_v21  ;;  %418 = vmatpush.msrb.mxu0 %v1467_v11  ;;  %v1521_v11 = vld [vmem:[%s1963_s2 + $0x3d8] sm:$0xff]  ;;  %v1527_v21 = vld [vmem:[%s1963_s2 + $0x2c8] sm:$0xff]  ;;  %477 = vmatpush.msrb.mxu3 %v1497_v15 }
  0x42   :  { %2060 = vst [vmem:[#allocation32_spill] sm:$0xff] %v1479_v23  ;;  %438 = vmatpush.msrb.mxu1 %v1479_v23  ;;  %v1533_v23 = vld [vmem:[%s1963_s2 + $0x350] sm:$0xff]  ;;  %458 = vmatpush.msrb.mxu2 %v1509_v13 }
  0x43   :  { %2061 = vst [vmem:[#allocation33_spill] sm:$0xff] %v1485_v22  ;;  %419 = vmatpush.msrb.mxu0 %v1491_v24  ;;  %v1539_v22 = vld [vmem:[%s1963_s2 + $0x240] sm:$0xff]  ;;  %478 = vmatpush.msrb.mxu3 %v1521_v11 }
  0x44   :  { %2062 = vst [vmem:[#allocation34_spill] sm:$0xff] %v1491_v24  ;;  %439 = vmatpush.msrb.mxu1 %v1503_v17  ;;  %v1545_v24 = vld [vmem:[%s1963_s2 + $0x3d0] sm:$0xff]  ;;  %459 = vmatpush.msrb.mxu2 %v1533_v23 }
  0x45   :  { %2063 = vst [vmem:[#allocation35_spill] sm:$0xff] %v1497_v15  ;;  %420 = vmatpush.msrb.mxu0 %v1515_v19  ;;  %v1551_v15 = vld [vmem:[%s1963_s2 + $0x2c0] sm:$0xff]  ;;  %479 = vmatpush.msrb.mxu3 %v1545_v24 }
  0x46   :  { %2064 = vst [vmem:[#allocation36_spill] sm:$0xff] %v1503_v17  ;;  %v1557_v17 = vld [vmem:[%s1963_s2 + $0x348] sm:$0xff]  ;;  %440 = vmatpush.msrb.mxu1 %v1527_v21 }
  0x47   :  { %2065 = vst [vmem:[#allocation37_spill] sm:$0xff] %v1509_v13  ;;  %v1563_v13 = vld [vmem:[%s1963_s2 + $0x238] sm:$0xff]  ;;  %421 = vmatpush.msrb.mxu0 %v1539_v22  ;;  %460 = vmatpush.msrb.mxu2 %v1557_v17 }
  0x48   :  { %2066 = vst [vmem:[#allocation38_spill] sm:$0xff] %v1515_v19  ;;  %v1569_v19 = vld [vmem:[%s1963_s2 + $0x3c8] sm:$0xff]  ;;  %441 = vmatpush.msrb.mxu1 %v1551_v15 }
  0x49   :  { %2067 = vst [vmem:[#allocation39_spill] sm:$0xff] %v1521_v11  ;;  %v1575_v11 = vld [vmem:[%s1963_s2 + $0x2b8] sm:$0xff]  ;;  %422 = vmatpush.msrb.mxu0 %v1563_v13  ;;  %480 = vmatpush.msrb.mxu3 %v1569_v19 }
  0x4a   :  { %2068 = vst [vmem:[#allocation40_spill] sm:$0xff] %v1527_v21  ;;  %v1581_v21 = vld [vmem:[%s1963_s2 + $0x340] sm:$0xff]  ;;  %442 = vmatpush.msrb.mxu1 %v1575_v11 }
  0x4b   :  { %2069 = vst [vmem:[#allocation41_spill] sm:$0xff] %v1533_v23  ;;  %v1587_v23 = vld [vmem:[%s1963_s2 + $0x230] sm:$0xff]  ;;  %461 = vmatpush.msrb.mxu2 %v1581_v21 }
  0x4c   :  { %2070 = vst [vmem:[#allocation42_spill] sm:$0xff] %v1539_v22  ;;  %v1593_v22 = vld [vmem:[%s1963_s2 + $0x3c0] sm:$0xff]  ;;  %423 = vmatpush.msrb.mxu0 %v1587_v23 }
  0x4d   :  { %2071 = vst [vmem:[#allocation43_spill] sm:$0xff] %v1545_v24  ;;  %v1599_v24 = vld [vmem:[%s1963_s2 + $0x2b0] sm:$0xff]  ;;  %481 = vmatpush.msrb.mxu3 %v1593_v22 }
  0x4e   :  { %2072 = vst [vmem:[#allocation44_spill] sm:$0xff] %v1551_v15  ;;  %v1605_v15 = vld [vmem:[%s1963_s2 + $0x338] sm:$0xff]  ;;  %443 = vmatpush.msrb.mxu1 %v1599_v24 }
  0x4f   :  { %2073 = vst [vmem:[#allocation45_spill] sm:$0xff] %v1557_v17  ;;  %v1611_v17 = vld [vmem:[%s1963_s2 + $0x228] sm:$0xff]  ;;  %462 = vmatpush.msrb.mxu2 %v1605_v15 }
  0x50   :  { %2074 = vst [vmem:[#allocation46_spill] sm:$0xff] %v1563_v13  ;;  %v1617_v13 = vld [vmem:[%s1963_s2 + $0x3b8] sm:$0xff]  ;;  %424 = vmatpush.msrb.mxu0 %v1611_v17 }
  0x51   :  { %2075 = vst [vmem:[#allocation47_spill] sm:$0xff] %v1569_v19  ;;  %v1623_v19 = vld [vmem:[%s1963_s2 + $0x2a8] sm:$0xff]  ;;  %482 = vmatpush.msrb.mxu3 %v1617_v13 }
  0x52   :  { %2076 = vst [vmem:[#allocation48_spill] sm:$0xff] %v1575_v11  ;;  %v1629_v11 = vld [vmem:[%s1963_s2 + $0x330] sm:$0xff]  ;;  %444 = vmatpush.msrb.mxu1 %v1623_v19 }
  0x53   :  { %2077 = vst [vmem:[#allocation49_spill] sm:$0xff] %v1581_v21  ;;  %v1635_v21 = vld [vmem:[%s1963_s2 + $0x220] sm:$0xff]  ;;  %463 = vmatpush.msrb.mxu2 %v1629_v11 }
  0x54   :  { %2078 = vst [vmem:[#allocation50_spill] sm:$0xff] %v1587_v23  ;;  %v1641_v23 = vld [vmem:[%s1963_s2 + $0x3b0] sm:$0xff]  ;;  %425 = vmatpush.msrb.mxu0 %v1635_v21 }
  0x55   :  { %2079 = vst [vmem:[#allocation51_spill] sm:$0xff] %v1593_v22  ;;  %v1647_v22 = vld [vmem:[%s1963_s2 + $0x2a0] sm:$0xff]  ;;  %483 = vmatpush.msrb.mxu3 %v1641_v23 }
  0x56   :  { %2080 = vst [vmem:[#allocation52_spill] sm:$0xff] %v1599_v24  ;;  %v1653_v24 = vld [vmem:[%s1963_s2 + $0x328] sm:$0xff]  ;;  %445 = vmatpush.msrb.mxu1 %v1647_v22 }
  0x57   :  { %2081 = vst [vmem:[#allocation53_spill] sm:$0xff] %v1605_v15  ;;  %v1659_v15 = vld [vmem:[%s1963_s2 + $0x218] sm:$0xff]  ;;  %464 = vmatpush.msrb.mxu2 %v1653_v24 }
  0x58   :  { %2082 = vst [vmem:[#allocation54_spill] sm:$0xff] %v1611_v17  ;;  %v1665_v17 = vld [vmem:[%s1963_s2 + $0x3a8] sm:$0xff]  ;;  %426 = vmatpush.msrb.mxu0 %v1659_v15 }
  0x59   :  { %2083 = vst [vmem:[#allocation55_spill] sm:$0xff] %v1617_v13  ;;  %v1671_v13 = vld [vmem:[%s1963_s2 + $0x298] sm:$0xff]  ;;  %484 = vmatpush.msrb.mxu3 %v1665_v17 }
  0x5a   :  { %2084 = vst [vmem:[#allocation56_spill] sm:$0xff] %v1623_v19  ;;  %v1677_v19 = vld [vmem:[%s1963_s2 + $0x320] sm:$0xff]  ;;  %446 = vmatpush.msrb.mxu1 %v1671_v13 }
  0x5b   :  { %2085 = vst [vmem:[#allocation57_spill] sm:$0xff] %v1629_v11  ;;  %v1683_v11 = vld [vmem:[%s1963_s2 + $0x210] sm:$0xff]  ;;  %465 = vmatpush.msrb.mxu2 %v1677_v19 }
  0x5c   :  { %2086 = vst [vmem:[#allocation58_spill] sm:$0xff] %v1635_v21  ;;  %v1689_v21 = vld [vmem:[%s1963_s2 + $0x3a0] sm:$0xff]  ;;  %427 = vmatpush.msrb.mxu0 %v1683_v11 }
  0x5d   :  { %2087 = vst [vmem:[#allocation59_spill] sm:$0xff] %v1641_v23  ;;  %v1695_v23 = vld [vmem:[%s1963_s2 + $0x290] sm:$0xff]  ;;  %485 = vmatpush.msrb.mxu3 %v1689_v21 }
  0x5e   :  { %2088 = vst [vmem:[#allocation60_spill] sm:$0xff] %v1653_v24  ;;  %v1702_v24 = vld [vmem:[%s1963_s2 + $0x208] sm:$0xff]  ;;  %447 = vmatpush.msrb.mxu1 %v1695_v23 }
  0x5f   :  { %2089 = vst [vmem:[#allocation61_spill] sm:$0xff] %v1659_v15  ;;  %v1709_v15 = vld [vmem:[%s1963_s2 + $0x288] sm:$0xff]  ;;  %428 = vmatpush.msrb.mxu0 %v1702_v24 }
  0x60   :  { %2090 = vst [vmem:[#allocation62_spill] sm:$0xff] %v1665_v17  ;;  %448 = vmatpush.msrb.mxu1 %v1709_v15  ;;  %v1718_v17 = vld [vmem:[%s1963_s2 + $0x200] sm:$0xff] }
  0x61   :  { %2091 = vst [vmem:[#allocation63_spill] sm:$0xff] %v1677_v19  ;;  %v1723_v19 = vld [vmem:[%s1963_s2 + $0x280] sm:$0xff]  ;;  %429 = vmatpush.msrb.mxu0 %v1718_v17 }
  0x62   :  { %2092 = vst [vmem:[#allocation64_spill] sm:$0xff] %v1689_v21  ;;  %v1728_v21 = vld [vmem:[%s1963_s2 + $0x318] sm:$0xff]  ;;  %449 = vmatpush.msrb.mxu1 %v1723_v19 }
  0x63   :  { %2093 = vst [vmem:[#allocation65_spill] sm:$0xff] %v1695_v23  ;;  %466 = vmatpush.msrb.mxu2 %v1728_v21 }
  0x64   :  { %2094 = vst [vmem:[#allocation66_spill] sm:$0xff] %v1702_v24  ;;  %v1742_v24 = vld [vmem:[%s1963_s2 + $0x310] sm:$0xff] }
  0x65   :  { %2095 = vst [vmem:[#allocation67_spill] sm:$0xff] %v1709_v15  ;;  %v1735_v15 = vld [vmem:[%s1963_s2 + $0x398] sm:$0xff]  ;;  %467 = vmatpush.msrb.mxu2 %v1742_v24 }
  0x66   :  { %2096 = vst [vmem:[#allocation68_spill] sm:$0xff] %v1718_v17  ;;  %486 = vmatpush.msrb.mxu3 %v1735_v15  ;;  %v1747_v17 = vld [vmem:[%s1963_s2 + $0x390] sm:$0xff] }
  0x67   :  { %2097 = vst [vmem:[#allocation69_spill] sm:$0xff] %v1723_v19 }
  0x68   :  { %2098 = vst [vmem:[#allocation70_spill] sm:$0xff] %v1728_v21  ;;  %487 = vmatpush.msrb.mxu3 %v1747_v17  ;;  %v1754_v21 = vld [vmem:[%s1963_s2 + $0x308] sm:$0xff] }
  0x69   :  { %2099 = vst [vmem:[#allocation71_spill] sm:$0xff] %v1735_v15  ;;  %v1759_v15 = vld [vmem:[%s1963_s2 + $0x388] sm:$0xff]  ;;  %468 = vmatpush.msrb.mxu2 %v1754_v21 }
  0x6a   :  { %2100 = vst [vmem:[#allocation72_spill] sm:$0xff] %v1742_v24  ;;  %488 = vmatpush.msrb.mxu3 %v1759_v15  ;;  %v1766_v24 = vld [vmem:[%s1963_s2 + $0x300] sm:$0xff] }
  0x6b   :  { %2101 = vst [vmem:[#allocation73_spill] sm:$0xff] %v1747_v17  ;;  %v1771_v17 = vld [vmem:[%s1963_s2 + $0x380] sm:$0xff]  ;;  %469 = vmatpush.msrb.mxu2 %v1766_v24  ;;  %s901_s2 = smov 64  }
  0x6c   :  { %2102 = vst [vmem:[#allocation74_spill] sm:$0xff] %v1759_v15  ;;  %489 = vmatpush.msrb.mxu3 %v1771_v17 }
  0x6d   :  { %2103 = vst [vmem:[#allocation75_spill] sm:$0xff] %v1766_v24 }
  0x6e   :  { %2104 = vst [vmem:[#allocation76_spill] sm:$0xff] %v1771_v17 }
  0x8e   :  { %v1775_v19 = vpop.f32.mrf.mxu0 }
  0x8f   :  { %v1777_v23 = vpop.f32.mrf.mxu1  ;;  %350 = vmatmul.f32.vlgmr.msra.gmra.mxu0 %v1775_v19 }
  0x90   :  { %370 = vmatmul.f32.vlgmr.msra.gmra.mxu1 %v1777_v23  ;;  %510 = vmatpush.msra.mxu0 %v1000_v25 }
  0x91   :  { %530 = vmatpush.msra.mxu1 %v1007_v26 }
  0x92   :  { %511 = vmatpush.msra.mxu0 %v1017_v28 }
  0x93   :  { %531 = vmatpush.msra.mxu1 %v1028_v30 }
  0x94   :  { %512 = vmatpush.msra.mxu0 %v1039_v32 }
  0x95   :  { %532 = vmatpush.msra.mxu1 %v1051_v34  ;;  %v1787_v17 = vpop.f32.mrf.mxu2 }
  0x96   :  { %v1789_v24 = vpop.f32.mrf.mxu3  ;;  %390 = vmatmul.f32.vlgmr.msra.gmra.mxu2 %v1787_v17  ;;  %513 = vmatpush.msra.mxu0 %v1063_v36  ;;  %v113_v15 = vpop.f32.mrf.mxu0  ;;  %v502_v36 = vmul.f32 %v1775_v19, %v1775_v19 }
  0x97   :  { %410 = vmatmul.f32.vlgmr.msra.gmra.mxu3 %v1789_v24  ;;  %533 = vmatpush.msra.mxu1 %v1075_v38  ;;  %v126_v25 = vpop.f32.mrf.mxu1  ;;  %v2105_v38 = vld [vmem:[#allocation14_spill] sm:$0xff]  ;;  %v2142_v15 = vld [vmem:[#allocation41_spill] sm:$0xff] }
  0x98   :  { %550 = vmatpush.msra.mxu2 %v1012_v27  ;;  %570 = vmatpush.msra.mxu3 %v1022_v29  ;;  %v2146_v25 = vld [vmem:[#allocation45_spill] sm:$0xff] }
  0x99   :  { %514 = vmatpush.msra.mxu0 %v1087_v40  ;;  %534 = vmatpush.msra.mxu1 %v1099_v42  ;;  %v2107_v40 = vld [vmem:[#allocation9_spill] sm:$0xff]  ;;  %v2109_v42 = vld [vmem:[#allocation16_spill] sm:$0xff] }
  0x9a   :  { %551 = vmatpush.msra.mxu2 %v1033_v31  ;;  %571 = vmatpush.msra.mxu3 %v1045_v33 }
  0x9b   :  { %515 = vmatpush.msra.mxu0 %v1111_v44  ;;  %535 = vmatpush.msra.mxu1 %v1123_v46  ;;  %v2111_v44 = vld [vmem:[#allocation11_spill] sm:$0xff]  ;;  %v2113_v46 = vld [vmem:[#allocation20_spill] sm:$0xff] }
  0x9c   :  { %552 = vmatpush.msra.mxu2 %v1057_v35  ;;  %572 = vmatpush.msra.mxu3 %v1069_v37  ;;  %v503_v37 = vmul.f32 %v1777_v23, %v1777_v23 }
  0x9d   :  { %516 = vmatpush.msra.mxu0 %v1144_v49  ;;  %536 = vmatpush.msra.mxu1 %v1152_v50  ;;  %v139_v26 = vpop.f32.mrf.mxu2  ;;  %v504_v49 = vmul.f32 %v1787_v17, %v1787_v17  ;;  %v505_v50 = vmul.f32 %v1789_v24, %v1789_v24 }
  0x9e   :  { %553 = vmatpush.msra.mxu2 %v1081_v39  ;;  %573 = vmatpush.msra.mxu3 %v1093_v41  ;;  %v152_v27 = vpop.f32.mrf.mxu3  ;;  %v2106_v39 = vld [vmem:[#allocation8_spill] sm:$0xff]  ;;  %v2108_v41 = vld [vmem:[#allocation15_spill] sm:$0xff] }
  0x9f   :  { %517 = vmatpush.msra.mxu0 %v1167_v52  ;;  %537 = vmatpush.msra.mxu1 %v1180_v54  ;;  %v2117_v52 = vld [vmem:[#allocation24_spill] sm:$0xff]  ;;  %v2119_v54 = vld [vmem:[#allocation19_spill] sm:$0xff]  ;;  %v2148_v27 = vld [vmem:[#allocation54_spill] sm:$0xff] }
  0xa0   :  { %v1809_v28 = vpop.f32.mrf.mxu0  ;;  %554 = vmatpush.msra.mxu2 %v1105_v43  ;;  %574 = vmatpush.msra.mxu3 %v1117_v45  ;;  %v2110_v43 = vld [vmem:[#allocation10_spill] sm:$0xff]  ;;  %v2147_v26 = vld [vmem:[#allocation47_spill] sm:$0xff] }
  0xa1   :  { %v1813_v29 = vpop.f32.mrf.mxu1  ;;  %430 = vmatmul.f32.vlgmr.msrb.gmra.mxu0 %v1809_v28  ;;  %538 = vmatpush.msra.mxu1 %v1203_v58  ;;  %v2112_v45 = vld [vmem:[#allocation18_spill] sm:$0xff]  ;;  %v2123_v58 = vld [vmem:[#allocation23_spill] sm:$0xff] }
  0xa2   :  { %518 = vmatpush.msra.mxu0 %v1191_v56  ;;  %555 = vmatpush.msra.mxu2 %v1129_v47  ;;  %v2114_v47 = vld [vmem:[#allocation12_spill] sm:$0xff] }
  0xa3   :  { %575 = vmatpush.msra.mxu3 %v1136_v48  ;;  %450 = vmatmul.f32.vlgmr.msrb.gmra.mxu1 %v1813_v29  ;;  %v2115_v48 = vld [vmem:[#allocation13_spill] sm:$0xff]  ;;  %v2121_v56 = vld [vmem:[#allocation28_spill] sm:$0xff] }
  0xa4   :  { %519 = vmatpush.msra.mxu0 %v1215_v60  ;;  %539 = vmatpush.msra.mxu1 %v1227_v62  ;;  %v2125_v60 = vld [vmem:[#allocation32_spill] sm:$0xff]  ;;  %v2127_v62 = vld [vmem:[#allocation27_spill] sm:$0xff] }
  0xa5   :  { %556 = vmatpush.msra.mxu2 %v1158_v51  ;;  %576 = vmatpush.msra.mxu3 %v1172_v53  ;;  %v2116_v51 = vld [vmem:[#allocation22_spill] sm:$0xff]  ;;  %v2118_v53 = vld [vmem:[#allocation17_spill] sm:$0xff] }
  0xa6   :  { %520 = vmatpush.msra.mxu0 %v1239_v0  ;;  %540 = vmatpush.msra.mxu1 %v1251_v2  ;;  %v2129_v0 = vld [vmem:[#allocation36_spill] sm:$0xff]  ;;  %v2131_v2 = vld [vmem:[#allocation31_spill] sm:$0xff] }
  0xa7   :  { %v1827_v30 = vpop.f32.mrf.mxu2  ;;  %557 = vmatpush.msra.mxu2 %v1185_v55  ;;  %577 = vmatpush.msra.mxu3 %v1197_v57  ;;  %v2120_v55 = vld [vmem:[#allocation26_spill] sm:$0xff]  ;;  %v2122_v57 = vld [vmem:[#allocation21_spill] sm:$0xff] }
  0xa8   :  { %v1831_v31 = vpop.f32.mrf.mxu3  ;;  %v165_v32 = vpop.f32.mrf.mxu0  ;;  %470 = vmatmul.f32.vlgmr.msrb.gmra.mxu2 %v1827_v30  ;;  %521 = vmatpush.msra.mxu0 %v1263_v4  ;;  %v2133_v4 = vld [vmem:[#allocation40_spill] sm:$0xff] }
  0xa9   :  { %v178_v33 = vpop.f32.mrf.mxu1  ;;  %541 = vmatpush.msra.mxu1 %v1275_v6  ;;  %558 = vmatpush.msra.mxu2 %v1209_v59  ;;  %v2124_v59 = vld [vmem:[#allocation30_spill] sm:$0xff]  ;;  %v2135_v6 = vld [vmem:[#allocation35_spill] sm:$0xff]  ;;  %v2149_v32 = vld [vmem:[#allocation56_spill] sm:$0xff] }
  0xaa   :  { %578 = vmatpush.msra.mxu3 %v1221_v61  ;;  %522 = vmatpush.msra.mxu0 %v1287_v8  ;;  %v2126_v61 = vld [vmem:[#allocation25_spill] sm:$0xff]  ;;  %v2137_v8 = vld [vmem:[#allocation44_spill] sm:$0xff] }
  0xab   :  { %490 = vmatmul.f32.vlgmr.msrb.gmra.mxu3 %v1831_v31  ;;  %542 = vmatpush.msra.mxu1 %v1299_v10  ;;  %v2139_v10 = vld [vmem:[#allocation39_spill] sm:$0xff]  ;;  %v2150_v33 = vld [vmem:[#allocation49_spill] sm:$0xff] }
  0xac   :  { %559 = vmatpush.msra.mxu2 %v1233_v63  ;;  %579 = vmatpush.msra.mxu3 %v1245_v1  ;;  %v2128_v63 = vld [vmem:[#allocation34_spill] sm:$0xff]  ;;  %v2130_v1 = vld [vmem:[#allocation29_spill] sm:$0xff] }
  0xad   :  { %523 = vmatpush.msra.mxu0 %v1311_v12  ;;  %543 = vmatpush.msra.mxu1 %v1323_v14  ;;  %v2140_v12 = vld [vmem:[#allocation46_spill] sm:$0xff]  ;;  %v2141_v14 = vld [vmem:[#allocation48_spill] sm:$0xff] }
  0xae   :  { %560 = vmatpush.msra.mxu2 %v1257_v3  ;;  %580 = vmatpush.msra.mxu3 %v1269_v5  ;;  %v2132_v3 = vld [vmem:[#allocation38_spill] sm:$0xff]  ;;  %v2134_v5 = vld [vmem:[#allocation33_spill] sm:$0xff] }
  0xaf   :  { %v191_v34 = vpop.f32.mrf.mxu2  ;;  %524 = vmatpush.msra.mxu0 %v1335_v16  ;;  %544 = vmatpush.msra.mxu1 %v1347_v18  ;;  %v2143_v16 = vld [vmem:[#allocation43_spill] sm:$0xff]  ;;  %v2144_v18 = vld [vmem:[#allocation50_spill] sm:$0xff] }
  0xb0   :  { %v204_v35 = vpop.f32.mrf.mxu3  ;;  %561 = vmatpush.msra.mxu2 %v1281_v7  ;;  %581 = vmatpush.msra.mxu3 %v1293_v9  ;;  %v2136_v7 = vld [vmem:[#allocation42_spill] sm:$0xff]  ;;  %v2138_v9 = vld [vmem:[#allocation37_spill] sm:$0xff]  ;;  %v2151_v34 = vld [vmem:[#allocation51_spill] sm:$0xff] }
  0xb1   :  { %525 = vmatpush.msra.mxu0 %v1359_v20  ;;  %545 = vmatpush.msra.mxu1 %v2105_v38  ;;  %v2145_v20 = vld [vmem:[#allocation52_spill] sm:$0xff]  ;;  %v2152_v35 = vld [vmem:[#allocation58_spill] sm:$0xff]  ;;  %v2155_v38 = vld [vmem:[#allocation61_spill] sm:$0xff] }
  0xb2   :  { %562 = vmatpush.msra.mxu2 %v2106_v39  ;;  %582 = vmatpush.msra.mxu3 %v2107_v40  ;;  %v2156_v39 = vld [vmem:[#allocation57_spill] sm:$0xff]  ;;  %v2157_v40 = vld [vmem:[#allocation59_spill] sm:$0xff] }
  0xb3   :  { %526 = vmatmul.f32.vlgmr.msra.gmra.mxu0 %v502_v36  ;;  %546 = vmatmul.f32.vlgmr.msra.gmra.mxu1 %v503_v37  ;;  %v2153_v36 = vld [vmem:[#allocation53_spill] sm:$0xff]  ;;  %v2154_v37 = vld [vmem:[#allocation55_spill] sm:$0xff] }
  0xb4   :  { %590 = vmatpush.msrb.mxu0 %v2108_v41  ;;  %610 = vmatpush.msrb.mxu1 %v2109_v42  ;;  %v2158_v41 = vld [vmem:[#allocation65_spill] sm:$0xff]  ;;  %v2159_v42 = vld [vmem:[#allocation60_spill] sm:$0xff] }
  0xb5   :  { %563 = vmatpush.msra.mxu2 %v2110_v43  ;;  %583 = vmatpush.msra.mxu3 %v2111_v44  ;;  %v2160_v43 = vld [vmem:[#allocation62_spill] sm:$0xff]  ;;  %v2162_v44 = vld [vmem:[#allocation67_spill] sm:$0xff] }
  0xb6   :  { %591 = vmatpush.msrb.mxu0 %v2112_v45  ;;  %611 = vmatpush.msrb.mxu1 %v2113_v46  ;;  %v2163_v45 = vld [vmem:[#allocation63_spill] sm:$0xff]  ;;  %v2164_v46 = vld [vmem:[#allocation64_spill] sm:$0xff] }
  0xb7   :  { %564 = vmatpush.msra.mxu2 %v2114_v47  ;;  %584 = vmatpush.msra.mxu3 %v2115_v48  ;;  %v2165_v47 = vld [vmem:[#allocation68_spill] sm:$0xff]  ;;  %v2166_v48 = vld [vmem:[#allocation69_spill] sm:$0xff] }
  0xb8   :  { %592 = vmatpush.msrb.mxu0 %v2116_v51  ;;  %612 = vmatpush.msrb.mxu1 %v2117_v52  ;;  %v2169_v51 = vld [vmem:[#allocation72_spill] sm:$0xff]  ;;  %v2170_v52 = vld [vmem:[#allocation73_spill] sm:$0xff] }
  0xb9   :  { %565 = vmatpush.msra.mxu2 %v2118_v53  ;;  %585 = vmatpush.msra.mxu3 %v2119_v54  ;;  %v2171_v53 = vld [vmem:[#allocation74_spill] sm:$0xff]  ;;  %v508_v54 = vmul.f32 %v1827_v30, %v1827_v30 }
  0xba   :  { %566 = vmatmul.f32.vlgmr.msra.gmra.mxu2 %v504_v49  ;;  %586 = vmatmul.f32.vlgmr.msra.gmra.mxu3 %v505_v50  ;;  %v2167_v49 = vld [vmem:[#allocation70_spill] sm:$0xff]  ;;  %v2168_v50 = vld [vmem:[#allocation71_spill] sm:$0xff] }
  0xbb   :  { %593 = vmatpush.msrb.mxu0 %v2120_v55  ;;  %613 = vmatpush.msrb.mxu1 %v2121_v56  ;;  %v509_v55 = vmul.f32 %v1831_v31, %v1831_v31  ;;  %v2172_v56 = vld [vmem:[#allocation75_spill] sm:$0xff] }
  0xbc   :  { %630 = vmatpush.msrb.mxu2 %v2122_v57  ;;  %650 = vmatpush.msrb.mxu3 %v2123_v58  ;;  %v2173_v57 = vld [vmem:[#allocation76_spill] sm:$0xff] }
  0xbd   :  { %594 = vmatpush.msrb.mxu0 %v2124_v59  ;;  %614 = vmatpush.msrb.mxu1 %v2125_v60 }
  0xbe   :  { %631 = vmatpush.msrb.mxu2 %v2126_v61  ;;  %651 = vmatpush.msrb.mxu3 %v2127_v62 }
  0xbf   :  { %595 = vmatpush.msrb.mxu0 %v2128_v63  ;;  %615 = vmatpush.msrb.mxu1 %v2129_v0 }
  0xc0   :  { %632 = vmatpush.msrb.mxu2 %v2130_v1  ;;  %652 = vmatpush.msrb.mxu3 %v2131_v2 }
  0xc1   :  { %596 = vmatpush.msrb.mxu0 %v2132_v3  ;;  %616 = vmatpush.msrb.mxu1 %v2133_v4 }
  0xc2   :  { %633 = vmatpush.msrb.mxu2 %v2134_v5  ;;  %653 = vmatpush.msrb.mxu3 %v2135_v6 }
  0xc3   :  { %597 = vmatpush.msrb.mxu0 %v2136_v7  ;;  %617 = vmatpush.msrb.mxu1 %v2137_v8 }
  0xc4   :  { %634 = vmatpush.msrb.mxu2 %v2138_v9  ;;  %654 = vmatpush.msrb.mxu3 %v2139_v10 }
  0xc5   :  { %598 = vmatpush.msrb.mxu0 %v2140_v12  ;;  %618 = vmatpush.msrb.mxu1 %v2141_v14  ;;  %v900_v12 = vmov 32.0  }
  0xc6   :  { %635 = vmatpush.msrb.mxu2 %v2142_v15  ;;  %655 = vmatpush.msrb.mxu3 %v2143_v16  ;;  %842 = vrcp.f32 %v900_v12 }
  0xc7   :  { %599 = vmatpush.msrb.mxu0 %v2144_v18  ;;  %619 = vmatpush.msrb.mxu1 %v2145_v20 }
  0xc8   :  { %636 = vmatpush.msrb.mxu2 %v2146_v25  ;;  %656 = vmatpush.msrb.mxu3 %v2147_v26 }
  0xc9   :  { %600 = vmatpush.msrb.mxu0 %v2148_v27  ;;  %620 = vmatpush.msrb.mxu1 %v2149_v32 }
  0xca   :  { %637 = vmatpush.msrb.mxu2 %v2150_v33  ;;  %657 = vmatpush.msrb.mxu3 %v2151_v34 }
  0xcb   :  { %601 = vmatpush.msrb.mxu0 %v2152_v35  ;;  %621 = vmatpush.msrb.mxu1 %v1647_v22  ;;  %v2161_v22 = vld [vmem:[#allocation66_spill] sm:$0xff] }
  0xcc   :  { %638 = vmatpush.msrb.mxu2 %v2153_v36  ;;  %658 = vmatpush.msrb.mxu3 %v2154_v37  ;;  %v843_v20 = vpop.eup %842 }
  0xcd   :  { %602 = vmatpush.msrb.mxu0 %v2155_v38  ;;  %622 = vmatpush.msrb.mxu1 %v1671_v13  ;;  %v506_v13 = vmul.f32 %v1809_v28, %v1809_v28  ;;  %v678_v34 = vmul.f32 32.0, %v843_v20  ;;  %vm682_vm2 = vweird.f32 %v843_v20 }
  0xce   :  { %639 = vmatpush.msrb.mxu2 %v2156_v39  ;;  %659 = vmatpush.msrb.mxu3 %v2157_v40 }
  0xcf   :  { %603 = vmatpush.msrb.mxu0 %v1683_v11  ;;  %623 = vmatpush.msrb.mxu1 %v2158_v41  ;;  %v507_v11 = vmul.f32 %v1813_v29, %v1813_v29  ;;  %v679_v38 = vsub.f32 1.0, %v678_v34 }
  0xd0   :  { %640 = vmatpush.msrb.mxu2 %v2159_v42  ;;  %660 = vmatpush.msrb.mxu3 %v2160_v43 }
  0xd1   :  { %604 = vmatpush.msrb.mxu0 %v2161_v22  ;;  %624 = vmatpush.msrb.mxu1 %v2162_v44  ;;  %v680_v22 = vmul.f32 %v843_v20, %v679_v38 }
  0xd2   :  { %641 = vmatpush.msrb.mxu2 %v2163_v45  ;;  %661 = vmatpush.msrb.mxu3 %v2164_v46 }
  0xd3   :  { %605 = vmatpush.msrb.mxu0 %v2165_v47  ;;  %625 = vmatpush.msrb.mxu1 %v2166_v48 }
  0xd4   :  { %642 = vmatpush.msrb.mxu2 %v2167_v49  ;;  %662 = vmatpush.msrb.mxu3 %v2168_v50 }
  0xd5   :  { %606 = vmatmul.f32.vlgmr.msrb.gmra.mxu0 %v506_v13  ;;  %626 = vmatmul.f32.vlgmr.msrb.gmra.mxu1 %v507_v11  ;;  %v681_v13 = vadd.f32 %v843_v20, %v680_v22 }
  0xd6   :  { %643 = vmatpush.msrb.mxu2 %v2169_v51  ;;  %663 = vmatpush.msrb.mxu3 %v2170_v52 }
  0xd7   :  { %v683_v49 = vsel %vm682_vm2, %v843_v20, %v681_v13 }
  0xd8   :  { %644 = vmatpush.msrb.mxu2 %v1754_v21  ;;  %664 = vmatpush.msrb.mxu3 %v2171_v53 }
  0xda   :  { %645 = vmatpush.msrb.mxu2 %v2172_v56  ;;  %665 = vmatpush.msrb.mxu3 %v2173_v57 }
  0xdb   :  { %646 = vmatmul.f32.vlgmr.msrb.gmra.mxu2 %v508_v54  ;;  %666 = vmatmul.f32.vlgmr.msrb.gmra.mxu3 %v509_v55 }
 0x10c   :  { %v351_v58 = vpop.f32.mrf.mxu0 }
 0x10d   :  { %v371_v59 = vpop.f32.mrf.mxu1 }
 0x10e   :  { %v372_v61 = vadd.f32 %v371_v59, %v351_v58 }
 0x119   :  { %v391_v60 = vpop.f32.mrf.mxu2 }
 0x11a   :  { %v392_v62 = vadd.f32 %v391_v60, %v372_v61  ;;  %v411_v21 = vpop.f32.mrf.mxu3 }
 0x11c   :  { %v412_v63 = vadd.f32 %v411_v21, %v392_v62 }
 0x11e   :  { %v431_v0 = vpop.f32.mrf.mxu0 }
 0x11f   :  { %v432_v1 = vadd.f32 %v431_v0, %v412_v63  ;;  %v700_v0 = vld [vmem:[#allocation2] sm:$0x1] }
 0x120   :  { %v451_v2 = vpop.f32.mrf.mxu1 }
 0x121   :  { %v452_v4 = vadd.f32 %v451_v2, %v432_v1 }
 0x12b   :  { %v471_v3 = vpop.f32.mrf.mxu2 }
 0x12c   :  { %v472_v5 = vadd.f32 %v471_v3, %v452_v4 }
 0x12e   :  { %v491_v6 = vpop.f32.mrf.mxu3 }
 0x12f   :  { %v492_v7 = vadd.f32 %v491_v6, %v472_v5  ;;  %v709_v6 = vld [vmem:[#allocation4] sm:$0x1] }
 0x130   :  { %v527_v8 = vpop.f32.mrf.mxu0  ;;  %v547_v9 = vpop.f32.mrf.mxu1 }
 0x131   :  { %v495_v14 = vsel %vm494_vm1, %v492_v7, 0.0  ;;  %v548_v15 = vadd.f32 %v547_v9, %v527_v8 }
 0x132   :  { %v496_v18 = vrot.slane %v495_v14, 4 }
 0x134   :  { %v497_v32 = vadd.f32 %v496_v18, %v495_v14 }
 0x136   :  { %v498_v35 = vrot.slane %v497_v32, 2 }
 0x138   :  { %v499_v41 = vadd.f32 %v498_v35, %v497_v32 }
 0x13a   :  { %v500_v45 = vrot.slane %v499_v41, 1 }
 0x13c   :  { %v501_v47 = vadd.f32 %v500_v45, %v499_v41 }
 0x13d   :  { %v567_v10 = vpop.f32.mrf.mxu2  ;;  %v587_v25 = vpop.f32.mrf.mxu3 }
 0x13e   :  { %v568_v16 = vadd.f32 %v567_v10, %v548_v15  ;;  %v684_v52 = vmul.f32 %v683_v49, %v501_v47 }
 0x140   :  { %v588_v27 = vadd.f32 %v587_v25, %v568_v16  ;;  %v686_v55 = vmul.f32 %v684_v52, %v684_v52  ;;  %v710_v3 = vmul.f32 %v700_v0, %v684_v52 }
 0x152   :  { %v607_v26 = vpop.f32.mrf.mxu0  ;;  %v627_v36 = vpop.f32.mrf.mxu1 }
 0x153   :  { %v608_v33 = vadd.f32 %v607_v26, %v588_v27 }
 0x155   :  { %v628_v37 = vadd.f32 %v627_v36, %v608_v33 }
 0x15e   :  { %v647_v39 = vpop.f32.mrf.mxu2  ;;  %v667_v42 = vpop.f32.mrf.mxu3 }
 0x15f   :  { %v648_v40 = vadd.f32 %v647_v39, %v628_v37 }
 0x161   :  { %v668_v43 = vadd.f32 %v667_v42, %v648_v40 }
 0x163   :  { %v670_v44 = vsel %vm494_vm1, %v668_v43, 0.0 }
 0x164   :  { %v671_v46 = vrot.slane %v670_v44, 4 }
 0x166   :  { %v672_v11 = vadd.f32 %v671_v46, %v670_v44 }
 0x168   :  { %v673_v48 = vrot.slane %v672_v11, 2 }
 0x16a   :  { %v674_v50 = vadd.f32 %v673_v48, %v672_v11 }
 0x16c   :  { %v675_v51 = vrot.slane %v674_v50, 1 }
 0x16e   :  { %v676_v53 = vadd.f32 %v675_v51, %v674_v50 }
 0x170   :  { %v685_v54 = vmul.f32 %v683_v49, %v676_v53 }
 0x172   :  { %v687_v56 = vsub.f32 %v685_v54, %v686_v55 }
 0x174   :  { %v688_v57 = vmax.f32 %v687_v56, 0.0 }
 0x176   :  { %v689_v58 = vadd.f32 1e-05, %v688_v57 }
 0x178   :  { %844 = vrsqrt.f32 %v689_v58  ;;  %vm696_vm4 = vweird.f32 %v689_v58 }
 0x17e   :  { %v845_v59 = vpop.eup %844 }
 0x17f   :  { %v691_v60 = vmul.f32 %v845_v59, %v689_v58  ;;  %vm697_vm3 = vweird.f32 %v845_v59 }
 0x180   :  { %vm698_vm5 = vmor %vm696_vm4, %vm697_vm3 }
 0x181   :  { %v692_v61 = vmul.f32 %v845_v59, %v691_v60 }
 0x183   :  { %v693_v62 = vmul.f32 0.5, %v692_v61 }
 0x185   :  { %v694_v21 = vsub.f32 1.5, %v693_v62 }
 0x187   :  { %v695_v63 = vmul.f32 %v845_v59, %v694_v21 }
 0x189   :  { %v699_v1 = vsel %vm698_vm5, %v845_v59, %v695_v63 }
 0x18a   :  { %v701_v2 = vmul.f32 %v700_v0, %v699_v1  ;;  %v711_v5 = vmul.f32 %v710_v3, %v699_v1 }
 0x18c   :  { %v703_v4 = vperm.slane %v701_v2, 0  ;;  %v712_v7 = vsub.f32 %v709_v6, %v711_v5 }
 0x18e   :  { %704 = vrot.lane.b32.xlu0 %v703_v4, %s901_s2  ;;  %v714_v8 = vperm.slane %v712_v7, 0 }
 0x196   :  { %715 = vrot.lane.b32.xlu0 %v714_v8, %s901_s2 }
 0x200   :  { %v705_v9 = vpop.permute.xlu0 %704 }
 0x201   :  { %v708_v10 = vsel %vm707_vm6, %v701_v2, %v705_v9 }
 0x202   :  { %v719_v12 = vperm.slane %v708_v10, 0 }
 0x204   :  { %v720_v15 = vmul.f32 %v719_v12, %v1775_v19  ;;  %v721_v18 = vmul.f32 %v719_v12, %v1777_v23  ;;  %v722_v20 = vmul.f32 %v719_v12, %v1787_v17  ;;  %v723_v25 = vmul.f32 %v719_v12, %v1789_v24 }
 0x205   :  { %v724_v27 = vmul.f32 %v719_v12, %v1809_v28  ;;  %v725_v32 = vmul.f32 %v719_v12, %v1813_v29  ;;  %v726_v33 = vmul.f32 %v719_v12, %v1827_v30  ;;  %v727_v34 = vmul.f32 %v719_v12, %v1831_v31 }
 0x208   :  { %v716_v14 = vpop.permute.xlu0 %715 }
 0x209   :  { %v718_v16 = vsel %vm707_vm6, %v712_v7, %v716_v14 }
 0x20a   :  { %v728_v26 = vperm.slane %v718_v16, 0 }
 0x20c   :  { %v729_v35 = vadd.f32 %v728_v26, %v720_v15  ;;  %v730_v36 = vadd.f32 %v728_v26, %v721_v18  ;;  %v731_v19 = vadd.f32 %v728_v26, %v722_v20  ;;  %v732_v37 = vadd.f32 %v728_v26, %v723_v25 }
 0x20d   :  { %v733_v38 = vadd.f32 %v728_v26, %v724_v27  ;;  %v734_v39 = vadd.f32 %v728_v26, %v725_v32  ;;  %v735_v23 = vadd.f32 %v728_v26, %v726_v33  ;;  %v736_v40 = vadd.f32 %v728_v26, %v727_v34 }
 0x20e   :  { %v737_v17 = vmax.f32 %v729_v35, 0.0  ;;  %v738_v41 = vmax.f32 %v730_v36, 0.0  ;;  %v739_v24 = vmax.f32 %v731_v19, 0.0  ;;  %v740_v42 = vmax.f32 %v732_v37, 0.0 }
 0x20f   :  { %v741_v43 = vmax.f32 %v733_v38, 0.0  ;;  %v742_v28 = vmax.f32 %v734_v39, 0.0  ;;  %v743_v22 = vmax.f32 %v735_v23, 0.0  ;;  %v744_v29 = vmax.f32 %v736_v40, 0.0 }
 0x210   :  { %v745_v30 = vpack.c.bf16 %v738_v41, %v737_v17  ;;  %v746_v31 = vpack.c.bf16 %v740_v42, %v739_v24 }
 0x211   :  { %v747_v44 = vpack.c.bf16 %v742_v28, %v741_v43  ;;  %v748_v45 = vpack.c.bf16 %v744_v29, %v743_v22 }
 0x212   :  { %v753_v46 = vrot.slane %v745_v30, 3  ;;  %v754_v13 = vrot.slane %v746_v31, 6  ;;  %v755_v11 = vrot.slane %v746_v31, 1 }
 0x213   :  { %v756_v47 = vrot.slane %v747_v44, 4  ;;  %v757_v48 = vrot.slane %v747_v44, 7  ;;  %v758_v49 = vrot.slane %v748_v45, 2  ;;  %v759_v50 = vrot.slane %v748_v45, 5 }
 0x214   :  { %v763_v51 = vsel %vm760_vm7, %v745_v30, %v753_v46  ;;  %v767_v52 = vsel %vm764_vm8, %v754_v13, %v755_v11 }
 0x215   :  { %v769_v53 = vsel %vm768_vm9, %v763_v51, %v767_v52  ;;  %v773_v54 = vsel %vm770_vm10, %v756_v47, %v757_v48  ;;  %v777_v55 = vsel %vm774_vm11, %v758_v49, %v759_v50 }
 0x216   :  { %v779_v56 = vsel %vm778_vm12, %v773_v54, %v777_v55 }
 0x217   :  { %v781_v57 = vsel %vm780_vm13, %v769_v53, %v779_v56 }
 0x218   :  { %783 = vst [vmem:[%s1966_s5] sm:$0xff] %v781_v57 }
 0x219   :  { %788 = vsyncpa [#allocation3], 1 }
 0x21a   :  { %789 = vsyncpa [#allocation5], 1 }

// kernel: _forward.10
= control target key start
LH: loop header
LB: loop body
LE: loop exit
PB: predicated region body
PF: predicated region fallthrough
CT: control target
= control target key end

     0   :  { %s2097_s12 = smov 0   ;;  %s2099_s13 = smov 0   ;;  %s2348_s0 = inlined_call_operand.vmem [shape: bf16[2,64,42], index: 0, kind: input, shape index: {}]   ;;  %s2349_s1 = inlined_call_operand.vmem [shape: bf16[4,4,32,64], index: 1, kind: input, shape index: {}]   ;;  %s2350_s2 = inlined_call_operand.vmem [shape: bf16[2,4,32,24], index: 2, kind: output, shape index: {0}]   ;;  %s2351_s3 = inlined_call_operand.vmem [shape: f32[2,4,32,2], index: 3, kind: output, shape index: {1}]  }
   0x1   :  { %s2101_s14 = smov 0   ;;  %s2103_s15 = smov 0  }
   0x2   :  { %s2105_s16 = smov 0  }
   0x3 LB: > { %s23_s17 = sadd.s32 1, %s2050_s14  ;;  %s26_s18 = sadd.s32 1, %s2054_s15  ;;  %s2058_s16 = sphi %s2105_s16, %s14_s16   ;;  %s2054_s15 = sphi %s2103_s15, %s2355_s15   ;;  %s2050_s14 = sphi %s2101_s14, %s2354_s14   ;;  %s2046_s13 = sphi %s2099_s13, %s2353_s13   ;;  %s2042_s12 = sphi %s2097_s12, %s2352_s12  }
   0x4   : > { %p24_p0 = scmp.ge.s32.totalorder %s23_s17, 4  ;;  %p1623_p1 = scmp.ge.s32.totalorder %s2058_s16, 1 }
   0x5   : > { %p166_p2 = scmp.lt.s32.totalorder %s2058_s16, 9 }
   0x6   : > { %s2357_s17 = smov (%p24_p0, %s23_s17), 0  ;;  %s2359_s18 = smov (!%p24_p0, %s26_s18), %s2054_s15 }
   0x7   : > { %p167_p3 = pnand %p1623_p1, %p166_p2  ;;  %p28_p4 = scmp.ge.s32.totalorder %s2359_s18, 2 }
   0x8   : > { %p208_p5 = scmp.lt.s32.totalorder (!%p167_p3), %s2046_s13, 1  ;;  %p213_p6 = scmp.lt.s32.totalorder (!%p167_p3), %s2042_s12, 3 }
   0x9   : > { %s2361_s18 = smov (%p28_p4, %s2359_s18), 0  ;;  %170 = sbr.rel (%p167_p3) target bundleno = 1830 (0x726), region = 28 }
   0xa   : > { %p1635_p7 = scmp.ne.s32.totalorder (!%p167_p3), %s2042_s12, 0 }
   0xe   : > { %v237_v0 = vlaneseq  ;;  %s2363_s13 = smov (!%p208_p5, %s2046_s13), 1  ;;  %v2060_v11 = vmov 0   ;;  %v2061_v25 = vmov 0.0  }
   0xf   : > { %s214_s19 = scalar_select %p213_p6, %s2042_s12, 3 }
  0x10   : > { %v238_v1 = vand.u32 127, %v237_v0  ;;  %s1913_s20 = sshll.u32 %s2363_s13, 5  ;;  %s1629_s21 = sshll.u32 %s2363_s13, 4 }
  0x11   : > { %s2134_s24 = scalar_lea.vmem %s2348_s0, %s1913_s20  ;;  %s1914_s25 = sshll.u32 %s214_s19, 6 }
  0x12   : > { %v242_v2 = vand.u32 65535, %v238_v1  ;;  %v243_v3 = vshrl.u32 %v238_v1, 16  ;;  %s2139_s28 = scalar_lea.vmem %s2349_s1, %s1914_s25  ;;  %s1628_s29 = sshll.u32 %s214_s19, 2 }
  0x13   : > { %s224_s30 = sadd.s32 %s1629_s21, %s1628_s29  ;;  %s2062_s13 = smov (!%p1635_p7), 127  }
  0x14   : > { %v245_v4 = vmul.u32 43691, %v242_v2  ;;  %v246_v5 = vmul.u32 43690, %v242_v2  ;;  %v247_v6 = vmul.u32 43691, %v243_v3  ;;  %s1630_s4 = sshll.u32 %s224_s30, 2  ;;  %s1633_s5 = sshll.u32 %s224_s30, 3  ;;  %v248_v7 = vmul.u32 43690, %v243_v3 }
  0x15   : > { %s2144_s8 = scalar_lea.vmem %s2350_s2, %s1630_s4  ;;  %s2149_s11 = scalar_lea.vmem %s2351_s3, %s1633_s5 }
  0x16   : > { %v249_v8 = vshll.u32 %v246_v5, 16  ;;  %v251_v9 = vshll.u32 %v247_v6, 16  ;;  %v250_v13 = vshrl.u32 %v246_v5, 16  ;;  %v252_v16 = vshrl.u32 %v247_v6, 16  ;;  %s2063_s19 = smov (!%p1635_p7), 122   ;;  %s2064_s20 = smov (!%p1635_p7), 121  }
  0x18   : > { %vm253_vm0 = vc.u32 %v245_v4, %v249_v8  ;;  %v255_v10 = vadd.s32 %v249_v8, %v245_v4 }
  0x19   : > { %v254_v12 = vsel %vm253_vm0, 1, %v2060_v11 }
  0x1a   : > { %v256_v14 = vadd.s32 %v254_v12, %v248_v7  ;;  %vm257_vm1 = vc.u32 %v255_v10, %v251_v9 }
  0x1b   : > { %v258_v15 = vsel %vm257_vm1, 1, %v2060_v11 }
  0x1c   : > { %v260_v17 = vadd.s32 %v258_v15, %v256_v14 }
  0x1e   : > { %v261_v18 = vadd.s32 %v260_v17, %v250_v13 }
  0x20   : > { %v262_v19 = vadd.s32 %v261_v18, %v252_v16 }
  0x22   : > { %v263_v20 = vshrl.u32 %v262_v19, 2 }
  0x24   : > { %v264_v21 = vmul.u32 6, %v263_v20 }
  0x26   : > { %v265_v22 = vsub.s32 %v238_v1, %v264_v21 }
  0x28   : > { %vm268_vm2 = vcmp.ne.s32.totalorder %v265_v22, 0  ;;  %vm269_vm3 = vcmp.lt.s32.totalorder %v265_v22, 0  ;;  %v271_v23 = vadd.s32 6, %v265_v22  ;;  %279 = sbr.rel (%p1635_p7) target bundleno = 477 (0x1dd), region = 32 }
  0x29   : > { %vm270_vm4 = vmand %vm269_vm3, %vm268_vm2 }
  0x2a   : > { %v272_v24 = vsel %vm270_vm4, %v271_v23, %v265_v22 }
  0x2b   : > { %vm273_vm5 = vcmp.lt.s32.totalorder %v272_v24, 4 }
  0x2c   : > { %v2151_v26 = vsel %vm273_vm5, 1.0, %v2061_v25 }
  0x2d   : > { %v1918_v27 = vld [vmem:[%s2134_s24 + $0x18] sm:$0xff]  ;;  %v1917_v28 = vld [vmem:[%s2134_s24 + $0x10] sm:$0xff]  ;;  %v1916_v29 = vld [vmem:[%s2134_s24 + $0x8] sm:$0xff]  ;;  %vm339_vm6 = vcmask 523264   ;;  %vm553_vm7 = vcmask 191488   ;;  %vm520_vm8 = vcmask 195584  }
  0x2e   : > { %333 = vrot.lane.b32.xlu1 %v1918_v27, %s2062_s13  ;;  %425 = vrot.lane.b32.xlu0 %v1918_v27, %s2063_s19  ;;  %v1915_v30 = vld [vmem:[%s2134_s24] sm:$0xff]  ;;  %v1920_v37 = vld [vmem:[%s2139_s28 + $0x8] sm:$0xff]  ;;  %vm558_vm9 = vcmask 7168   ;;  %vm563_vm10 = vcmask 15360  }
  0x2f   : > { %479 = vrot.lane.b32.xlu2 %v1917_v28, %s2064_s20  ;;  %389 = vmatpush.bf16.msra.mxu1 %v1918_v27  ;;  %v1919_v32 = vld [vmem:[%s2139_s28] sm:$0xff]  ;;  %v1921_v41 = vld [vmem:[%s2139_s28 + $0x10] sm:$0xff]  ;;  %v1922_v48 = vld [vmem:[%s2139_s28 + $0x18] sm:$0xff] }
  0x30   : > { %v1923_v46 = vld [vmem:[%s2139_s28 + $0x20] sm:$0xff]  ;;  %v1925_v47 = vld [vmem:[%s2139_s28 + $0x30] sm:$0xff]  ;;  %v1924_v49 = vld [vmem:[%s2139_s28 + $0x28] sm:$0xff] }
  0x31   : > { %v1926_v50 = vld [vmem:[%s2139_s28 + $0x38] sm:$0xff] }
  0x33   : > { %390 = vmatpush.bf16.msra.mxu1 %v1917_v28 }
  0x36   : > { %481 = vrot.lane.b32.xlu0 %v1918_v27, %s2064_s20  ;;  %423 = vrot.lane.b32.xlu1 %v1917_v28, %s2063_s19 }
  0x37   : > { %331 = vrot.lane.b32.xlu2 %v1917_v28, %s2062_s13  ;;  %391 = vmatpush.bf16.msra.mxu1 %v1916_v29 }
  0x3b   : > { %392 = vmatpush.bf16.msra.mxu1 %v1915_v30 }
  0x3e   : > { %477 = vrot.lane.b32.xlu1 %v1916_v29, %s2064_s20  ;;  %421 = vrot.lane.b32.xlu0 %v1916_v29, %s2063_s19 }
  0x3f   : > { %329 = vrot.lane.b32.xlu2 %v1916_v29, %s2062_s13  ;;  %1674 = vmatmul.msk.bf16.vlgmr.msra.gmra.mxu1 %vm339_vm6, %v1919_v32 }
  0x46   : > { %475 = vrot.lane.b32.xlu1 %v1915_v30, %s2064_s20  ;;  %419 = vrot.lane.b32.xlu0 %v1915_v30, %s2063_s19 }
  0x47   : > { %327 = vrot.lane.b32.xlu2 %v1915_v30, %s2062_s13 }
  0x4f   : > { %1675 = vmatmul.msk.bf16.gmra.mxu1 %vm339_vm6, %v1920_v37 }
  0x89   : > { %v480_v31 = vpop.permute.xlu2 %479 }
  0x91   : > { %v332_v33 = vpop.permute.xlu2 %331 }
  0x99   : > { %v330_v36 = vpop.permute.xlu2 %329 }
  0xa0   : > { %v334_v34 = vpop.permute.xlu1 %333  ;;  %v426_v35 = vpop.permute.xlu0 %425 }
  0xa1   : > { %441 = vmatpush.bf16.msra.mxu2 %v426_v35  ;;  %350 = vmatpush.bf16.msra.mxu0 %v334_v34  ;;  %v328_v40 = vpop.permute.xlu2 %327 }
  0xa5   : > { %351 = vmatpush.bf16.msra.mxu0 %v332_v33 }
  0xa8   : > { %v482_v38 = vpop.permute.xlu0 %481  ;;  %v424_v39 = vpop.permute.xlu1 %423 }
  0xa9   : > { %497 = vmatpush.bf16.msra.mxu3 %v482_v38  ;;  %442 = vmatpush.bf16.msra.mxu2 %v424_v39 }
  0xaa   : > { %352 = vmatpush.bf16.msra.mxu0 %v330_v36 }
  0xad   : > { %498 = vmatpush.bf16.msra.mxu3 %v480_v31 }
  0xae   : > { %353 = vmatpush.bf16.msra.mxu0 %v328_v40 }
  0xb0   : > { %v478_v42 = vpop.permute.xlu1 %477  ;;  %v422_v43 = vpop.permute.xlu0 %421 }
  0xb1   : > { %443 = vmatpush.bf16.msra.mxu2 %v422_v43  ;;  %499 = vmatpush.bf16.msra.mxu3 %v478_v42 }
  0xb2   : > { %1664 = vmatmul.msk.bf16.vlgmr.msra.gmra.mxu0 %vm339_vm6, %v1921_v41 }
  0xb8   : > { %v476_v44 = vpop.permute.xlu1 %475  ;;  %v420_v45 = vpop.permute.xlu0 %419 }
  0xb9   : > { %444 = vmatpush.bf16.msra.mxu2 %v420_v45  ;;  %500 = vmatpush.bf16.msra.mxu3 %v476_v44 }
  0xbc   : > { %1688 = vmatmul.msk.bf16.vlgmr.msra.gmra.mxu2 %vm339_vm6, %v1923_v46  ;;  %1702 = vmatmul.msk.bf16.vlgmr.msra.gmra.mxu3 %vm339_vm6, %v1925_v47  ;;  %v394_v52 = vpop.f32.mrf.mxu1 }
  0xc2   : > { %1665 = vmatmul.msk.bf16.gmra.mxu0 %vm339_vm6, %v1922_v48 }
  0xc4   : > { %v396_v55 = vpop.f32.mrf.mxu1 }
  0xcc   : > { %1689 = vmatmul.msk.bf16.gmra.mxu2 %vm339_vm6, %v1924_v49  ;;  %1703 = vmatmul.msk.bf16.gmra.mxu3 %vm339_vm6, %v1926_v50  ;;  %v399_v4 = vpop.f32.mrf.mxu1 }
  0xd4   : > { %v401_v18 = vpop.f32.mrf.mxu1 }
 0x12f   : > { %v355_v51 = vpop.f32.mrf.mxu0 }
 0x130   : > { %v395_v53 = vadd.f32 %v394_v52, %v355_v51 }
 0x137   : > { %v357_v54 = vpop.f32.mrf.mxu0 }
 0x138   : > { %v397_v62 = vadd.f32 %v396_v55, %v357_v54 }
 0x13f   : > { %v446_v56 = vpop.f32.mrf.mxu2  ;;  %v502_v57 = vpop.f32.mrf.mxu3 }
 0x140   : > { %v456_v58 = vadd.f32 %v446_v56, %v395_v53  ;;  %v360_v3 = vpop.f32.mrf.mxu0 }
 0x141   : > { %v400_v7 = vadd.f32 %v399_v4, %v360_v3 }
 0x142   : > { %v512_v59 = vadd.f32 %v502_v57, %v456_v58 }
 0x144   : > { %v549_v60 = vpack.c.bf16 %v512_v59, %v512_v59  ;;  %v516_v61 = vmul.f32 %v2151_v26, %v512_v59 }
 0x146   : > { %554 = vst.msk [vmem:[%s2144_s8] sm:$0xf] %vm553_vm7, %v549_v60  ;;  %v521_v63 = vsel %vm520_vm8, %v516_v61, 0.0  ;;  %v533_v6 = vmul.f32 %v516_v61, %v512_v59 }
 0x147   : > { %v448_v0 = vpop.f32.mrf.mxu2  ;;  %v504_v1 = vpop.f32.mrf.mxu3  ;;  %522 = vadd.xlane.f32.xlu0 %v521_v63 }
 0x148   : > { %v457_v2 = vadd.f32 %v448_v0, %v397_v62  ;;  %v537_v11 = vsel %vm520_vm8, %v533_v6, 0.0  ;;  %v362_v17 = vpop.f32.mrf.mxu0 }
 0x149   : > { %v402_v21 = vadd.f32 %v401_v18, %v362_v17 }
 0x14a   : > { %v513_v5 = vadd.f32 %v504_v1, %v457_v2 }
 0x14c   : > { %v550_v8 = vpack.c.bf16 %v513_v5, %v513_v5  ;;  %v517_v9 = vmul.f32 %v2151_v26, %v513_v5 }
 0x14e   : > { %555 = vst.msk [vmem:[%s2144_s8 + $0x4] sm:$0xf] %vm553_vm7, %v550_v8  ;;  %v524_v10 = vsel %vm520_vm8, %v517_v9, 0.0  ;;  %v534_v16 = vmul.f32 %v517_v9, %v513_v5 }
 0x14f   : > { %v451_v12 = vpop.f32.mrf.mxu2  ;;  %v507_v13 = vpop.f32.mrf.mxu3  ;;  %525 = vadd.xlane.f32.xlu1 %v524_v10  ;;  %538 = vadd.xlane.f32.xlu0 %v537_v11 }
 0x150   : > { %v458_v14 = vadd.f32 %v451_v12, %v400_v7  ;;  %v540_v23 = vsel %vm520_vm8, %v534_v16, 0.0 }
 0x152   : > { %v514_v15 = vadd.f32 %v507_v13, %v458_v14 }
 0x154   : > { %v551_v19 = vpack.c.bf16 %v514_v15, %v514_v15  ;;  %v518_v20 = vmul.f32 %v2151_v26, %v514_v15 }
 0x156   : > { %556 = vst.msk [vmem:[%s2144_s8 + $0x8] sm:$0xf] %vm553_vm7, %v551_v19  ;;  %v527_v22 = vsel %vm520_vm8, %v518_v20, 0.0  ;;  %v535_v34 = vmul.f32 %v518_v20, %v514_v15 }
 0x157   : > { %v453_v24 = vpop.f32.mrf.mxu2  ;;  %528 = vadd.xlane.f32.xlu2 %v527_v22  ;;  %541 = vadd.xlane.f32.xlu1 %v540_v23  ;;  %v509_v27 = vpop.f32.mrf.mxu3 }
 0x158   : > { %v459_v25 = vadd.f32 %v453_v24, %v402_v21  ;;  %v543_v35 = vsel %vm520_vm8, %v535_v34, 0.0 }
 0x15a   : > { %v515_v28 = vadd.f32 %v509_v27, %v459_v25 }
 0x15c   : > { %v552_v29 = vpack.c.bf16 %v515_v28, %v515_v28  ;;  %v519_v30 = vmul.f32 %v2151_v26, %v515_v28 }
 0x15e   : > { %557 = vst.msk [vmem:[%s2144_s8 + $0xc] sm:$0xf] %vm553_vm7, %v552_v29  ;;  %v530_v31 = vsel %vm520_vm8, %v519_v30, 0.0  ;;  %v536_v32 = vmul.f32 %v519_v30, %v515_v28 }
 0x15f   : > { %531 = vadd.xlane.f32.xlu2 %v530_v31 }
 0x160   : > { %v546_v33 = vsel %vm520_vm8, %v536_v32, 0.0 }
 0x161   : > { %547 = vadd.xlane.f32.xlu0 %v546_v33 }
 0x167   : > { %544 = vadd.xlane.f32.xlu2 %v543_v35 }
 0x1ba   : > { %v523_v36 = vpop.xlane.xlu0 %522 }
 0x1c2   : > { %v526_v37 = vpop.xlane.xlu1 %525  ;;  %v539_v38 = vpop.xlane.xlu0 %538 }
 0x1c3   : > { %v559_v39 = vsel %vm558_vm9, %v523_v36, %v539_v38 }
 0x1c4   : > { %564 = vst.msk [vmem:[%s2149_s11] sm:$0xff] %vm563_vm10, %v559_v39 }
 0x1ca   : > { %v529_v40 = vpop.xlane.xlu2 %528  ;;  %v542_v41 = vpop.xlane.xlu1 %541 }
 0x1cb   : > { %v560_v42 = vsel %vm558_vm9, %v526_v37, %v542_v41 }
 0x1cc   : > { %565 = vst.msk [vmem:[%s2149_s11 + $0x8] sm:$0xff] %vm563_vm10, %v560_v42 }
 0x1d2   : > { %v532_v43 = vpop.xlane.xlu2 %531 }
 0x1d4   : > { %v548_v44 = vpop.xlane.xlu0 %547 }
 0x1d5   : > { %v562_v45 = vsel %vm558_vm9, %v532_v43, %v548_v44 }
 0x1d6   : > { %567 = vst.msk [vmem:[%s2149_s11 + $0x18] sm:$0xff] %vm563_vm10, %v562_v45 }
 0x1da   : > { %v545_v46 = vpop.xlane.xlu2 %544 }
 0x1db   : > { %v561_v47 = vsel %vm558_vm9, %v529_v40, %v545_v46 }
 0x1dc   : > { %566 = vst.msk [vmem:[%s2149_s11 + $0x10] sm:$0xff] %vm563_vm10, %v561_v47 }
 0x1dd PF: > { %p1704_p8 = scmp.ne.s32.totalorder %s2042_s12, 1 }
 0x1de   : > { %s2065_s21 = smov (!%p1704_p8), 126   ;;  %s2066_s22 = smov (!%p1704_p8), 121  }
 0x1df   : > { %571 = sbr.rel (%p1704_p8) target bundleno = 928 (0x3a0), region = 36  ;;  %s2067_s23 = smov (!%p1704_p8), 127  }
 0x1e0   : > { %s2068_s25 = smov (!%p1704_p8), 120  }
 0x1e4   : > { %v1930_v48 = vld [vmem:[%s2134_s24 + $0x18] sm:$0xff]  ;;  %v1929_v49 = vld [vmem:[%s2134_s24 + $0x10] sm:$0xff]  ;;  %v1928_v50 = vld [vmem:[%s2134_s24 + $0x8] sm:$0xff]  ;;  %vm631_vm11 = vcmask 523264   ;;  %vm853_vm12 = vcmask 191488   ;;  %vm820_vm13 = vcmask 195584  }
 0x1e5   : > { %625 = vrot.lane.b32.xlu1 %v1930_v48, %s2065_s21  ;;  %725 = vrot.lane.b32.xlu0 %v1930_v48, %s2066_s22  ;;  %v1927_v51 = vld [vmem:[%s2134_s24] sm:$0xff]  ;;  %v1933_v1 = vld [vmem:[%s2139_s28 + $0x10] sm:$0xff]  ;;  %vm858_vm14 = vcmask 7168   ;;  %vm863_vm15 = vcmask 15360  }
 0x1e6   : > { %723 = vrot.lane.b32.xlu2 %v1929_v49, %s2066_s22  ;;  %v1935_v4 = vld [vmem:[%s2139_s28 + $0x20] sm:$0xff]  ;;  %v1937_v5 = vld [vmem:[%s2139_s28 + $0x30] sm:$0xff]  ;;  %v1934_v8 = vld [vmem:[%s2139_s28 + $0x18] sm:$0xff] }
 0x1e7   : > { %v1931_v7 = vld [vmem:[%s2139_s28] sm:$0xff]  ;;  %v1936_v9 = vld [vmem:[%s2139_s28 + $0x28] sm:$0xff]  ;;  %v1938_v10 = vld [vmem:[%s2139_s28 + $0x38] sm:$0xff] }
 0x1e8   : > { %v1932_v11 = vld [vmem:[%s2139_s28 + $0x8] sm:$0xff] }
 0x1ed   : > { %673 = vrot.lane.b32.xlu1 %v1930_v48, %s2067_s23  ;;  %781 = vrot.lane.b32.xlu0 %v1930_v48, %s2068_s25 }
 0x1ee   : > { %779 = vrot.lane.b32.xlu2 %v1929_v49, %s2068_s25 }
 0x1f5   : > { %671 = vrot.lane.b32.xlu1 %v1929_v49, %s2067_s23  ;;  %623 = vrot.lane.b32.xlu0 %v1929_v49, %s2065_s21 }
 0x1f6   : > { %721 = vrot.lane.b32.xlu2 %v1928_v50, %s2066_s22 }
 0x1fd   : > { %621 = vrot.lane.b32.xlu1 %v1928_v50, %s2065_s21  ;;  %777 = vrot.lane.b32.xlu0 %v1928_v50, %s2068_s25 }
 0x1fe   : > { %669 = vrot.lane.b32.xlu2 %v1928_v50, %s2067_s23 }
 0x205   : > { %775 = vrot.lane.b32.xlu1 %v1927_v51, %s2068_s25  ;;  %719 = vrot.lane.b32.xlu0 %v1927_v51, %s2066_s22 }
 0x206   : > { %619 = vrot.lane.b32.xlu2 %v1927_v51, %s2065_s21 }
 0x20d   : > { %667 = vrot.lane.b32.xlu0 %v1927_v51, %s2067_s23 }
 0x240   : > { %v724_v52 = vpop.permute.xlu2 %723 }
 0x248   : > { %v780_v53 = vpop.permute.xlu2 %779 }
 0x250   : > { %v722_v56 = vpop.permute.xlu2 %721 }
 0x257   : > { %v626_v54 = vpop.permute.xlu1 %625  ;;  %v726_v55 = vpop.permute.xlu0 %725 }
 0x258   : > { %741 = vmatpush.bf16.msra.mxu2 %v726_v55  ;;  %642 = vmatpush.bf16.msra.mxu0 %v626_v54  ;;  %v670_v59 = vpop.permute.xlu2 %669 }
 0x25c   : > { %742 = vmatpush.bf16.msra.mxu2 %v724_v52 }
 0x25f   : > { %v674_v57 = vpop.permute.xlu1 %673  ;;  %v782_v58 = vpop.permute.xlu0 %781 }
 0x260   : > { %797 = vmatpush.bf16.msra.mxu3 %v782_v58  ;;  %689 = vmatpush.bf16.msra.mxu1 %v674_v57  ;;  %v620_v0 = vpop.permute.xlu2 %619 }
 0x261   : > { %743 = vmatpush.bf16.msra.mxu2 %v722_v56 }
 0x264   : > { %798 = vmatpush.bf16.msra.mxu3 %v780_v53 }
 0x267   : > { %v672_v60 = vpop.permute.xlu1 %671  ;;  %v624_v61 = vpop.permute.xlu0 %623 }
 0x268   : > { %643 = vmatpush.bf16.msra.mxu0 %v624_v61  ;;  %690 = vmatpush.bf16.msra.mxu1 %v672_v60 }
 0x26c   : > { %691 = vmatpush.bf16.msra.mxu1 %v670_v59 }
 0x26f   : > { %v622_v62 = vpop.permute.xlu1 %621  ;;  %v778_v63 = vpop.permute.xlu0 %777 }
 0x270   : > { %799 = vmatpush.bf16.msra.mxu3 %v778_v63  ;;  %644 = vmatpush.bf16.msra.mxu0 %v622_v62 }
 0x274   : > { %645 = vmatpush.bf16.msra.mxu0 %v620_v0 }
 0x277   : > { %v776_v2 = vpop.permute.xlu1 %775  ;;  %v720_v3 = vpop.permute.xlu0 %719  ;;  %1733 = vmatmul.msk.bf16.vlgmr.msra.gmra.mxu0 %vm631_vm11, %v1933_v1 }
 0x278   : > { %744 = vmatpush.bf16.msra.mxu2 %v720_v3  ;;  %800 = vmatpush.bf16.msra.mxu3 %v776_v2 }
 0x27b   : > { %1757 = vmatmul.msk.bf16.vlgmr.msra.gmra.mxu2 %vm631_vm11, %v1935_v4  ;;  %1771 = vmatmul.msk.bf16.vlgmr.msra.gmra.mxu3 %vm631_vm11, %v1937_v5 }
 0x27f   : > { %v668_v6 = vpop.permute.xlu0 %667 }
 0x280   : > { %692 = vmatpush.bf16.msra.mxu1 %v668_v6 }
 0x283   : > { %1743 = vmatmul.msk.bf16.vlgmr.msra.gmra.mxu1 %vm631_vm11, %v1931_v7 }
 0x287   : > { %1734 = vmatmul.msk.bf16.gmra.mxu0 %vm631_vm11, %v1934_v8 }
 0x28b   : > { %1758 = vmatmul.msk.bf16.gmra.mxu2 %vm631_vm11, %v1936_v9  ;;  %1772 = vmatmul.msk.bf16.gmra.mxu3 %vm631_vm11, %v1938_v10 }
 0x293   : > { %1744 = vmatmul.msk.bf16.gmra.mxu1 %vm631_vm11, %v1932_v11 }
 0x2f4   : > { %v647_v12 = vpop.f32.mrf.mxu0 }
 0x2fc   : > { %v649_v18 = vpop.f32.mrf.mxu0 }
 0x2fe   : > { %v746_v13 = vpop.f32.mrf.mxu2  ;;  %v802_v14 = vpop.f32.mrf.mxu3 }
 0x300   : > { %v694_v15 = vpop.f32.mrf.mxu1 }
 0x301   : > { %v695_v16 = vadd.f32 %v694_v15, %v647_v12 }
 0x303   : > { %v756_v17 = vadd.f32 %v746_v13, %v695_v16 }
 0x304   : > { %v652_v31 = vpop.f32.mrf.mxu0 }
 0x305   : > { %v812_v19 = vadd.f32 %v802_v14, %v756_v17 }
 0x306   : > { %v748_v20 = vpop.f32.mrf.mxu2  ;;  %v804_v23 = vpop.f32.mrf.mxu3 }
 0x307   : > { %v849_v21 = vpack.c.bf16 %v812_v19, %v812_v19  ;;  %v816_v22 = vmul.f32 %v2151_v26, %v812_v19 }
 0x308   : > { %v696_v24 = vpop.f32.mrf.mxu1 }
 0x309   : > { %854 = vst.msk [vmem:[%s2144_s8] sm:$0xf] %vm853_vm12, %v849_v21  ;;  %v697_v25 = vadd.f32 %v696_v24, %v649_v18  ;;  %v821_v27 = vsel %vm820_vm13, %v816_v22, 0.0  ;;  %v833_v30 = vmul.f32 %v816_v22, %v812_v19 }
 0x30a   : > { %822 = vadd.xlane.f32.xlu1 %v821_v27 }
 0x30b   : > { %v757_v28 = vadd.f32 %v748_v20, %v697_v25  ;;  %v837_v38 = vsel %vm820_vm13, %v833_v30, 0.0 }
 0x30c   : > { %v654_v44 = vpop.f32.mrf.mxu0 }
 0x30d   : > { %v813_v29 = vadd.f32 %v804_v23, %v757_v28 }
 0x30e   : > { %v751_v34 = vpop.f32.mrf.mxu2  ;;  %v807_v39 = vpop.f32.mrf.mxu3 }
 0x30f   : > { %v850_v32 = vpack.c.bf16 %v813_v29, %v813_v29  ;;  %v817_v33 = vmul.f32 %v2151_v26, %v813_v29 }
 0x310   : > { %v699_v35 = vpop.f32.mrf.mxu1 }
 0x311   : > { %855 = vst.msk [vmem:[%s2144_s8 + $0x4] sm:$0xf] %vm853_vm12, %v850_v32  ;;  %v700_v36 = vadd.f32 %v699_v35, %v652_v31  ;;  %v824_v37 = vsel %vm820_vm13, %v817_v33, 0.0  ;;  %v834_v59 = vmul.f32 %v817_v33, %v813_v29 }
 0x312   : > { %825 = vadd.xlane.f32.xlu2 %v824_v37  ;;  %838 = vadd.xlane.f32.xlu1 %v837_v38 }
 0x313   : > { %v758_v40 = vadd.f32 %v751_v34, %v700_v36  ;;  %v840_v60 = vsel %vm820_vm13, %v834_v59, 0.0 }
 0x315   : > { %v814_v41 = vadd.f32 %v807_v39, %v758_v40 }
 0x316   : > { %v753_v48 = vpop.f32.mrf.mxu2  ;;  %v809_v50 = vpop.f32.mrf.mxu3 }
 0x317   : > { %v851_v42 = vpack.c.bf16 %v814_v41, %v814_v41  ;;  %v818_v43 = vmul.f32 %v2151_v26, %v814_v41 }
 0x318   : > { %v701_v45 = vpop.f32.mrf.mxu1 }
 0x319   : > { %856 = vst.msk [vmem:[%s2144_s8 + $0x8] sm:$0xf] %vm853_vm12, %v851_v42  ;;  %v702_v46 = vadd.f32 %v701_v45, %v654_v44  ;;  %v827_v47 = vsel %vm820_vm13, %v818_v43, 0.0  ;;  %v835_v52 = vmul.f32 %v818_v43, %v814_v41 }
 0x31a   : > { %828 = vadd.xlane.f32.xlu0 %v827_v47 }
 0x31b   : > { %v759_v49 = vadd.f32 %v753_v48, %v702_v46  ;;  %v843_v55 = vsel %vm820_vm13, %v835_v52, 0.0 }
 0x31d   : > { %v815_v51 = vadd.f32 %v809_v50, %v759_v49 }
 0x31f   : > { %v852_v53 = vpack.c.bf16 %v815_v51, %v815_v51  ;;  %v819_v54 = vmul.f32 %v2151_v26, %v815_v51 }
 0x321   : > { %857 = vst.msk [vmem:[%s2144_s8 + $0xc] sm:$0xf] %vm853_vm12, %v852_v53  ;;  %v830_v56 = vsel %vm820_vm13, %v819_v54, 0.0  ;;  %v836_v57 = vmul.f32 %v819_v54, %v815_v51 }
 0x322   : > { %844 = vadd.xlane.f32.xlu0 %v843_v55  ;;  %831 = vadd.xlane.f32.xlu2 %v830_v56 }
 0x323   : > { %v846_v58 = vsel %vm820_vm13, %v836_v57, 0.0 }
 0x324   : > { %847 = vadd.xlane.f32.xlu1 %v846_v58 }
 0x32a   : > { %841 = vadd.xlane.f32.xlu2 %v840_v60 }
 0x37d   : > { %v823_v61 = vpop.xlane.xlu1 %822 }
 0x385   : > { %v839_v62 = vpop.xlane.xlu1 %838  ;;  %v826_v0 = vpop.xlane.xlu2 %825 }
 0x386   : > { %v859_v63 = vsel %vm858_vm14, %v823_v61, %v839_v62 }
 0x387   : > { %864 = vst.msk [vmem:[%s2149_s11] sm:$0xff] %vm863_vm15, %v859_v63 }
 0x38d   : > { %v829_v1 = vpop.xlane.xlu0 %828 }
 0x395   : > { %v845_v2 = vpop.xlane.xlu0 %844  ;;  %v832_v3 = vpop.xlane.xlu2 %831 }
 0x396   : > { %v861_v4 = vsel %vm858_vm14, %v829_v1, %v845_v2 }
 0x397   : > { %866 = vst.msk [vmem:[%s2149_s11 + $0x10] sm:$0xff] %vm863_vm15, %v861_v4  ;;  %v848_v5 = vpop.xlane.xlu1 %847 }
 0x398   : > { %v862_v6 = vsel %vm858_vm14, %v832_v3, %v848_v5 }
 0x399   : > { %867 = vst.msk [vmem:[%s2149_s11 + $0x18] sm:$0xff] %vm863_vm15, %v862_v6 }
 0x39d   : > { %v842_v7 = vpop.xlane.xlu2 %841 }
 0x39e   : > { %v860_v8 = vsel %vm858_vm14, %v826_v0, %v842_v7 }
 0x39f   : > { %865 = vst.msk [vmem:[%s2149_s11 + $0x8] sm:$0xff] %vm863_vm15, %v860_v8 }
 0x3a0 PF: > { %p1773_p9 = scmp.ne.s32.totalorder %s2042_s12, 2 }
 0x3a1   : > { %s2069_s26 = smov (!%p1773_p9), 121   ;;  %s2070_s27 = smov (!%p1773_p9), 116  }
 0x3a2   : > { %871 = sbr.rel (%p1773_p9) target bundleno = 1379 (0x563), region = 40  ;;  %s2071_s29 = smov (!%p1773_p9), 122  }
 0x3a3   : > { %s2072_s30 = smov (!%p1773_p9), 115  }
 0x3a7   : > { %v1942_v9 = vld [vmem:[%s2134_s24 + $0x18] sm:$0xff]  ;;  %v1941_v10 = vld [vmem:[%s2134_s24 + $0x10] sm:$0xff]  ;;  %v1940_v11 = vld [vmem:[%s2134_s24 + $0x8] sm:$0xff]  ;;  %vm931_vm0 = vcmask 523264   ;;  %vm1153_vm1 = vcmask 191488   ;;  %vm1120_vm2 = vcmask 195584  }
 0x3a8   : > { %925 = vrot.lane.b32.xlu1 %v1942_v9, %s2069_s26  ;;  %1025 = vrot.lane.b32.xlu0 %v1942_v9, %s2070_s27  ;;  %v1939_v12 = vld [vmem:[%s2134_s24] sm:$0xff]  ;;  %v1945_v27 = vld [vmem:[%s2139_s28 + $0x10] sm:$0xff]  ;;  %vm1158_vm3 = vcmask 7168   ;;  %vm1163_vm4 = vcmask 15360  }
 0x3a9   : > { %1023 = vrot.lane.b32.xlu2 %v1941_v10, %s2070_s27  ;;  %v1947_v30 = vld [vmem:[%s2139_s28 + $0x20] sm:$0xff]  ;;  %v1949_v31 = vld [vmem:[%s2139_s28 + $0x30] sm:$0xff]  ;;  %v1946_v34 = vld [vmem:[%s2139_s28 + $0x18] sm:$0xff] }
 0x3aa   : > { %v1943_v33 = vld [vmem:[%s2139_s28] sm:$0xff]  ;;  %v1948_v35 = vld [vmem:[%s2139_s28 + $0x28] sm:$0xff]  ;;  %v1950_v36 = vld [vmem:[%s2139_s28 + $0x38] sm:$0xff] }
 0x3ab   : > { %v1944_v37 = vld [vmem:[%s2139_s28 + $0x8] sm:$0xff] }
 0x3b0   : > { %973 = vrot.lane.b32.xlu1 %v1942_v9, %s2071_s29  ;;  %1081 = vrot.lane.b32.xlu0 %v1942_v9, %s2072_s30 }
 0x3b1   : > { %1079 = vrot.lane.b32.xlu2 %v1941_v10, %s2072_s30 }
 0x3b8   : > { %971 = vrot.lane.b32.xlu1 %v1941_v10, %s2071_s29  ;;  %923 = vrot.lane.b32.xlu0 %v1941_v10, %s2069_s26 }
 0x3b9   : > { %1021 = vrot.lane.b32.xlu2 %v1940_v11, %s2070_s27 }
 0x3c0   : > { %921 = vrot.lane.b32.xlu1 %v1940_v11, %s2069_s26  ;;  %1077 = vrot.lane.b32.xlu0 %v1940_v11, %s2072_s30 }
 0x3c1   : > { %969 = vrot.lane.b32.xlu2 %v1940_v11, %s2071_s29 }
 0x3c8   : > { %1075 = vrot.lane.b32.xlu1 %v1939_v12, %s2072_s30  ;;  %1019 = vrot.lane.b32.xlu0 %v1939_v12, %s2070_s27 }
 0x3c9   : > { %919 = vrot.lane.b32.xlu2 %v1939_v12, %s2069_s26 }
 0x3d0   : > { %967 = vrot.lane.b32.xlu0 %v1939_v12, %s2071_s29 }
 0x403   : > { %v1024_v13 = vpop.permute.xlu2 %1023 }
 0x40b   : > { %v1080_v14 = vpop.permute.xlu2 %1079 }
 0x413   : > { %v1022_v17 = vpop.permute.xlu2 %1021 }
 0x41a   : > { %v926_v15 = vpop.permute.xlu1 %925  ;;  %v1026_v16 = vpop.permute.xlu0 %1025 }
 0x41b   : > { %1041 = vmatpush.bf16.msra.mxu2 %v1026_v16  ;;  %942 = vmatpush.bf16.msra.mxu0 %v926_v15  ;;  %v970_v20 = vpop.permute.xlu2 %969 }
 0x41f   : > { %1042 = vmatpush.bf16.msra.mxu2 %v1024_v13 }
 0x422   : > { %v974_v18 = vpop.permute.xlu1 %973  ;;  %v1082_v19 = vpop.permute.xlu0 %1081 }
 0x423   : > { %1097 = vmatpush.bf16.msra.mxu3 %v1082_v19  ;;  %989 = vmatpush.bf16.msra.mxu1 %v974_v18  ;;  %v920_v25 = vpop.permute.xlu2 %919 }
 0x424   : > { %1043 = vmatpush.bf16.msra.mxu2 %v1022_v17 }
 0x427   : > { %1098 = vmatpush.bf16.msra.mxu3 %v1080_v14 }
 0x42a   : > { %v972_v21 = vpop.permute.xlu1 %971  ;;  %v924_v22 = vpop.permute.xlu0 %923 }
 0x42b   : > { %943 = vmatpush.bf16.msra.mxu0 %v924_v22  ;;  %990 = vmatpush.bf16.msra.mxu1 %v972_v21 }
 0x42f   : > { %991 = vmatpush.bf16.msra.mxu1 %v970_v20 }
 0x432   : > { %v922_v23 = vpop.permute.xlu1 %921  ;;  %v1078_v24 = vpop.permute.xlu0 %1077 }
 0x433   : > { %1099 = vmatpush.bf16.msra.mxu3 %v1078_v24  ;;  %944 = vmatpush.bf16.msra.mxu0 %v922_v23 }
 0x437   : > { %945 = vmatpush.bf16.msra.mxu0 %v920_v25 }
 0x43a   : > { %v1076_v28 = vpop.permute.xlu1 %1075  ;;  %v1020_v29 = vpop.permute.xlu0 %1019  ;;  %1802 = vmatmul.msk.bf16.vlgmr.msra.gmra.mxu0 %vm931_vm0, %v1945_v27 }
 0x43b   : > { %1044 = vmatpush.bf16.msra.mxu2 %v1020_v29  ;;  %1100 = vmatpush.bf16.msra.mxu3 %v1076_v28 }
 0x43e   : > { %1826 = vmatmul.msk.bf16.vlgmr.msra.gmra.mxu2 %vm931_vm0, %v1947_v30  ;;  %1840 = vmatmul.msk.bf16.vlgmr.msra.gmra.mxu3 %vm931_vm0, %v1949_v31 }
 0x442   : > { %v968_v32 = vpop.permute.xlu0 %967 }
 0x443   : > { %992 = vmatpush.bf16.msra.mxu1 %v968_v32 }
 0x446   : > { %1812 = vmatmul.msk.bf16.vlgmr.msra.gmra.mxu1 %vm931_vm0, %v1943_v33 }
 0x44a   : > { %1803 = vmatmul.msk.bf16.gmra.mxu0 %vm931_vm0, %v1946_v34 }
 0x44e   : > { %1827 = vmatmul.msk.bf16.gmra.mxu2 %vm931_vm0, %v1948_v35  ;;  %1841 = vmatmul.msk.bf16.gmra.mxu3 %vm931_vm0, %v1950_v36 }
 0x456   : > { %1813 = vmatmul.msk.bf16.gmra.mxu1 %vm931_vm0, %v1944_v37 }
 0x4b7   : > { %v947_v38 = vpop.f32.mrf.mxu0 }
 0x4bf   : > { %v949_v44 = vpop.f32.mrf.mxu0 }
 0x4c1   : > { %v1046_v39 = vpop.f32.mrf.mxu2  ;;  %v1102_v40 = vpop.f32.mrf.mxu3 }
 0x4c3   : > { %v994_v41 = vpop.f32.mrf.mxu1 }
 0x4c4   : > { %v995_v42 = vadd.f32 %v994_v41, %v947_v38 }
 0x4c6   : > { %v1056_v43 = vadd.f32 %v1046_v39, %v995_v42 }
 0x4c7   : > { %v952_v56 = vpop.f32.mrf.mxu0 }
 0x4c8   : > { %v1112_v45 = vadd.f32 %v1102_v40, %v1056_v43 }
 0x4c9   : > { %v1048_v46 = vpop.f32.mrf.mxu2  ;;  %v1104_v49 = vpop.f32.mrf.mxu3 }
 0x4ca   : > { %v1149_v47 = vpack.c.bf16 %v1112_v45, %v1112_v45  ;;  %v1116_v48 = vmul.f32 %v2151_v26, %v1112_v45 }
 0x4cb   : > { %v996_v50 = vpop.f32.mrf.mxu1 }
 0x4cc   : > { %1154 = vst.msk [vmem:[%s2144_s8] sm:$0xf] %vm1153_vm1, %v1149_v47  ;;  %v997_v51 = vadd.f32 %v996_v50, %v949_v44  ;;  %v1121_v52 = vsel %vm1120_vm2, %v1116_v48, 0.0  ;;  %v1133_v55 = vmul.f32 %v1116_v48, %v1112_v45 }
 0x4cd   : > { %1122 = vadd.xlane.f32.xlu1 %v1121_v52 }
 0x4ce   : > { %v1057_v53 = vadd.f32 %v1048_v46, %v997_v51  ;;  %v1137_v63 = vsel %vm1120_vm2, %v1133_v55, 0.0 }
 0x4cf   : > { %v954_v5 = vpop.f32.mrf.mxu0 }
 0x4d0   : > { %v1113_v54 = vadd.f32 %v1104_v49, %v1057_v53 }
 0x4d1   : > { %v1051_v59 = vpop.f32.mrf.mxu2  ;;  %v1107_v0 = vpop.f32.mrf.mxu3 }
 0x4d2   : > { %v1150_v57 = vpack.c.bf16 %v1113_v54, %v1113_v54  ;;  %v1117_v58 = vmul.f32 %v2151_v26, %v1113_v54 }
 0x4d3   : > { %v999_v60 = vpop.f32.mrf.mxu1 }
 0x4d4   : > { %1155 = vst.msk [vmem:[%s2144_s8 + $0x4] sm:$0xf] %vm1153_vm1, %v1150_v57  ;;  %v1000_v61 = vadd.f32 %v999_v60, %v952_v56  ;;  %v1124_v62 = vsel %vm1120_vm2, %v1117_v58, 0.0  ;;  %v1134_v20 = vmul.f32 %v1117_v58, %v1113_v54 }
 0x4d5   : > { %1125 = vadd.xlane.f32.xlu2 %v1124_v62  ;;  %1138 = vadd.xlane.f32.xlu1 %v1137_v63 }
 0x4d6   : > { %v1058_v1 = vadd.f32 %v1051_v59, %v1000_v61  ;;  %v1140_v21 = vsel %vm1120_vm2, %v1134_v20, 0.0 }
 0x4d8   : > { %v1114_v2 = vadd.f32 %v1107_v0, %v1058_v1 }
 0x4d9   : > { %v1053_v9 = vpop.f32.mrf.mxu2  ;;  %v1109_v11 = vpop.f32.mrf.mxu3 }
 0x4da   : > { %v1151_v3 = vpack.c.bf16 %v1114_v2, %v1114_v2  ;;  %v1118_v4 = vmul.f32 %v2151_v26, %v1114_v2 }
 0x4db   : > { %v1001_v6 = vpop.f32.mrf.mxu1 }
 0x4dc   : > { %1156 = vst.msk [vmem:[%s2144_s8 + $0x8] sm:$0xf] %vm1153_vm1, %v1151_v3  ;;  %v1002_v7 = vadd.f32 %v1001_v6, %v954_v5  ;;  %v1127_v8 = vsel %vm1120_vm2, %v1118_v4, 0.0  ;;  %v1135_v13 = vmul.f32 %v1118_v4, %v1114_v2 }
 0x4dd   : > { %1128 = vadd.xlane.f32.xlu0 %v1127_v8 }
 0x4de   : > { %v1059_v10 = vadd.f32 %v1053_v9, %v1002_v7  ;;  %v1143_v16 = vsel %vm1120_vm2, %v1135_v13, 0.0 }
 0x4e0   : > { %v1115_v12 = vadd.f32 %v1109_v11, %v1059_v10 }
 0x4e2   : > { %v1152_v14 = vpack.c.bf16 %v1115_v12, %v1115_v12  ;;  %v1119_v15 = vmul.f32 %v2151_v26, %v1115_v12 }
 0x4e4   : > { %1157 = vst.msk [vmem:[%s2144_s8 + $0xc] sm:$0xf] %vm1153_vm1, %v1152_v14  ;;  %v1130_v17 = vsel %vm1120_vm2, %v1119_v15, 0.0  ;;  %v1136_v18 = vmul.f32 %v1119_v15, %v1115_v12 }
 0x4e5   : > { %1144 = vadd.xlane.f32.xlu0 %v1143_v16  ;;  %1131 = vadd.xlane.f32.xlu2 %v1130_v17 }
 0x4e6   : > { %v1146_v19 = vsel %vm1120_vm2, %v1136_v18, 0.0 }
 0x4e7   : > { %1147 = vadd.xlane.f32.xlu1 %v1146_v19 }
 0x4ed   : > { %1141 = vadd.xlane.f32.xlu2 %v1140_v21 }
 0x540   : > { %v1123_v22 = vpop.xlane.xlu1 %1122 }
 0x548   : > { %v1139_v23 = vpop.xlane.xlu1 %1138  ;;  %v1126_v25 = vpop.xlane.xlu2 %1125 }
 0x549   : > { %v1159_v24 = vsel %vm1158_vm3, %v1123_v22, %v1139_v23 }
 0x54a   : > { %1164 = vst.msk [vmem:[%s2149_s11] sm:$0xff] %vm1163_vm4, %v1159_v24 }
 0x550   : > { %v1129_v27 = vpop.xlane.xlu0 %1128 }
 0x558   : > { %v1145_v28 = vpop.xlane.xlu0 %1144  ;;  %v1132_v29 = vpop.xlane.xlu2 %1131 }
 0x559   : > { %v1161_v30 = vsel %vm1158_vm3, %v1129_v27, %v1145_v28 }
 0x55a   : > { %1166 = vst.msk [vmem:[%s2149_s11 + $0x10] sm:$0xff] %vm1163_vm4, %v1161_v30  ;;  %v1148_v31 = vpop.xlane.xlu1 %1147 }
 0x55b   : > { %v1162_v32 = vsel %vm1158_vm3, %v1132_v29, %v1148_v31 }
 0x55c   : > { %1167 = vst.msk [vmem:[%s2149_s11 + $0x18] sm:$0xff] %vm1163_vm4, %v1162_v32 }
 0x560   : > { %v1142_v33 = vpop.xlane.xlu2 %1141 }
 0x561   : > { %v1160_v34 = vsel %vm1158_vm3, %v1126_v25, %v1142_v33 }
 0x562   : > { %1165 = vst.msk [vmem:[%s2149_s11 + $0x8] sm:$0xff] %vm1163_vm4, %v1160_v34 }
 0x563 PF: > { %p1842_p10 = scmp.ne.s32.totalorder %s2042_s12, 3 }
 0x564   : > { %s2073_s4 = smov (!%p1842_p10), 120   ;;  %s2074_s5 = smov (!%p1842_p10), 115  }
 0x565   : > { %1171 = sbr.rel (%p1842_p10) target bundleno = 1830 (0x726), region = 44  ;;  %s2075_s6 = smov (!%p1842_p10), 121  }
 0x566   : > { %s2076_s7 = smov (!%p1842_p10), 114  }
 0x56a   : > { %v1954_v35 = vld [vmem:[%s2134_s24 + $0x18] sm:$0xff]  ;;  %v1953_v36 = vld [vmem:[%s2134_s24 + $0x10] sm:$0xff]  ;;  %v1952_v37 = vld [vmem:[%s2134_s24 + $0x8] sm:$0xff]  ;;  %vm1231_vm5 = vcmask 523264   ;;  %vm1453_vm6 = vcmask 191488   ;;  %vm1420_vm7 = vcmask 195584  }
 0x56b   : > { %1225 = vrot.lane.b32.xlu1 %v1954_v35, %s2073_s4  ;;  %1325 = vrot.lane.b32.xlu0 %v1954_v35, %s2074_s5  ;;  %v1951_v38 = vld [vmem:[%s2134_s24] sm:$0xff]  ;;  %v1957_v52 = vld [vmem:[%s2139_s28 + $0x10] sm:$0xff]  ;;  %vm1458_vm8 = vcmask 7168   ;;  %vm1463_vm9 = vcmask 15360  }
 0x56c   : > { %1323 = vrot.lane.b32.xlu2 %v1953_v36, %s2074_s5  ;;  %v1959_v55 = vld [vmem:[%s2139_s28 + $0x20] sm:$0xff]  ;;  %v1961_v56 = vld [vmem:[%s2139_s28 + $0x30] sm:$0xff]  ;;  %v1958_v59 = vld [vmem:[%s2139_s28 + $0x18] sm:$0xff] }
 0x56d   : > { %v1955_v58 = vld [vmem:[%s2139_s28] sm:$0xff]  ;;  %v1960_v60 = vld [vmem:[%s2139_s28 + $0x28] sm:$0xff]  ;;  %v1962_v61 = vld [vmem:[%s2139_s28 + $0x38] sm:$0xff] }
 0x56e   : > { %v1956_v62 = vld [vmem:[%s2139_s28 + $0x8] sm:$0xff] }
 0x573   : > { %1273 = vrot.lane.b32.xlu1 %v1954_v35, %s2075_s6  ;;  %1381 = vrot.lane.b32.xlu0 %v1954_v35, %s2076_s7 }
 0x574   : > { %1379 = vrot.lane.b32.xlu2 %v1953_v36, %s2076_s7 }
 0x57b   : > { %1271 = vrot.lane.b32.xlu1 %v1953_v36, %s2075_s6  ;;  %1223 = vrot.lane.b32.xlu0 %v1953_v36, %s2073_s4 }
 0x57c   : > { %1321 = vrot.lane.b32.xlu2 %v1952_v37, %s2074_s5 }
 0x583   : > { %1221 = vrot.lane.b32.xlu1 %v1952_v37, %s2073_s4  ;;  %1377 = vrot.lane.b32.xlu0 %v1952_v37, %s2076_s7 }
 0x584   : > { %1269 = vrot.lane.b32.xlu2 %v1952_v37, %s2075_s6 }
 0x58b   : > { %1375 = vrot.lane.b32.xlu1 %v1951_v38, %s2076_s7  ;;  %1319 = vrot.lane.b32.xlu0 %v1951_v38, %s2074_s5 }
 0x58c   : > { %1219 = vrot.lane.b32.xlu2 %v1951_v38, %s2073_s4 }
 0x593   : > { %1267 = vrot.lane.b32.xlu0 %v1951_v38, %s2075_s6 }
 0x5c6   : > { %v1324_v39 = vpop.permute.xlu2 %1323 }
 0x5ce   : > { %v1380_v40 = vpop.permute.xlu2 %1379 }
 0x5d6   : > { %v1322_v43 = vpop.permute.xlu2 %1321 }
 0x5dd   : > { %v1226_v41 = vpop.permute.xlu1 %1225  ;;  %v1326_v42 = vpop.permute.xlu0 %1325 }
 0x5de   : > { %1341 = vmatpush.bf16.msra.mxu2 %v1326_v42  ;;  %1242 = vmatpush.bf16.msra.mxu0 %v1226_v41  ;;  %v1270_v46 = vpop.permute.xlu2 %1269 }
 0x5e2   : > { %1342 = vmatpush.bf16.msra.mxu2 %v1324_v39 }
 0x5e5   : > { %v1274_v44 = vpop.permute.xlu1 %1273  ;;  %v1382_v45 = vpop.permute.xlu0 %1381 }
 0x5e6   : > { %1397 = vmatpush.bf16.msra.mxu3 %v1382_v45  ;;  %1289 = vmatpush.bf16.msra.mxu1 %v1274_v44  ;;  %v1220_v51 = vpop.permute.xlu2 %1219 }
 0x5e7   : > { %1343 = vmatpush.bf16.msra.mxu2 %v1322_v43 }
 0x5ea   : > { %1398 = vmatpush.bf16.msra.mxu3 %v1380_v40 }
 0x5ed   : > { %v1272_v47 = vpop.permute.xlu1 %1271  ;;  %v1224_v48 = vpop.permute.xlu0 %1223 }
 0x5ee   : > { %1243 = vmatpush.bf16.msra.mxu0 %v1224_v48  ;;  %1290 = vmatpush.bf16.msra.mxu1 %v1272_v47 }
 0x5f2   : > { %1291 = vmatpush.bf16.msra.mxu1 %v1270_v46 }
 0x5f5   : > { %v1222_v49 = vpop.permute.xlu1 %1221  ;;  %v1378_v50 = vpop.permute.xlu0 %1377 }
 0x5f6   : > { %1399 = vmatpush.bf16.msra.mxu3 %v1378_v50  ;;  %1244 = vmatpush.bf16.msra.mxu0 %v1222_v49 }
 0x5fa   : > { %1245 = vmatpush.bf16.msra.mxu0 %v1220_v51 }
 0x5fd   : > { %v1376_v53 = vpop.permute.xlu1 %1375  ;;  %v1320_v54 = vpop.permute.xlu0 %1319  ;;  %1871 = vmatmul.msk.bf16.vlgmr.msra.gmra.mxu0 %vm1231_vm5, %v1957_v52 }
 0x5fe   : > { %1344 = vmatpush.bf16.msra.mxu2 %v1320_v54  ;;  %1400 = vmatpush.bf16.msra.mxu3 %v1376_v53 }
 0x601   : > { %1895 = vmatmul.msk.bf16.vlgmr.msra.gmra.mxu2 %vm1231_vm5, %v1959_v55  ;;  %1909 = vmatmul.msk.bf16.vlgmr.msra.gmra.mxu3 %vm1231_vm5, %v1961_v56 }
 0x605   : > { %v1268_v57 = vpop.permute.xlu0 %1267 }
 0x606   : > { %1292 = vmatpush.bf16.msra.mxu1 %v1268_v57 }
 0x609   : > { %1881 = vmatmul.msk.bf16.vlgmr.msra.gmra.mxu1 %vm1231_vm5, %v1955_v58 }
 0x60d   : > { %1872 = vmatmul.msk.bf16.gmra.mxu0 %vm1231_vm5, %v1958_v59 }
 0x611   : > { %1896 = vmatmul.msk.bf16.gmra.mxu2 %vm1231_vm5, %v1960_v60  ;;  %1910 = vmatmul.msk.bf16.gmra.mxu3 %vm1231_vm5, %v1962_v61 }
 0x619   : > { %1882 = vmatmul.msk.bf16.gmra.mxu1 %vm1231_vm5, %v1956_v62 }
 0x67a   : > { %v1247_v63 = vpop.f32.mrf.mxu0 }
 0x682   : > { %v1249_v5 = vpop.f32.mrf.mxu0 }
 0x684   : > { %v1346_v0 = vpop.f32.mrf.mxu2  ;;  %v1402_v1 = vpop.f32.mrf.mxu3 }
 0x686   : > { %v1294_v2 = vpop.f32.mrf.mxu1 }
 0x687   : > { %v1295_v3 = vadd.f32 %v1294_v2, %v1247_v63 }
 0x689   : > { %v1356_v4 = vadd.f32 %v1346_v0, %v1295_v3 }
 0x68a   : > { %v1252_v17 = vpop.f32.mrf.mxu0 }
 0x68b   : > { %v1412_v6 = vadd.f32 %v1402_v1, %v1356_v4 }
 0x68c   : > { %v1348_v7 = vpop.f32.mrf.mxu2  ;;  %v1404_v10 = vpop.f32.mrf.mxu3 }
 0x68d   : > { %v1449_v8 = vpack.c.bf16 %v1412_v6, %v1412_v6  ;;  %v1416_v9 = vmul.f32 %v2151_v26, %v1412_v6 }
 0x68e   : > { %v1296_v11 = vpop.f32.mrf.mxu1 }
 0x68f   : > { %1454 = vst.msk [vmem:[%s2144_s8] sm:$0xf] %vm1453_vm6, %v1449_v8  ;;  %v1297_v12 = vadd.f32 %v1296_v11, %v1249_v5  ;;  %v1421_v13 = vsel %vm1420_vm7, %v1416_v9, 0.0  ;;  %v1433_v16 = vmul.f32 %v1416_v9, %v1412_v6 }
 0x690   : > { %1422 = vadd.xlane.f32.xlu1 %v1421_v13 }
 0x691   : > { %v1357_v14 = vadd.f32 %v1348_v7, %v1297_v12  ;;  %v1437_v24 = vsel %vm1420_vm7, %v1433_v16, 0.0 }
 0x692   : > { %v1254_v31 = vpop.f32.mrf.mxu0 }
 0x693   : > { %v1413_v15 = vadd.f32 %v1404_v10, %v1357_v14 }
 0x694   : > { %v1351_v20 = vpop.f32.mrf.mxu2  ;;  %v1407_v25 = vpop.f32.mrf.mxu3 }
 0x695   : > { %v1450_v18 = vpack.c.bf16 %v1413_v15, %v1413_v15  ;;  %v1417_v19 = vmul.f32 %v2151_v26, %v1413_v15 }
 0x696   : > { %v1299_v21 = vpop.f32.mrf.mxu1 }
 0x697   : > { %1455 = vst.msk [vmem:[%s2144_s8 + $0x4] sm:$0xf] %vm1453_vm6, %v1450_v18  ;;  %v1300_v22 = vadd.f32 %v1299_v21, %v1252_v17  ;;  %v1424_v23 = vsel %vm1420_vm7, %v1417_v19, 0.0  ;;  %v1434_v46 = vmul.f32 %v1417_v19, %v1413_v15 }
 0x698   : > { %1425 = vadd.xlane.f32.xlu2 %v1424_v23  ;;  %1438 = vadd.xlane.f32.xlu1 %v1437_v24 }
 0x699   : > { %v1358_v27 = vadd.f32 %v1351_v20, %v1300_v22  ;;  %v1440_v47 = vsel %vm1420_vm7, %v1434_v46, 0.0 }
 0x69b   : > { %v1414_v28 = vadd.f32 %v1407_v25, %v1358_v27 }
 0x69c   : > { %v1353_v35 = vpop.f32.mrf.mxu2  ;;  %v1409_v37 = vpop.f32.mrf.mxu3 }
 0x69d   : > { %v1451_v29 = vpack.c.bf16 %v1414_v28, %v1414_v28  ;;  %v1418_v30 = vmul.f32 %v2151_v26, %v1414_v28 }
 0x69e   : > { %v1301_v32 = vpop.f32.mrf.mxu1 }
 0x69f   : > { %1456 = vst.msk [vmem:[%s2144_s8 + $0x8] sm:$0xf] %vm1453_vm6, %v1451_v29  ;;  %v1302_v33 = vadd.f32 %v1301_v32, %v1254_v31  ;;  %v1427_v34 = vsel %vm1420_vm7, %v1418_v30, 0.0  ;;  %v1435_v39 = vmul.f32 %v1418_v30, %v1414_v28 }
 0x6a0   : > { %1428 = vadd.xlane.f32.xlu0 %v1427_v34 }
 0x6a1   : > { %v1359_v36 = vadd.f32 %v1353_v35, %v1302_v33  ;;  %v1443_v42 = vsel %vm1420_vm7, %v1435_v39, 0.0 }
 0x6a3   : > { %v1415_v38 = vadd.f32 %v1409_v37, %v1359_v36 }
 0x6a5   : > { %v1452_v40 = vpack.c.bf16 %v1415_v38, %v1415_v38  ;;  %v1419_v41 = vmul.f32 %v2151_v26, %v1415_v38 }
 0x6a7   : > { %1457 = vst.msk [vmem:[%s2144_s8 + $0xc] sm:$0xf] %vm1453_vm6, %v1452_v40  ;;  %v1430_v43 = vsel %vm1420_vm7, %v1419_v41, 0.0  ;;  %v1436_v44 = vmul.f32 %v1419_v41, %v1415_v38 }
 0x6a8   : > { %1444 = vadd.xlane.f32.xlu0 %v1443_v42  ;;  %1431 = vadd.xlane.f32.xlu2 %v1430_v43 }
 0x6a9   : > { %v1446_v45 = vsel %vm1420_vm7, %v1436_v44, 0.0 }
 0x6aa   : > { %1447 = vadd.xlane.f32.xlu1 %v1446_v45 }
 0x6b0   : > { %1441 = vadd.xlane.f32.xlu2 %v1440_v47 }
 0x703   : > { %v1423_v26 = vpop.xlane.xlu1 %1422 }
 0x70b   : > { %v1439_v48 = vpop.xlane.xlu1 %1438  ;;  %v1426_v50 = vpop.xlane.xlu2 %1425 }
 0x70c   : > { %v1459_v49 = vsel %vm1458_vm8, %v1423_v26, %v1439_v48 }
 0x70d   : > { %1464 = vst.msk [vmem:[%s2149_s11] sm:$0xff] %vm1463_vm9, %v1459_v49 }
 0x713   : > { %v1429_v51 = vpop.xlane.xlu0 %1428 }
 0x71b   : > { %v1445_v52 = vpop.xlane.xlu0 %1444  ;;  %v1432_v53 = vpop.xlane.xlu2 %1431 }
 0x71c   : > { %v1461_v54 = vsel %vm1458_vm8, %v1429_v51, %v1445_v52 }
 0x71d   : > { %1466 = vst.msk [vmem:[%s2149_s11 + $0x10] sm:$0xff] %vm1463_vm9, %v1461_v54  ;;  %v1448_v55 = vpop.xlane.xlu1 %1447 }
 0x71e   : > { %v1462_v56 = vsel %vm1458_vm8, %v1432_v53, %v1448_v55 }
 0x71f   : > { %1467 = vst.msk [vmem:[%s2149_s11 + $0x18] sm:$0xff] %vm1463_vm9, %v1462_v56 }
 0x723   : > { %v1442_v57 = vpop.xlane.xlu2 %1441 }
 0x724   : > { %v1460_v58 = vsel %vm1458_vm8, %v1426_v50, %v1442_v57 }
 0x725   : > { %1465 = vst.msk [vmem:[%s2149_s11 + $0x8] sm:$0xff] %vm1463_vm9, %v1460_v58 }
 0x726 PF: > { %s14_s16 = sadd.s32 1, %s2058_s16   ;;  %s2352_s12 = smov %s2050_s14 }
 0x727   : > { %p11_p11 = scmp.ge.s32.totalorder %s14_s16, 10   ;;  %s2353_s13 = smov %s2054_s15 }
 0x728   : > { %s2354_s14 = smov %s2357_s17  ;;  %s2355_s15 = smov %s2361_s18 }
 0x729   :  { %13 = sbr.rel (!%p11_p11) target bundleno = 3 (0x3), region = 101 }

// kernel: _forward.13
= control target key start
LH: loop header
LB: loop body
LE: loop exit
PB: predicated region body
PF: predicated region fallthrough
CT: control target
= control target key end

     0   :  { %s462_s12 = smov 0   ;;  %s464_s13 = smov 0   ;;  %s529_s0 = inlined_call_operand.vmem [shape: bf16[2,4,16,80], index: 0, kind: input, shape index: {}]   ;;  %s530_s1 = inlined_call_operand.vmem [shape: f32[16,1], index: 1, kind: input, shape index: {}]   ;;  %s531_s2 = inlined_call_operand.vmem [shape: f32[16,1], index: 2, kind: input, shape index: {}]   ;;  %s532_s3 = inlined_call_operand.vmem [shape: bf16[2,4,16,80], index: 3, kind: output, shape index: {}]  }
   0x1   :  { %s466_s14 = smov 0   ;;  %s468_s15 = smov 0  }
   0x2   :  { %s470_s16 = smov 0  }
   0x3 LB: > { %s22_s17 = sadd.s32 1, %s431_s14  ;;  %s25_s18 = sadd.s32 1, %s435_s15  ;;  %s439_s16 = sphi %s470_s16, %s13_s16   ;;  %s435_s15 = sphi %s468_s15, %s536_s15   ;;  %s431_s14 = sphi %s466_s14, %s535_s14   ;;  %s427_s13 = sphi %s464_s13, %s534_s13   ;;  %s423_s12 = sphi %s462_s12, %s533_s12  }
   0x4   : > { %p23_p0 = scmp.ge.s32.totalorder %s22_s17, 4  ;;  %p345_p1 = scmp.ge.s32.totalorder %s439_s16, 1 }
   0x5   : > { %p157_p2 = scmp.lt.s32.totalorder %s439_s16, 9 }
   0x6   : > { %s538_s17 = smov (%p23_p0, %s22_s17), 0  ;;  %s540_s18 = smov (!%p23_p0, %s25_s18), %s435_s15 }
   0x7   : > { %p158_p3 = pnand %p345_p1, %p157_p2  ;;  %p27_p4 = scmp.ge.s32.totalorder %s540_s18, 2 }
   0x8   : > { %p189_p5 = scmp.lt.s32.totalorder (!%p158_p3), %s427_s13, 1  ;;  %p191_p6 = scmp.lt.s32.totalorder (!%p158_p3), %s423_s12, 3 }
   0x9   : > { %s542_s18 = smov (%p27_p4, %s540_s18), 0  ;;  %161 = sbr.rel (%p158_p3) target bundleno = 148 (0x94), region = 32 }
   0xe   : > { %v225_v0 = vld [vmem:[%s531_s2] sm:$0xff]  ;;  %v441_v2 = vmov 0   ;;  %v226_v3 = vld [vmem:[%s531_s2 + $0x8] sm:$0xff]  ;;  %s544_s13 = smov (!%p189_p5, %s427_s13), 1  ;;  %s546_s12 = smov (!%p191_p6, %s423_s12), 3  ;;  %vm243_vm0 = vcmask 650240  }
   0xf   : > { %v211_v1 = vld [vmem:[%s530_s1] sm:$0xff]  ;;  %400 = vset.pattern.permute.xlu1 %v441_v2  ;;  %399 = vset.pattern.permute.xlu0 %v441_v2  ;;  %v212_v4 = vld [vmem:[%s530_s1 + $0x8] sm:$0xff]  ;;  %s346_s27 = sshll.u32 %s546_s12, 1  ;;  %s347_s28 = sshll.u32 %s544_s13, 3 }
  0x10   : > { %229 = vperm.xlu1 %400, %v225_v0   ;;  %215 = vperm.xlu0 %399, %v211_v1   ;;  %s195_s29 = sadd.s32 %s347_s28, %s346_s27 }
  0x11   : > { %s348_s30 = sshll.u32 %s195_s29, 2 }
  0x12   : > { %s197_s6 = scalar_lea.vmem %s529_s0, %s348_s30  ;;  %s206_s9 = scalar_lea.vmem %s532_s3, %s348_s30 }
  0x13   : > { %v355_v5 = vld [vmem:[%s197_s6] sm:$0xff]  }
  0x14   : > { %v356_v6 = vunpack.c.l.bf16 %v355_v5  ;;  %v357_v12 = vunpack.c.h.bf16 %v355_v5 }
  0x18   : > { %234 = vperm.xlu1 %400, %v226_v3   ;;  %220 = vperm.xlu0 %399, %v212_v4  }
  0x82   : > { %v230_v7 = vpop.permute.xlu1 %229  ;;  %v216_v8 = vpop.permute.xlu0 %215 }
  0x83   : > { %v223_v9 = vmul.f32 %v356_v6, %v216_v8 }
  0x85   : > { %v237_v10 = vadd.f32 %v230_v7, %v223_v9 }
  0x87   : > { %v239_v11 = vmax.f32 %v237_v10, 0.0 }
  0x89   : > { %v241_v13 = vpack.c.bf16 %v239_v11, %v239_v11 }
  0x8a   : > { %v221_v14 = vpop.permute.xlu0 %220  ;;  %v235_v16 = vpop.permute.xlu1 %234 }
  0x8b   : > { %244 = vst.msk [vmem:[%s206_s9] sm:$0xf] %vm243_vm0, %v241_v13  ;;  %v224_v15 = vmul.f32 %v357_v12, %v221_v14 }
  0x8d   : > { %v238_v17 = vadd.f32 %v235_v16, %v224_v15 }
  0x8f   : > { %v240_v18 = vmax.f32 %v238_v17, 0.0 }
  0x91   : > { %v242_v19 = vpack.c.bf16 %v240_v18, %v240_v18 }
  0x93   : > { %245 = vst.msk [vmem:[%s206_s9 + $0x4] sm:$0xf] %vm243_vm0, %v242_v19 }
  0x94 PF: > { %s13_s16 = sadd.s32 1, %s439_s16   ;;  %s533_s12 = smov %s431_s14 }
  0x95   : > { %p10_p7 = scmp.ge.s32.totalorder %s13_s16, 10   ;;  %s534_s13 = smov %s435_s15 }
  0x96   : > { %s535_s14 = smov %s538_s17  ;;  %s536_s15 = smov %s542_s18 }
  0x97   :  { %12 = sbr.rel (!%p10_p7) target bundleno = 3 (0x3), region = 62 }

// kernel: _forward.12
= control target key start
LH: loop header
LB: loop body
LE: loop exit
PB: predicated region body
PF: predicated region fallthrough
CT: control target
= control target key end

     0   :  { %s1437_s12 = smov 0   ;;  %s1439_s13 = smov 0   ;;  %s1600_s0 = inlined_call_operand.vmem [shape: bf16[2,32,110], index: 0, kind: input, shape index: {}]   ;;  %s1601_s1 = inlined_call_operand.vmem [shape: bf16[4,4,16,32], index: 1, kind: input, shape index: {}]   ;;  %s1602_s2 = inlined_call_operand.vmem [shape: bf16[2,4,16,80], index: 2, kind: output, shape index: {0}]   ;;  %s1603_s3 = inlined_call_operand.vmem [shape: f32[2,4,16,2], index: 3, kind: output, shape index: {1}]  }
   0x1   :  { %s1441_s14 = smov 0   ;;  %s1443_s15 = smov 0  }
   0x2   :  { %s1445_s16 = smov 0  }
   0x3 LB: > { %s23_s17 = sadd.s32 1, %s1390_s14  ;;  %s26_s18 = sadd.s32 1, %s1394_s15  ;;  %s1398_s16 = sphi %s1445_s16, %s14_s16   ;;  %s1394_s15 = sphi %s1443_s15, %s1607_s15   ;;  %s1390_s14 = sphi %s1441_s14, %s1606_s14   ;;  %s1386_s13 = sphi %s1439_s13, %s1605_s13   ;;  %s1382_s12 = sphi %s1437_s12, %s1604_s12  }
   0x4   : > { %p24_p0 = scmp.ge.s32.totalorder %s23_s17, 4  ;;  %p1123_p1 = scmp.ge.s32.totalorder %s1398_s16, 1 }
   0x5   : > { %p166_p2 = scmp.lt.s32.totalorder %s1398_s16, 9 }
   0x6   : > { %s1609_s17 = smov (%p24_p0, %s23_s17), 0  ;;  %s1611_s18 = smov (!%p24_p0, %s26_s18), %s1394_s15 }
   0x7   : > { %p167_p3 = pnand %p1123_p1, %p166_p2  ;;  %p28_p4 = scmp.ge.s32.totalorder %s1611_s18, 2 }
   0x8   : > { %p208_p5 = scmp.lt.s32.totalorder (!%p167_p3), %s1386_s13, 1  ;;  %p213_p6 = scmp.lt.s32.totalorder (!%p167_p3), %s1382_s12, 3 }
   0x9   : > { %s1613_s18 = smov (%p28_p4, %s1611_s18), 0  ;;  %170 = sbr.rel (%p167_p3) target bundleno = 1656 (0x678), region = 28 }
   0xa   : > { %p1135_p7 = scmp.ne.s32.totalorder (!%p167_p3), %s1382_s12, 0 }
   0xe   : > { %v237_v0 = vlaneseq  ;;  %s1615_s13 = smov (!%p208_p5, %s1386_s13), 1  ;;  %v1400_v11 = vmov 0   ;;  %v1401_v25 = vmov 0.0  }
   0xf   : > { %s214_s19 = scalar_select %p213_p6, %s1382_s12, 3 }
  0x10   : > { %v238_v1 = vand.u32 127, %v237_v0  ;;  %s1277_s20 = sshll.u32 %s1615_s13, 4  ;;  %s1129_s21 = sshll.u32 %s1615_s13, 3 }
  0x11   : > { %s1474_s24 = scalar_lea.vmem %s1600_s0, %s1277_s20  ;;  %s1278_s25 = sshll.u32 %s214_s19, 5 }
  0x12   : > { %v242_v2 = vand.u32 65535, %v238_v1  ;;  %v243_v3 = vshrl.u32 %v238_v1, 16  ;;  %s1479_s28 = scalar_lea.vmem %s1601_s1, %s1278_s25  ;;  %s1128_s29 = sshll.u32 %s214_s19, 1 }
  0x13   : > { %s224_s30 = sadd.s32 %s1129_s21, %s1128_s29  ;;  %s1402_s13 = smov (!%p1135_p7), 127  }
  0x14   : > { %v245_v4 = vmul.u32 52429, %v242_v2  ;;  %v246_v5 = vmul.u32 52428, %v242_v2  ;;  %v247_v6 = vmul.u32 52429, %v243_v3  ;;  %s1130_s4 = sshll.u32 %s224_s30, 2  ;;  %s1133_s5 = sshll.u32 %s224_s30, 3  ;;  %v248_v7 = vmul.u32 52428, %v243_v3 }
  0x15   : > { %s1484_s8 = scalar_lea.vmem %s1602_s2, %s1130_s4  ;;  %s1489_s11 = scalar_lea.vmem %s1603_s3, %s1133_s5 }
  0x16   : > { %v249_v8 = vshll.u32 %v246_v5, 16  ;;  %v251_v9 = vshll.u32 %v247_v6, 16  ;;  %v250_v13 = vshrl.u32 %v246_v5, 16  ;;  %v252_v16 = vshrl.u32 %v247_v6, 16  ;;  %s1403_s19 = smov (!%p1135_p7), 118   ;;  %s1404_s20 = smov (!%p1135_p7), 117  }
  0x18   : > { %vm253_vm0 = vc.u32 %v245_v4, %v249_v8  ;;  %v255_v10 = vadd.s32 %v249_v8, %v245_v4 }
  0x19   : > { %v254_v12 = vsel %vm253_vm0, 1, %v1400_v11 }
  0x1a   : > { %v256_v14 = vadd.s32 %v254_v12, %v248_v7  ;;  %vm257_vm1 = vc.u32 %v255_v10, %v251_v9 }
  0x1b   : > { %v258_v15 = vsel %vm257_vm1, 1, %v1400_v11 }
  0x1c   : > { %v260_v17 = vadd.s32 %v258_v15, %v256_v14 }
  0x1e   : > { %v261_v18 = vadd.s32 %v260_v17, %v250_v13 }
  0x20   : > { %v262_v19 = vadd.s32 %v261_v18, %v252_v16 }
  0x22   : > { %v263_v20 = vshrl.u32 %v262_v19, 3 }
  0x24   : > { %v264_v21 = vmul.u32 10, %v263_v20 }
  0x26   : > { %v265_v22 = vsub.s32 %v238_v1, %v264_v21 }
  0x28   : > { %vm268_vm2 = vcmp.ne.s32.totalorder %v265_v22, 0  ;;  %vm269_vm3 = vcmp.lt.s32.totalorder %v265_v22, 0  ;;  %v271_v23 = vadd.s32 10, %v265_v22  ;;  %279 = sbr.rel (%p1135_p7) target bundleno = 441 (0x1b9), region = 32 }
  0x29   : > { %vm270_vm4 = vmand %vm269_vm3, %vm268_vm2 }
  0x2a   : > { %v272_v24 = vsel %vm270_vm4, %v271_v23, %v265_v22 }
  0x2b   : > { %vm273_vm5 = vcmp.lt.s32.totalorder %v272_v24, 8 }
  0x2c   : > { %v1491_v26 = vsel %vm273_vm5, 1.0, %v1401_v25 }
  0x2d   : > { %v1280_v27 = vld [vmem:[%s1474_s24 + $0x8] sm:$0xff]  ;;  %v1279_v28 = vld [vmem:[%s1474_s24] sm:$0xff]  ;;  %vm310_vm6 = vcmask 261120   ;;  %v1283_v37 = vld [vmem:[%s1479_s28 + $0x10] sm:$0xff]  ;;  %vm437_vm7 = vcmask 650240   ;;  %vm420_vm8 = vcmask 654336  }
  0x2e   : > { %306 = vrot.lane.b32.xlu1 %v1280_v27, %s1402_s13  ;;  %362 = vrot.lane.b32.xlu0 %v1280_v27, %s1403_s19  ;;  %v1281_v29 = vld [vmem:[%s1479_s28] sm:$0xff]  ;;  %v1282_v34 = vld [vmem:[%s1479_s28 + $0x8] sm:$0xff]  ;;  %vm440_vm9 = vcmask 7168   ;;  %vm443_vm10 = vcmask 15360  }
  0x2f   : > { %393 = vrot.lane.b32.xlu2 %v1279_v28, %s1404_s20  ;;  %344 = vmatpush.bf16.msra.mxu1 %v1280_v27  ;;  %v1284_v38 = vld [vmem:[%s1479_s28 + $0x18] sm:$0xff] }
  0x33   : > { %345 = vmatpush.bf16.msra.mxu1 %v1279_v28 }
  0x36   : > { %395 = vrot.lane.b32.xlu0 %v1280_v27, %s1404_s20  ;;  %360 = vrot.lane.b32.xlu1 %v1279_v28, %s1403_s19 }
  0x37   : > { %304 = vrot.lane.b32.xlu2 %v1279_v28, %s1402_s13  ;;  %1155 = vmatmul.msk.bf16.vlgmr.msra.gmra.mxu1 %vm310_vm6, %v1281_v29 }
  0x89   : > { %v394_v30 = vpop.permute.xlu2 %393 }
  0x91   : > { %v305_v33 = vpop.permute.xlu2 %304 }
  0xa0   : > { %v307_v31 = vpop.permute.xlu1 %306  ;;  %v363_v32 = vpop.permute.xlu0 %362 }
  0xa1   : > { %375 = vmatpush.bf16.msra.mxu2 %v363_v32  ;;  %320 = vmatpush.bf16.msra.mxu0 %v307_v31 }
  0xa5   : > { %321 = vmatpush.bf16.msra.mxu0 %v305_v33 }
  0xa8   : > { %v396_v35 = vpop.permute.xlu0 %395  ;;  %v361_v36 = vpop.permute.xlu1 %360  ;;  %1150 = vmatmul.msk.bf16.vlgmr.msra.gmra.mxu0 %vm310_vm6, %v1282_v34 }
  0xa9   : > { %376 = vmatpush.bf16.msra.mxu2 %v361_v36  ;;  %408 = vmatpush.bf16.msra.mxu3 %v396_v35 }
  0xac   : > { %1162 = vmatmul.msk.bf16.vlgmr.msra.gmra.mxu2 %vm310_vm6, %v1283_v37 }
  0xad   : > { %409 = vmatpush.bf16.msra.mxu3 %v394_v30 }
  0xb0   : > { %1169 = vmatmul.msk.bf16.vlgmr.msra.gmra.mxu3 %vm310_vm6, %v1284_v38 }
  0xb4   : > { %v347_v40 = vpop.f32.mrf.mxu1 }
  0xbc   : > { %v349_v47 = vpop.f32.mrf.mxu1 }
 0x125   : > { %v323_v39 = vpop.f32.mrf.mxu0 }
 0x126   : > { %v348_v41 = vadd.f32 %v347_v40, %v323_v39 }
 0x12d   : > { %v325_v46 = vpop.f32.mrf.mxu0 }
 0x12e   : > { %v350_v51 = vadd.f32 %v349_v47, %v325_v46 }
 0x12f   : > { %v378_v42 = vpop.f32.mrf.mxu2 }
 0x130   : > { %v383_v43 = vadd.f32 %v378_v42, %v348_v41 }
 0x133   : > { %v411_v44 = vpop.f32.mrf.mxu3 }
 0x134   : > { %v416_v45 = vadd.f32 %v411_v44, %v383_v43 }
 0x136   : > { %v435_v48 = vpack.c.bf16 %v416_v45, %v416_v45  ;;  %v418_v49 = vmul.f32 %v1491_v26, %v416_v45 }
 0x137   : > { %v380_v50 = vpop.f32.mrf.mxu2 }
 0x138   : > { %438 = vst.msk [vmem:[%s1484_s8] sm:$0xf] %vm437_vm7, %v435_v48  ;;  %v421_v52 = vsel %vm420_vm8, %v418_v49, 0.0  ;;  %v427_v53 = vmul.f32 %v418_v49, %v416_v45  ;;  %v384_v54 = vadd.f32 %v380_v50, %v350_v51 }
 0x139   : > { %422 = vadd.xlane.f32.xlu0 %v421_v52 }
 0x13a   : > { %v429_v55 = vsel %vm420_vm8, %v427_v53, 0.0 }
 0x13b   : > { %v413_v56 = vpop.f32.mrf.mxu3  ;;  %430 = vadd.xlane.f32.xlu2 %v429_v55 }
 0x13c   : > { %v417_v57 = vadd.f32 %v413_v56, %v384_v54 }
 0x13e   : > { %v436_v58 = vpack.c.bf16 %v417_v57, %v417_v57  ;;  %v419_v59 = vmul.f32 %v1491_v26, %v417_v57 }
 0x140   : > { %439 = vst.msk [vmem:[%s1484_s8 + $0x4] sm:$0xf] %vm437_vm7, %v436_v58  ;;  %v424_v60 = vsel %vm420_vm8, %v419_v59, 0.0  ;;  %v428_v61 = vmul.f32 %v419_v59, %v417_v57 }
 0x141   : > { %425 = vadd.xlane.f32.xlu1 %v424_v60 }
 0x142   : > { %v432_v62 = vsel %vm420_vm8, %v428_v61, 0.0 }
 0x143   : > { %433 = vadd.xlane.f32.xlu2 %v432_v62 }
 0x1ac   : > { %v423_v63 = vpop.xlane.xlu0 %422 }
 0x1ae   : > { %v431_v0 = vpop.xlane.xlu2 %430 }
 0x1af   : > { %v441_v1 = vsel %vm440_vm9, %v423_v63, %v431_v0 }
 0x1b0   : > { %444 = vst.msk [vmem:[%s1489_s11] sm:$0xff] %vm443_vm10, %v441_v1 }
 0x1b4   : > { %v426_v2 = vpop.xlane.xlu1 %425 }
 0x1b6   : > { %v434_v3 = vpop.xlane.xlu2 %433 }
 0x1b7   : > { %v442_v4 = vsel %vm440_vm9, %v426_v2, %v434_v3 }
 0x1b8   : > { %445 = vst.msk [vmem:[%s1489_s11 + $0x8] sm:$0xff] %vm443_vm10, %v442_v4 }
 0x1b9 PF: > { %p1170_p8 = scmp.ne.s32.totalorder %s1382_s12, 1 }
 0x1ba   : > { %s1405_s21 = smov (!%p1170_p8), 126   ;;  %s1406_s22 = smov (!%p1170_p8), 117  }
 0x1bb   : > { %449 = sbr.rel (%p1170_p8) target bundleno = 846 (0x34e), region = 36  ;;  %s1407_s23 = smov (!%p1170_p8), 127  }
 0x1bc   : > { %s1408_s25 = smov (!%p1170_p8), 116  }
 0x1c0   : > { %v1286_v5 = vld [vmem:[%s1474_s24 + $0x8] sm:$0xff]  ;;  %v1285_v6 = vld [vmem:[%s1474_s24] sm:$0xff]  ;;  %v1289_v10 = vld [vmem:[%s1479_s28 + $0x10] sm:$0xff]  ;;  %vm480_vm11 = vcmask 261120   ;;  %vm611_vm12 = vcmask 650240   ;;  %vm594_vm13 = vcmask 654336  }
 0x1c1   : > { %476 = vrot.lane.b32.xlu1 %v1286_v5, %s1405_s21  ;;  %536 = vrot.lane.b32.xlu0 %v1286_v5, %s1406_s22  ;;  %v1290_v14 = vld [vmem:[%s1479_s28 + $0x18] sm:$0xff]  ;;  %v1288_v17 = vld [vmem:[%s1479_s28 + $0x8] sm:$0xff]  ;;  %vm614_vm14 = vcmask 7168   ;;  %vm617_vm15 = vcmask 15360  }
 0x1c2   : > { %534 = vrot.lane.b32.xlu2 %v1285_v6, %s1406_s22  ;;  %v1287_v18 = vld [vmem:[%s1479_s28] sm:$0xff] }
 0x1c9   : > { %505 = vrot.lane.b32.xlu1 %v1286_v5, %s1407_s23  ;;  %569 = vrot.lane.b32.xlu0 %v1286_v5, %s1408_s25 }
 0x1ca   : > { %567 = vrot.lane.b32.xlu2 %v1285_v6, %s1408_s25 }
 0x1d1   : > { %503 = vrot.lane.b32.xlu1 %v1285_v6, %s1407_s23  ;;  %474 = vrot.lane.b32.xlu0 %v1285_v6, %s1405_s21 }
 0x21c   : > { %v535_v7 = vpop.permute.xlu2 %534 }
 0x224   : > { %v568_v13 = vpop.permute.xlu2 %567 }
 0x233   : > { %v477_v8 = vpop.permute.xlu1 %476  ;;  %v537_v9 = vpop.permute.xlu0 %536 }
 0x234   : > { %490 = vmatpush.bf16.msra.mxu0 %v477_v8  ;;  %549 = vmatpush.bf16.msra.mxu2 %v537_v9 }
 0x238   : > { %550 = vmatpush.bf16.msra.mxu2 %v535_v7 }
 0x23b   : > { %v506_v11 = vpop.permute.xlu1 %505  ;;  %v570_v12 = vpop.permute.xlu0 %569  ;;  %1197 = vmatmul.msk.bf16.vlgmr.msra.gmra.mxu2 %vm480_vm11, %v1289_v10 }
 0x23c   : > { %518 = vmatpush.bf16.msra.mxu1 %v506_v11  ;;  %582 = vmatpush.bf16.msra.mxu3 %v570_v12 }
 0x240   : > { %583 = vmatpush.bf16.msra.mxu3 %v568_v13 }
 0x243   : > { %v504_v15 = vpop.permute.xlu1 %503  ;;  %v475_v16 = vpop.permute.xlu0 %474  ;;  %1204 = vmatmul.msk.bf16.vlgmr.msra.gmra.mxu3 %vm480_vm11, %v1290_v14 }
 0x244   : > { %491 = vmatpush.bf16.msra.mxu0 %v475_v16  ;;  %519 = vmatpush.bf16.msra.mxu1 %v504_v15 }
 0x247   : > { %1185 = vmatmul.msk.bf16.vlgmr.msra.gmra.mxu0 %vm480_vm11, %v1288_v17  ;;  %1190 = vmatmul.msk.bf16.vlgmr.msra.gmra.mxu1 %vm480_vm11, %v1287_v18 }
 0x2be   : > { %v552_v19 = vpop.f32.mrf.mxu2 }
 0x2c4   : > { %v493_v20 = vpop.f32.mrf.mxu0  ;;  %v521_v21 = vpop.f32.mrf.mxu1 }
 0x2c5   : > { %v522_v22 = vadd.f32 %v521_v21, %v493_v20 }
 0x2c6   : > { %v585_v23 = vpop.f32.mrf.mxu3  ;;  %v554_v34 = vpop.f32.mrf.mxu2 }
 0x2c7   : > { %v557_v24 = vadd.f32 %v552_v19, %v522_v22 }
 0x2c9   : > { %v590_v25 = vadd.f32 %v585_v23, %v557_v24 }
 0x2cb   : > { %v609_v27 = vpack.c.bf16 %v590_v25, %v590_v25  ;;  %v592_v28 = vmul.f32 %v1491_v26, %v590_v25 }
 0x2cc   : > { %v495_v29 = vpop.f32.mrf.mxu0  ;;  %v523_v30 = vpop.f32.mrf.mxu1 }
 0x2cd   : > { %612 = vst.msk [vmem:[%s1484_s8] sm:$0xf] %vm611_vm12, %v609_v27  ;;  %v524_v31 = vadd.f32 %v523_v30, %v495_v29  ;;  %v595_v32 = vsel %vm594_vm13, %v592_v28, 0.0  ;;  %v601_v33 = vmul.f32 %v592_v28, %v590_v25 }
 0x2ce   : > { %596 = vadd.xlane.f32.xlu2 %v595_v32  ;;  %v587_v37 = vpop.f32.mrf.mxu3 }
 0x2cf   : > { %v558_v35 = vadd.f32 %v554_v34, %v524_v31  ;;  %v603_v36 = vsel %vm594_vm13, %v601_v33, 0.0 }
 0x2d0   : > { %604 = vadd.xlane.f32.xlu1 %v603_v36 }
 0x2d1   : > { %v591_v38 = vadd.f32 %v587_v37, %v558_v35 }
 0x2d3   : > { %v610_v39 = vpack.c.bf16 %v591_v38, %v591_v38  ;;  %v593_v40 = vmul.f32 %v1491_v26, %v591_v38 }
 0x2d5   : > { %613 = vst.msk [vmem:[%s1484_s8 + $0x4] sm:$0xf] %vm611_vm12, %v610_v39  ;;  %v598_v41 = vsel %vm594_vm13, %v593_v40, 0.0  ;;  %v602_v42 = vmul.f32 %v593_v40, %v591_v38 }
 0x2d6   : > { %599 = vadd.xlane.f32.xlu0 %v598_v41 }
 0x2d7   : > { %v606_v43 = vsel %vm594_vm13, %v602_v42, 0.0 }
 0x2d8   : > { %607 = vadd.xlane.f32.xlu2 %v606_v43 }
 0x341   : > { %v597_v44 = vpop.xlane.xlu2 %596 }
 0x343   : > { %v605_v45 = vpop.xlane.xlu1 %604 }
 0x344   : > { %v615_v46 = vsel %vm614_vm14, %v597_v44, %v605_v45 }
 0x345   : > { %618 = vst.msk [vmem:[%s1489_s11] sm:$0xff] %vm617_vm15, %v615_v46 }
 0x349   : > { %v600_v47 = vpop.xlane.xlu0 %599 }
 0x34b   : > { %v608_v48 = vpop.xlane.xlu2 %607 }
 0x34c   : > { %v616_v49 = vsel %vm614_vm14, %v600_v47, %v608_v48 }
 0x34d   : > { %619 = vst.msk [vmem:[%s1489_s11 + $0x8] sm:$0xff] %vm617_vm15, %v616_v49 }
 0x34e PF: > { %p1205_p9 = scmp.ne.s32.totalorder %s1382_s12, 2 }
 0x34f   : > { %s1409_s26 = smov (!%p1205_p9), 117   ;;  %s1410_s27 = smov (!%p1205_p9), 108  }
 0x350   : > { %623 = sbr.rel (%p1205_p9) target bundleno = 1251 (0x4e3), region = 40  ;;  %s1411_s29 = smov (!%p1205_p9), 118  }
 0x351   : > { %s1412_s30 = smov (!%p1205_p9), 107  }
 0x355   : > { %v1292_v50 = vld [vmem:[%s1474_s24 + $0x8] sm:$0xff]  ;;  %v1291_v51 = vld [vmem:[%s1474_s24] sm:$0xff]  ;;  %v1295_v55 = vld [vmem:[%s1479_s28 + $0x10] sm:$0xff]  ;;  %vm654_vm0 = vcmask 261120   ;;  %vm785_vm1 = vcmask 650240   ;;  %vm768_vm2 = vcmask 654336  }
 0x356   : > { %650 = vrot.lane.b32.xlu1 %v1292_v50, %s1409_s26  ;;  %710 = vrot.lane.b32.xlu0 %v1292_v50, %s1410_s27  ;;  %v1296_v59 = vld [vmem:[%s1479_s28 + $0x18] sm:$0xff]  ;;  %v1294_v62 = vld [vmem:[%s1479_s28 + $0x8] sm:$0xff]  ;;  %vm788_vm3 = vcmask 7168   ;;  %vm791_vm4 = vcmask 15360  }
 0x357   : > { %708 = vrot.lane.b32.xlu2 %v1291_v51, %s1410_s27  ;;  %v1293_v63 = vld [vmem:[%s1479_s28] sm:$0xff] }
 0x35e   : > { %679 = vrot.lane.b32.xlu1 %v1292_v50, %s1411_s29  ;;  %743 = vrot.lane.b32.xlu0 %v1292_v50, %s1412_s30 }
 0x35f   : > { %741 = vrot.lane.b32.xlu2 %v1291_v51, %s1412_s30 }
 0x366   : > { %677 = vrot.lane.b32.xlu1 %v1291_v51, %s1411_s29  ;;  %648 = vrot.lane.b32.xlu0 %v1291_v51, %s1409_s26 }
 0x3b1   : > { %v709_v52 = vpop.permute.xlu2 %708 }
 0x3b9   : > { %v742_v58 = vpop.permute.xlu2 %741 }
 0x3c8   : > { %v651_v53 = vpop.permute.xlu1 %650  ;;  %v711_v54 = vpop.permute.xlu0 %710 }
 0x3c9   : > { %664 = vmatpush.bf16.msra.mxu0 %v651_v53  ;;  %723 = vmatpush.bf16.msra.mxu2 %v711_v54 }
 0x3cd   : > { %724 = vmatpush.bf16.msra.mxu2 %v709_v52 }
 0x3d0   : > { %v680_v56 = vpop.permute.xlu1 %679  ;;  %v744_v57 = vpop.permute.xlu0 %743  ;;  %1232 = vmatmul.msk.bf16.vlgmr.msra.gmra.mxu2 %vm654_vm0, %v1295_v55 }
 0x3d1   : > { %692 = vmatpush.bf16.msra.mxu1 %v680_v56  ;;  %756 = vmatpush.bf16.msra.mxu3 %v744_v57 }
 0x3d5   : > { %757 = vmatpush.bf16.msra.mxu3 %v742_v58 }
 0x3d8   : > { %v678_v60 = vpop.permute.xlu1 %677  ;;  %v649_v61 = vpop.permute.xlu0 %648  ;;  %1239 = vmatmul.msk.bf16.vlgmr.msra.gmra.mxu3 %vm654_vm0, %v1296_v59 }
 0x3d9   : > { %665 = vmatpush.bf16.msra.mxu0 %v649_v61  ;;  %693 = vmatpush.bf16.msra.mxu1 %v678_v60 }
 0x3dc   : > { %1220 = vmatmul.msk.bf16.vlgmr.msra.gmra.mxu0 %vm654_vm0, %v1294_v62  ;;  %1225 = vmatmul.msk.bf16.vlgmr.msra.gmra.mxu1 %vm654_vm0, %v1293_v63 }
 0x453   : > { %v726_v0 = vpop.f32.mrf.mxu2 }
 0x459   : > { %v667_v1 = vpop.f32.mrf.mxu0  ;;  %v695_v2 = vpop.f32.mrf.mxu1 }
 0x45a   : > { %v696_v3 = vadd.f32 %v695_v2, %v667_v1 }
 0x45b   : > { %v759_v4 = vpop.f32.mrf.mxu3  ;;  %v728_v14 = vpop.f32.mrf.mxu2 }
 0x45c   : > { %v731_v5 = vadd.f32 %v726_v0, %v696_v3 }
 0x45e   : > { %v764_v6 = vadd.f32 %v759_v4, %v731_v5 }
 0x460   : > { %v783_v7 = vpack.c.bf16 %v764_v6, %v764_v6  ;;  %v766_v8 = vmul.f32 %v1491_v26, %v764_v6 }
 0x461   : > { %v669_v9 = vpop.f32.mrf.mxu0  ;;  %v697_v10 = vpop.f32.mrf.mxu1 }
 0x462   : > { %786 = vst.msk [vmem:[%s1484_s8] sm:$0xf] %vm785_vm1, %v783_v7  ;;  %v698_v11 = vadd.f32 %v697_v10, %v669_v9  ;;  %v769_v12 = vsel %vm768_vm2, %v766_v8, 0.0  ;;  %v775_v13 = vmul.f32 %v766_v8, %v764_v6 }
 0x463   : > { %770 = vadd.xlane.f32.xlu2 %v769_v12  ;;  %v761_v17 = vpop.f32.mrf.mxu3 }
 0x464   : > { %v732_v15 = vadd.f32 %v728_v14, %v698_v11  ;;  %v777_v16 = vsel %vm768_vm2, %v775_v13, 0.0 }
 0x465   : > { %778 = vadd.xlane.f32.xlu1 %v777_v16 }
 0x466   : > { %v765_v18 = vadd.f32 %v761_v17, %v732_v15 }
 0x468   : > { %v784_v19 = vpack.c.bf16 %v765_v18, %v765_v18  ;;  %v767_v20 = vmul.f32 %v1491_v26, %v765_v18 }
 0x46a   : > { %787 = vst.msk [vmem:[%s1484_s8 + $0x4] sm:$0xf] %vm785_vm1, %v784_v19  ;;  %v772_v21 = vsel %vm768_vm2, %v767_v20, 0.0  ;;  %v776_v22 = vmul.f32 %v767_v20, %v765_v18 }
 0x46b   : > { %773 = vadd.xlane.f32.xlu0 %v772_v21 }
 0x46c   : > { %v780_v23 = vsel %vm768_vm2, %v776_v22, 0.0 }
 0x46d   : > { %781 = vadd.xlane.f32.xlu2 %v780_v23 }
 0x4d6   : > { %v771_v24 = vpop.xlane.xlu2 %770 }
 0x4d8   : > { %v779_v25 = vpop.xlane.xlu1 %778 }
 0x4d9   : > { %v789_v27 = vsel %vm788_vm3, %v771_v24, %v779_v25 }
 0x4da   : > { %792 = vst.msk [vmem:[%s1489_s11] sm:$0xff] %vm791_vm4, %v789_v27 }
 0x4de   : > { %v774_v28 = vpop.xlane.xlu0 %773 }
 0x4e0   : > { %v782_v29 = vpop.xlane.xlu2 %781 }
 0x4e1   : > { %v790_v30 = vsel %vm788_vm3, %v774_v28, %v782_v29 }
 0x4e2   : > { %793 = vst.msk [vmem:[%s1489_s11 + $0x8] sm:$0xff] %vm791_vm4, %v790_v30 }
 0x4e3 PF: > { %p1240_p10 = scmp.ne.s32.totalorder %s1382_s12, 3 }
 0x4e4   : > { %s1413_s4 = smov (!%p1240_p10), 116   ;;  %s1414_s5 = smov (!%p1240_p10), 107  }
 0x4e5   : > { %797 = sbr.rel (%p1240_p10) target bundleno = 1656 (0x678), region = 44  ;;  %s1415_s6 = smov (!%p1240_p10), 117  }
 0x4e6   : > { %s1416_s7 = smov (!%p1240_p10), 106  }
 0x4ea   : > { %v1298_v31 = vld [vmem:[%s1474_s24 + $0x8] sm:$0xff]  ;;  %v1297_v32 = vld [vmem:[%s1474_s24] sm:$0xff]  ;;  %v1301_v36 = vld [vmem:[%s1479_s28 + $0x10] sm:$0xff]  ;;  %vm828_vm5 = vcmask 261120   ;;  %vm959_vm6 = vcmask 650240   ;;  %vm942_vm7 = vcmask 654336  }
 0x4eb   : > { %824 = vrot.lane.b32.xlu1 %v1298_v31, %s1413_s4  ;;  %884 = vrot.lane.b32.xlu0 %v1298_v31, %s1414_s5  ;;  %v1302_v40 = vld [vmem:[%s1479_s28 + $0x18] sm:$0xff]  ;;  %v1300_v43 = vld [vmem:[%s1479_s28 + $0x8] sm:$0xff]  ;;  %vm962_vm8 = vcmask 7168   ;;  %vm965_vm9 = vcmask 15360  }
 0x4ec   : > { %882 = vrot.lane.b32.xlu2 %v1297_v32, %s1414_s5  ;;  %v1299_v44 = vld [vmem:[%s1479_s28] sm:$0xff] }
 0x4f3   : > { %853 = vrot.lane.b32.xlu1 %v1298_v31, %s1415_s6  ;;  %917 = vrot.lane.b32.xlu0 %v1298_v31, %s1416_s7 }
 0x4f4   : > { %915 = vrot.lane.b32.xlu2 %v1297_v32, %s1416_s7 }
 0x4fb   : > { %851 = vrot.lane.b32.xlu1 %v1297_v32, %s1415_s6  ;;  %822 = vrot.lane.b32.xlu0 %v1297_v32, %s1413_s4 }
 0x546   : > { %v883_v33 = vpop.permute.xlu2 %882 }
 0x54e   : > { %v916_v39 = vpop.permute.xlu2 %915 }
 0x55d   : > { %v825_v34 = vpop.permute.xlu1 %824  ;;  %v885_v35 = vpop.permute.xlu0 %884 }
 0x55e   : > { %838 = vmatpush.bf16.msra.mxu0 %v825_v34  ;;  %897 = vmatpush.bf16.msra.mxu2 %v885_v35 }
 0x562   : > { %898 = vmatpush.bf16.msra.mxu2 %v883_v33 }
 0x565   : > { %v854_v37 = vpop.permute.xlu1 %853  ;;  %v918_v38 = vpop.permute.xlu0 %917  ;;  %1267 = vmatmul.msk.bf16.vlgmr.msra.gmra.mxu2 %vm828_vm5, %v1301_v36 }
 0x566   : > { %866 = vmatpush.bf16.msra.mxu1 %v854_v37  ;;  %930 = vmatpush.bf16.msra.mxu3 %v918_v38 }
 0x56a   : > { %931 = vmatpush.bf16.msra.mxu3 %v916_v39 }
 0x56d   : > { %v852_v41 = vpop.permute.xlu1 %851  ;;  %v823_v42 = vpop.permute.xlu0 %822  ;;  %1274 = vmatmul.msk.bf16.vlgmr.msra.gmra.mxu3 %vm828_vm5, %v1302_v40 }
 0x56e   : > { %839 = vmatpush.bf16.msra.mxu0 %v823_v42  ;;  %867 = vmatpush.bf16.msra.mxu1 %v852_v41 }
 0x571   : > { %1255 = vmatmul.msk.bf16.vlgmr.msra.gmra.mxu0 %vm828_vm5, %v1300_v43  ;;  %1260 = vmatmul.msk.bf16.vlgmr.msra.gmra.mxu1 %vm828_vm5, %v1299_v44 }
 0x5e8   : > { %v900_v45 = vpop.f32.mrf.mxu2 }
 0x5ee   : > { %v841_v46 = vpop.f32.mrf.mxu0  ;;  %v869_v47 = vpop.f32.mrf.mxu1 }
 0x5ef   : > { %v870_v48 = vadd.f32 %v869_v47, %v841_v46 }
 0x5f0   : > { %v933_v49 = vpop.f32.mrf.mxu3  ;;  %v902_v59 = vpop.f32.mrf.mxu2 }
 0x5f1   : > { %v905_v50 = vadd.f32 %v900_v45, %v870_v48 }
 0x5f3   : > { %v938_v51 = vadd.f32 %v933_v49, %v905_v50 }
 0x5f5   : > { %v957_v52 = vpack.c.bf16 %v938_v51, %v938_v51  ;;  %v940_v53 = vmul.f32 %v1491_v26, %v938_v51 }
 0x5f6   : > { %v843_v54 = vpop.f32.mrf.mxu0  ;;  %v871_v55 = vpop.f32.mrf.mxu1 }
 0x5f7   : > { %960 = vst.msk [vmem:[%s1484_s8] sm:$0xf] %vm959_vm6, %v957_v52  ;;  %v872_v56 = vadd.f32 %v871_v55, %v843_v54  ;;  %v943_v57 = vsel %vm942_vm7, %v940_v53, 0.0  ;;  %v949_v58 = vmul.f32 %v940_v53, %v938_v51 }
 0x5f8   : > { %944 = vadd.xlane.f32.xlu2 %v943_v57  ;;  %v935_v62 = vpop.f32.mrf.mxu3 }
 0x5f9   : > { %v906_v60 = vadd.f32 %v902_v59, %v872_v56  ;;  %v951_v61 = vsel %vm942_vm7, %v949_v58, 0.0 }
 0x5fa   : > { %952 = vadd.xlane.f32.xlu1 %v951_v61 }
 0x5fb   : > { %v939_v63 = vadd.f32 %v935_v62, %v906_v60 }
 0x5fd   : > { %v958_v0 = vpack.c.bf16 %v939_v63, %v939_v63  ;;  %v941_v1 = vmul.f32 %v1491_v26, %v939_v63 }
 0x5ff   : > { %961 = vst.msk [vmem:[%s1484_s8 + $0x4] sm:$0xf] %vm959_vm6, %v958_v0  ;;  %v946_v2 = vsel %vm942_vm7, %v941_v1, 0.0  ;;  %v950_v3 = vmul.f32 %v941_v1, %v939_v63 }
 0x600   : > { %947 = vadd.xlane.f32.xlu0 %v946_v2 }
 0x601   : > { %v954_v4 = vsel %vm942_vm7, %v950_v3, 0.0 }
 0x602   : > { %955 = vadd.xlane.f32.xlu2 %v954_v4 }
 0x66b   : > { %v945_v5 = vpop.xlane.xlu2 %944 }
 0x66d   : > { %v953_v6 = vpop.xlane.xlu1 %952 }
 0x66e   : > { %v963_v7 = vsel %vm962_vm8, %v945_v5, %v953_v6 }
 0x66f   : > { %966 = vst.msk [vmem:[%s1489_s11] sm:$0xff] %vm965_vm9, %v963_v7 }
 0x673   : > { %v948_v8 = vpop.xlane.xlu0 %947 }
 0x675   : > { %v956_v9 = vpop.xlane.xlu2 %955 }
 0x676   : > { %v964_v10 = vsel %vm962_vm8, %v948_v8, %v956_v9 }
 0x677   : > { %967 = vst.msk [vmem:[%s1489_s11 + $0x8] sm:$0xff] %vm965_vm9, %v964_v10 }
 0x678 PF: > { %s14_s16 = sadd.s32 1, %s1398_s16   ;;  %s1604_s12 = smov %s1390_s14 }
 0x679   : > { %p11_p11 = scmp.ge.s32.totalorder %s14_s16, 10   ;;  %s1605_s13 = smov %s1394_s15 }
 0x67a   : > { %s1606_s14 = smov %s1609_s17  ;;  %s1607_s15 = smov %s1613_s18 }
 0x67b   :  { %13 = sbr.rel (!%p11_p11) target bundleno = 3 (0x3), region = 101 }

// kernel: _forward.15
= control target key start
LH: loop header
LB: loop body
LE: loop exit
PB: predicated region body
PF: predicated region fallthrough
CT: control target
= control target key end

     0   :  { %s447_s12 = smov 0   ;;  %s449_s13 = smov 0   ;;  %s504_s0 = inlined_call_operand.vmem [shape: bf16[2,4,8,288], index: 0, kind: input, shape index: {}]   ;;  %s505_s1 = inlined_call_operand.vmem [shape: f32[8,1], index: 1, kind: input, shape index: {}]   ;;  %s506_s2 = inlined_call_operand.vmem [shape: f32[8,1], index: 2, kind: input, shape index: {}]   ;;  %s507_s3 = inlined_call_operand.vmem [shape: bf16[2,4,8,288], index: 3, kind: output, shape index: {}]  }
   0x1   :  { %s451_s14 = smov 0   ;;  %s453_s15 = smov 0  }
   0x2   :  { %s455_s16 = smov 0  }
   0x3 LB: > { %s22_s17 = sadd.s32 1, %s416_s14  ;;  %s25_s18 = sadd.s32 1, %s420_s15  ;;  %s424_s16 = sphi %s455_s16, %s13_s16   ;;  %s420_s15 = sphi %s453_s15, %s511_s15   ;;  %s416_s14 = sphi %s451_s14, %s510_s14   ;;  %s412_s13 = sphi %s449_s13, %s509_s13   ;;  %s408_s12 = sphi %s447_s12, %s508_s12  }
   0x4   : > { %p23_p0 = scmp.ge.s32.totalorder %s22_s17, 4  ;;  %p337_p1 = scmp.ge.s32.totalorder %s424_s16, 1 }
   0x5   : > { %p157_p2 = scmp.lt.s32.totalorder %s424_s16, 9 }
   0x6   : > { %s513_s17 = smov (%p23_p0, %s22_s17), 0  ;;  %s515_s18 = smov (!%p23_p0, %s25_s18), %s420_s15 }
   0x7   : > { %p158_p3 = pnand %p337_p1, %p157_p2  ;;  %p27_p4 = scmp.ge.s32.totalorder %s515_s18, 2 }
   0x8   : > { %p189_p5 = scmp.lt.s32.totalorder (!%p158_p3), %s412_s13, 1  ;;  %p191_p6 = scmp.lt.s32.totalorder (!%p158_p3), %s408_s12, 3 }
   0x9   : > { %s517_s18 = smov (%p27_p4, %s515_s18), 0  ;;  %161 = sbr.rel (%p158_p3) target bundleno = 147 (0x93), region = 32 }
   0xe   : > { %v212_v0 = vld [vmem:[%s505_s1] sm:$0xff]  ;;  %v426_v1 = vmov 0   ;;  %s519_s13 = smov (!%p189_p5, %s412_s13), 1  ;;  %s521_s12 = smov (!%p191_p6, %s408_s12), 3  ;;  %vm236_vm0 = vcmask 257024  }
   0xf   : > { %385 = vset.pattern.permute.xlu0 %v426_v1  ;;  %v221_v2 = vld [vmem:[%s506_s2] sm:$0xff]  ;;  %s343_s23 = smul.u32 12, %s519_s13 }
  0x10   : > { %215 = vperm.xlu0 %385, %v212_v0   ;;  %s342_s24 = smul.u32 3, %s521_s12 }
  0x12   : > { %s195_s25 = sadd.s32 %s343_s23, %s342_s24 }
  0x13   : > { %s338_s26 = sshll.u32 %s195_s25, 2 }
  0x14   : > { %s197_s29 = scalar_lea.vmem %s504_s0, %s338_s26  ;;  %s206_s5 = scalar_lea.vmem %s507_s3, %s338_s26 }
  0x15   : > { %v207_v4 = vld [vmem:[%s197_s29] sm:$0xff]  ;;  %v208_v5 = vld [vmem:[%s197_s29 + $0x8] sm:$0xf] }
  0x16   : > { %v209_v6 = vunpack.c.l.bf16 %v207_v4  ;;  %v210_v7 = vunpack.c.h.bf16 %v207_v4  ;;  %v211_v8 = vunpack.c.l.bf16 %v208_v5 }
  0x18   : > { %224 = vperm.xlu0 %385, %v221_v2  }
  0x82   : > { %v216_v3 = vpop.permute.xlu0 %215 }
  0x83   : > { %v218_v9 = vmul.f32 %v216_v3, %v209_v6  ;;  %v219_v10 = vmul.f32 %v216_v3, %v210_v7  ;;  %v220_v11 = vmul.f32 %v216_v3, %v211_v8 }
  0x8a   : > { %v225_v12 = vpop.permute.xlu0 %224 }
  0x8b   : > { %v227_v13 = vadd.f32 %v225_v12, %v218_v9  ;;  %v228_v14 = vadd.f32 %v225_v12, %v219_v10  ;;  %v229_v15 = vadd.f32 %v225_v12, %v220_v11 }
  0x8d   : > { %v230_v16 = vmax.f32 %v227_v13, 0.0  ;;  %v231_v17 = vmax.f32 %v228_v14, 0.0  ;;  %v232_v18 = vmax.f32 %v229_v15, 0.0 }
  0x8f   : > { %v233_v19 = vpack.c.bf16 %v231_v17, %v230_v16  ;;  %v234_v20 = vpack.c.bf16 %v232_v18, %v232_v18 }
  0x91   : > { %235 = vst [vmem:[%s206_s5] sm:$0xff] %v233_v19 }
  0x92   : > { %237 = vst.msk [vmem:[%s206_s5 + $0x8] sm:$0xf] %vm236_vm0, %v234_v20 }
  0x93 PF: > { %s13_s16 = sadd.s32 1, %s424_s16   ;;  %s508_s12 = smov %s416_s14 }
  0x94   : > { %p10_p7 = scmp.ge.s32.totalorder %s13_s16, 10   ;;  %s509_s13 = smov %s420_s15 }
  0x95   : > { %s510_s14 = smov %s513_s17  ;;  %s511_s15 = smov %s517_s18 }
  0x96   :  { %12 = sbr.rel (!%p10_p7) target bundleno = 3 (0x3), region = 62 }

// kernel: _forward.14
= control target key start
LH: loop header
LB: loop body
LE: loop exit
PB: predicated region body
PF: predicated region fallthrough
CT: control target
= control target key end

     0   :  { %s1872_s12 = smov 0   ;;  %s1874_s13 = smov 0   ;;  %s2088_s0 = inlined_call_operand.vmem [shape: bf16[2,16,342], index: 0, kind: input, shape index: {}]   ;;  %s2089_s1 = inlined_call_operand.vmem [shape: bf16[4,4,8,16], index: 1, kind: input, shape index: {}]   ;;  %s2090_s2 = inlined_call_operand.vmem [shape: bf16[2,4,8,288], index: 2, kind: output, shape index: {0}]   ;;  %s2091_s3 = inlined_call_operand.vmem [shape: f32[2,4,8,2], index: 3, kind: output, shape index: {1}]  }
   0x1   :  { %s1876_s14 = smov 0   ;;  %s1878_s15 = smov 0  }
   0x2   :  { %s1880_s16 = smov 0  }
   0x3 LB: > { %s23_s17 = sadd.s32 1, %s1825_s14  ;;  %s26_s18 = sadd.s32 1, %s1829_s15  ;;  %s1833_s16 = sphi %s1880_s16, %s14_s16   ;;  %s1829_s15 = sphi %s1878_s15, %s2095_s15   ;;  %s1825_s14 = sphi %s1876_s14, %s2094_s14   ;;  %s1821_s13 = sphi %s1874_s13, %s2093_s13   ;;  %s1817_s12 = sphi %s1872_s12, %s2092_s12  }
   0x4   : > { %p24_p0 = scmp.ge.s32.totalorder %s23_s17, 4  ;;  %p1598_p1 = scmp.ge.s32.totalorder %s1833_s16, 1 }
   0x5   : > { %p166_p2 = scmp.lt.s32.totalorder %s1833_s16, 9 }
   0x6   : > { %s2097_s17 = smov (%p24_p0, %s23_s17), 0  ;;  %s2099_s18 = smov (!%p24_p0, %s26_s18), %s1829_s15 }
   0x7   : > { %p167_p3 = pnand %p1598_p1, %p166_p2  ;;  %p28_p4 = scmp.ge.s32.totalorder %s2099_s18, 2 }
   0x8   : > { %p207_p5 = scmp.lt.s32.totalorder (!%p167_p3), %s1821_s13, 1  ;;  %p212_p6 = scmp.lt.s32.totalorder (!%p167_p3), %s1817_s12, 3 }
   0x9   : > { %s2101_s18 = smov (%p28_p4, %s2099_s18), 0  ;;  %170 = sbr.rel (%p167_p3) target bundleno = 1751 (0x6d7), region = 28 }
   0xa   : > { %p1608_p7 = scmp.ne.s32.totalorder (!%p167_p3), %s1817_s12, 0 }
   0xe   : > { %v235_v0 = vlaneseq  ;;  %s2103_s13 = smov (!%p207_p5, %s1821_s13), 1  ;;  %v1835_v22 = vmov 0  }
   0xf   : > { %s213_s19 = scalar_select %p212_p6, %s1817_s12, 3 }
  0x10   : > { %v1905_v1 = vand.u32 127, %v235_v0  ;;  %s1735_s20 = smul.u32 24, %s2103_s13  ;;  %s1603_s21 = sshll.u32 %s2103_s13, 2 }
  0x11   : > { %s1722_s22 = sshll.u32 %s213_s19, 4  ;;  %s1736_s23 = smul.u32 3, %s213_s19 }
  0x12   : > { %v1909_v2 = vadd.s32 128, %v1905_v1  ;;  %v1912_v3 = vadd.s32 256, %v1905_v1  ;;  %v242_v4 = vand.u32 65535, %v1905_v1  ;;  %v243_v5 = vshrl.u32 %v1905_v1, 16  ;;  %s1919_s26 = scalar_lea.vmem %s2088_s0, %s1735_s20  ;;  %s1924_s29 = scalar_lea.vmem %s2089_s1, %s1722_s22 }
  0x13   : > { %s1737_s30 = smul.u32 12, %s2103_s13  ;;  %s231_s4 = sadd.s32 %s1603_s21, %s213_s19 }
  0x14   : > { %v245_v6 = vmul.u32 14564, %v242_v4  ;;  %v246_v7 = vmul.u32 58254, %v242_v4  ;;  %v247_v8 = vmul.u32 14564, %v243_v5  ;;  %v271_v9 = vand.u32 65535, %v1909_v2  ;;  %s1604_s5 = sshll.u32 %s231_s4, 3  ;;  %s1837_s20 = smov (!%p1608_p7), 127  }
  0x15   : > { %v272_v10 = vshrl.u32 %v1909_v2, 16  ;;  %v300_v11 = vand.u32 65535, %v1912_v3  ;;  %v248_v12 = vmul.u32 58254, %v243_v5  ;;  %v301_v15 = vshrl.u32 %v1912_v3, 16  ;;  %s223_s6 = sadd.s32 %s1737_s30, %s1736_s23  ;;  %s1933_s9 = scalar_lea.vmem %s2091_s3, %s1604_s5 }
  0x16   : > { %v249_v13 = vshll.u32 %v246_v7, 16  ;;  %v251_v14 = vshll.u32 %v247_v8, 16  ;;  %v274_v16 = vmul.u32 14564, %v271_v9  ;;  %v275_v17 = vmul.u32 58254, %v271_v9  ;;  %s1602_s10 = sshll.u32 %s223_s6, 2  ;;  %s1838_s21 = smov (!%p1608_p7), 110  }
  0x17   : > { %v276_v18 = vmul.u32 14564, %v272_v10  ;;  %v250_v19 = vshrl.u32 %v246_v7, 16  ;;  %v304_v21 = vmul.u32 58254, %v300_v11  ;;  %s1938_s19 = scalar_lea.vmem %s2090_s2, %s1602_s10  ;;  %v277_v24 = vmul.u32 58254, %v272_v10  ;;  %s1839_s22 = smov (!%p1608_p7), 109  }
  0x18   : > { %vm253_vm0 = vc.u32 %v245_v6, %v249_v13  ;;  %v255_v20 = vadd.s32 %v249_v13, %v245_v6  ;;  %v278_v25 = vshll.u32 %v275_v17, 16  ;;  %v303_v28 = vmul.u32 14564, %v300_v11 }
  0x19   : > { %v254_v23 = vsel %vm253_vm0, 1, %v1835_v22  ;;  %v280_v26 = vshll.u32 %v276_v18, 16  ;;  %v305_v29 = vmul.u32 14564, %v301_v15  ;;  %v252_v30 = vshrl.u32 %v247_v8, 16 }
  0x1a   : > { %v256_v27 = vadd.s32 %v254_v23, %v248_v12  ;;  %vm257_vm1 = vc.u32 %v255_v20, %v251_v14  ;;  %vm282_vm2 = vc.u32 %v274_v16, %v278_v25  ;;  %v284_v32 = vadd.s32 %v278_v25, %v274_v16 }
  0x1b   : > { %v258_v31 = vsel %vm257_vm1, 1, %v1835_v22  ;;  %v283_v34 = vsel %vm282_vm2, 1, %v1835_v22  ;;  %v306_v35 = vmul.u32 58254, %v301_v15  ;;  %v307_v36 = vshll.u32 %v304_v21, 16 }
  0x1c   : > { %v260_v33 = vadd.s32 %v258_v31, %v256_v27  ;;  %v279_v37 = vshrl.u32 %v275_v17, 16  ;;  %v285_v38 = vadd.s32 %v283_v34, %v277_v24  ;;  %vm286_vm3 = vc.u32 %v284_v32, %v280_v26 }
  0x1d   : > { %v309_v39 = vshll.u32 %v305_v29, 16  ;;  %v287_v41 = vsel %vm286_vm3, 1, %v1835_v22  ;;  %vm311_vm4 = vc.u32 %v303_v28, %v307_v36  ;;  %v313_v42 = vadd.s32 %v307_v36, %v303_v28 }
  0x1e   : > { %v261_v40 = vadd.s32 %v260_v33, %v250_v19  ;;  %v281_v43 = vshrl.u32 %v276_v18, 16  ;;  %v289_v44 = vadd.s32 %v287_v41, %v285_v38  ;;  %v312_v45 = vsel %vm311_vm4, 1, %v1835_v22 }
  0x1f   : > { %v308_v47 = vshrl.u32 %v304_v21, 16  ;;  %v314_v48 = vadd.s32 %v312_v45, %v306_v35  ;;  %vm315_vm5 = vc.u32 %v313_v42, %v309_v39  ;;  %v310_v52 = vshrl.u32 %v305_v29, 16 }
  0x20   : > { %v262_v46 = vadd.s32 %v261_v40, %v252_v30  ;;  %v290_v49 = vadd.s32 %v289_v44, %v279_v37  ;;  %v316_v50 = vsel %vm315_vm5, 1, %v1835_v22  ;;  %v1836_v7 = vmov 0.0  }
  0x21   : > { %v318_v53 = vadd.s32 %v316_v50, %v314_v48 }
  0x22   : > { %v263_v51 = vshrl.u32 %v262_v46, 4  ;;  %v291_v54 = vadd.s32 %v290_v49, %v281_v43 }
  0x23   : > { %v319_v56 = vadd.s32 %v318_v53, %v308_v47 }
  0x24   : > { %v264_v55 = vmul.u32 18, %v263_v51  ;;  %v292_v57 = vshrl.u32 %v291_v54, 4 }
  0x25   : > { %v320_v59 = vadd.s32 %v319_v56, %v310_v52 }
  0x26   : > { %v265_v58 = vsub.s32 %v1905_v1, %v264_v55  ;;  %v293_v60 = vmul.u32 18, %v292_v57 }
  0x27   : > { %v321_v61 = vshrl.u32 %v320_v59, 4 }
  0x28   : > { %vm326_vm6 = vcmp.ne.s32.totalorder %v265_v58, 0  ;;  %vm329_vm7 = vcmp.lt.s32.totalorder %v265_v58, 0  ;;  %v335_v62 = vadd.s32 18, %v265_v58  ;;  %v294_v63 = vsub.s32 %v1909_v2, %v293_v60 }
  0x29   : > { %vm332_vm8 = vmand %vm329_vm7, %vm326_vm6  ;;  %v322_v0 = vmul.u32 18, %v321_v61 }
  0x2a   : > { %v338_v4 = vsel %vm332_vm8, %v335_v62, %v265_v58  ;;  %vm327_vm9 = vcmp.ne.s32.totalorder %v294_v63, 0  ;;  %vm330_vm10 = vcmp.lt.s32.totalorder %v294_v63, 0  ;;  %v336_v5 = vadd.s32 18, %v294_v63 }
  0x2b   : > { %vm341_vm11 = vcmp.lt.s32.totalorder %v338_v4, 16  ;;  %v323_v6 = vsub.s32 %v1912_v3, %v322_v0  ;;  %vm333_vm12 = vmand %vm330_vm10, %vm327_vm9 }
  0x2c   : > { %v1943_v1 = vsel %vm341_vm11, 1.0, %v1836_v7  ;;  %v339_v8 = vsel %vm333_vm12, %v336_v5, %v294_v63 }
  0x2d   : > { %vm328_vm13 = vcmp.ne.s32.totalorder %v323_v6, 0  ;;  %vm331_vm14 = vcmp.lt.s32.totalorder %v323_v6, 0  ;;  %v337_v9 = vadd.s32 18, %v323_v6  ;;  %vm342_vm15 = vcmp.lt.s32.totalorder %v339_v8, 16  ;;  %353 = sbr.rel (%p1608_p7) target bundleno = 467 (0x1d3), region = 32 }
  0x2e   : > { %vm334_vm0 = vmand %vm331_vm14, %vm328_vm13  ;;  %v1945_v2 = vsel %vm342_vm15, 1.0, %v1836_v7 }
  0x2f   : > { %v340_v10 = vsel %vm334_vm0, %v337_v9, %v323_v6 }
  0x30   : > { %vm343_vm1 = vcmp.lt.s32.totalorder %v340_v10, 16 }
  0x31   : > { %v1947_v11 = vsel %vm343_vm1, 1.0, %v1836_v7 }
  0x32   : > { %v1620_v3 = vld [vmem:[%s1919_s26 + $0x8] sm:$0xf]  ;;  %v1725_v12 = vld [vmem:[%s1919_s26 + $0x10] sm:$0xf0]  ;;  %v1723_v14 = vld [vmem:[%s1919_s26 + $0x4] sm:$0xf] }
  0x33   : > { %v1621_v13 = vor.u32 %v1725_v12, %v1620_v3  ;;  %v1614_v15 = vld [vmem:[%s1919_s26 + $0xc] sm:$0xf0]  ;;  %v1612_v16 = vld [vmem:[%s1919_s26] sm:$0xf]  ;;  %v1724_v18 = vld [vmem:[%s1919_s26 + $0x8] sm:$0xf0] }
  0x34   : > { %v1617_v17 = vor.u32 %v1723_v14, %v1614_v15  ;;  %v1613_v19 = vor.u32 %v1724_v18, %v1612_v16  ;;  %v358_v20 = vld [vmem:[%s1924_s29] sm:$0xf]  ;;  %vm386_vm2 = vcmask 130048   ;;  %vm482_vm3 = vcmask 900096   ;;  %v1628_v24 = vld [vmem:[%s1924_s29 + $0x8] sm:$0xf] }
  0x35   : > { %378 = vrot.lane.b32.xlu0 %v1621_v13, %s1837_s20  ;;  %vm380_vm4 = vcmask 1039360   ;;  %v1609_v27 = vld [vmem:[%s1924_s29 + $0x4] sm:$0xf]  ;;  %vm541_vm5 = vcmask 891904   ;;  %v1632_v38 = vld [vmem:[%s1924_s29 + $0xc] sm:$0xf] }
  0x36   : > { %376 = vrot.lane.b32.xlu1 %v1617_v17, %s1837_s20  ;;  %478 = vrot.lane.b32.xlu2 %v1617_v17, %s1838_s21  ;;  %vm612_vm6 = vcmask 257024   ;;  %vm596_vm7 = vcmask 261120   ;;  %vm614_vm8 = vcmask 7168   ;;  %vm616_vm9 = vcmask 15360  }
  0x37   : > { %442 = vmatpush.bf16.msra.mxu3 %v1613_v19 }
  0x3a   : > { %1625 = vmatmul.msk.bf16.vlgmr.msra.gmra.mxu3 %vm386_vm2, %v358_v20 }
  0x3d   : > { %374 = vrot.lane.b32.xlu0 %v1613_v19, %s1837_s20 }
  0x3e   : > { %476 = vrot.lane.b32.xlu1 %v1613_v19, %s1838_s21  ;;  %480 = vrot.lane.b32.xlu2 %v1621_v13, %s1838_s21 }
  0x45   : > { %537 = vrot.lane.b32.xlu0 %v1617_v17, %s1839_s22 }
  0x46   : > { %539 = vrot.lane.b32.xlu1 %v1621_v13, %s1839_s22  ;;  %535 = vrot.lane.b32.xlu2 %v1613_v19, %s1839_s22 }
  0x90   : > { %v479_v21 = vpop.permute.xlu2 %478 }
  0x98   : > { %v481_v22 = vpop.permute.xlu2 %480 }
  0x99   : > { %v484_v23 = vsel %vm482_vm3, %v479_v21, %v481_v22 }
  0x9a   : > { %511 = vmatpush.bf16.msrb.mxu3 %v484_v23 }
  0x9d   : > { %1630 = vmatmul.msk.bf16.vlgmr.msrb.gmra.mxu3 %vm386_vm2, %v1628_v24 }
  0xa0   : > { %v536_v33 = vpop.permute.xlu2 %535 }
  0xa7   : > { %v379_v25 = vpop.permute.xlu0 %378 }
  0xa8   : > { %v377_v26 = vpop.permute.xlu1 %376  ;;  %423 = vmatpush.bf16.msra.mxu2 %v379_v25 }
  0xa9   : > { %v382_v28 = vsel %vm380_vm4, %v377_v26, %v379_v25 }
  0xaa   : > { %410 = vmatpush.bf16.msra.mxu1 %v382_v28 }
  0xab   : > { %1624 = vmatmul.msk.bf16.vlgmr.msra.gmra.mxu2 %vm386_vm2, %v1609_v27 }
  0xad   : > { %1623 = vmatmul.msk.bf16.vlgmr.msra.gmra.mxu1 %vm386_vm2, %v1609_v27 }
  0xae   : > { %468 = vmatpush.bf16.msrb.mxu1 %v1621_v13 }
  0xaf   : > { %v375_v29 = vpop.permute.xlu0 %374 }
  0xb0   : > { %v477_v30 = vpop.permute.xlu1 %476  ;;  %v381_v31 = vsel %vm380_vm4, %v375_v29, %v377_v26 }
  0xb1   : > { %397 = vmatpush.bf16.msra.mxu0 %v381_v31  ;;  %v483_v32 = vsel %vm482_vm3, %v477_v30, %v479_v21 }
  0xb2   : > { %498 = vmatpush.bf16.msrb.mxu2 %v483_v32 }
  0xb4   : > { %1622 = vmatmul.msk.bf16.vlgmr.msra.gmra.mxu0 %vm386_vm2, %v1609_v27 }
  0xb5   : > { %455 = vmatpush.bf16.msrb.mxu0 %v1617_v17 }
  0xb7   : > { %v538_v34 = vpop.permute.xlu0 %537 }
  0xb8   : > { %v542_v35 = vsel %vm541_vm5, %v536_v33, %v538_v34  ;;  %v540_v36 = vpop.permute.xlu1 %539 }
  0xb9   : > { %524 = vmatpush.bf16.msra.mxu0 %v481_v22  ;;  %v543_v37 = vsel %vm541_vm5, %v538_v34, %v540_v36  ;;  %583 = vmatpush.bf16.msra.mxu3 %v540_v36 }
  0xba   : > { %557 = vmatpush.bf16.msra.mxu1 %v542_v35  ;;  %570 = vmatpush.bf16.msra.mxu2 %v543_v37 }
  0xbb   : > { %1629 = vmatmul.msk.bf16.vlgmr.msrb.gmra.mxu2 %vm386_vm2, %v1628_v24 }
  0xbc   : > { %1635 = vmatmul.msk.bf16.vlgmr.msra.gmra.mxu3 %vm386_vm2, %v1632_v38 }
  0xbd   : > { %1627 = vmatmul.msk.bf16.vlgmr.msrb.gmra.mxu1 %vm386_vm2, %v358_v20  ;;  %v444_v39 = vpop.f32.mrf.mxu3 }
  0xc4   : > { %1626 = vmatmul.msk.bf16.vlgmr.msrb.gmra.mxu0 %vm386_vm2, %v358_v20 }
  0xc5   : > { %v446_v40 = vpop.f32.mrf.mxu3 }
  0xcb   : > { %1634 = vmatmul.msk.bf16.vlgmr.msra.gmra.mxu2 %vm386_vm2, %v1632_v38 }
  0xcd   : > { %1633 = vmatmul.msk.bf16.vlgmr.msra.gmra.mxu1 %vm386_vm2, %v1632_v38 }
  0xd4   : > { %1631 = vmatmul.msk.bf16.vlgmr.msra.gmra.mxu0 %vm386_vm2, %v1628_v24 }
 0x120   : > { %v513_v41 = vpop.f32.mrf.mxu3 }
 0x128   : > { %v515_v42 = vpop.f32.mrf.mxu3 }
 0x12a   : > { %v412_v43 = vpop.f32.mrf.mxu1 }
 0x12e   : > { %v425_v44 = vpop.f32.mrf.mxu2 }
 0x131   : > { %v399_v45 = vpop.f32.mrf.mxu0 }
 0x132   : > { %v414_v46 = vpop.f32.mrf.mxu1  ;;  %v445_v59 = vadd.f32 %v444_v39, %v399_v45 }
 0x136   : > { %v427_v47 = vpop.f32.mrf.mxu2 }
 0x139   : > { %v401_v48 = vpop.f32.mrf.mxu0 }
 0x13a   : > { %v470_v49 = vpop.f32.mrf.mxu1 }
 0x13b   : > { %v471_v4 = vadd.f32 %v470_v49, %v425_v44 }
 0x13e   : > { %v500_v50 = vpop.f32.mrf.mxu2 }
 0x13f   : > { %v585_v51 = vpop.f32.mrf.mxu3  ;;  %v530_v60 = vadd.f32 %v500_v50, %v445_v59 }
 0x141   : > { %v457_v52 = vpop.f32.mrf.mxu0 }
 0x142   : > { %v472_v53 = vpop.f32.mrf.mxu1  ;;  %v458_v56 = vadd.f32 %v457_v52, %v412_v43 }
 0x144   : > { %v531_v61 = vadd.f32 %v513_v41, %v458_v56 }
 0x146   : > { %v502_v54 = vpop.f32.mrf.mxu2 }
 0x147   : > { %v587_v55 = vpop.f32.mrf.mxu3 }
 0x149   : > { %v459_v57 = vpop.f32.mrf.mxu0 }
 0x14a   : > { %v559_v58 = vpop.f32.mrf.mxu1 }
 0x14b   : > { %v589_v63 = vadd.f32 %v559_v58, %v530_v60 }
 0x14d   : > { %v592_v10 = vmul.f32 %v1943_v1, %v589_v63 }
 0x14e   : > { %v572_v62 = vpop.f32.mrf.mxu2 }
 0x14f   : > { %v590_v0 = vadd.f32 %v572_v62, %v531_v61  ;;  %v601_v16 = vmul.f32 %v592_v10, %v589_v63 }
 0x151   : > { %v593_v5 = vmul.f32 %v1945_v2, %v590_v0  ;;  %v609_v6 = vpack.c.bf16 %v590_v0, %v589_v63  ;;  %v526_v7 = vpop.f32.mrf.mxu0 }
 0x152   : > { %v532_v8 = vadd.f32 %v526_v7, %v471_v4  ;;  %v561_v9 = vpop.f32.mrf.mxu1 }
 0x153   : > { %611 = vst [vmem:[%s1938_s19] sm:$0xff] %v609_v6  ;;  %v602_v12 = vmul.f32 %v593_v5, %v590_v0  ;;  %v595_v17 = vadd.f32 %v593_v5, %v592_v10 }
 0x154   : > { %v591_v3 = vadd.f32 %v585_v51, %v532_v8 }
 0x155   : > { %v604_v22 = vadd.f32 %v602_v12, %v601_v16 }
 0x156   : > { %v610_v13 = vpack.c.bf16 %v591_v3, %v591_v3  ;;  %v574_v14 = vpop.f32.mrf.mxu2  ;;  %v594_v15 = vmul.f32 %v1947_v11, %v591_v3 }
 0x158   : > { %613 = vst.msk [vmem:[%s1938_s19 + $0x8] sm:$0xf] %vm612_vm6, %v610_v13  ;;  %v597_v18 = vsel %vm596_vm7, %v594_v15, 0.0  ;;  %v603_v19 = vmul.f32 %v594_v15, %v591_v3 }
 0x159   : > { %v528_v20 = vpop.f32.mrf.mxu0  ;;  %v598_v21 = vadd.f32 %v597_v18, %v595_v17 }
 0x15a   : > { %v605_v23 = vsel %vm596_vm7, %v603_v19, 0.0 }
 0x15b   : > { %599 = vadd.xlane.f32.xlu0 %v598_v21  ;;  %v606_v24 = vadd.f32 %v605_v23, %v604_v22 }
 0x15d   : > { %607 = vadd.xlane.f32.xlu1 %v606_v24 }
 0x1ce   : > { %v600_v25 = vpop.xlane.xlu0 %599 }
 0x1d0   : > { %v608_v26 = vpop.xlane.xlu1 %607 }
 0x1d1   : > { %v615_v27 = vsel %vm614_vm8, %v600_v25, %v608_v26 }
 0x1d2   : > { %617 = vst.msk [vmem:[%s1933_s9] sm:$0xff] %vm616_vm9, %v615_v27 }
 0x1d3 PF: > { %p1636_p8 = scmp.ne.s32.totalorder %s1817_s12, 1 }
 0x1d4   : > { %s1840_s23 = smov (!%p1636_p8), 126   ;;  %s1841_s24 = smov (!%p1636_p8), 127  }
 0x1d5   : > { %621 = sbr.rel (%p1636_p8) target bundleno = 895 (0x37f), region = 36  ;;  %s1842_s25 = smov (!%p1636_p8), 109  }
 0x1d6   : > { %s1843_s27 = smov (!%p1636_p8), 108  }
 0x1da   : > { %v1648_v28 = vld [vmem:[%s1919_s26 + $0x8] sm:$0xf]  ;;  %v1728_v29 = vld [vmem:[%s1919_s26 + $0x10] sm:$0xf0]  ;;  %v1726_v31 = vld [vmem:[%s1919_s26 + $0x4] sm:$0xf] }
 0x1db   : > { %v1649_v30 = vor.u32 %v1728_v29, %v1648_v28  ;;  %v1642_v32 = vld [vmem:[%s1919_s26 + $0xc] sm:$0xf0]  ;;  %v1640_v34 = vld [vmem:[%s1919_s26] sm:$0xf]  ;;  %v1727_v35 = vld [vmem:[%s1919_s26 + $0x8] sm:$0xf0] }
 0x1dc   : > { %v1645_v33 = vor.u32 %v1726_v31, %v1642_v32  ;;  %v1641_v36 = vor.u32 %v1727_v35, %v1640_v34  ;;  %vm648_vm10 = vcmask 1031168   ;;  %v1637_v42 = vld [vmem:[%s1924_s29 + $0x4] sm:$0xf]  ;;  %vm654_vm11 = vcmask 130048   ;;  %v626_v48 = vld [vmem:[%s1924_s29] sm:$0xf] }
 0x1dd   : > { %646 = vrot.lane.b32.xlu0 %v1649_v30, %s1840_s23  ;;  %vm703_vm12 = vcmask 1039360   ;;  %vm759_vm13 = vcmask 891904   ;;  %v1656_v54 = vld [vmem:[%s1924_s29 + $0x8] sm:$0xf]  ;;  %vm818_vm14 = vcmask 883712   ;;  %vm889_vm15 = vcmask 257024  }
 0x1de   : > { %699 = vrot.lane.b32.xlu1 %v1645_v33, %s1841_s24  ;;  %644 = vrot.lane.b32.xlu2 %v1645_v33, %s1840_s23  ;;  %v1660_v60 = vld [vmem:[%s1924_s29 + $0xc] sm:$0xf]  ;;  %vm873_vm0 = vcmask 261120   ;;  %vm891_vm1 = vcmask 7168   ;;  %vm893_vm2 = vcmask 15360  }
 0x1e5   : > { %697 = vrot.lane.b32.xlu0 %v1641_v36, %s1841_s24 }
 0x1e6   : > { %642 = vrot.lane.b32.xlu1 %v1641_v36, %s1840_s23  ;;  %753 = vrot.lane.b32.xlu2 %v1641_v36, %s1842_s25 }
 0x1ed   : > { %755 = vrot.lane.b32.xlu0 %v1645_v33, %s1842_s25 }
 0x1ee   : > { %757 = vrot.lane.b32.xlu1 %v1649_v30, %s1842_s25  ;;  %701 = vrot.lane.b32.xlu2 %v1649_v30, %s1841_s24 }
 0x1f5   : > { %814 = vrot.lane.b32.xlu0 %v1645_v33, %s1843_s27 }
 0x1f6   : > { %816 = vrot.lane.b32.xlu1 %v1649_v30, %s1843_s27  ;;  %812 = vrot.lane.b32.xlu2 %v1641_v36, %s1843_s27 }
 0x238   : > { %v645_v37 = vpop.permute.xlu2 %644 }
 0x240   : > { %v754_v38 = vpop.permute.xlu2 %753 }
 0x248   : > { %v702_v43 = vpop.permute.xlu2 %701 }
 0x24f   : > { %v647_v39 = vpop.permute.xlu0 %646 }
 0x250   : > { %v700_v40 = vpop.permute.xlu1 %699  ;;  %691 = vmatpush.bf16.msra.mxu2 %v647_v39  ;;  %v650_v41 = vsel %vm648_vm10, %v645_v37, %v647_v39  ;;  %v813_v55 = vpop.permute.xlu2 %812 }
 0x251   : > { %678 = vmatpush.bf16.msra.mxu1 %v650_v41  ;;  %v705_v49 = vsel %vm703_vm12, %v700_v40, %v702_v43 }
 0x253   : > { %1652 = vmatmul.msk.bf16.vlgmr.msra.gmra.mxu2 %vm654_vm11, %v1637_v42 }
 0x254   : > { %1651 = vmatmul.msk.bf16.vlgmr.msra.gmra.mxu1 %vm654_vm11, %v1637_v42 }
 0x255   : > { %745 = vmatpush.bf16.msrb.mxu1 %v702_v43 }
 0x257   : > { %v698_v44 = vpop.permute.xlu0 %697 }
 0x258   : > { %v643_v45 = vpop.permute.xlu1 %642  ;;  %v704_v46 = vsel %vm703_vm12, %v698_v44, %v700_v40 }
 0x259   : > { %v649_v47 = vsel %vm648_vm10, %v643_v45, %v645_v37  ;;  %719 = vmatpush.bf16.msra.mxu3 %v704_v46 }
 0x25a   : > { %665 = vmatpush.bf16.msra.mxu0 %v649_v47 }
 0x25c   : > { %1653 = vmatmul.msk.bf16.vlgmr.msra.gmra.mxu3 %vm654_vm11, %v626_v48 }
 0x25d   : > { %1650 = vmatmul.msk.bf16.vlgmr.msra.gmra.mxu0 %vm654_vm11, %v1637_v42 }
 0x25e   : > { %732 = vmatpush.bf16.msrb.mxu0 %v705_v49 }
 0x25f   : > { %v756_v50 = vpop.permute.xlu0 %755 }
 0x260   : > { %v758_v51 = vpop.permute.xlu1 %757  ;;  %v760_v52 = vsel %vm759_vm13, %v754_v38, %v756_v50 }
 0x261   : > { %775 = vmatpush.bf16.msrb.mxu2 %v760_v52  ;;  %v761_v53 = vsel %vm759_vm13, %v756_v50, %v758_v51 }
 0x262   : > { %801 = vmatpush.bf16.msra.mxu0 %v758_v51  ;;  %788 = vmatpush.bf16.msrb.mxu3 %v761_v53 }
 0x264   : > { %1655 = vmatmul.msk.bf16.vlgmr.msrb.gmra.mxu1 %vm654_vm11, %v626_v48  ;;  %1657 = vmatmul.msk.bf16.vlgmr.msrb.gmra.mxu2 %vm654_vm11, %v1656_v54 }
 0x267   : > { %v815_v56 = vpop.permute.xlu0 %814 }
 0x268   : > { %v819_v57 = vsel %vm818_vm14, %v813_v55, %v815_v56  ;;  %v817_v58 = vpop.permute.xlu1 %816 }
 0x269   : > { %v820_v59 = vsel %vm818_vm14, %v815_v56, %v817_v58  ;;  %860 = vmatpush.bf16.msra.mxu3 %v817_v58  ;;  %834 = vmatpush.bf16.msra.mxu1 %v819_v57 }
 0x26a   : > { %847 = vmatpush.bf16.msra.mxu2 %v820_v59 }
 0x26c   : > { %1658 = vmatmul.msk.bf16.vlgmr.msrb.gmra.mxu3 %vm654_vm11, %v1656_v54 }
 0x26d   : > { %1654 = vmatmul.msk.bf16.vlgmr.msrb.gmra.mxu0 %vm654_vm11, %v626_v48 }
 0x274   : > { %1661 = vmatmul.msk.bf16.vlgmr.msra.gmra.mxu1 %vm654_vm11, %v1660_v60  ;;  %1662 = vmatmul.msk.bf16.vlgmr.msra.gmra.mxu2 %vm654_vm11, %v1660_v60 }
 0x27c   : > { %1663 = vmatmul.msk.bf16.vlgmr.msra.gmra.mxu3 %vm654_vm11, %v1660_v60 }
 0x27d   : > { %1659 = vmatmul.msk.bf16.vlgmr.msra.gmra.mxu0 %vm654_vm11, %v1656_v54 }
 0x2d1   : > { %v680_v61 = vpop.f32.mrf.mxu1 }
 0x2d6   : > { %v693_v62 = vpop.f32.mrf.mxu2 }
 0x2d9   : > { %v682_v63 = vpop.f32.mrf.mxu1 }
 0x2da   : > { %v667_v0 = vpop.f32.mrf.mxu0 }
 0x2de   : > { %v695_v4 = vpop.f32.mrf.mxu2 }
 0x2df   : > { %v721_v5 = vpop.f32.mrf.mxu3 }
 0x2e0   : > { %v722_v16 = vadd.f32 %v721_v5, %v667_v0 }
 0x2e1   : > { %v747_v6 = vpop.f32.mrf.mxu1 }
 0x2e2   : > { %v669_v7 = vpop.f32.mrf.mxu0  ;;  %v748_v27 = vadd.f32 %v747_v6, %v693_v62 }
 0x2e7   : > { %v723_v8 = vpop.f32.mrf.mxu3  ;;  %v777_v9 = vpop.f32.mrf.mxu2 }
 0x2e8   : > { %v807_v18 = vadd.f32 %v777_v9, %v722_v16 }
 0x2e9   : > { %v749_v10 = vpop.f32.mrf.mxu1 }
 0x2ea   : > { %v734_v3 = vpop.f32.mrf.mxu0 }
 0x2eb   : > { %v735_v17 = vadd.f32 %v734_v3, %v680_v61 }
 0x2ef   : > { %v779_v12 = vpop.f32.mrf.mxu2  ;;  %v790_v13 = vpop.f32.mrf.mxu3 }
 0x2f0   : > { %v808_v19 = vadd.f32 %v790_v13, %v735_v17 }
 0x2f1   : > { %v836_v14 = vpop.f32.mrf.mxu1 }
 0x2f2   : > { %v736_v15 = vpop.f32.mrf.mxu0  ;;  %v866_v22 = vadd.f32 %v836_v14, %v807_v18 }
 0x2f4   : > { %v869_v30 = vmul.f32 %v1943_v1, %v866_v22 }
 0x2f6   : > { %v878_v38 = vmul.f32 %v869_v30, %v866_v22 }
 0x2f7   : > { %v792_v20 = vpop.f32.mrf.mxu3  ;;  %v849_v21 = vpop.f32.mrf.mxu2 }
 0x2f8   : > { %v867_v23 = vadd.f32 %v849_v21, %v808_v19 }
 0x2f9   : > { %v838_v24 = vpop.f32.mrf.mxu1 }
 0x2fa   : > { %v886_v25 = vpack.c.bf16 %v867_v23, %v866_v22  ;;  %v803_v26 = vpop.f32.mrf.mxu0  ;;  %v870_v28 = vmul.f32 %v1945_v2, %v867_v23 }
 0x2fb   : > { %v809_v29 = vadd.f32 %v803_v26, %v748_v27 }
 0x2fc   : > { %888 = vst [vmem:[%s1938_s19] sm:$0xff] %v886_v25  ;;  %v879_v34 = vmul.f32 %v870_v28, %v867_v23  ;;  %v872_v39 = vadd.f32 %v870_v28, %v869_v30 }
 0x2fe   : > { %v881_v43 = vadd.f32 %v879_v34, %v878_v38 }
 0x2ff   : > { %v862_v31 = vpop.f32.mrf.mxu3  ;;  %v851_v32 = vpop.f32.mrf.mxu2 }
 0x300   : > { %v868_v33 = vadd.f32 %v862_v31, %v809_v29 }
 0x302   : > { %v887_v35 = vpack.c.bf16 %v868_v33, %v868_v33  ;;  %v805_v36 = vpop.f32.mrf.mxu0  ;;  %v871_v37 = vmul.f32 %v1947_v11, %v868_v33 }
 0x304   : > { %890 = vst.msk [vmem:[%s1938_s19 + $0x8] sm:$0xf] %vm889_vm15, %v887_v35  ;;  %v874_v40 = vsel %vm873_vm0, %v871_v37, 0.0  ;;  %v880_v41 = vmul.f32 %v871_v37, %v868_v33 }
 0x305   : > { %v875_v42 = vadd.f32 %v874_v40, %v872_v39 }
 0x306   : > { %v882_v44 = vsel %vm873_vm0, %v880_v41, 0.0 }
 0x307   : > { %v864_v45 = vpop.f32.mrf.mxu3  ;;  %876 = vadd.xlane.f32.xlu0 %v875_v42  ;;  %v883_v46 = vadd.f32 %v882_v44, %v881_v43 }
 0x309   : > { %884 = vadd.xlane.f32.xlu1 %v883_v46 }
 0x37a   : > { %v877_v47 = vpop.xlane.xlu0 %876 }
 0x37c   : > { %v885_v48 = vpop.xlane.xlu1 %884 }
 0x37d   : > { %v892_v49 = vsel %vm891_vm1, %v877_v47, %v885_v48 }
 0x37e   : > { %894 = vst.msk [vmem:[%s1933_s9] sm:$0xff] %vm893_vm2, %v892_v49 }
 0x37f PF: > { %p1664_p9 = scmp.ne.s32.totalorder %s1817_s12, 2 }
 0x380   : > { %s1844_s28 = smov (!%p1664_p9), 109   ;;  %s1845_s30 = smov (!%p1664_p9), 110  }
 0x381   : > { %898 = sbr.rel (%p1664_p9) target bundleno = 1323 (0x52b), region = 40  ;;  %s1846_s4 = smov (!%p1664_p9), 92  }
 0x382   : > { %s1847_s5 = smov (!%p1664_p9), 91  }
 0x386   : > { %v1676_v50 = vld [vmem:[%s1919_s26 + $0x8] sm:$0xf]  ;;  %v1731_v51 = vld [vmem:[%s1919_s26 + $0x10] sm:$0xf0]  ;;  %v1729_v53 = vld [vmem:[%s1919_s26 + $0x4] sm:$0xf] }
 0x387   : > { %v1677_v52 = vor.u32 %v1731_v51, %v1676_v50  ;;  %v1670_v54 = vld [vmem:[%s1919_s26 + $0xc] sm:$0xf0]  ;;  %v1668_v56 = vld [vmem:[%s1919_s26] sm:$0xf]  ;;  %v1730_v57 = vld [vmem:[%s1919_s26 + $0x8] sm:$0xf0] }
 0x388   : > { %v1673_v55 = vor.u32 %v1729_v53, %v1670_v54  ;;  %v1669_v58 = vor.u32 %v1730_v57, %v1668_v56  ;;  %vm925_vm3 = vcmask 891904   ;;  %v1665_v0 = vld [vmem:[%s1924_s29 + $0x4] sm:$0xf]  ;;  %vm931_vm4 = vcmask 130048   ;;  %v903_v9 = vld [vmem:[%s1924_s29] sm:$0xf] }
 0x389   : > { %923 = vrot.lane.b32.xlu0 %v1677_v52, %s1844_s28  ;;  %vm980_vm5 = vcmask 900096   ;;  %vm1036_vm6 = vcmask 752640   ;;  %v1684_v15 = vld [vmem:[%s1924_s29 + $0x8] sm:$0xf]  ;;  %vm1095_vm7 = vcmask 744448   ;;  %vm1166_vm8 = vcmask 257024  }
 0x38a   : > { %976 = vrot.lane.b32.xlu1 %v1673_v55, %s1845_s30  ;;  %921 = vrot.lane.b32.xlu2 %v1673_v55, %s1844_s28  ;;  %v1688_v21 = vld [vmem:[%s1924_s29 + $0xc] sm:$0xf]  ;;  %vm1150_vm9 = vcmask 261120   ;;  %vm1168_vm10 = vcmask 7168   ;;  %vm1170_vm11 = vcmask 15360  }
 0x391   : > { %974 = vrot.lane.b32.xlu0 %v1669_v58, %s1845_s30 }
 0x392   : > { %919 = vrot.lane.b32.xlu1 %v1669_v58, %s1844_s28  ;;  %1030 = vrot.lane.b32.xlu2 %v1669_v58, %s1846_s4 }
 0x399   : > { %1032 = vrot.lane.b32.xlu0 %v1673_v55, %s1846_s4 }
 0x39a   : > { %1034 = vrot.lane.b32.xlu1 %v1677_v52, %s1846_s4  ;;  %978 = vrot.lane.b32.xlu2 %v1677_v52, %s1845_s30 }
 0x3a1   : > { %1091 = vrot.lane.b32.xlu0 %v1673_v55, %s1847_s5 }
 0x3a2   : > { %1093 = vrot.lane.b32.xlu1 %v1677_v52, %s1847_s5  ;;  %1089 = vrot.lane.b32.xlu2 %v1669_v58, %s1847_s5 }
 0x3e4   : > { %v922_v59 = vpop.permute.xlu2 %921 }
 0x3ec   : > { %v1031_v60 = vpop.permute.xlu2 %1030 }
 0x3f4   : > { %v979_v4 = vpop.permute.xlu2 %978 }
 0x3fb   : > { %v924_v61 = vpop.permute.xlu0 %923 }
 0x3fc   : > { %v977_v62 = vpop.permute.xlu1 %976  ;;  %968 = vmatpush.bf16.msra.mxu2 %v924_v61  ;;  %v927_v63 = vsel %vm925_vm3, %v922_v59, %v924_v61  ;;  %v1090_v16 = vpop.permute.xlu2 %1089 }
 0x3fd   : > { %955 = vmatpush.bf16.msra.mxu1 %v927_v63  ;;  %v982_v10 = vsel %vm980_vm5, %v977_v62, %v979_v4 }
 0x3ff   : > { %1680 = vmatmul.msk.bf16.vlgmr.msra.gmra.mxu2 %vm931_vm4, %v1665_v0 }
 0x400   : > { %1679 = vmatmul.msk.bf16.vlgmr.msra.gmra.mxu1 %vm931_vm4, %v1665_v0 }
 0x401   : > { %1022 = vmatpush.bf16.msrb.mxu1 %v979_v4 }
 0x403   : > { %v975_v5 = vpop.permute.xlu0 %974 }
 0x404   : > { %v920_v6 = vpop.permute.xlu1 %919  ;;  %v981_v7 = vsel %vm980_vm5, %v975_v5, %v977_v62 }
 0x405   : > { %v926_v8 = vsel %vm925_vm3, %v920_v6, %v922_v59  ;;  %996 = vmatpush.bf16.msra.mxu3 %v981_v7 }
 0x406   : > { %942 = vmatpush.bf16.msra.mxu0 %v926_v8 }
 0x408   : > { %1681 = vmatmul.msk.bf16.vlgmr.msra.gmra.mxu3 %vm931_vm4, %v903_v9 }
 0x409   : > { %1678 = vmatmul.msk.bf16.vlgmr.msra.gmra.mxu0 %vm931_vm4, %v1665_v0 }
 0x40a   : > { %1009 = vmatpush.bf16.msrb.mxu0 %v982_v10 }
 0x40b   : > { %v1033_v3 = vpop.permute.xlu0 %1032 }
 0x40c   : > { %v1035_v12 = vpop.permute.xlu1 %1034  ;;  %v1037_v13 = vsel %vm1036_vm6, %v1031_v60, %v1033_v3 }
 0x40d   : > { %1052 = vmatpush.bf16.msrb.mxu2 %v1037_v13  ;;  %v1038_v14 = vsel %vm1036_vm6, %v1033_v3, %v1035_v12 }
 0x40e   : > { %1078 = vmatpush.bf16.msra.mxu0 %v1035_v12  ;;  %1065 = vmatpush.bf16.msrb.mxu3 %v1038_v14 }
 0x410   : > { %1683 = vmatmul.msk.bf16.vlgmr.msrb.gmra.mxu1 %vm931_vm4, %v903_v9  ;;  %1685 = vmatmul.msk.bf16.vlgmr.msrb.gmra.mxu2 %vm931_vm4, %v1684_v15 }
 0x413   : > { %v1092_v17 = vpop.permute.xlu0 %1091 }
 0x414   : > { %v1096_v18 = vsel %vm1095_vm7, %v1090_v16, %v1092_v17  ;;  %v1094_v19 = vpop.permute.xlu1 %1093 }
 0x415   : > { %v1097_v20 = vsel %vm1095_vm7, %v1092_v17, %v1094_v19  ;;  %1137 = vmatpush.bf16.msra.mxu3 %v1094_v19  ;;  %1111 = vmatpush.bf16.msra.mxu1 %v1096_v18 }
 0x416   : > { %1124 = vmatpush.bf16.msra.mxu2 %v1097_v20 }
 0x418   : > { %1686 = vmatmul.msk.bf16.vlgmr.msrb.gmra.mxu3 %vm931_vm4, %v1684_v15 }
 0x419   : > { %1682 = vmatmul.msk.bf16.vlgmr.msrb.gmra.mxu0 %vm931_vm4, %v903_v9 }
 0x420   : > { %1689 = vmatmul.msk.bf16.vlgmr.msra.gmra.mxu1 %vm931_vm4, %v1688_v21  ;;  %1690 = vmatmul.msk.bf16.vlgmr.msra.gmra.mxu2 %vm931_vm4, %v1688_v21 }
 0x428   : > { %1691 = vmatmul.msk.bf16.vlgmr.msra.gmra.mxu3 %vm931_vm4, %v1688_v21 }
 0x429   : > { %1687 = vmatmul.msk.bf16.vlgmr.msra.gmra.mxu0 %vm931_vm4, %v1684_v15 }
 0x47d   : > { %v957_v22 = vpop.f32.mrf.mxu1 }
 0x482   : > { %v970_v23 = vpop.f32.mrf.mxu2 }
 0x485   : > { %v959_v24 = vpop.f32.mrf.mxu1 }
 0x486   : > { %v944_v25 = vpop.f32.mrf.mxu0 }
 0x48a   : > { %v972_v26 = vpop.f32.mrf.mxu2 }
 0x48b   : > { %v998_v27 = vpop.f32.mrf.mxu3 }
 0x48c   : > { %v999_v38 = vadd.f32 %v998_v27, %v944_v25 }
 0x48d   : > { %v1024_v28 = vpop.f32.mrf.mxu1 }
 0x48e   : > { %v946_v29 = vpop.f32.mrf.mxu0  ;;  %v1025_v49 = vadd.f32 %v1024_v28, %v970_v23 }
 0x493   : > { %v1000_v30 = vpop.f32.mrf.mxu3  ;;  %v1054_v31 = vpop.f32.mrf.mxu2 }
 0x494   : > { %v1084_v40 = vadd.f32 %v1054_v31, %v999_v38 }
 0x495   : > { %v1026_v32 = vpop.f32.mrf.mxu1 }
 0x496   : > { %v1011_v33 = vpop.f32.mrf.mxu0 }
 0x497   : > { %v1012_v39 = vadd.f32 %v1011_v33, %v957_v22 }
 0x49b   : > { %v1056_v34 = vpop.f32.mrf.mxu2  ;;  %v1067_v35 = vpop.f32.mrf.mxu3 }
 0x49c   : > { %v1085_v41 = vadd.f32 %v1067_v35, %v1012_v39 }
 0x49d   : > { %v1113_v36 = vpop.f32.mrf.mxu1 }
 0x49e   : > { %v1013_v37 = vpop.f32.mrf.mxu0  ;;  %v1143_v44 = vadd.f32 %v1113_v36, %v1084_v40 }
 0x4a0   : > { %v1146_v52 = vmul.f32 %v1943_v1, %v1143_v44 }
 0x4a2   : > { %v1155_v60 = vmul.f32 %v1146_v52, %v1143_v44 }
 0x4a3   : > { %v1069_v42 = vpop.f32.mrf.mxu3  ;;  %v1126_v43 = vpop.f32.mrf.mxu2 }
 0x4a4   : > { %v1144_v45 = vadd.f32 %v1126_v43, %v1085_v41 }
 0x4a5   : > { %v1115_v46 = vpop.f32.mrf.mxu1 }
 0x4a6   : > { %v1163_v47 = vpack.c.bf16 %v1144_v45, %v1143_v44  ;;  %v1080_v48 = vpop.f32.mrf.mxu0  ;;  %v1147_v50 = vmul.f32 %v1945_v2, %v1144_v45 }
 0x4a7   : > { %v1086_v51 = vadd.f32 %v1080_v48, %v1025_v49 }
 0x4a8   : > { %1165 = vst [vmem:[%s1938_s19] sm:$0xff] %v1163_v47  ;;  %v1156_v56 = vmul.f32 %v1147_v50, %v1144_v45  ;;  %v1149_v61 = vadd.f32 %v1147_v50, %v1146_v52 }
 0x4aa   : > { %v1158_v4 = vadd.f32 %v1156_v56, %v1155_v60 }
 0x4ab   : > { %v1139_v53 = vpop.f32.mrf.mxu3  ;;  %v1128_v54 = vpop.f32.mrf.mxu2 }
 0x4ac   : > { %v1145_v55 = vadd.f32 %v1139_v53, %v1086_v51 }
 0x4ae   : > { %v1164_v57 = vpack.c.bf16 %v1145_v55, %v1145_v55  ;;  %v1082_v58 = vpop.f32.mrf.mxu0  ;;  %v1148_v59 = vmul.f32 %v1947_v11, %v1145_v55 }
 0x4b0   : > { %1167 = vst.msk [vmem:[%s1938_s19 + $0x8] sm:$0xf] %vm1166_vm8, %v1164_v57  ;;  %v1151_v62 = vsel %vm1150_vm9, %v1148_v59, 0.0  ;;  %v1157_v63 = vmul.f32 %v1148_v59, %v1145_v55 }
 0x4b1   : > { %v1152_v0 = vadd.f32 %v1151_v62, %v1149_v61 }
 0x4b2   : > { %v1159_v5 = vsel %vm1150_vm9, %v1157_v63, 0.0 }
 0x4b3   : > { %v1141_v6 = vpop.f32.mrf.mxu3  ;;  %1153 = vadd.xlane.f32.xlu0 %v1152_v0  ;;  %v1160_v7 = vadd.f32 %v1159_v5, %v1158_v4 }
 0x4b5   : > { %1161 = vadd.xlane.f32.xlu1 %v1160_v7 }
 0x526   : > { %v1154_v8 = vpop.xlane.xlu0 %1153 }
 0x528   : > { %v1162_v9 = vpop.xlane.xlu1 %1161 }
 0x529   : > { %v1169_v10 = vsel %vm1168_vm10, %v1154_v8, %v1162_v9 }
 0x52a   : > { %1171 = vst.msk [vmem:[%s1933_s9] sm:$0xff] %vm1170_vm11, %v1169_v10 }
 0x52b PF: > { %p1692_p10 = scmp.ne.s32.totalorder %s1817_s12, 3 }
 0x52c   : > { %s1848_s6 = smov (!%p1692_p10), 108   ;;  %s1849_s7 = smov (!%p1692_p10), 109  }
 0x52d   : > { %1175 = sbr.rel (%p1692_p10) target bundleno = 1751 (0x6d7), region = 44  ;;  %s1850_s12 = smov (!%p1692_p10), 91  }
 0x52e   : > { %s1851_s8 = smov (!%p1692_p10), 90  }
 0x532   : > { %v1704_v3 = vld [vmem:[%s1919_s26 + $0x8] sm:$0xf]  ;;  %v1734_v12 = vld [vmem:[%s1919_s26 + $0x10] sm:$0xf0]  ;;  %v1732_v14 = vld [vmem:[%s1919_s26 + $0x4] sm:$0xf] }
 0x533   : > { %v1705_v13 = vor.u32 %v1734_v12, %v1704_v3  ;;  %v1698_v15 = vld [vmem:[%s1919_s26 + $0xc] sm:$0xf0]  ;;  %v1696_v17 = vld [vmem:[%s1919_s26] sm:$0xf]  ;;  %v1733_v18 = vld [vmem:[%s1919_s26 + $0x8] sm:$0xf0] }
 0x534   : > { %v1701_v16 = vor.u32 %v1732_v14, %v1698_v15  ;;  %v1697_v19 = vor.u32 %v1733_v18, %v1696_v17  ;;  %vm1202_vm12 = vcmask 883712   ;;  %v1693_v25 = vld [vmem:[%s1924_s29 + $0x4] sm:$0xf]  ;;  %vm1208_vm13 = vcmask 130048   ;;  %v1180_v31 = vld [vmem:[%s1924_s29] sm:$0xf] }
 0x535   : > { %1200 = vrot.lane.b32.xlu0 %v1705_v13, %s1848_s6  ;;  %vm1257_vm14 = vcmask 891904   ;;  %vm1313_vm15 = vcmask 744448   ;;  %v1712_v37 = vld [vmem:[%s1924_s29 + $0x8] sm:$0xf]  ;;  %vm1372_vm0 = vcmask 736256   ;;  %vm1443_vm1 = vcmask 257024  }
 0x536   : > { %1253 = vrot.lane.b32.xlu1 %v1701_v16, %s1849_s7  ;;  %1198 = vrot.lane.b32.xlu2 %v1701_v16, %s1848_s6  ;;  %v1716_v43 = vld [vmem:[%s1924_s29 + $0xc] sm:$0xf]  ;;  %vm1427_vm2 = vcmask 261120   ;;  %vm1445_vm3 = vcmask 7168   ;;  %vm1447_vm4 = vcmask 15360  }
 0x53d   : > { %1251 = vrot.lane.b32.xlu0 %v1697_v19, %s1849_s7 }
 0x53e   : > { %1196 = vrot.lane.b32.xlu1 %v1697_v19, %s1848_s6  ;;  %1307 = vrot.lane.b32.xlu2 %v1697_v19, %s1850_s12 }
 0x545   : > { %1309 = vrot.lane.b32.xlu0 %v1701_v16, %s1850_s12 }
 0x546   : > { %1311 = vrot.lane.b32.xlu1 %v1705_v13, %s1850_s12  ;;  %1255 = vrot.lane.b32.xlu2 %v1705_v13, %s1849_s7 }
 0x54d   : > { %1368 = vrot.lane.b32.xlu0 %v1701_v16, %s1851_s8 }
 0x54e   : > { %1370 = vrot.lane.b32.xlu1 %v1705_v13, %s1851_s8  ;;  %1366 = vrot.lane.b32.xlu2 %v1697_v19, %s1851_s8 }
 0x590   : > { %v1199_v20 = vpop.permute.xlu2 %1198 }
 0x598   : > { %v1308_v21 = vpop.permute.xlu2 %1307 }
 0x5a0   : > { %v1256_v26 = vpop.permute.xlu2 %1255 }
 0x5a7   : > { %v1201_v22 = vpop.permute.xlu0 %1200 }
 0x5a8   : > { %v1254_v23 = vpop.permute.xlu1 %1253  ;;  %1245 = vmatpush.bf16.msra.mxu2 %v1201_v22  ;;  %v1204_v24 = vsel %vm1202_vm12, %v1199_v20, %v1201_v22  ;;  %v1367_v38 = vpop.permute.xlu2 %1366 }
 0x5a9   : > { %1232 = vmatpush.bf16.msra.mxu1 %v1204_v24  ;;  %v1259_v32 = vsel %vm1257_vm14, %v1254_v23, %v1256_v26 }
 0x5ab   : > { %1708 = vmatmul.msk.bf16.vlgmr.msra.gmra.mxu2 %vm1208_vm13, %v1693_v25 }
 0x5ac   : > { %1707 = vmatmul.msk.bf16.vlgmr.msra.gmra.mxu1 %vm1208_vm13, %v1693_v25 }
 0x5ad   : > { %1299 = vmatpush.bf16.msrb.mxu1 %v1256_v26 }
 0x5af   : > { %v1252_v27 = vpop.permute.xlu0 %1251 }
 0x5b0   : > { %v1197_v28 = vpop.permute.xlu1 %1196  ;;  %v1258_v29 = vsel %vm1257_vm14, %v1252_v27, %v1254_v23 }
 0x5b1   : > { %v1203_v30 = vsel %vm1202_vm12, %v1197_v28, %v1199_v20  ;;  %1273 = vmatpush.bf16.msra.mxu3 %v1258_v29 }
 0x5b2   : > { %1219 = vmatpush.bf16.msra.mxu0 %v1203_v30 }
 0x5b4   : > { %1709 = vmatmul.msk.bf16.vlgmr.msra.gmra.mxu3 %vm1208_vm13, %v1180_v31 }
 0x5b5   : > { %1706 = vmatmul.msk.bf16.vlgmr.msra.gmra.mxu0 %vm1208_vm13, %v1693_v25 }
 0x5b6   : > { %1286 = vmatpush.bf16.msrb.mxu0 %v1259_v32 }
 0x5b7   : > { %v1310_v33 = vpop.permute.xlu0 %1309 }
 0x5b8   : > { %v1312_v34 = vpop.permute.xlu1 %1311  ;;  %v1314_v35 = vsel %vm1313_vm15, %v1308_v21, %v1310_v33 }
 0x5b9   : > { %1329 = vmatpush.bf16.msrb.mxu2 %v1314_v35  ;;  %v1315_v36 = vsel %vm1313_vm15, %v1310_v33, %v1312_v34 }
 0x5ba   : > { %1355 = vmatpush.bf16.msra.mxu0 %v1312_v34  ;;  %1342 = vmatpush.bf16.msrb.mxu3 %v1315_v36 }
 0x5bc   : > { %1711 = vmatmul.msk.bf16.vlgmr.msrb.gmra.mxu1 %vm1208_vm13, %v1180_v31  ;;  %1713 = vmatmul.msk.bf16.vlgmr.msrb.gmra.mxu2 %vm1208_vm13, %v1712_v37 }
 0x5bf   : > { %v1369_v39 = vpop.permute.xlu0 %1368 }
 0x5c0   : > { %v1373_v40 = vsel %vm1372_vm0, %v1367_v38, %v1369_v39  ;;  %v1371_v41 = vpop.permute.xlu1 %1370 }
 0x5c1   : > { %v1374_v42 = vsel %vm1372_vm0, %v1369_v39, %v1371_v41  ;;  %1414 = vmatpush.bf16.msra.mxu3 %v1371_v41  ;;  %1388 = vmatpush.bf16.msra.mxu1 %v1373_v40 }
 0x5c2   : > { %1401 = vmatpush.bf16.msra.mxu2 %v1374_v42 }
 0x5c4   : > { %1714 = vmatmul.msk.bf16.vlgmr.msrb.gmra.mxu3 %vm1208_vm13, %v1712_v37 }
 0x5c5   : > { %1710 = vmatmul.msk.bf16.vlgmr.msrb.gmra.mxu0 %vm1208_vm13, %v1180_v31 }
 0x5cc   : > { %1717 = vmatmul.msk.bf16.vlgmr.msra.gmra.mxu1 %vm1208_vm13, %v1716_v43  ;;  %1718 = vmatmul.msk.bf16.vlgmr.msra.gmra.mxu2 %vm1208_vm13, %v1716_v43 }
 0x5d4   : > { %1719 = vmatmul.msk.bf16.vlgmr.msra.gmra.mxu3 %vm1208_vm13, %v1716_v43 }
 0x5d5   : > { %1715 = vmatmul.msk.bf16.vlgmr.msra.gmra.mxu0 %vm1208_vm13, %v1712_v37 }
 0x629   : > { %v1234_v44 = vpop.f32.mrf.mxu1 }
 0x62e   : > { %v1247_v45 = vpop.f32.mrf.mxu2 }
 0x631   : > { %v1236_v46 = vpop.f32.mrf.mxu1 }
 0x632   : > { %v1221_v47 = vpop.f32.mrf.mxu0 }
 0x636   : > { %v1249_v48 = vpop.f32.mrf.mxu2 }
 0x637   : > { %v1275_v49 = vpop.f32.mrf.mxu3 }
 0x638   : > { %v1276_v60 = vadd.f32 %v1275_v49, %v1221_v47 }
 0x639   : > { %v1301_v50 = vpop.f32.mrf.mxu1 }
 0x63a   : > { %v1223_v51 = vpop.f32.mrf.mxu0  ;;  %v1302_v10 = vadd.f32 %v1301_v50, %v1247_v45 }
 0x63f   : > { %v1277_v52 = vpop.f32.mrf.mxu3  ;;  %v1331_v53 = vpop.f32.mrf.mxu2 }
 0x640   : > { %v1361_v62 = vadd.f32 %v1331_v53, %v1276_v60 }
 0x641   : > { %v1303_v54 = vpop.f32.mrf.mxu1 }
 0x642   : > { %v1288_v55 = vpop.f32.mrf.mxu0 }
 0x643   : > { %v1289_v61 = vadd.f32 %v1288_v55, %v1234_v44 }
 0x647   : > { %v1333_v56 = vpop.f32.mrf.mxu2  ;;  %v1344_v57 = vpop.f32.mrf.mxu3 }
 0x648   : > { %v1362_v63 = vadd.f32 %v1344_v57, %v1289_v61 }
 0x649   : > { %v1390_v58 = vpop.f32.mrf.mxu1 }
 0x64a   : > { %v1290_v59 = vpop.f32.mrf.mxu0  ;;  %v1420_v5 = vadd.f32 %v1390_v58, %v1361_v62 }
 0x64c   : > { %v1423_v13 = vmul.f32 %v1943_v1, %v1420_v5 }
 0x64e   : > { %v1432_v21 = vmul.f32 %v1423_v13, %v1420_v5 }
 0x64f   : > { %v1346_v0 = vpop.f32.mrf.mxu3  ;;  %v1403_v4 = vpop.f32.mrf.mxu2 }
 0x650   : > { %v1421_v6 = vadd.f32 %v1403_v4, %v1362_v63 }
 0x651   : > { %v1392_v7 = vpop.f32.mrf.mxu1 }
 0x652   : > { %v1440_v8 = vpack.c.bf16 %v1421_v6, %v1420_v5  ;;  %v1357_v9 = vpop.f32.mrf.mxu0  ;;  %v1424_v3 = vmul.f32 %v1945_v2, %v1421_v6 }
 0x653   : > { %v1363_v12 = vadd.f32 %v1357_v9, %v1302_v10 }
 0x654   : > { %1442 = vst [vmem:[%s1938_s19] sm:$0xff] %v1440_v8  ;;  %v1433_v17 = vmul.f32 %v1424_v3, %v1421_v6  ;;  %v1426_v22 = vadd.f32 %v1424_v3, %v1423_v13 }
 0x656   : > { %v1435_v25 = vadd.f32 %v1433_v17, %v1432_v21 }
 0x657   : > { %v1416_v14 = vpop.f32.mrf.mxu3  ;;  %v1405_v15 = vpop.f32.mrf.mxu2 }
 0x658   : > { %v1422_v16 = vadd.f32 %v1416_v14, %v1363_v12 }
 0x65a   : > { %v1441_v18 = vpack.c.bf16 %v1422_v16, %v1422_v16  ;;  %v1359_v19 = vpop.f32.mrf.mxu0  ;;  %v1425_v20 = vmul.f32 %v1947_v11, %v1422_v16 }
 0x65c   : > { %1444 = vst.msk [vmem:[%s1938_s19 + $0x8] sm:$0xf] %vm1443_vm1, %v1441_v18  ;;  %v1428_v23 = vsel %vm1427_vm2, %v1425_v20, 0.0  ;;  %v1434_v24 = vmul.f32 %v1425_v20, %v1422_v16 }
 0x65d   : > { %v1429_v2 = vadd.f32 %v1428_v23, %v1426_v22 }
 0x65e   : > { %v1436_v26 = vsel %vm1427_vm2, %v1434_v24, 0.0 }
 0x65f   : > { %v1418_v1 = vpop.f32.mrf.mxu3  ;;  %1430 = vadd.xlane.f32.xlu0 %v1429_v2  ;;  %v1437_v27 = vadd.f32 %v1436_v26, %v1435_v25 }
 0x661   : > { %1438 = vadd.xlane.f32.xlu1 %v1437_v27 }
 0x6d2   : > { %v1431_v28 = vpop.xlane.xlu0 %1430 }
 0x6d4   : > { %v1439_v29 = vpop.xlane.xlu1 %1438 }
 0x6d5   : > { %v1446_v30 = vsel %vm1445_vm3, %v1431_v28, %v1439_v29 }
 0x6d6   : > { %1448 = vst.msk [vmem:[%s1933_s9] sm:$0xff] %vm1447_vm4, %v1446_v30 }
 0x6d7 PF: > { %s14_s16 = sadd.s32 1, %s1833_s16   ;;  %s2092_s12 = smov %s1825_s14 }
 0x6d8   : > { %p11_p11 = scmp.ge.s32.totalorder %s14_s16, 10   ;;  %s2093_s13 = smov %s1829_s15 }
 0x6d9   : > { %s2094_s14 = smov %s2097_s17  ;;  %s2095_s15 = smov %s2101_s18 }
 0x6da   :  { %13 = sbr.rel (!%p11_p11) target bundleno = 3 (0x3), region = 101 }

// kernel: _forward.17
= control target key start
LH: loop header
LB: loop body
LE: loop exit
PB: predicated region body
PF: predicated region fallthrough
CT: control target
= control target key end

     0   :  { %s558_s12 = smov 0   ;;  %s560_s13 = smov 0   ;;  %s665_s0 = inlined_call_operand.vmem [shape: bf16[2,4,3,1088], index: 0, kind: input, shape index: {}]   ;;  %s666_s1 = inlined_call_operand.vmem [shape: f32[3,1], index: 1, kind: input, shape index: {}]   ;;  %s667_s2 = inlined_call_operand.vmem [shape: f32[3,1], index: 2, kind: input, shape index: {}]   ;;  %s668_s3 = inlined_call_operand.vmem [shape: bf16[2,4,3,1088], index: 3, kind: output, shape index: {}]  }
   0x1   :  { %s562_s14 = smov 0   ;;  %s564_s15 = smov 0  }
   0x2   :  { %s566_s16 = smov 0  }
   0x3 LB: > { %s22_s17 = sadd.s32 1, %s526_s14  ;;  %s25_s18 = sadd.s32 1, %s530_s15  ;;  %s534_s16 = sphi %s566_s16, %s13_s16   ;;  %s530_s15 = sphi %s564_s15, %s680_s15   ;;  %s526_s14 = sphi %s562_s14, %s679_s14   ;;  %s522_s13 = sphi %s560_s13, %s678_s13   ;;  %s518_s12 = sphi %s558_s12, %s677_s12  }
   0x4   : > { %p23_p0 = scmp.ge.s32.totalorder %s22_s17, 4  ;;  %p446_p1 = scmp.ge.s32.totalorder %s534_s16, 1 }
   0x5   : > { %p157_p2 = scmp.lt.s32.totalorder %s534_s16, 9 }
   0x6   : > { %s682_s17 = smov (%p23_p0, %s22_s17), 0  ;;  %s684_s18 = smov (!%p23_p0, %s25_s18), %s530_s15 }
   0x7   : > { %p158_p3 = pnand %p446_p1, %p157_p2  ;;  %p27_p4 = scmp.ge.s32.totalorder %s684_s18, 2 }
   0x8   : > { %p189_p5 = scmp.lt.s32.totalorder (!%p158_p3), %s522_s13, 1  ;;  %p191_p6 = scmp.lt.s32.totalorder (!%p158_p3), %s518_s12, 3 }
   0x9   : > { %s686_s18 = smov (%p27_p4, %s684_s18), 0  ;;  %161 = sbr.rel (%p158_p3) target bundleno = 171 (0xab), region = 32 }
   0xe   : > { %v215_v0 = vld [vmem:[%s666_s1] sm:$0x7]  ;;  %v536_v1 = vmov 0   ;;  %s688_s13 = smov (!%p189_p5, %s522_s13), 1  ;;  %s690_s12 = smov (!%p191_p6, %s518_s12), 3  ;;  %vm298_vm0 = vcmask 1041408  }
   0xf   : > { %495 = vset.pattern.permute.xlu0 %v536_v1  ;;  %v230_v2 = vld [vmem:[%s667_s2] sm:$0x7]  ;;  %s452_s23 = smul.u32 36, %s688_s13  ;;  %v537_v3 = vmov 839922192   ;;  %vm324_vm2 = vcmask 1043458  }
  0x10   : > { %218 = vperm.xlu0 %495, %v215_v0   ;;  %s451_s24 = smul.u32 9, %s690_s12  ;;  %v221_v4 = vunpack.c.l.s4 %v537_v3  ;;  %vm322_vm1 = vsmask.f32 1280  ;;  %vm325_vm3 = vsmask.f32 3328  ;;  %vm302_vm6 = vcmask 1045508  }
  0x11   : > { %vm604_vm4 = vmand %vm298_vm0, %vm322_vm1  ;;  %vm329_vm7 = vsmask.f32 5376  ;;  %vm306_vm10 = vcmask 1043456   ;;  %vm332_vm11 = vcmask 1047558   ;;  %vm333_vm12 = vsmask.f32 7424 }
  0x12   : > { %s594_s25 = sadd.s32 %s452_s23, %s451_s24  ;;  %v222_v5 = vunpack.c.0.s8 %v221_v4  ;;  %vm608_vm5 = vmand %vm324_vm2, %vm325_vm3  ;;  %vm342_vm2 = vcmask 517120  }
  0x13   : > { %s447_s26 = sshll.u32 %s594_s25, 1  ;;  %vm327_vm8 = vmor %vm608_vm5, %vm604_vm4 }
  0x14   : > { %s197_s29 = scalar_lea.vmem %s665_s0, %s447_s26  ;;  %vm330_vm9 = vmand %vm302_vm6, %vm329_vm7  ;;  %s626_s5 = scalar_lea.vmem %s668_s3, %s447_s26 }
  0x15   : > { %v207_v7 = vld [vmem:[%s197_s29] sm:$0xff]  ;;  %v208_v8 = vld [vmem:[%s197_s29 + $0x8] sm:$0xff]  ;;  %v209_v14 = vld [vmem:[%s197_s29 + $0x10] sm:$0x3] }
  0x16   : > { %v210_v9 = vunpack.c.l.bf16 %v207_v7  ;;  %v211_v11 = vunpack.c.h.bf16 %v207_v7  ;;  %v212_v12 = vunpack.c.l.bf16 %v208_v8  ;;  %v213_v13 = vunpack.c.h.bf16 %v208_v8  ;;  %vm617_vm13 = vmor %vm330_vm9, %vm327_vm8  ;;  %v336_v52 = vld [vmem:[%s626_s5] sm:$0xff]  ;;  %v339_v58 = vld [vmem:[%s626_s5 + $0x8] sm:$0xff] }
  0x17   : > { %v214_v21 = vunpack.c.l.bf16 %v209_v14  ;;  %vm628_vm14 = vmand %vm332_vm11, %vm333_vm12  ;;  %v344_v3 = vld [vmem:[%s626_s5 + $0x10] sm:$0x3] }
  0x18   : > { %233 = vperm.xlu0 %495, %v230_v2   ;;  %vm335_vm15 = vmor %vm628_vm14, %vm617_vm13 }
  0x19   : > { %vm343_vm3 = vmand %vm342_vm2, %vm322_vm1 }
  0x82   : > { %v219_v6 = vpop.permute.xlu0 %218 }
  0x83   : > { %v223_v10 = vperm.slane %v219_v6, %v222_v5 }
  0x85   : > { %v225_v15 = vmul.f32 %v223_v10, %v210_v9  ;;  %v226_v17 = vmul.f32 %v223_v10, %v211_v11  ;;  %v227_v18 = vmul.f32 %v223_v10, %v212_v12  ;;  %v228_v19 = vmul.f32 %v223_v10, %v213_v13 }
  0x86   : > { %v229_v30 = vmul.f32 %v223_v10, %v214_v21 }
  0x8a   : > { %v234_v16 = vpop.permute.xlu0 %233 }
  0x8b   : > { %v238_v20 = vperm.slane %v234_v16, %v222_v5 }
  0x8d   : > { %v240_v22 = vadd.f32 %v238_v20, %v225_v15  ;;  %v241_v23 = vadd.f32 %v238_v20, %v226_v17  ;;  %v242_v24 = vadd.f32 %v238_v20, %v227_v18  ;;  %v243_v25 = vadd.f32 %v238_v20, %v228_v19 }
  0x8e   : > { %v244_v33 = vadd.f32 %v238_v20, %v229_v30 }
  0x8f   : > { %v245_v26 = vmax.f32 %v240_v22, 0.0  ;;  %v246_v27 = vmax.f32 %v241_v23, 0.0  ;;  %v247_v28 = vmax.f32 %v242_v24, 0.0  ;;  %v248_v29 = vmax.f32 %v243_v25, 0.0 }
  0x90   : > { %v249_v34 = vmax.f32 %v244_v33, 0.0 }
  0x91   : > { %255 = vst [vmem:[#allocation1] ss:$2 sm:$0xff] %v245_v26 }
  0x92   : > { %257 = vst [vmem:[#allocation1 + $0x10] ss:$2 sm:$0xff] %v246_v27 }
  0x93   : > { %259 = vst [vmem:[#allocation1 + $0x20] ss:$2 sm:$0xff] %v247_v28 }
  0x94   : > { %261 = vst [vmem:[#allocation1 + $0x30] ss:$2 sm:$0xff] %v248_v29 }
  0x98   : > { %v262_v35 = vld.sshfl [vmem:[#allocation1] sm:$0xff pattern:$0x75316420]  ;;  %v263_v36 = vld.sshfl [vmem:[#allocation1 + $0x8] sm:$0xff pattern:$0x75316420] }
  0x99   : > { %v264_v38 = vld.sshfl [vmem:[#allocation1 + $0x10] sm:$0xff pattern:$0x75316420]  ;;  %v265_v39 = vld.sshfl [vmem:[#allocation1 + $0x18] sm:$0xff pattern:$0x75316420]  ;;  %v281_v40 = vpack.c.bf16 %v263_v36, %v262_v35 }
  0x9a   : > { %v266_v42 = vld.sshfl [vmem:[#allocation1 + $0x20] sm:$0xff pattern:$0x75316420]  ;;  %v267_v43 = vld.sshfl [vmem:[#allocation1 + $0x28] sm:$0xff pattern:$0x75316420]  ;;  %v282_v44 = vpack.c.bf16 %v265_v39, %v264_v38 }
  0x9b   : > { %v268_v45 = vld.sshfl [vmem:[#allocation1 + $0x30] sm:$0xff pattern:$0x75316420]  ;;  %v269_v46 = vld.sshfl [vmem:[#allocation1 + $0x38] sm:$0xff pattern:$0x75316420]  ;;  %v283_v47 = vpack.c.bf16 %v267_v43, %v266_v42 }
  0x9c   : > { %270 = vst [vmem:[#allocation1] ss:$2 sm:$0xff] %v249_v34  ;;  %v284_v48 = vpack.c.bf16 %v269_v46, %v268_v45  ;;  %v291_v49 = vrot.slane %v281_v40, 2  ;;  %v292_v50 = vrot.slane %v282_v44, 4  ;;  %v293_v51 = vrot.slane %v282_v44, 6 }
  0x9d   : > { %v294_v53 = vrot.slane %v283_v47, 2 }
  0x9e   : > { %v295_v54 = vrot.slane %v284_v48, 4  ;;  %v296_v55 = vrot.slane %v284_v48, 6  ;;  %v301_v56 = vsel %vm298_vm0, %v281_v40, %v291_v49  ;;  %v305_v57 = vsel %vm302_vm6, %v292_v50, %v293_v51 }
  0x9f   : > { %v307_v59 = vsel %vm306_vm10, %v301_v56, %v305_v57  ;;  %v310_v60 = vsel %vm298_vm0, %v283_v47, %v294_v53 }
  0xa0   : > { %v313_v61 = vsel %vm302_vm6, %v295_v54, %v296_v55  ;;  %v337_v62 = vsel %vm335_vm15, %v307_v59, %v336_v52 }
  0xa1   : > { %v314_v63 = vsel %vm306_vm10, %v310_v60, %v313_v61  ;;  %338 = vst [vmem:[%s626_s5] sm:$0xff] %v337_v62 }
  0xa2   : > { %v340_v0 = vsel %vm335_vm15, %v314_v63, %v339_v58 }
  0xa3   : > { %v271_v1 = vld.sshfl [vmem:[#allocation1] sm:$0xff pattern:$0x75316420]  ;;  %341 = vst [vmem:[%s626_s5 + $0x8] sm:$0xff] %v340_v0 }
  0xa4   : > { %v285_v2 = vpack.c.bf16 %v271_v1, %v271_v1 }
  0xa6   : > { %v297_v4 = vrot.slane %v285_v2, 2 }
  0xa8   : > { %v317_v5 = vsel %vm298_vm0, %v285_v2, %v297_v4 }
  0xa9   : > { %v345_v6 = vsel %vm343_vm3, %v317_v5, %v344_v3 }
  0xaa   : > { %346 = vst [vmem:[%s626_s5 + $0x10] sm:$0x3] %v345_v6 }
  0xab PF: > { %s13_s16 = sadd.s32 1, %s534_s16   ;;  %s677_s12 = smov %s526_s14 }
  0xac   : > { %p10_p7 = scmp.ge.s32.totalorder %s13_s16, 10   ;;  %s678_s13 = smov %s530_s15 }
  0xad   : > { %s679_s14 = smov %s682_s17  ;;  %s680_s15 = smov %s686_s18 }
  0xae   :  { %12 = sbr.rel (!%p10_p7) target bundleno = 3 (0x3), region = 65 }

// kernel: _forward.16
= control target key start
LH: loop header
LB: loop body
LE: loop exit
PB: predicated region body
PF: predicated region fallthrough
CT: control target
= control target key end

     0   :  { %s4616_s12 = smov 0   ;;  %s4618_s13 = smov 0   ;;  %s5867_s0 = inlined_call_operand.vmem [shape: bf16[2,8,1190], index: 0, kind: input, shape index: {}]   ;;  %s5868_s1 = inlined_call_operand.vmem [shape: bf16[4,4,3,8], index: 1, kind: input, shape index: {}]   ;;  %s5869_s2 = inlined_call_operand.vmem [shape: bf16[2,4,3,1088], index: 2, kind: output, shape index: {0}]   ;;  %s5870_s3 = inlined_call_operand.vmem [shape: f32[2,4,3,2], index: 3, kind: output, shape index: {1}]  }
   0x1   :  { %s4620_s14 = smov 0   ;;  %s4622_s15 = smov 0  }
   0x2   :  { %s4624_s16 = smov 0  }
   0x3 LB: > { %s23_s17 = sadd.s32 1, %s4569_s14  ;;  %s26_s18 = sadd.s32 1, %s4573_s15  ;;  %s4577_s16 = sphi %s4624_s16, %s14_s16   ;;  %s4573_s15 = sphi %s4622_s15, %s5936_s15   ;;  %s4569_s14 = sphi %s4620_s14, %s5935_s14   ;;  %s4565_s13 = sphi %s4618_s13, %s5934_s13   ;;  %s4561_s12 = sphi %s4616_s12, %s5933_s12  }
   0x4   : > { %p24_p0 = scmp.ge.s32.totalorder %s23_s17, 4  ;;  %p4300_p1 = scmp.ge.s32.totalorder %s4577_s16, 1 }
   0x5   : > { %p166_p2 = scmp.lt.s32.totalorder %s4577_s16, 9 }
   0x6   : > { %s5938_s17 = smov (%p24_p0, %s23_s17), 0  ;;  %s5940_s18 = smov (!%p24_p0, %s26_s18), %s4573_s15 }
   0x7   : > { %p167_p3 = pnand %p4300_p1, %p166_p2  ;;  %p28_p4 = scmp.ge.s32.totalorder %s5940_s18, 2 }
   0x8   : > { %p207_p5 = scmp.lt.s32.totalorder (!%p167_p3), %s4565_s13, 1  ;;  %p212_p6 = scmp.lt.s32.totalorder (!%p167_p3), %s4561_s12, 3 }
   0x9   : > { %s5942_s18 = smov (%p28_p4, %s5940_s18), 0  ;;  %170 = sbr.rel (%p167_p3) target bundleno = 2200 (0x898), region = 28 }
   0xa   : > { %p4316_p7 = scmp.ne.s32.totalorder (!%p167_p3), %s4561_s12, 0 }
   0xe   : > { %v235_v0 = vlaneseq  ;;  %s5944_s13 = smov (!%p207_p5, %s4565_s13), 1  ;;  %v4579_v37 = vmov 0  }
   0xf   : > { %s4654_s19 = scalar_select %p212_p6, %s4561_s12, 3 }
  0x10   : > { %v4651_v1 = vand.u32 127, %v235_v0  ;;  %s4479_s20 = smul.u32 40, %s5944_s13  ;;  %s4305_s21 = sshll.u32 %s5944_s13, 2 }
  0x11   : > { %s4478_s22 = sshll.u32 %s4654_s19, 3  ;;  %s4480_s23 = smul.u32 9, %s4654_s19 }
  0x12   : > { %v4659_v2 = vadd.s32 128, %v4651_v1  ;;  %v4662_v3 = vadd.s32 256, %v4651_v1  ;;  %v4665_v4 = vadd.s32 384, %v4651_v1  ;;  %v4668_v5 = vadd.s32 512, %v4651_v1  ;;  %s4687_s26 = scalar_lea.vmem %s5867_s0, %s4479_s20  ;;  %s4692_s29 = scalar_lea.vmem %s5868_s1, %s4478_s22 }
  0x13   : > { %v4673_v6 = vadd.s32 640, %v4651_v1  ;;  %v4676_v7 = vadd.s32 768, %v4651_v1  ;;  %v4679_v8 = vadd.s32 896, %v4651_v1  ;;  %v4682_v9 = vadd.s32 1024, %v4651_v1  ;;  %s4481_s30 = smul.u32 36, %s5944_s13  ;;  %s231_s4 = sadd.s32 %s4305_s21, %s4654_s19 }
  0x14   : > { %v248_v10 = vand.u32 65535, %v4651_v1  ;;  %v249_v11 = vshrl.u32 %v4651_v1, 16  ;;  %v277_v12 = vand.u32 65535, %v4659_v2  ;;  %v278_v13 = vshrl.u32 %v4659_v2, 16  ;;  %s4306_s5 = sshll.u32 %s231_s4, 2  ;;  %s4581_s20 = smov (!%p4316_p7), 127  }
  0x15   : > { %v306_v14 = vand.u32 65535, %v4662_v3  ;;  %v307_v15 = vshrl.u32 %v4662_v3, 16  ;;  %v335_v16 = vand.u32 65535, %v4665_v4  ;;  %v336_v17 = vshrl.u32 %v4665_v4, 16  ;;  %s223_s6 = sadd.s32 %s4481_s30, %s4480_s23  ;;  %s4707_s9 = scalar_lea.vmem %s5870_s3, %s4306_s5 }
  0x16   : > { %v251_v18 = vmul.u32 61681, %v248_v10  ;;  %v252_v19 = vmul.u32 61680, %v248_v10  ;;  %v253_v20 = vmul.u32 61681, %v249_v11  ;;  %v254_v21 = vmul.u32 61680, %v249_v11  ;;  %s4304_s10 = sshll.u32 %s223_s6, 1  ;;  %s4582_s21 = smov (!%p4316_p7), 94  }
  0x17   : > { %v280_v22 = vmul.u32 61681, %v277_v12  ;;  %v281_v23 = vmul.u32 61680, %v277_v12  ;;  %v282_v24 = vmul.u32 61681, %v278_v13  ;;  %v283_v25 = vmul.u32 61680, %v278_v13  ;;  %s4712_s19 = scalar_lea.vmem %s5869_s2, %s4304_s10  ;;  %s4583_s22 = smov (!%p4316_p7), 93  }
  0x18   : > { %v255_v26 = vshll.u32 %v252_v19, 16  ;;  %v256_v27 = vshrl.u32 %v252_v19, 16  ;;  %v257_v28 = vshll.u32 %v253_v20, 16  ;;  %v258_v29 = vshrl.u32 %v253_v20, 16 }
  0x19   : > { %v284_v30 = vshll.u32 %v281_v23, 16  ;;  %v285_v31 = vshrl.u32 %v281_v23, 16  ;;  %v286_v32 = vshll.u32 %v282_v24, 16  ;;  %v287_v33 = vshrl.u32 %v282_v24, 16 }
  0x1a   : > { %vm259_vm0 = vc.u32 %v251_v18, %v255_v26  ;;  %v261_v34 = vadd.s32 %v255_v26, %v251_v18  ;;  %v309_v35 = vmul.u32 61681, %v306_v14  ;;  %v310_v36 = vmul.u32 61680, %v306_v14 }
  0x1b   : > { %v260_v38 = vsel %vm259_vm0, 1, %v4579_v37  ;;  %vm288_vm1 = vc.u32 %v280_v22, %v284_v30  ;;  %v290_v39 = vadd.s32 %v284_v30, %v280_v22  ;;  %v311_v40 = vmul.u32 61681, %v307_v15 }
  0x1c   : > { %v262_v41 = vadd.s32 %v260_v38, %v254_v21  ;;  %vm263_vm2 = vc.u32 %v261_v34, %v257_v28  ;;  %v289_v42 = vsel %vm288_vm1, 1, %v4579_v37  ;;  %v312_v43 = vmul.u32 61680, %v307_v15 }
  0x1d   : > { %v264_v44 = vsel %vm263_vm2, 1, %v4579_v37  ;;  %v291_v45 = vadd.s32 %v289_v42, %v283_v25  ;;  %vm292_vm3 = vc.u32 %v290_v39, %v286_v32  ;;  %v313_v46 = vshll.u32 %v310_v36, 16 }
  0x1e   : > { %v266_v47 = vadd.s32 %v264_v44, %v262_v41  ;;  %v293_v48 = vsel %vm292_vm3, 1, %v4579_v37  ;;  %v314_v49 = vshrl.u32 %v310_v36, 16  ;;  %v315_v50 = vshll.u32 %v311_v40, 16 }
  0x1f   : > { %v295_v51 = vadd.s32 %v293_v48, %v291_v45  ;;  %v316_v52 = vshrl.u32 %v311_v40, 16  ;;  %vm317_vm4 = vc.u32 %v309_v35, %v313_v46  ;;  %v319_v53 = vadd.s32 %v313_v46, %v309_v35 }
  0x20   : > { %v267_v54 = vadd.s32 %v266_v47, %v256_v27  ;;  %v318_v55 = vsel %vm317_vm4, 1, %v4579_v37  ;;  %v338_v56 = vmul.u32 61681, %v335_v16  ;;  %v339_v57 = vmul.u32 61680, %v335_v16 }
  0x21   : > { %v296_v58 = vadd.s32 %v295_v51, %v285_v31  ;;  %v320_v59 = vadd.s32 %v318_v55, %v312_v43  ;;  %vm321_vm5 = vc.u32 %v319_v53, %v315_v50  ;;  %v340_v60 = vmul.u32 61681, %v336_v17 }
  0x22   : > { %v268_v61 = vadd.s32 %v267_v54, %v258_v29  ;;  %v322_v62 = vsel %vm321_vm5, 1, %v4579_v37  ;;  %v341_v63 = vmul.u32 61680, %v336_v17  ;;  %v342_v0 = vshll.u32 %v339_v57, 16 }
  0x23   : > { %v297_v10 = vadd.s32 %v296_v58, %v287_v33  ;;  %v324_v11 = vadd.s32 %v322_v62, %v320_v59  ;;  %v343_v12 = vshrl.u32 %v339_v57, 16  ;;  %v344_v13 = vshll.u32 %v340_v60, 16 }
  0x24   : > { %v269_v14 = vshrl.u32 %v268_v61, 5  ;;  %v345_v15 = vshrl.u32 %v340_v60, 16  ;;  %vm346_vm6 = vc.u32 %v338_v56, %v342_v0  ;;  %v348_v18 = vadd.s32 %v342_v0, %v338_v56 }
  0x25   : > { %v298_v19 = vshrl.u32 %v297_v10, 5  ;;  %v325_v20 = vadd.s32 %v324_v11, %v314_v49  ;;  %v347_v16 = vsel %vm346_vm6, 1, %v4579_v37  ;;  %v364_v21 = vand.u32 65535, %v4668_v5 }
  0x26   : > { %v270_v22 = vmul.u32 34, %v269_v14  ;;  %v349_v23 = vadd.s32 %v347_v16, %v341_v63  ;;  %vm350_vm7 = vc.u32 %v348_v18, %v344_v13  ;;  %v365_v17 = vshrl.u32 %v4668_v5, 16 }
  0x27   : > { %v299_v24 = vmul.u32 34, %v298_v19  ;;  %v326_v25 = vadd.s32 %v325_v20, %v316_v52  ;;  %v351_v26 = vsel %vm350_vm7, 1, %v4579_v37  ;;  %v367_v27 = vmul.u32 61681, %v364_v21 }
  0x28   : > { %v4725_v28 = vsub.s32 %v4651_v1, %v270_v22  ;;  %v353_v29 = vadd.s32 %v351_v26, %v349_v23  ;;  %v368_v30 = vmul.u32 61680, %v364_v21  ;;  %v369_v31 = vmul.u32 61681, %v365_v17 }
  0x29   : > { %v4728_v32 = vsub.s32 %v4659_v2, %v299_v24  ;;  %v327_v33 = vshrl.u32 %v326_v25, 5  ;;  %v370_v34 = vmul.u32 61680, %v365_v17  ;;  %v393_v35 = vand.u32 65535, %v4673_v6 }
  0x2a   : > { %v354_v36 = vadd.s32 %v353_v29, %v343_v12  ;;  %v371_v38 = vshll.u32 %v368_v30, 16  ;;  %v372_v39 = vshrl.u32 %v368_v30, 16  ;;  %v373_v40 = vshll.u32 %v369_v31, 16 }
  0x2b   : > { %v328_v41 = vmul.u32 34, %v327_v33  ;;  %v374_v42 = vshrl.u32 %v369_v31, 16  ;;  %v394_v43 = vshrl.u32 %v4673_v6, 16  ;;  %v396_v1 = vmul.u32 61681, %v393_v35 }
  0x2c   : > { %v355_v44 = vadd.s32 %v354_v36, %v345_v15  ;;  %vm375_vm8 = vc.u32 %v367_v27, %v371_v38  ;;  %v377_v45 = vadd.s32 %v371_v38, %v367_v27  ;;  %v397_v46 = vmul.u32 61680, %v393_v35 }
  0x2d   : > { %v4733_v2 = vsub.s32 %v4662_v3, %v328_v41  ;;  %v376_v47 = vsel %vm375_vm8, 1, %v4579_v37  ;;  %v398_v48 = vmul.u32 61681, %v394_v43  ;;  %v399_v49 = vmul.u32 61680, %v394_v43 }
  0x2e   : > { %v356_v50 = vshrl.u32 %v355_v44, 5  ;;  %v378_v51 = vadd.s32 %v376_v47, %v370_v34  ;;  %vm379_vm9 = vc.u32 %v377_v45, %v373_v40  ;;  %v400_v52 = vshll.u32 %v397_v46, 16 }
  0x2f   : > { %v380_v53 = vsel %vm379_vm9, 1, %v4579_v37  ;;  %v401_v54 = vshrl.u32 %v397_v46, 16  ;;  %v402_v55 = vshll.u32 %v398_v48, 16  ;;  %v403_v56 = vshrl.u32 %v398_v48, 16 }
  0x30   : > { %v357_v57 = vmul.u32 34, %v356_v50  ;;  %v382_v58 = vadd.s32 %v380_v53, %v378_v51  ;;  %vm404_vm10 = vc.u32 %v396_v1, %v400_v52  ;;  %v406_v59 = vadd.s32 %v400_v52, %v396_v1 }
  0x31   : > { %v405_v3 = vsel %vm404_vm10, 1, %v4579_v37  ;;  %v422_v60 = vand.u32 65535, %v4676_v7  ;;  %v423_v61 = vshrl.u32 %v4676_v7, 16  ;;  %v451_v62 = vand.u32 65535, %v4679_v8 }
  0x32   : > { %v4742_v63 = vsub.s32 %v4665_v4, %v357_v57  ;;  %v383_v0 = vadd.s32 %v382_v58, %v372_v39  ;;  %v407_v10 = vadd.s32 %v405_v3, %v399_v49  ;;  %vm408_vm11 = vc.u32 %v406_v59, %v402_v55 }
  0x33   : > { %v409_v11 = vsel %vm408_vm11, 1, %v4579_v37  ;;  %v425_v12 = vmul.u32 61681, %v422_v60  ;;  %v426_v13 = vmul.u32 61680, %v422_v60  ;;  %v427_v14 = vmul.u32 61681, %v423_v61 }
  0x34   : > { %v384_v15 = vadd.s32 %v383_v0, %v374_v42  ;;  %v411_v18 = vadd.s32 %v409_v11, %v407_v10  ;;  %v428_v19 = vmul.u32 61680, %v423_v61  ;;  %v452_v20 = vshrl.u32 %v4679_v8, 16 }
  0x35   : > { %v429_v16 = vshll.u32 %v426_v13, 16  ;;  %v430_v21 = vshrl.u32 %v426_v13, 16  ;;  %v431_v22 = vshll.u32 %v427_v14, 16  ;;  %v432_v23 = vshrl.u32 %v427_v14, 16 }
  0x36   : > { %v385_v17 = vshrl.u32 %v384_v15, 5  ;;  %v412_v4 = vadd.s32 %v411_v18, %v401_v54  ;;  %v454_v24 = vmul.u32 61681, %v451_v62  ;;  %v455_v25 = vmul.u32 61680, %v451_v62 }
  0x37   : > { %vm433_vm12 = vc.u32 %v425_v12, %v429_v16  ;;  %v435_v26 = vadd.s32 %v429_v16, %v425_v12  ;;  %v456_v27 = vmul.u32 61681, %v452_v20  ;;  %v457_v29 = vmul.u32 61680, %v452_v20 }
  0x38   : > { %v386_v30 = vmul.u32 34, %v385_v17  ;;  %v413_v31 = vadd.s32 %v412_v4, %v403_v56  ;;  %v434_v33 = vsel %vm433_vm12, 1, %v4579_v37  ;;  %v458_v34 = vshll.u32 %v455_v25, 16 }
  0x39   : > { %v436_v35 = vadd.s32 %v434_v33, %v428_v19  ;;  %vm437_vm13 = vc.u32 %v435_v26, %v431_v22  ;;  %v459_v36 = vshrl.u32 %v455_v25, 16  ;;  %v460_v38 = vshll.u32 %v456_v27, 16 }
  0x3a   : > { %v4748_v39 = vsub.s32 %v4668_v5, %v386_v30  ;;  %v414_v40 = vshrl.u32 %v413_v31, 5  ;;  %v438_v41 = vsel %vm437_vm13, 1, %v4579_v37  ;;  %v461_v42 = vshrl.u32 %v456_v27, 16 }
  0x3b   : > { %v440_v43 = vadd.s32 %v438_v41, %v436_v35  ;;  %vm462_vm14 = vc.u32 %v454_v24, %v458_v34  ;;  %v464_v1 = vadd.s32 %v458_v34, %v454_v24  ;;  %v480_v44 = vand.u32 65535, %v4682_v9 }
  0x3c   : > { %v415_v45 = vmul.u32 34, %v414_v40  ;;  %v463_v46 = vsel %vm462_vm14, 1, %v4579_v37  ;;  %v481_v47 = vshrl.u32 %v4682_v9, 16  ;;  %vm506_vm15 = vcmp.ne.s32.totalorder %v4725_v28, 0 }
  0x3d   : > { %v441_v48 = vadd.s32 %v440_v43, %v430_v21  ;;  %v465_v49 = vadd.s32 %v463_v46, %v457_v29  ;;  %vm466_vm0 = vc.u32 %v464_v1, %v460_v38  ;;  %v483_v5 = vmul.u32 61681, %v480_v44 }
  0x3e   : > { %v4756_v50 = vsub.s32 %v4673_v6, %v415_v45  ;;  %v467_v51 = vsel %vm466_vm0, 1, %v4579_v37  ;;  %v484_v52 = vmul.u32 61680, %v480_v44  ;;  %v485_v53 = vmul.u32 61681, %v481_v47 }
  0x3f   : > { %v442_v54 = vadd.s32 %v441_v48, %v432_v23  ;;  %v469_v55 = vadd.s32 %v467_v51, %v465_v49  ;;  %v486_v56 = vmul.u32 61680, %v481_v47  ;;  %vm507_vm1 = vcmp.ne.s32.totalorder %v4728_v32, 0 }
  0x40   : > { %v487_v57 = vshll.u32 %v484_v52, 16  ;;  %v488_v58 = vshrl.u32 %v484_v52, 16  ;;  %v489_v59 = vshll.u32 %v485_v53, 16  ;;  %v490_v3 = vshrl.u32 %v485_v53, 16 }
  0x41   : > { %v443_v60 = vshrl.u32 %v442_v54, 5  ;;  %v470_v61 = vadd.s32 %v469_v55, %v459_v36  ;;  %vm508_vm2 = vcmp.ne.s32.totalorder %v4733_v2, 0  ;;  %vm509_vm3 = vcmp.ne.s32.totalorder %v4742_v63, 0 }
  0x42   : > { %vm491_vm4 = vc.u32 %v483_v5, %v487_v57  ;;  %v493_v6 = vadd.s32 %v487_v57, %v483_v5  ;;  %vm510_vm5 = vcmp.ne.s32.totalorder %v4748_v39, 0  ;;  %vm511_vm6 = vcmp.ne.s32.totalorder %v4756_v50, 0 }
  0x43   : > { %v444_v62 = vmul.u32 34, %v443_v60  ;;  %v471_v0 = vadd.s32 %v470_v61, %v461_v42  ;;  %v492_v10 = vsel %vm491_vm4, 1, %v4579_v37  ;;  %vm515_vm7 = vcmp.lt.s32.totalorder %v4725_v28, 0 }
  0x44   : > { %v494_v11 = vadd.s32 %v492_v10, %v486_v56  ;;  %vm495_vm8 = vc.u32 %v493_v6, %v489_v59  ;;  %vm516_vm9 = vcmp.lt.s32.totalorder %v4728_v32, 0  ;;  %vm517_vm10 = vcmp.lt.s32.totalorder %v4733_v2, 0  ;;  %vm4770_vm11 = vmand %vm515_vm7, %vm506_vm15 }
  0x45   : > { %v445_v13 = vsub.s32 %v4676_v7, %v444_v62  ;;  %v472_v14 = vshrl.u32 %v471_v0, 5  ;;  %v496_v15 = vsel %vm495_vm8, 1, %v4579_v37  ;;  %vm518_vm12 = vcmp.lt.s32.totalorder %v4742_v63, 0  ;;  %vm4779_vm13 = vmand %vm516_vm9, %vm507_vm1 }
  0x46   : > { %v498_v19 = vadd.s32 %v496_v15, %v494_v11  ;;  %vm519_vm14 = vcmp.lt.s32.totalorder %v4748_v39, 0  ;;  %vm520_vm15 = vcmp.lt.s32.totalorder %v4756_v50, 0  ;;  %vm4787_vm0 = vmand %vm517_vm10, %vm508_vm2  ;;  %v533_v37 = vadd.s32 34, %v4725_v28 }
  0x47   : > { %v473_v20 = vmul.u32 34, %v472_v14  ;;  %vm512_vm4 = vcmp.ne.s32.totalorder %v445_v13, 0  ;;  %vm521_vm7 = vcmp.lt.s32.totalorder %v445_v13, 0  ;;  %vm4794_vm1 = vmand %vm518_vm12, %vm509_vm3  ;;  %v534_v21 = vadd.s32 34, %v4728_v32 }
  0x48   : > { %v499_v22 = vadd.s32 %v498_v19, %v488_v58  ;;  %vm4801_vm2 = vmand %vm519_vm14, %vm510_vm5  ;;  %v535_v17 = vadd.s32 34, %v4733_v2  ;;  %v536_v4 = vadd.s32 34, %v4742_v63  ;;  %v537_v24 = vadd.s32 34, %v4748_v39 }
  0x49   : > { %v474_v25 = vsub.s32 %v4679_v8, %v473_v20  ;;  %vm4811_vm3 = vmand %vm520_vm15, %vm511_vm6  ;;  %v538_v27 = vadd.s32 34, %v4756_v50  ;;  %v539_v29 = vadd.s32 34, %v445_v13  ;;  %v542_v30 = vsel %vm4770_vm11, %v533_v37, %v4725_v28 }
  0x4a   : > { %v500_v31 = vadd.s32 %v499_v22, %v490_v3  ;;  %vm4820_vm5 = vmand %vm521_vm7, %vm512_vm4  ;;  %v543_v8 = vsel %vm4779_vm13, %v534_v21, %v4728_v32  ;;  %v544_v34 = vsel %vm4787_vm0, %v535_v17, %v4733_v2  ;;  %v545_v35 = vsel %vm4794_vm1, %v536_v4, %v4742_v63 }
  0x4b   : > { %vm513_vm6 = vcmp.ne.s32.totalorder %v474_v25, 0  ;;  %vm522_vm8 = vcmp.lt.s32.totalorder %v474_v25, 0  ;;  %v540_v28 = vadd.s32 34, %v474_v25  ;;  %v546_v36 = vsel %vm4801_vm2, %v537_v24, %v4748_v39 }
  0x4c   : > { %v501_v38 = vshrl.u32 %v500_v31, 5  ;;  %vm531_vm9 = vmand %vm522_vm8, %vm513_vm6  ;;  %v547_v32 = vsel %vm4811_vm3, %v538_v27, %v4756_v50  ;;  %v548_v2 = vsel %vm4820_vm5, %v539_v29, %v445_v13  ;;  %vm551_vm10 = vcmp.lt.s32.totalorder %v542_v30, 32 }
  0x4d   : > { %v549_v40 = vsel %vm531_vm9, %v540_v28, %v474_v25  ;;  %vm552_vm11 = vcmp.lt.s32.totalorder %v543_v8, 32  ;;  %vm553_vm12 = vcmp.lt.s32.totalorder %v544_v34, 32  ;;  %vm554_vm13 = vcmp.lt.s32.totalorder %v545_v35, 32 }
  0x4e   : > { %v502_v63 = vmul.u32 34, %v501_v38  ;;  %vm555_vm14 = vcmp.lt.s32.totalorder %v546_v36, 32  ;;  %vm556_vm15 = vcmp.lt.s32.totalorder %v547_v32, 32  ;;  %vm557_vm0 = vcmp.lt.s32.totalorder %v548_v2, 32 }
  0x4f   : > { %vm558_vm4 = vcmp.lt.s32.totalorder %v549_v40, 32  ;;  %v4580_v41 = vmov 0.0  }
  0x50   : > { %v503_v39 = vsub.s32 %v4682_v9, %v502_v63  ;;  %v4842_v42 = vsel %vm551_vm10, 1.0, %v4580_v41  ;;  %v4844_v43 = vsel %vm552_vm11, 1.0, %v4580_v41  ;;  %v4846_v1 = vsel %vm553_vm12, 1.0, %v4580_v41 }
  0x51   : > { %v4848_v44 = vsel %vm554_vm13, 1.0, %v4580_v41  ;;  %v4850_v45 = vsel %vm555_vm14, 1.0, %v4580_v41  ;;  %v4852_v46 = vsel %vm556_vm15, 1.0, %v4580_v41  ;;  %v4854_v47 = vsel %vm557_vm0, 1.0, %v4580_v41 }
  0x52   : > { %vm514_vm7 = vcmp.ne.s32.totalorder %v503_v39, 0  ;;  %vm523_vm1 = vcmp.lt.s32.totalorder %v503_v39, 0  ;;  %v541_v48 = vadd.s32 34, %v503_v39  ;;  %v4856_v49 = vsel %vm558_vm4, 1.0, %v4580_v41  ;;  %581 = sbr.rel (%p4316_p7) target bundleno = 610 (0x262), region = 32 }
  0x53   : > { %vm532_vm2 = vmand %vm523_vm1, %vm514_vm7 }
  0x54   : > { %v550_v9 = vsel %vm532_vm2, %v541_v48, %v503_v39 }
  0x55   : > { %vm559_vm3 = vcmp.lt.s32.totalorder %v550_v9, 32 }
  0x56   : > { %v4858_v5 = vsel %vm559_vm3, 1.0, %v4580_v41 }
  0x57   : > { %v583_v50 = vld [vmem:[%s4687_s26 + $0x8] sm:$0xff]  ;;  %v582_v51 = vld [vmem:[%s4687_s26] sm:$0xff]  ;;  %v584_v54 = vld [vmem:[%s4687_s26 + $0x10] sm:$0xff]  ;;  %vm631_vm5 = vcmask 1039360   ;;  %vm644_vm6 = vcmask 1043456   ;;  %vm640_vm8 = vcmask 64512  }
  0x58   : > { %v597_v52 = vunpack.c.l.b16 %v583_v50  ;;  %v595_v53 = vunpack.c.l.b16 %v582_v51  ;;  %v599_v55 = vunpack.c.l.b16 %v584_v54  ;;  %v598_v59 = vunpack.c.h.b16 %v583_v50  ;;  %v585_v60 = vld [vmem:[%s4687_s26 + $0x18] sm:$0xff]  ;;  %v586_v10 = vld [vmem:[%s4687_s26 + $0x20] sm:$0xf] }
  0x59   : > { %v596_v3 = vunpack.c.h.b16 %v582_v51  ;;  %v601_v61 = vunpack.c.l.b16 %v585_v60  ;;  %v602_v11 = vunpack.c.h.b16 %v585_v60  ;;  %v600_v12 = vunpack.c.h.b16 %v584_v54  ;;  %v4317_v29 = vld [vmem:[%s4692_s29 + $0x2] sm:$0x3] }
  0x5a   : > { %v4864_v56 = vpack.c.b16 %v597_v52, %v597_v52  ;;  %v4866_v57 = vpack.c.b16 %v595_v53, %v595_v53  ;;  %v4868_v58 = vpack.c.b16 %v599_v55, %v599_v55  ;;  %v4874_v6 = vpack.c.b16 %v598_v59, %v598_v59 }
  0x5b   : > { %v4876_v62 = vpack.c.b16 %v596_v3, %v596_v3  ;;  %v4878_v0 = vpack.c.b16 %v601_v61, %v601_v61  ;;  %v603_v13 = vunpack.c.l.b16 %v586_v10  ;;  %v4884_v14 = vpack.c.b16 %v602_v11, %v602_v11 }
  0x5c   : > { %617 = vrot.lane.b32.xlu0 %v4864_v56, %s4581_s20  ;;  %613 = vrot.lane.b32.xlu1 %v4866_v57, %s4581_s20  ;;  %v4886_v15 = vpack.c.b16 %v600_v12, %v600_v12  ;;  %v799_v39 = vsel %vm644_vm6, %v4864_v56, 0  ;;  %v793_v41 = vsel %vm644_vm6, %v4866_v57, 0  ;;  %v802_v9 = vsel %vm644_vm6, %v4874_v6, 0 }
  0x5d   : > { %621 = vrot.lane.b32.xlu2 %v4868_v58, %s4581_s20  ;;  %v4888_v18 = vpack.c.b16 %v603_v13, %v603_v13  ;;  %v796_v34 = vsel %vm644_vm6, %v4876_v62, 0  ;;  %v811_v50 = vsel %vm644_vm6, %v4878_v0, 0  ;;  %v805_v51 = vsel %vm644_vm6, %v4868_v58, 0 }
  0x5e   : > { %v808_v48 = vsel %vm644_vm6, %v4886_v15, 0  ;;  %vm956_vm9 = vcmask 769024   ;;  %v814_v3 = vsel %vm644_vm6, %v4884_v14, 0  ;;  %vm1141_vm10 = vcmask 760832  }
  0x5f   : > { %v817_v60 = vsel %vm644_vm6, %v4888_v18, 0  ;;  %vm1404_vm11 = vsmask.f32 1280  ;;  %vm1406_vm12 = vcmask 1043458   ;;  %vm1407_vm13 = vsmask.f32 3328 }
  0x60   : > { %vm1381_vm14 = vcmask 1041408   ;;  %vm1315_vm15 = vcmask 1042432   ;;  %vm1385_vm0 = vcmask 1045508   ;;  %vm1411_vm4 = vsmask.f32 5376  ;;  %vm5045_vm1 = vmand %vm1406_vm12, %vm1407_vm13 }
  0x61   : > { %vm5039_vm7 = vmand %vm1381_vm14, %vm1404_vm11  ;;  %vm1424_vm13 = vcmask 517120  }
  0x62   : > { %vm5052_vm2 = vmand %vm1385_vm0, %vm1411_vm4  ;;  %vm1331_vm4 = vcmask 518144  }
  0x63   : > { %vm1409_vm3 = vmor %vm5045_vm1, %vm5039_vm7 }
  0x64   : > { %619 = vrot.lane.b32.xlu0 %v4874_v6, %s4581_s20  ;;  %615 = vrot.lane.b32.xlu1 %v4876_v62, %s4581_s20  ;;  %vm5117_vm7 = vmand %vm1424_vm13, %vm1404_vm11  ;;  %vm1431_vm11 = vcmask 10240  }
  0x65   : > { %625 = vrot.lane.b32.xlu2 %v4878_v0, %s4581_s20 }
  0x6c   : > { %627 = vrot.lane.b32.xlu0 %v4884_v14, %s4581_s20  ;;  %623 = vrot.lane.b32.xlu1 %v4886_v15, %s4581_s20 }
  0x6d   : > { %629 = vrot.lane.b32.xlu2 %v4888_v18, %s4581_s20 }
  0x74   : > { %938 = vrot.lane.b32.xlu0 %v4866_v57, %s4582_s21  ;;  %940 = vrot.lane.b32.xlu1 %v4876_v62, %s4582_s21 }
  0x75   : > { %942 = vrot.lane.b32.xlu2 %v4864_v56, %s4582_s21 }
  0x7c   : > { %946 = vrot.lane.b32.xlu0 %v4868_v58, %s4582_s21  ;;  %948 = vrot.lane.b32.xlu1 %v4886_v15, %s4582_s21 }
  0x7d   : > { %944 = vrot.lane.b32.xlu2 %v4874_v6, %s4582_s21 }
  0x84   : > { %950 = vrot.lane.b32.xlu0 %v4878_v0, %s4582_s21  ;;  %954 = vrot.lane.b32.xlu1 %v4888_v18, %s4582_s21 }
  0x85   : > { %952 = vrot.lane.b32.xlu2 %v4884_v14, %s4582_s21 }
  0x8c   : > { %1125 = vrot.lane.b32.xlu1 %v4876_v62, %s4583_s22  ;;  %1123 = vrot.lane.b32.xlu0 %v4866_v57, %s4583_s22  ;;  %v587_v57 = vld [vmem:[%s4692_s29] sm:$0x3] }
  0x8d   : > { %1129 = vrot.lane.b32.xlu2 %v4874_v6, %s4583_s22 }
  0x94   : > { %1127 = vrot.lane.b32.xlu1 %v4864_v56, %s4583_s22  ;;  %1131 = vrot.lane.b32.xlu0 %v4868_v58, %s4583_s22 }
  0x95   : > { %1133 = vrot.lane.b32.xlu2 %v4886_v15, %s4583_s22 }
  0x9c   : > { %1137 = vrot.lane.b32.xlu0 %v4884_v14, %s4583_s22  ;;  %1139 = vrot.lane.b32.xlu1 %v4888_v18, %s4583_s22 }
  0x9d   : > { %1135 = vrot.lane.b32.xlu2 %v4878_v0, %s4583_s22 }
  0xb7   : > { %v622_v19 = vpop.permute.xlu2 %621 }
  0xbf   : > { %v626_v20 = vpop.permute.xlu2 %625 }
  0xc7   : > { %v630_v30 = vpop.permute.xlu2 %629 }
  0xc8   : > { %v670_v31 = vsel %vm644_vm6, %v630_v30, 0 }
  0xce   : > { %v618_v7 = vpop.permute.xlu0 %617  ;;  %v614_v37 = vpop.permute.xlu1 %613 }
  0xcf   : > { %v943_v54 = vpop.permute.xlu2 %942 }
  0xd6   : > { %v620_v16 = vpop.permute.xlu0 %619  ;;  %v616_v21 = vpop.permute.xlu1 %615 }
  0xd7   : > { %v632_v22 = vsel %vm631_vm5, %v614_v37, %v616_v21  ;;  %v633_v23 = vsel %vm631_vm5, %v616_v21, %v618_v7  ;;  %v634_v17 = vsel %vm631_vm5, %v618_v7, %v620_v16  ;;  %v635_v4 = vsel %vm631_vm5, %v620_v16, %v622_v19  ;;  %v945_v62 = vpop.permute.xlu2 %944 }
  0xd8   : > { %v646_v24 = vsel %vm644_vm6, %v632_v22, 0  ;;  %v649_v25 = vsel %vm644_vm6, %v633_v23, 0  ;;  %v652_v26 = vsel %vm644_vm6, %v634_v17, 0  ;;  %v655_v27 = vsel %vm644_vm6, %v635_v4, 0  ;;  %v4336_v17 = vld [vmem:[%s4692_s29 + $0x4] sm:$0x3] }
  0xd9   : > { %679 = vmatpush.bf16.msra.mxu0 %v646_v24  ;;  %692 = vmatpush.bf16.msra.mxu1 %v649_v25  ;;  %v959_v10 = vsel %vm956_vm9, %v943_v54, %v945_v62 }
  0xda   : > { %705 = vmatpush.bf16.msra.mxu2 %v652_v26  ;;  %718 = vmatpush.bf16.msra.mxu3 %v655_v27  ;;  %v975_v14 = vsel %vm644_vm6, %v959_v10, 0 }
  0xdc   : > { %4318 = vmatmul.msk.bf16.vlgmr.msra.gmra.mxu0 %vm640_vm8, %v4317_v29  ;;  %4319 = vmatmul.msk.bf16.vlgmr.msra.gmra.mxu1 %vm640_vm8, %v4317_v29 }
  0xdd   : > { %4320 = vmatmul.msk.bf16.vlgmr.msra.gmra.mxu2 %vm640_vm8, %v4317_v29  ;;  %4321 = vmatmul.msk.bf16.vlgmr.msra.gmra.mxu3 %vm640_vm8, %v4317_v29 }
  0xde   : > { %v628_v33 = vpop.permute.xlu0 %627  ;;  %v624_v8 = vpop.permute.xlu1 %623 }
  0xdf   : > { %v636_v35 = vsel %vm631_vm5, %v622_v19, %v624_v8  ;;  %v637_v28 = vsel %vm631_vm5, %v624_v8, %v626_v20  ;;  %v638_v36 = vsel %vm631_vm5, %v626_v20, %v628_v33  ;;  %v639_v38 = vsel %vm631_vm5, %v628_v33, %v630_v30  ;;  %v953_v37 = vpop.permute.xlu2 %952 }
  0xe0   : > { %v658_v32 = vsel %vm644_vm6, %v636_v35, 0  ;;  %v661_v2 = vsel %vm644_vm6, %v637_v28, 0  ;;  %v664_v40 = vsel %vm644_vm6, %v638_v36, 0  ;;  %v667_v63 = vsel %vm644_vm6, %v639_v38, 0 }
  0xe1   : > { %731 = vmatpush.bf16.msrb.mxu0 %v658_v32  ;;  %744 = vmatpush.bf16.msrb.mxu1 %v661_v2  ;;  %vm1414_vm5 = vcmask 1047558  }
  0xe2   : > { %757 = vmatpush.bf16.msrb.mxu2 %v664_v40  ;;  %770 = vmatpush.bf16.msrb.mxu3 %v667_v63 }
  0xe5   : > { %783 = vmatpush.bf16.msra.mxu0 %v670_v31  ;;  %826 = vmatpush.bf16.msra.mxu1 %v793_v41 }
  0xe6   : > { %839 = vmatpush.bf16.msra.mxu2 %v796_v34  ;;  %852 = vmatpush.bf16.msra.mxu3 %v799_v39  ;;  %v939_v52 = vpop.permute.xlu0 %938  ;;  %v941_v53 = vpop.permute.xlu1 %940 }
  0xe7   : > { %v957_v55 = vsel %vm956_vm9, %v939_v52, %v941_v53  ;;  %v958_v56 = vsel %vm956_vm9, %v941_v53, %v943_v54  ;;  %v1130_v27 = vpop.permute.xlu2 %1129 }
  0xe8   : > { %v969_v59 = vsel %vm644_vm6, %v957_v55, 0  ;;  %v972_v58 = vsel %vm644_vm6, %v958_v56, 0 }
  0xec   : > { %4322 = vmatmul.msk.bf16.vlgmr.msrb.gmra.mxu0 %vm640_vm8, %v4317_v29  ;;  %4323 = vmatmul.msk.bf16.vlgmr.msrb.gmra.mxu1 %vm640_vm8, %v4317_v29 }
  0xed   : > { %4324 = vmatmul.msk.bf16.vlgmr.msrb.gmra.mxu2 %vm640_vm8, %v4317_v29  ;;  %4325 = vmatmul.msk.bf16.vlgmr.msrb.gmra.mxu3 %vm640_vm8, %v4317_v29 }
  0xee   : > { %891 = vmatpush.bf16.msrb.mxu2 %v808_v48  ;;  %865 = vmatpush.bf16.msrb.mxu0 %v802_v9  ;;  %v947_v61 = vpop.permute.xlu0 %946  ;;  %v949_v6 = vpop.permute.xlu1 %948  ;;  %v4346_v9 = vld [vmem:[%s4692_s29 + $0x6] sm:$0x3] }
  0xef   : > { %904 = vmatpush.bf16.msrb.mxu3 %v811_v50  ;;  %878 = vmatpush.bf16.msrb.mxu1 %v805_v51  ;;  %v960_v11 = vsel %vm956_vm9, %v945_v62, %v947_v61  ;;  %v961_v12 = vsel %vm956_vm9, %v947_v61, %v949_v6  ;;  %v1134_v8 = vpop.permute.xlu2 %1133 }
  0xf0   : > { %v978_v15 = vsel %vm644_vm6, %v960_v11, 0  ;;  %v981_v18 = vsel %vm644_vm6, %v961_v12, 0 }
  0xf6   : > { %v951_v0 = vpop.permute.xlu0 %950  ;;  %v955_v7 = vpop.permute.xlu1 %954 }
  0xf7   : > { %v962_v13 = vsel %vm956_vm9, %v949_v6, %v951_v0  ;;  %v963_v16 = vsel %vm956_vm9, %v951_v0, %v953_v37  ;;  %v964_v22 = vsel %vm956_vm9, %v953_v37, %v955_v7  ;;  %v993_v24 = vsel %vm644_vm6, %v955_v7, 0  ;;  %v1136_v2 = vpop.permute.xlu2 %1135  ;;  %vm5071_vm9 = vmor %vm5052_vm2, %vm1409_vm3 }
  0xf8   : > { %v984_v19 = vsel %vm644_vm6, %v962_v13, 0  ;;  %v987_v4 = vsel %vm644_vm6, %v963_v16, 0  ;;  %v990_v25 = vsel %vm644_vm6, %v964_v22, 0  ;;  %v1147_v39 = vsel %vm1141_vm10, %v1134_v8, %v1136_v2 }
  0xf9   : > { %v1169_v50 = vsel %vm644_vm6, %v1147_v39, 0 }
  0xfc   : > { %4326 = vmatmul.msk.bf16.vlgmr.msra.gmra.mxu0 %vm640_vm8, %v4317_v29  ;;  %4327 = vmatmul.msk.bf16.vlgmr.msra.gmra.mxu1 %vm640_vm8, %v587_v57 }
  0xfd   : > { %4328 = vmatmul.msk.bf16.vlgmr.msra.gmra.mxu2 %vm640_vm8, %v587_v57  ;;  %4329 = vmatmul.msk.bf16.vlgmr.msra.gmra.mxu3 %vm640_vm8, %v587_v57 }
  0xfe   : > { %1002 = vmatpush.bf16.msra.mxu2 %v969_v59  ;;  %1015 = vmatpush.bf16.msra.mxu3 %v972_v58  ;;  %v1124_v20 = vpop.permute.xlu0 %1123  ;;  %v1126_v21 = vpop.permute.xlu1 %1125 }
  0xff   : > { %917 = vmatpush.bf16.msra.mxu0 %v814_v3  ;;  %930 = vmatpush.bf16.msra.mxu1 %v817_v60  ;;  %v1142_v23 = vsel %vm1141_vm10, %v1124_v20, %v1126_v21 }
 0x100   : > { %v1154_v26 = vsel %vm644_vm6, %v1142_v23, 0 }
 0x106   : > { %v1128_v29 = vpop.permute.xlu1 %1127  ;;  %v1132_v30 = vpop.permute.xlu0 %1131 }
 0x107   : > { %v1143_v31 = vsel %vm1141_vm10, %v1126_v21, %v1128_v29  ;;  %v1144_v33 = vsel %vm1141_vm10, %v1128_v29, %v1130_v27  ;;  %v1145_v34 = vsel %vm1141_vm10, %v1130_v27, %v1132_v30  ;;  %v1146_v35 = vsel %vm1141_vm10, %v1132_v30, %v1134_v8 }
 0x108   : > { %v1157_v28 = vsel %vm644_vm6, %v1143_v31, 0  ;;  %v1160_v36 = vsel %vm644_vm6, %v1144_v33, 0  ;;  %v1163_v38 = vsel %vm644_vm6, %v1145_v34, 0  ;;  %v1166_v32 = vsel %vm644_vm6, %v1146_v35, 0 }
 0x10c   : > { %4330 = vmatmul.msk.bf16.vlgmr.msrb.gmra.mxu0 %vm640_vm8, %v587_v57  ;;  %4331 = vmatmul.msk.bf16.vlgmr.msrb.gmra.mxu1 %vm640_vm8, %v587_v57 }
 0x10d   : > { %4332 = vmatmul.msk.bf16.vlgmr.msrb.gmra.mxu2 %vm640_vm8, %v587_v57  ;;  %4333 = vmatmul.msk.bf16.vlgmr.msrb.gmra.mxu3 %vm640_vm8, %v587_v57 }
 0x10e   : > { %1028 = vmatpush.bf16.msrb.mxu0 %v975_v14  ;;  %1041 = vmatpush.bf16.msrb.mxu1 %v978_v15  ;;  %v1138_v40 = vpop.permute.xlu0 %1137  ;;  %v1140_v63 = vpop.permute.xlu1 %1139 }
 0x10f   : > { %1054 = vmatpush.bf16.msrb.mxu2 %v981_v18  ;;  %1067 = vmatpush.bf16.msrb.mxu3 %v984_v19  ;;  %v1148_v41 = vsel %vm1141_vm10, %v1136_v2, %v1138_v40  ;;  %v1149_v48 = vsel %vm1141_vm10, %v1138_v40, %v1140_v63  ;;  %v1178_v51 = vsel %vm644_vm6, %v1140_v63, 0 }
 0x110   : > { %v1172_v52 = vsel %vm644_vm6, %v1148_v41, 0  ;;  %v1175_v53 = vsel %vm644_vm6, %v1149_v48, 0 }
 0x11c   : > { %4334 = vmatmul.msk.bf16.vlgmr.msra.gmra.mxu0 %vm640_vm8, %v587_v57  ;;  %4335 = vmatmul.msk.bf16.vlgmr.msra.gmra.mxu1 %vm640_vm8, %v587_v57 }
 0x11d   : > { %4337 = vmatmul.msk.bf16.vlgmr.msra.gmra.mxu2 %vm640_vm8, %v4336_v17  ;;  %4338 = vmatmul.msk.bf16.vlgmr.msra.gmra.mxu3 %vm640_vm8, %v4336_v17 }
 0x11e   : > { %1080 = vmatpush.bf16.msra.mxu0 %v987_v4  ;;  %1106 = vmatpush.bf16.msra.mxu2 %v993_v24 }
 0x11f   : > { %1093 = vmatpush.bf16.msra.mxu1 %v990_v25  ;;  %1187 = vmatpush.bf16.msra.mxu3 %v1154_v26 }
 0x12c   : > { %4339 = vmatmul.msk.bf16.vlgmr.msrb.gmra.mxu0 %vm640_vm8, %v4336_v17  ;;  %4340 = vmatmul.msk.bf16.vlgmr.msrb.gmra.mxu1 %vm640_vm8, %v4336_v17 }
 0x12d   : > { %4341 = vmatmul.msk.bf16.vlgmr.msrb.gmra.mxu2 %vm640_vm8, %v4336_v17  ;;  %4342 = vmatmul.msk.bf16.vlgmr.msrb.gmra.mxu3 %vm640_vm8, %v4336_v17 }
 0x12e   : > { %1200 = vmatpush.bf16.msrb.mxu0 %v1157_v28  ;;  %1213 = vmatpush.bf16.msrb.mxu1 %v1160_v36 }
 0x12f   : > { %1226 = vmatpush.bf16.msrb.mxu2 %v1163_v38  ;;  %1239 = vmatpush.bf16.msrb.mxu3 %v1166_v32 }
 0x13c   : > { %4343 = vmatmul.msk.bf16.vlgmr.msra.gmra.mxu0 %vm640_vm8, %v4336_v17  ;;  %4344 = vmatmul.msk.bf16.vlgmr.msra.gmra.mxu1 %vm640_vm8, %v4336_v17 }
 0x13d   : > { %4345 = vmatmul.msk.bf16.vlgmr.msra.gmra.mxu2 %vm640_vm8, %v4336_v17  ;;  %4347 = vmatmul.msk.bf16.vlgmr.msra.gmra.mxu3 %vm640_vm8, %v4346_v9 }
 0x13e   : > { %1252 = vmatpush.bf16.msra.mxu0 %v1169_v50  ;;  %1291 = vmatpush.bf16.msra.mxu3 %v1178_v51 }
 0x13f   : > { %1265 = vmatpush.bf16.msra.mxu1 %v1172_v52  ;;  %1278 = vmatpush.bf16.msra.mxu2 %v1175_v53 }
 0x14c   : > { %4348 = vmatmul.msk.bf16.vlgmr.msrb.gmra.mxu0 %vm640_vm8, %v4346_v9  ;;  %4349 = vmatmul.msk.bf16.vlgmr.msrb.gmra.mxu1 %vm640_vm8, %v4346_v9 }
 0x14d   : > { %4350 = vmatmul.msk.bf16.vlgmr.msrb.gmra.mxu2 %vm640_vm8, %v4346_v9  ;;  %4351 = vmatmul.msk.bf16.vlgmr.msrb.gmra.mxu3 %vm640_vm8, %v4346_v9 }
 0x159   : > { %v681_v54 = vpop.f32.mrf.mxu0  ;;  %v694_v55 = vpop.f32.mrf.mxu1 }
 0x15c   : > { %4352 = vmatmul.msk.bf16.vlgmr.msra.gmra.mxu0 %vm640_vm8, %v4346_v9  ;;  %4353 = vmatmul.msk.bf16.vlgmr.msra.gmra.mxu1 %vm640_vm8, %v4346_v9 }
 0x15d   : > { %4354 = vmatmul.msk.bf16.vlgmr.msra.gmra.mxu2 %vm640_vm8, %v4346_v9  ;;  %4355 = vmatmul.msk.bf16.vlgmr.msra.gmra.mxu3 %vm640_vm8, %v4346_v9  ;;  %vm1415_vm8 = vsmask.f32 7424 }
 0x15e   : > { %vm5077_vm10 = vmand %vm1414_vm5, %vm1415_vm8 }
 0x15f   : > { %vm1417_vm12 = vmor %vm5077_vm10, %vm5071_vm9 }
 0x160   : > { %v707_v56 = vpop.f32.mrf.mxu2  ;;  %v720_v57 = vpop.f32.mrf.mxu3 }
 0x161   : > { %v683_v59 = vpop.f32.mrf.mxu0  ;;  %v696_v58 = vpop.f32.mrf.mxu1 }
 0x168   : > { %v709_v3 = vpop.f32.mrf.mxu2  ;;  %v722_v60 = vpop.f32.mrf.mxu3 }
 0x169   : > { %v733_v61 = vpop.f32.mrf.mxu0  ;;  %v746_v6 = vpop.f32.mrf.mxu1 }
 0x170   : > { %v759_v62 = vpop.f32.mrf.mxu2  ;;  %v772_v0 = vpop.f32.mrf.mxu3 }
 0x171   : > { %v735_v10 = vpop.f32.mrf.mxu0  ;;  %v748_v11 = vpop.f32.mrf.mxu1 }
 0x178   : > { %v761_v12 = vpop.f32.mrf.mxu2  ;;  %v774_v13 = vpop.f32.mrf.mxu3 }
 0x179   : > { %v785_v14 = vpop.f32.mrf.mxu0  ;;  %v828_v15 = vpop.f32.mrf.mxu1 }
 0x17a   : > { %v829_v18 = vadd.f32 %v828_v15, %v681_v54 }
 0x180   : > { %v841_v19 = vpop.f32.mrf.mxu2  ;;  %v854_v7 = vpop.f32.mrf.mxu3 }
 0x181   : > { %v842_v37 = vadd.f32 %v841_v19, %v694_v55  ;;  %v855_v20 = vadd.f32 %v854_v7, %v707_v56  ;;  %v787_v16 = vpop.f32.mrf.mxu0  ;;  %v830_v21 = vpop.f32.mrf.mxu1 }
 0x188   : > { %v843_v22 = vpop.f32.mrf.mxu2  ;;  %v856_v23 = vpop.f32.mrf.mxu3 }
 0x189   : > { %v867_v17 = vpop.f32.mrf.mxu0  ;;  %v880_v4 = vpop.f32.mrf.mxu1 }
 0x18a   : > { %v868_v24 = vadd.f32 %v867_v17, %v720_v57  ;;  %v881_v25 = vadd.f32 %v880_v4, %v733_v61 }
 0x190   : > { %v893_v26 = vpop.f32.mrf.mxu2  ;;  %v906_v27 = vpop.f32.mrf.mxu3 }
 0x191   : > { %v5020_v29 = vadd.f32 %v893_v26, %v746_v6  ;;  %v5022_v30 = vadd.f32 %v906_v27, %v759_v62  ;;  %v869_v31 = vpop.f32.mrf.mxu0  ;;  %v882_v33 = vpop.f32.mrf.mxu1 }
 0x198   : > { %v895_v8 = vpop.f32.mrf.mxu2  ;;  %v908_v34 = vpop.f32.mrf.mxu3 }
 0x199   : > { %v919_v35 = vpop.f32.mrf.mxu0  ;;  %v932_v28 = vpop.f32.mrf.mxu1 }
 0x19a   : > { %v5024_v36 = vadd.f32 %v919_v35, %v772_v0  ;;  %v5026_v38 = vadd.f32 %v932_v28, %v785_v14 }
 0x1a0   : > { %v1004_v32 = vpop.f32.mrf.mxu2  ;;  %v1017_v2 = vpop.f32.mrf.mxu3 }
 0x1a1   : > { %v921_v40 = vpop.f32.mrf.mxu0  ;;  %v934_v63 = vpop.f32.mrf.mxu1  ;;  %v1112_v61 = vadd.f32 %v1004_v32, %v829_v18  ;;  %v1113_v62 = vadd.f32 %v1017_v2, %v842_v37 }
 0x1a8   : > { %v1006_v39 = vpop.f32.mrf.mxu2  ;;  %v1019_v41 = vpop.f32.mrf.mxu3 }
 0x1a9   : > { %v1030_v48 = vpop.f32.mrf.mxu0  ;;  %v1043_v9 = vpop.f32.mrf.mxu1 }
 0x1aa   : > { %v1114_v0 = vadd.f32 %v1030_v48, %v855_v20  ;;  %v1115_v22 = vadd.f32 %v1043_v9, %v868_v24 }
 0x1b0   : > { %v1056_v50 = vpop.f32.mrf.mxu2  ;;  %v5028_v51 = vpop.f32.mrf.mxu3 }
 0x1b1   : > { %v1032_v52 = vpop.f32.mrf.mxu0  ;;  %v1045_v53 = vpop.f32.mrf.mxu1  ;;  %v1116_v27 = vadd.f32 %v1056_v50, %v881_v25 }
 0x1b8   : > { %v1058_v54 = vpop.f32.mrf.mxu2  ;;  %v1071_v55 = vpop.f32.mrf.mxu3 }
 0x1b9   : > { %v5030_v56 = vpop.f32.mrf.mxu0  ;;  %v5032_v57 = vpop.f32.mrf.mxu1 }
 0x1c0   : > { %v5034_v59 = vpop.f32.mrf.mxu2  ;;  %v1189_v58 = vpop.f32.mrf.mxu3 }
 0x1c1   : > { %v1084_v3 = vpop.f32.mrf.mxu0  ;;  %v1097_v60 = vpop.f32.mrf.mxu1  ;;  %v1297_v6 = vadd.f32 %v1189_v58, %v1112_v61 }
 0x1c3   : > { %v1306_v10 = vmul.f32 %v4842_v42, %v1297_v6 }
 0x1c5   : > { %v1336_v7 = vmul.f32 %v1306_v10, %v1297_v6  ;;  %v1316_v23 = vsel %vm1315_vm15, %v1306_v10, 0.0  ;;  %v1418_v10 = vld [vmem:[%s4712_s19] sm:$0xff] }
 0x1c7   : > { %v1345_v24 = vsel %vm1315_vm15, %v1336_v7, 0.0 }
 0x1c8   : > { %v1110_v11 = vpop.f32.mrf.mxu2  ;;  %v1191_v12 = vpop.f32.mrf.mxu3 }
 0x1c9   : > { %v1202_v13 = vpop.f32.mrf.mxu0  ;;  %v1215_v14 = vpop.f32.mrf.mxu1 }
 0x1ca   : > { %v1298_v15 = vadd.f32 %v1202_v13, %v1113_v62  ;;  %v1299_v19 = vadd.f32 %v1215_v14, %v1114_v0 }
 0x1cc   : > { %v1307_v37 = vmul.f32 %v4844_v43, %v1298_v15  ;;  %v1364_v20 = vpack.c.bf16 %v1298_v15, %v1297_v6  ;;  %v1308_v16 = vmul.f32 %v4846_v1, %v1299_v19  ;;  %v1117_v6 = vadd.f32 %v5028_v51, %v5020_v29 }
 0x1cd   : > { %v1118_v29 = vadd.f32 %v5030_v56, %v5022_v30 }
 0x1ce   : > { %v1317_v17 = vsel %vm1315_vm15, %v1307_v37, 0.0  ;;  %v1337_v4 = vmul.f32 %v1307_v37, %v1298_v15  ;;  %v1338_v33 = vmul.f32 %v1308_v16, %v1299_v19  ;;  %v1319_v34 = vsel %vm1315_vm15, %v1308_v16, 0.0 }
 0x1cf   : > { %v1318_v31 = vadd.f32 %v1317_v17, %v1316_v23  ;;  %v1374_v9 = vrot.slane %v1364_v20, 2 }
 0x1d0   : > { %v1346_v8 = vsel %vm1315_vm15, %v1337_v4, 0.0  ;;  %v1228_v35 = vpop.f32.mrf.mxu2  ;;  %v1241_v28 = vpop.f32.mrf.mxu3  ;;  %v1348_v39 = vsel %vm1315_vm15, %v1338_v33, 0.0  ;;  %v1119_v33 = vadd.f32 %v5032_v57, %v5024_v36 }
 0x1d1   : > { %v1347_v32 = vadd.f32 %v1346_v8, %v1345_v24  ;;  %v1320_v2 = vadd.f32 %v1319_v34, %v1318_v31  ;;  %v1300_v25 = vadd.f32 %v1228_v35, %v1115_v22  ;;  %v1204_v40 = vpop.f32.mrf.mxu0  ;;  %v1217_v63 = vpop.f32.mrf.mxu1  ;;  %v1301_v41 = vadd.f32 %v1241_v28, %v1116_v27 }
 0x1d2   : > { %v1384_v11 = vsel %vm1381_vm14, %v1364_v20, %v1374_v9  ;;  %v1120_v24 = vadd.f32 %v5034_v59, %v5026_v38 }
 0x1d3   : > { %v1349_v50 = vadd.f32 %v1348_v39, %v1347_v32  ;;  %v1309_v52 = vmul.f32 %v4848_v44, %v1300_v25  ;;  %v1365_v53 = vpack.c.bf16 %v1300_v25, %v1299_v19  ;;  %v1310_v55 = vmul.f32 %v4850_v45, %v1301_v41 }
 0x1d5   : > { %v1321_v58 = vsel %vm1315_vm15, %v1309_v52, 0.0  ;;  %v1339_v3 = vmul.f32 %v1309_v52, %v1300_v25  ;;  %v1375_v60 = vrot.slane %v1365_v53, 4  ;;  %v1376_v61 = vrot.slane %v1365_v53, 6 }
 0x1d6   : > { %v1322_v62 = vadd.f32 %v1321_v58, %v1320_v2  ;;  %v1340_v0 = vmul.f32 %v1310_v55, %v1301_v41  ;;  %v1323_v14 = vsel %vm1315_vm15, %v1310_v55, 0.0 }
 0x1d7   : > { %v1350_v12 = vsel %vm1315_vm15, %v1339_v3, 0.0  ;;  %v1388_v13 = vsel %vm1385_vm0, %v1375_v60, %v1376_v61  ;;  %v1426_v61 = vld [vmem:[%s4712_s19 + $0x10] sm:$0x3] }
 0x1d8   : > { %v1351_v51 = vadd.f32 %v1350_v12, %v1349_v50  ;;  %v1389_v15 = vsel %vm644_vm6, %v1384_v11, %v1388_v13  ;;  %v1324_v19 = vadd.f32 %v1323_v14, %v1322_v62  ;;  %v1230_v18 = vpop.f32.mrf.mxu2  ;;  %v1243_v7 = vpop.f32.mrf.mxu3  ;;  %v1352_v37 = vsel %vm1315_vm15, %v1340_v0, 0.0  ;;  %v1421_v62 = vld [vmem:[%s4712_s19 + $0x8] sm:$0xff] }
 0x1d9   : > { %v1254_v16 = vpop.f32.mrf.mxu0  ;;  %v1267_v20 = vpop.f32.mrf.mxu1  ;;  %v1419_v21 = vsel %vm1417_vm12, %v1389_v15, %v1418_v10 }
 0x1da   : > { %v1353_v22 = vadd.f32 %v1352_v37, %v1351_v51  ;;  %v1302_v23 = vadd.f32 %v1254_v16, %v1117_v6  ;;  %v1303_v17 = vadd.f32 %v1267_v20, %v1118_v29  ;;  %1420 = vst [vmem:[%s4712_s19] sm:$0xff] %v1419_v21 }
 0x1dc   : > { %v1311_v30 = vmul.f32 %v4852_v46, %v1302_v23  ;;  %v1366_v56 = vpack.c.bf16 %v1302_v23, %v1301_v41  ;;  %v1312_v4 = vmul.f32 %v4854_v47, %v1303_v17 }
 0x1de   : > { %v1325_v26 = vsel %vm1315_vm15, %v1311_v30, 0.0  ;;  %v1341_v27 = vmul.f32 %v1311_v30, %v1302_v23  ;;  %v1342_v31 = vmul.f32 %v1312_v4, %v1303_v17  ;;  %v1327_v32 = vsel %vm1315_vm15, %v1312_v4, 0.0 }
 0x1df   : > { %v1326_v8 = vadd.f32 %v1325_v26, %v1324_v19  ;;  %v1377_v9 = vrot.slane %v1366_v56, 2 }
 0x1e0   : > { %v1354_v34 = vsel %vm1315_vm15, %v1341_v27, 0.0  ;;  %v1280_v35 = vpop.f32.mrf.mxu2  ;;  %v1293_v28 = vpop.f32.mrf.mxu3  ;;  %v1356_v36 = vsel %vm1315_vm15, %v1342_v31, 0.0 }
 0x1e1   : > { %v1304_v2 = vadd.f32 %v1280_v35, %v1119_v33  ;;  %v1305_v25 = vadd.f32 %v1293_v28, %v1120_v24  ;;  %v1256_v40 = vpop.f32.mrf.mxu0  ;;  %v1269_v63 = vpop.f32.mrf.mxu1  ;;  %v1328_v39 = vadd.f32 %v1327_v32, %v1326_v8  ;;  %v1355_v41 = vadd.f32 %v1354_v34, %v1353_v22 }
 0x1e2   : > { %v1392_v6 = vsel %vm1381_vm14, %v1366_v56, %v1377_v9 }
 0x1e3   : > { %v1313_v38 = vmul.f32 %v4856_v49, %v1304_v2  ;;  %v1367_v57 = vpack.c.bf16 %v1304_v2, %v1303_v17  ;;  %v1368_v59 = vpack.c.bf16 %v1305_v25, %v1305_v25  ;;  %v1314_v50 = vmul.f32 %v4858_v5, %v1305_v25 }
 0x1e4   : > { %v1357_v52 = vadd.f32 %v1356_v36, %v1355_v41 }
 0x1e5   : > { %v1343_v53 = vmul.f32 %v1313_v38, %v1304_v2  ;;  %v1378_v55 = vrot.slane %v1367_v57, 4  ;;  %v1379_v58 = vrot.slane %v1367_v57, 6  ;;  %v1380_v3 = vrot.slane %v1368_v59, 2 }
 0x1e6   : > { %v1329_v0 = vsel %vm1315_vm15, %v1313_v38, 0.0  ;;  %v1344_v10 = vmul.f32 %v1314_v50, %v1305_v25  ;;  %v1332_v18 = vsel %vm1331_vm4, %v1314_v50, 0.0 }
 0x1e7   : > { %v1395_v11 = vsel %vm1385_vm0, %v1378_v55, %v1379_v58  ;;  %v1399_v12 = vsel %vm1381_vm14, %v1368_v59, %v1380_v3  ;;  %v1330_v13 = vadd.f32 %v1329_v0, %v1328_v39  ;;  %v1358_v14 = vsel %vm1315_vm15, %v1343_v53, 0.0 }
 0x1e8   : > { %v1396_v29 = vsel %vm644_vm6, %v1392_v6, %v1395_v11  ;;  %v1427_v51 = vsel %vm5117_vm7, %v1399_v12, %v1426_v61  ;;  %v1282_v15 = vpop.f32.mrf.mxu2  ;;  %v1295_v19 = vpop.f32.mrf.mxu3  ;;  %v1359_v7 = vadd.f32 %v1358_v14, %v1357_v52  ;;  %v1360_v20 = vsel %vm1331_vm4, %v1344_v10, 0.0 }
 0x1e9   : > { %v1422_v37 = vsel %vm1417_vm12, %v1396_v29, %v1421_v62  ;;  %1428 = vst [vmem:[%s4712_s19 + $0x10] sm:$0x3] %v1427_v51  ;;  %v1333_v16 = vadd.f32 %v1332_v18, %v1330_v13  ;;  %vm1429_vm6 = vcmask 7168  }
 0x1ea   : > { %1423 = vst [vmem:[%s4712_s19 + $0x8] sm:$0xff] %v1422_v37  ;;  %v1361_v21 = vadd.f32 %v1360_v20, %v1359_v7 }
 0x1eb   : > { %1334 = vadd.xlane.f32.xlu0 %v1333_v16 }
 0x1ec   : > { %1362 = vadd.xlane.f32.xlu1 %v1361_v21 }
 0x25e   : > { %v1335_v22 = vpop.xlane.xlu0 %1334 }
 0x25f   : > { %v1363_v23 = vpop.xlane.xlu1 %1362 }
 0x260   : > { %v1430_v17 = vsel %vm1429_vm6, %v1335_v22, %v1363_v23 }
 0x261   : > { %1432 = vst.msk [vmem:[%s4707_s9] sm:$0x7] %vm1431_vm11, %v1430_v17 }
 0x262 PF: > { %p4356_p8 = scmp.ne.s32.totalorder %s4561_s12, 1 }
 0x263   : > { %s4584_s23 = smov (!%p4356_p8), 126   ;;  %s4585_s24 = smov (!%p4356_p8), 127  }
 0x264   : > { %1436 = sbr.rel (%p4356_p8) target bundleno = 1140 (0x474), region = 36  ;;  %s4586_s25 = smov (!%p4356_p8), 93  }
 0x265   : > { %s4587_s27 = smov (!%p4356_p8), 92  }
 0x269   : > { %v1438_v48 = vld [vmem:[%s4687_s26 + $0x8] sm:$0xff]  ;;  %v1437_v54 = vld [vmem:[%s4687_s26] sm:$0xff]  ;;  %v1439_v4 = vld [vmem:[%s4687_s26 + $0x10] sm:$0xff]  ;;  %vm1486_vm14 = vcmask 1031168   ;;  %vm1499_vm15 = vcmask 1043456   ;;  %vm1495_vm0 = vcmask 64512  }
 0x26a   : > { %v1452_v30 = vunpack.c.l.b16 %v1438_v48  ;;  %v1450_v56 = vunpack.c.l.b16 %v1437_v54  ;;  %v1454_v26 = vunpack.c.l.b16 %v1439_v4  ;;  %v1453_v24 = vunpack.c.h.b16 %v1438_v48  ;;  %v1440_v34 = vld [vmem:[%s4687_s26 + $0x18] sm:$0xff]  ;;  %v1441_v25 = vld [vmem:[%s4687_s26 + $0x20] sm:$0xf] }
 0x26b   : > { %v1451_v8 = vunpack.c.h.b16 %v1437_v54  ;;  %v1456_v35 = vunpack.c.l.b16 %v1440_v34  ;;  %v1457_v40 = vunpack.c.h.b16 %v1440_v34  ;;  %v1455_v63 = vunpack.c.h.b16 %v1439_v4  ;;  %v4357_v11 = vld [vmem:[%s4692_s29 + $0x2] sm:$0x3] }
 0x26c   : > { %v1461_v27 = vpack.c.b16 %v1452_v30, %v1452_v30  ;;  %v1459_v31 = vpack.c.b16 %v1450_v56, %v1450_v56  ;;  %v1463_v33 = vpack.c.b16 %v1454_v26, %v1454_v26  ;;  %v1462_v28 = vpack.c.b16 %v1453_v24, %v1453_v24 }
 0x26d   : > { %v1460_v32 = vpack.c.b16 %v1451_v8, %v1451_v8  ;;  %v1465_v2 = vpack.c.b16 %v1456_v35, %v1456_v35  ;;  %v1458_v39 = vunpack.c.l.b16 %v1441_v25  ;;  %v1466_v41 = vpack.c.b16 %v1457_v40, %v1457_v40 }
 0x26e   : > { %1472 = vrot.lane.b32.xlu0 %v1461_v27, %s4584_s23  ;;  %1468 = vrot.lane.b32.xlu1 %v1459_v31, %s4584_s23  ;;  %v1464_v9 = vpack.c.b16 %v1455_v63, %v1455_v63  ;;  %vm1662_vm1 = vcmask 1039360   ;;  %v1442_v63 = vld [vmem:[%s4692_s29] sm:$0x3]  ;;  %vm1838_vm2 = vcmask 760832   ;;  %vm2023_vm3 = vcmask 752640  }
 0x26f   : > { %1476 = vrot.lane.b32.xlu2 %v1463_v33, %s4584_s23  ;;  %v1467_v36 = vpack.c.b16 %v1458_v39, %v1458_v39  ;;  %vm2286_vm5 = vsmask.f32 1280  ;;  %vm2288_vm8 = vcmask 1043458   ;;  %vm2289_vm9 = vsmask.f32 3328 }
 0x270   : > { %vm2263_vm10 = vcmask 1041408   ;;  %vm2197_vm12 = vcmask 1042432   ;;  %vm2267_vm13 = vcmask 1045508   ;;  %vm2293_vm4 = vsmask.f32 5376  ;;  %vm5280_vm6 = vmand %vm2288_vm8, %vm2289_vm9 }
 0x271   : > { %vm5274_vm7 = vmand %vm2263_vm10, %vm2286_vm5  ;;  %vm2306_vm9 = vcmask 517120  }
 0x272   : > { %vm5287_vm11 = vmand %vm2267_vm13, %vm2293_vm4  ;;  %vm2213_vm4 = vcmask 518144  }
 0x276   : > { %1474 = vrot.lane.b32.xlu0 %v1462_v28, %s4584_s23  ;;  %1470 = vrot.lane.b32.xlu1 %v1460_v32, %s4584_s23 }
 0x277   : > { %1480 = vrot.lane.b32.xlu2 %v1465_v2, %s4584_s23 }
 0x27e   : > { %1482 = vrot.lane.b32.xlu0 %v1466_v41, %s4584_s23  ;;  %1478 = vrot.lane.b32.xlu1 %v1464_v9, %s4584_s23 }
 0x27f   : > { %1484 = vrot.lane.b32.xlu2 %v1467_v36, %s4584_s23 }
 0x286   : > { %1646 = vrot.lane.b32.xlu0 %v1460_v32, %s4585_s24  ;;  %1648 = vrot.lane.b32.xlu1 %v1461_v27, %s4585_s24 }
 0x287   : > { %1650 = vrot.lane.b32.xlu2 %v1462_v28, %s4585_s24 }
 0x28e   : > { %1644 = vrot.lane.b32.xlu0 %v1459_v31, %s4585_s24  ;;  %1654 = vrot.lane.b32.xlu1 %v1464_v9, %s4585_s24 }
 0x28f   : > { %1656 = vrot.lane.b32.xlu2 %v1465_v2, %s4585_s24 }
 0x296   : > { %1652 = vrot.lane.b32.xlu0 %v1463_v33, %s4585_s24  ;;  %1658 = vrot.lane.b32.xlu1 %v1466_v41, %s4585_s24 }
 0x297   : > { %1820 = vrot.lane.b32.xlu2 %v1459_v31, %s4586_s25 }
 0x29e   : > { %1660 = vrot.lane.b32.xlu1 %v1467_v36, %s4585_s24  ;;  %1822 = vrot.lane.b32.xlu0 %v1460_v32, %s4586_s25 }
 0x29f   : > { %1824 = vrot.lane.b32.xlu2 %v1461_v27, %s4586_s25 }
 0x2a6   : > { %1828 = vrot.lane.b32.xlu0 %v1463_v33, %s4586_s25  ;;  %1830 = vrot.lane.b32.xlu1 %v1464_v9, %s4586_s25 }
 0x2a7   : > { %1826 = vrot.lane.b32.xlu2 %v1462_v28, %s4586_s25 }
 0x2ae   : > { %1832 = vrot.lane.b32.xlu0 %v1465_v2, %s4586_s25  ;;  %1836 = vrot.lane.b32.xlu1 %v1467_v36, %s4586_s25 }
 0x2af   : > { %1834 = vrot.lane.b32.xlu2 %v1466_v41, %s4586_s25 }
 0x2b6   : > { %2007 = vrot.lane.b32.xlu1 %v1460_v32, %s4587_s27  ;;  %2005 = vrot.lane.b32.xlu0 %v1459_v31, %s4587_s27 }
 0x2b7   : > { %2011 = vrot.lane.b32.xlu2 %v1462_v28, %s4587_s27 }
 0x2be   : > { %2009 = vrot.lane.b32.xlu1 %v1461_v27, %s4587_s27  ;;  %2013 = vrot.lane.b32.xlu0 %v1463_v33, %s4587_s27 }
 0x2bf   : > { %2015 = vrot.lane.b32.xlu2 %v1464_v9, %s4587_s27 }
 0x2c6   : > { %2019 = vrot.lane.b32.xlu0 %v1466_v41, %s4587_s27  ;;  %2021 = vrot.lane.b32.xlu1 %v1467_v36, %s4587_s27 }
 0x2c7   : > { %2017 = vrot.lane.b32.xlu2 %v1465_v2, %s4587_s27 }
 0x2c9   : > { %v1477_v38 = vpop.permute.xlu2 %1476 }
 0x2d1   : > { %v1481_v57 = vpop.permute.xlu2 %1480 }
 0x2d9   : > { %v1485_v61 = vpop.permute.xlu2 %1484 }
 0x2da   : > { %v1525_v12 = vsel %vm1499_vm15, %v1485_v61, 0 }
 0x2e0   : > { %v1473_v59 = vpop.permute.xlu0 %1472  ;;  %v1469_v50 = vpop.permute.xlu1 %1468 }
 0x2e1   : > { %v1651_v18 = vpop.permute.xlu2 %1650 }
 0x2e8   : > { %v1475_v52 = vpop.permute.xlu0 %1474  ;;  %v1471_v53 = vpop.permute.xlu1 %1470 }
 0x2e9   : > { %v1487_v55 = vsel %vm1486_vm14, %v1469_v50, %v1471_v53  ;;  %v1488_v58 = vsel %vm1486_vm14, %v1471_v53, %v1473_v59  ;;  %v1489_v3 = vsel %vm1486_vm14, %v1473_v59, %v1475_v52  ;;  %v1490_v60 = vsel %vm1486_vm14, %v1475_v52, %v1477_v38  ;;  %v1657_v48 = vpop.permute.xlu2 %1656 }
 0x2ea   : > { %v1501_v6 = vsel %vm1499_vm15, %v1487_v55, 0  ;;  %v1504_v62 = vsel %vm1499_vm15, %v1488_v58, 0  ;;  %v1507_v0 = vsel %vm1499_vm15, %v1489_v3, 0  ;;  %v1510_v10 = vsel %vm1499_vm15, %v1490_v60, 0 }
 0x2eb   : > { %1534 = vmatpush.bf16.msra.mxu0 %v1501_v6  ;;  %1547 = vmatpush.bf16.msra.mxu1 %v1504_v62 }
 0x2ec   : > { %1560 = vmatpush.bf16.msra.mxu2 %v1507_v0  ;;  %1573 = vmatpush.bf16.msra.mxu3 %v1510_v10 }
 0x2ee   : > { %4358 = vmatmul.msk.bf16.vlgmr.msra.gmra.mxu0 %vm1495_vm0, %v4357_v11  ;;  %4359 = vmatmul.msk.bf16.vlgmr.msra.gmra.mxu1 %vm1495_vm0, %v4357_v11 }
 0x2ef   : > { %4360 = vmatmul.msk.bf16.vlgmr.msra.gmra.mxu2 %vm1495_vm0, %v4357_v11  ;;  %4361 = vmatmul.msk.bf16.vlgmr.msra.gmra.mxu3 %vm1495_vm0, %v4357_v11 }
 0x2f0   : > { %v1483_v13 = vpop.permute.xlu0 %1482  ;;  %v1479_v14 = vpop.permute.xlu1 %1478 }
 0x2f1   : > { %v1491_v29 = vsel %vm1486_vm14, %v1477_v38, %v1479_v14  ;;  %v1492_v51 = vsel %vm1486_vm14, %v1479_v14, %v1481_v57  ;;  %v1493_v15 = vsel %vm1486_vm14, %v1481_v57, %v1483_v13  ;;  %v1494_v19 = vsel %vm1486_vm14, %v1483_v13, %v1485_v61  ;;  %v1821_v24 = vpop.permute.xlu2 %1820  ;;  %vm2291_vm14 = vmor %vm5280_vm6, %vm5274_vm7 }
 0x2f2   : > { %v1513_v7 = vsel %vm1499_vm15, %v1491_v29, 0  ;;  %v1516_v37 = vsel %vm1499_vm15, %v1492_v51, 0  ;;  %v1519_v16 = vsel %vm1499_vm15, %v1493_v15, 0  ;;  %v1522_v20 = vsel %vm1499_vm15, %v1494_v19, 0  ;;  %vm5352_vm7 = vmand %vm2306_vm9, %vm2286_vm5 }
 0x2f3   : > { %1586 = vmatpush.bf16.msrb.mxu0 %v1513_v7  ;;  %1599 = vmatpush.bf16.msrb.mxu1 %v1516_v37  ;;  %v4376_v37 = vld [vmem:[%s4692_s29 + $0x4] sm:$0x3]  ;;  %vm2313_vm5 = vcmask 10240  }
 0x2f4   : > { %1612 = vmatpush.bf16.msrb.mxu2 %v1519_v16  ;;  %1625 = vmatpush.bf16.msrb.mxu3 %v1522_v20 }
 0x2f7   : > { %1638 = vmatpush.bf16.msra.mxu0 %v1525_v12 }
 0x2f8   : > { %v1647_v21 = vpop.permute.xlu0 %1646  ;;  %v1649_v22 = vpop.permute.xlu1 %1648 }
 0x2f9   : > { %v1664_v23 = vsel %vm1662_vm1, %v1647_v21, %v1649_v22  ;;  %v1665_v17 = vsel %vm1662_vm1, %v1649_v22, %v1651_v18  ;;  %v1825_v39 = vpop.permute.xlu2 %1824 }
 0x2fa   : > { %v1678_v54 = vsel %vm1499_vm15, %v1664_v23, 0  ;;  %v1681_v30 = vsel %vm1499_vm15, %v1665_v17, 0 }
 0x2fb   : > { %1721 = vmatpush.bf16.msra.mxu2 %v1678_v54  ;;  %1734 = vmatpush.bf16.msra.mxu3 %v1681_v30 }
 0x2fe   : > { %4362 = vmatmul.msk.bf16.vlgmr.msrb.gmra.mxu0 %vm1495_vm0, %v4357_v11  ;;  %4363 = vmatmul.msk.bf16.vlgmr.msrb.gmra.mxu1 %vm1495_vm0, %v4357_v11 }
 0x2ff   : > { %4364 = vmatmul.msk.bf16.vlgmr.msrb.gmra.mxu2 %vm1495_vm0, %v4357_v11  ;;  %4365 = vmatmul.msk.bf16.vlgmr.msrb.gmra.mxu3 %vm1495_vm0, %v4357_v11 }
 0x300   : > { %v1645_v56 = vpop.permute.xlu0 %1644  ;;  %v1655_v4 = vpop.permute.xlu1 %1654 }
 0x301   : > { %v1663_v26 = vsel %vm1662_vm1, %v1645_v56, %v1647_v21  ;;  %v1668_v27 = vsel %vm1662_vm1, %v1655_v4, %v1657_v48  ;;  %v1827_v55 = vpop.permute.xlu2 %1826 }
 0x302   : > { %v1675_v31 = vsel %vm1499_vm15, %v1663_v26, 0  ;;  %v1690_v33 = vsel %vm1499_vm15, %v1668_v27, 0  ;;  %v1841_v60 = vsel %vm1838_vm2, %v1825_v39, %v1827_v55 }
 0x303   : > { %1708 = vmatpush.bf16.msra.mxu1 %v1675_v31  ;;  %1773 = vmatpush.bf16.msrb.mxu2 %v1690_v33  ;;  %v1857_v62 = vsel %vm1499_vm15, %v1841_v60, 0 }
 0x308   : > { %v1653_v8 = vpop.permute.xlu0 %1652  ;;  %v1659_v34 = vpop.permute.xlu1 %1658 }
 0x309   : > { %v1666_v35 = vsel %vm1662_vm1, %v1651_v18, %v1653_v8  ;;  %v1667_v28 = vsel %vm1662_vm1, %v1653_v8, %v1655_v4  ;;  %v1669_v32 = vsel %vm1662_vm1, %v1657_v48, %v1659_v34  ;;  %v1835_v29 = vpop.permute.xlu2 %1834 }
 0x30a   : > { %v1684_v2 = vsel %vm1499_vm15, %v1666_v35, 0  ;;  %v1687_v25 = vsel %vm1499_vm15, %v1667_v28, 0  ;;  %v1693_v40 = vsel %vm1499_vm15, %v1669_v32, 0 }
 0x30b   : > { %1747 = vmatpush.bf16.msrb.mxu0 %v1684_v2  ;;  %1760 = vmatpush.bf16.msrb.mxu1 %v1687_v25  ;;  %v4386_v25 = vld [vmem:[%s4692_s29 + $0x6] sm:$0x3] }
 0x30c   : > { %1786 = vmatpush.bf16.msrb.mxu3 %v1693_v40 }
 0x30e   : > { %4366 = vmatmul.msk.bf16.vlgmr.msra.gmra.mxu0 %vm1495_vm0, %v4357_v11  ;;  %4367 = vmatmul.msk.bf16.vlgmr.msra.gmra.mxu1 %vm1495_vm0, %v1442_v63 }
 0x30f   : > { %4368 = vmatmul.msk.bf16.vlgmr.msra.gmra.mxu2 %vm1495_vm0, %v1442_v63  ;;  %4369 = vmatmul.msk.bf16.vlgmr.msra.gmra.mxu3 %vm1495_vm0, %v1442_v63 }
 0x310   : > { %v1661_v41 = vpop.permute.xlu1 %1660  ;;  %v1823_v9 = vpop.permute.xlu0 %1822 }
 0x311   : > { %v1670_v36 = vsel %vm1662_vm1, %v1659_v34, %v1661_v41  ;;  %v1699_v38 = vsel %vm1499_vm15, %v1661_v41, 0  ;;  %v1839_v57 = vsel %vm1838_vm2, %v1821_v24, %v1823_v9  ;;  %v1840_v59 = vsel %vm1838_vm2, %v1823_v9, %v1825_v39  ;;  %v2012_v23 = vpop.permute.xlu2 %2011 }
 0x312   : > { %v1696_v50 = vsel %vm1499_vm15, %v1670_v36, 0  ;;  %v1851_v52 = vsel %vm1499_vm15, %v1839_v57, 0  ;;  %v1854_v53 = vsel %vm1499_vm15, %v1840_v59, 0  ;;  %1812 = vmatpush.bf16.msra.mxu1 %v1699_v38  ;;  %vm2297_vm1 = vsmask.f32 7424 }
 0x313   : > { %1799 = vmatpush.bf16.msra.mxu0 %v1696_v50  ;;  %1884 = vmatpush.bf16.msra.mxu2 %v1851_v52 }
 0x314   : > { %1897 = vmatpush.bf16.msra.mxu3 %v1854_v53 }
 0x318   : > { %v1829_v58 = vpop.permute.xlu0 %1828  ;;  %v1831_v3 = vpop.permute.xlu1 %1830 }
 0x319   : > { %v1842_v61 = vsel %vm1838_vm2, %v1827_v55, %v1829_v58  ;;  %v1843_v6 = vsel %vm1838_vm2, %v1829_v58, %v1831_v3  ;;  %v2016_v56 = vpop.permute.xlu2 %2015 }
 0x31a   : > { %v1860_v0 = vsel %vm1499_vm15, %v1842_v61, 0  ;;  %v1863_v10 = vsel %vm1499_vm15, %v1843_v6, 0 }
 0x31e   : > { %4370 = vmatmul.msk.bf16.vlgmr.msrb.gmra.mxu0 %vm1495_vm0, %v1442_v63  ;;  %4371 = vmatmul.msk.bf16.vlgmr.msrb.gmra.mxu1 %vm1495_vm0, %v1442_v63 }
 0x31f   : > { %4372 = vmatmul.msk.bf16.vlgmr.msrb.gmra.mxu2 %vm1495_vm0, %v1442_v63  ;;  %4373 = vmatmul.msk.bf16.vlgmr.msrb.gmra.mxu3 %vm1495_vm0, %v1442_v63 }
 0x320   : > { %1910 = vmatpush.bf16.msrb.mxu0 %v1857_v62  ;;  %1923 = vmatpush.bf16.msrb.mxu1 %v1860_v0  ;;  %v1833_v11 = vpop.permute.xlu0 %1832  ;;  %v1837_v12 = vpop.permute.xlu1 %1836 }
 0x321   : > { %1936 = vmatpush.bf16.msrb.mxu2 %v1863_v10  ;;  %v1844_v13 = vsel %vm1838_vm2, %v1831_v3, %v1833_v11  ;;  %v1845_v15 = vsel %vm1838_vm2, %v1833_v11, %v1835_v29  ;;  %v1846_v18 = vsel %vm1838_vm2, %v1835_v29, %v1837_v12  ;;  %v1875_v20 = vsel %vm1499_vm15, %v1837_v12, 0  ;;  %v2018_v8 = vpop.permute.xlu2 %2017  ;;  %vm5306_vm2 = vmor %vm5287_vm11, %vm2291_vm14 }
 0x322   : > { %v1866_v14 = vsel %vm1499_vm15, %v1844_v13, 0  ;;  %v1869_v16 = vsel %vm1499_vm15, %v1845_v15, 0  ;;  %v1872_v21 = vsel %vm1499_vm15, %v1846_v18, 0  ;;  %v2029_v28 = vsel %vm2023_vm3, %v2016_v56, %v2018_v8 }
 0x323   : > { %1949 = vmatpush.bf16.msrb.mxu3 %v1866_v14  ;;  %v2051_v40 = vsel %vm1499_vm15, %v2029_v28, 0 }
 0x328   : > { %v2006_v51 = vpop.permute.xlu0 %2005  ;;  %v2008_v19 = vpop.permute.xlu1 %2007 }
 0x329   : > { %v2024_v7 = vsel %vm2023_vm3, %v2006_v51, %v2008_v19 }
 0x32a   : > { %v2036_v22 = vsel %vm1499_vm15, %v2024_v7, 0 }
 0x32e   : > { %4374 = vmatmul.msk.bf16.vlgmr.msra.gmra.mxu0 %vm1495_vm0, %v1442_v63  ;;  %4375 = vmatmul.msk.bf16.vlgmr.msra.gmra.mxu1 %vm1495_vm0, %v1442_v63 }
 0x32f   : > { %4377 = vmatmul.msk.bf16.vlgmr.msra.gmra.mxu2 %vm1495_vm0, %v4376_v37  ;;  %4378 = vmatmul.msk.bf16.vlgmr.msra.gmra.mxu3 %vm1495_vm0, %v4376_v37 }
 0x330   : > { %1962 = vmatpush.bf16.msra.mxu0 %v1869_v16  ;;  %1988 = vmatpush.bf16.msra.mxu2 %v1875_v20  ;;  %v2010_v17 = vpop.permute.xlu1 %2009  ;;  %v2014_v48 = vpop.permute.xlu0 %2013 }
 0x331   : > { %1975 = vmatpush.bf16.msra.mxu1 %v1872_v21  ;;  %2069 = vmatpush.bf16.msra.mxu3 %v2036_v22  ;;  %v2025_v54 = vsel %vm2023_vm3, %v2008_v19, %v2010_v17  ;;  %v2026_v30 = vsel %vm2023_vm3, %v2010_v17, %v2012_v23  ;;  %v2027_v4 = vsel %vm2023_vm3, %v2012_v23, %v2014_v48 }
 0x332   : > { %v2028_v26 = vsel %vm2023_vm3, %v2014_v48, %v2016_v56  ;;  %v2039_v27 = vsel %vm1499_vm15, %v2025_v54, 0  ;;  %v2042_v31 = vsel %vm1499_vm15, %v2026_v30, 0  ;;  %v2045_v33 = vsel %vm1499_vm15, %v2027_v4, 0 }
 0x333   : > { %v2048_v24 = vsel %vm1499_vm15, %v2028_v26, 0 }
 0x338   : > { %v2020_v34 = vpop.permute.xlu0 %2019  ;;  %v2022_v35 = vpop.permute.xlu1 %2021 }
 0x339   : > { %v2030_v32 = vsel %vm2023_vm3, %v2018_v8, %v2020_v34  ;;  %v2031_v2 = vsel %vm2023_vm3, %v2020_v34, %v2022_v35  ;;  %v2060_v63 = vsel %vm1499_vm15, %v2022_v35, 0 }
 0x33a   : > { %v2054_v39 = vsel %vm1499_vm15, %v2030_v32, 0  ;;  %v2057_v41 = vsel %vm1499_vm15, %v2031_v2, 0 }
 0x33e   : > { %4379 = vmatmul.msk.bf16.vlgmr.msrb.gmra.mxu0 %vm1495_vm0, %v4376_v37  ;;  %4380 = vmatmul.msk.bf16.vlgmr.msrb.gmra.mxu1 %vm1495_vm0, %v4376_v37 }
 0x33f   : > { %4381 = vmatmul.msk.bf16.vlgmr.msrb.gmra.mxu2 %vm1495_vm0, %v4376_v37  ;;  %4382 = vmatmul.msk.bf16.vlgmr.msrb.gmra.mxu3 %vm1495_vm0, %v4376_v37 }
 0x340   : > { %2082 = vmatpush.bf16.msrb.mxu0 %v2039_v27  ;;  %2095 = vmatpush.bf16.msrb.mxu1 %v2042_v31 }
 0x341   : > { %2108 = vmatpush.bf16.msrb.mxu2 %v2045_v33  ;;  %2121 = vmatpush.bf16.msrb.mxu3 %v2048_v24 }
 0x34e   : > { %4383 = vmatmul.msk.bf16.vlgmr.msra.gmra.mxu0 %vm1495_vm0, %v4376_v37  ;;  %4384 = vmatmul.msk.bf16.vlgmr.msra.gmra.mxu1 %vm1495_vm0, %v4376_v37 }
 0x34f   : > { %4385 = vmatmul.msk.bf16.vlgmr.msra.gmra.mxu2 %vm1495_vm0, %v4376_v37  ;;  %4387 = vmatmul.msk.bf16.vlgmr.msra.gmra.mxu3 %vm1495_vm0, %v4386_v25 }
 0x350   : > { %2134 = vmatpush.bf16.msra.mxu0 %v2051_v40  ;;  %2173 = vmatpush.bf16.msra.mxu3 %v2060_v63 }
 0x351   : > { %2147 = vmatpush.bf16.msra.mxu1 %v2054_v39  ;;  %2160 = vmatpush.bf16.msra.mxu2 %v2057_v41 }
 0x35e   : > { %4388 = vmatmul.msk.bf16.vlgmr.msrb.gmra.mxu0 %vm1495_vm0, %v4386_v25  ;;  %4389 = vmatmul.msk.bf16.vlgmr.msrb.gmra.mxu1 %vm1495_vm0, %v4386_v25 }
 0x35f   : > { %4390 = vmatmul.msk.bf16.vlgmr.msrb.gmra.mxu2 %vm1495_vm0, %v4386_v25  ;;  %4391 = vmatmul.msk.bf16.vlgmr.msrb.gmra.mxu3 %vm1495_vm0, %v4386_v25 }
 0x36b   : > { %v1536_v9 = vpop.f32.mrf.mxu0  ;;  %v1549_v36 = vpop.f32.mrf.mxu1 }
 0x36e   : > { %4392 = vmatmul.msk.bf16.vlgmr.msra.gmra.mxu0 %vm1495_vm0, %v4386_v25  ;;  %4393 = vmatmul.msk.bf16.vlgmr.msra.gmra.mxu1 %vm1495_vm0, %v4386_v25 }
 0x36f   : > { %4394 = vmatmul.msk.bf16.vlgmr.msra.gmra.mxu2 %vm1495_vm0, %v4386_v25  ;;  %4395 = vmatmul.msk.bf16.vlgmr.msra.gmra.mxu3 %vm1495_vm0, %v4386_v25  ;;  %vm2296_vm0 = vcmask 1047558  }
 0x370   : > { %vm5312_vm3 = vmand %vm2296_vm0, %vm2297_vm1 }
 0x371   : > { %vm2299_vm8 = vmor %vm5312_vm3, %vm5306_vm2 }
 0x372   : > { %v1562_v38 = vpop.f32.mrf.mxu2  ;;  %v1575_v57 = vpop.f32.mrf.mxu3 }
 0x373   : > { %v1538_v59 = vpop.f32.mrf.mxu0  ;;  %v1551_v50 = vpop.f32.mrf.mxu1 }
 0x37a   : > { %v1564_v52 = vpop.f32.mrf.mxu2  ;;  %v1577_v53 = vpop.f32.mrf.mxu3 }
 0x37b   : > { %v1588_v55 = vpop.f32.mrf.mxu0  ;;  %v1601_v58 = vpop.f32.mrf.mxu1 }
 0x382   : > { %v1614_v3 = vpop.f32.mrf.mxu2  ;;  %v1627_v60 = vpop.f32.mrf.mxu3 }
 0x383   : > { %v1590_v61 = vpop.f32.mrf.mxu0  ;;  %v1603_v6 = vpop.f32.mrf.mxu1 }
 0x38a   : > { %v1616_v62 = vpop.f32.mrf.mxu2  ;;  %v1629_v0 = vpop.f32.mrf.mxu3 }
 0x38b   : > { %v1640_v10 = vpop.f32.mrf.mxu0  ;;  %v1710_v11 = vpop.f32.mrf.mxu1 }
 0x38c   : > { %v1711_v12 = vadd.f32 %v1710_v11, %v1536_v9 }
 0x392   : > { %v1723_v13 = vpop.f32.mrf.mxu2  ;;  %v1736_v14 = vpop.f32.mrf.mxu3 }
 0x393   : > { %v1724_v29 = vadd.f32 %v1723_v13, %v1549_v36  ;;  %v1737_v51 = vadd.f32 %v1736_v14, %v1562_v38  ;;  %v1642_v15 = vpop.f32.mrf.mxu0  ;;  %v1712_v19 = vpop.f32.mrf.mxu1 }
 0x39a   : > { %v1725_v18 = vpop.f32.mrf.mxu2  ;;  %v1738_v7 = vpop.f32.mrf.mxu3 }
 0x39b   : > { %v1749_v37 = vpop.f32.mrf.mxu0  ;;  %v1762_v16 = vpop.f32.mrf.mxu1 }
 0x39c   : > { %v1750_v20 = vadd.f32 %v1749_v37, %v1575_v57  ;;  %v1763_v21 = vadd.f32 %v1762_v16, %v1588_v55 }
 0x3a2   : > { %v1775_v22 = vpop.f32.mrf.mxu2  ;;  %v1788_v23 = vpop.f32.mrf.mxu3 }
 0x3a3   : > { %v5255_v17 = vadd.f32 %v1775_v22, %v1601_v58  ;;  %v5257_v48 = vadd.f32 %v1788_v23, %v1614_v3  ;;  %v1751_v54 = vpop.f32.mrf.mxu0  ;;  %v1764_v30 = vpop.f32.mrf.mxu1 }
 0x3aa   : > { %v1777_v56 = vpop.f32.mrf.mxu2  ;;  %v1790_v4 = vpop.f32.mrf.mxu3 }
 0x3ab   : > { %v1801_v26 = vpop.f32.mrf.mxu0  ;;  %v1814_v27 = vpop.f32.mrf.mxu1 }
 0x3ac   : > { %v5259_v31 = vadd.f32 %v1801_v26, %v1627_v60  ;;  %v5261_v33 = vadd.f32 %v1814_v27, %v1640_v10 }
 0x3b2   : > { %v1886_v24 = vpop.f32.mrf.mxu2  ;;  %v1899_v8 = vpop.f32.mrf.mxu3 }
 0x3b3   : > { %v1803_v34 = vpop.f32.mrf.mxu0  ;;  %v1816_v35 = vpop.f32.mrf.mxu1  ;;  %v1994_v55 = vadd.f32 %v1886_v24, %v1711_v12  ;;  %v1995_v3 = vadd.f32 %v1899_v8, %v1724_v29 }
 0x3ba   : > { %v1888_v28 = vpop.f32.mrf.mxu2  ;;  %v1901_v32 = vpop.f32.mrf.mxu3 }
 0x3bb   : > { %v1912_v2 = vpop.f32.mrf.mxu0  ;;  %v1925_v25 = vpop.f32.mrf.mxu1 }
 0x3bc   : > { %v1996_v60 = vadd.f32 %v1912_v2, %v1737_v51  ;;  %v1997_v18 = vadd.f32 %v1925_v25, %v1750_v20 }
 0x3c2   : > { %v1938_v40 = vpop.f32.mrf.mxu2  ;;  %v5263_v63 = vpop.f32.mrf.mxu3 }
 0x3c3   : > { %v1914_v39 = vpop.f32.mrf.mxu0  ;;  %v1927_v41 = vpop.f32.mrf.mxu1  ;;  %v1998_v23 = vadd.f32 %v1938_v40, %v1763_v21 }
 0x3ca   : > { %v1940_v9 = vpop.f32.mrf.mxu2  ;;  %v1953_v36 = vpop.f32.mrf.mxu3 }
 0x3cb   : > { %v5265_v38 = vpop.f32.mrf.mxu0  ;;  %v5267_v57 = vpop.f32.mrf.mxu1 }
 0x3d2   : > { %v5269_v59 = vpop.f32.mrf.mxu2  ;;  %v2071_v50 = vpop.f32.mrf.mxu3 }
 0x3d3   : > { %v1966_v52 = vpop.f32.mrf.mxu0  ;;  %v1979_v53 = vpop.f32.mrf.mxu1  ;;  %v2179_v58 = vadd.f32 %v2071_v50, %v1994_v55 }
 0x3d5   : > { %v2188_v61 = vmul.f32 %v4842_v42, %v2179_v58 }
 0x3d7   : > { %v2218_v14 = vmul.f32 %v2188_v61, %v2179_v58  ;;  %v2198_v7 = vsel %vm2197_vm12, %v2188_v61, 0.0  ;;  %v2300_v61 = vld [vmem:[%s4712_s19] sm:$0xff] }
 0x3d9   : > { %v2227_v20 = vsel %vm2197_vm12, %v2218_v14, 0.0 }
 0x3da   : > { %v1992_v6 = vpop.f32.mrf.mxu2  ;;  %v2073_v62 = vpop.f32.mrf.mxu3 }
 0x3db   : > { %v2084_v0 = vpop.f32.mrf.mxu0  ;;  %v2097_v10 = vpop.f32.mrf.mxu1 }
 0x3dc   : > { %v2180_v11 = vadd.f32 %v2084_v0, %v1995_v3  ;;  %v2181_v13 = vadd.f32 %v2097_v10, %v1996_v60 }
 0x3de   : > { %v2189_v29 = vmul.f32 %v4844_v43, %v2180_v11  ;;  %v2246_v51 = vpack.c.bf16 %v2180_v11, %v2179_v58  ;;  %v2190_v15 = vmul.f32 %v4846_v1, %v2181_v13  ;;  %v1999_v58 = vadd.f32 %v5263_v63, %v5255_v17 }
 0x3df   : > { %v2000_v17 = vadd.f32 %v5265_v38, %v5257_v48 }
 0x3e0   : > { %v2199_v37 = vsel %vm2197_vm12, %v2189_v29, 0.0  ;;  %v2219_v16 = vmul.f32 %v2189_v29, %v2180_v11  ;;  %v2220_v30 = vmul.f32 %v2190_v15, %v2181_v13  ;;  %v2201_v4 = vsel %vm2197_vm12, %v2190_v15, 0.0 }
 0x3e1   : > { %v2200_v54 = vadd.f32 %v2199_v37, %v2198_v7  ;;  %v2256_v25 = vrot.slane %v2246_v51, 2 }
 0x3e2   : > { %v2228_v56 = vsel %vm2197_vm12, %v2219_v16, 0.0  ;;  %v2110_v26 = vpop.f32.mrf.mxu2  ;;  %v2123_v27 = vpop.f32.mrf.mxu3  ;;  %v2230_v28 = vsel %vm2197_vm12, %v2220_v30, 0.0  ;;  %v2001_v30 = vadd.f32 %v5267_v57, %v5259_v31 }
 0x3e3   : > { %v2229_v24 = vadd.f32 %v2228_v56, %v2227_v20  ;;  %v2202_v8 = vadd.f32 %v2201_v4, %v2200_v54  ;;  %v2182_v21 = vadd.f32 %v2110_v26, %v1997_v18  ;;  %v2086_v34 = vpop.f32.mrf.mxu0  ;;  %v2099_v35 = vpop.f32.mrf.mxu1  ;;  %v2183_v32 = vadd.f32 %v2123_v27, %v1998_v23 }
 0x3e4   : > { %v2266_v6 = vsel %vm2263_vm10, %v2246_v51, %v2256_v25  ;;  %v2002_v20 = vadd.f32 %v5269_v59, %v5261_v33 }
 0x3e5   : > { %v2231_v40 = vadd.f32 %v2230_v28, %v2229_v24  ;;  %v2191_v39 = vmul.f32 %v4848_v44, %v2182_v21  ;;  %v2247_v41 = vpack.c.bf16 %v2182_v21, %v2181_v13  ;;  %v2192_v36 = vmul.f32 %v4850_v45, %v2183_v32 }
 0x3e7   : > { %v2203_v50 = vsel %vm2197_vm12, %v2191_v39, 0.0  ;;  %v2221_v52 = vmul.f32 %v2191_v39, %v2182_v21  ;;  %v2257_v53 = vrot.slane %v2247_v41, 4  ;;  %v2258_v55 = vrot.slane %v2247_v41, 6 }
 0x3e8   : > { %v2204_v3 = vadd.f32 %v2203_v50, %v2202_v8  ;;  %v2222_v60 = vmul.f32 %v2192_v36, %v2183_v32  ;;  %v2205_v10 = vsel %vm2197_vm12, %v2192_v36, 0.0 }
 0x3e9   : > { %v2232_v62 = vsel %vm2197_vm12, %v2221_v52, 0.0  ;;  %v2270_v0 = vsel %vm2267_vm13, %v2257_v53, %v2258_v55  ;;  %v2308_v55 = vld [vmem:[%s4712_s19 + $0x10] sm:$0x3] }
 0x3ea   : > { %v2233_v63 = vadd.f32 %v2232_v62, %v2231_v40  ;;  %v2271_v11 = vsel %vm1499_vm15, %v2266_v6, %v2270_v0  ;;  %v2206_v13 = vadd.f32 %v2205_v10, %v2204_v3  ;;  %v2112_v12 = vpop.f32.mrf.mxu2  ;;  %v2125_v14 = vpop.f32.mrf.mxu3  ;;  %v2234_v29 = vsel %vm2197_vm12, %v2222_v60, 0.0  ;;  %v2303_v3 = vld [vmem:[%s4712_s19 + $0x8] sm:$0xff] }
 0x3eb   : > { %v2136_v15 = vpop.f32.mrf.mxu0  ;;  %v2149_v51 = vpop.f32.mrf.mxu1  ;;  %v2301_v19 = vsel %vm2299_vm8, %v2271_v11, %v2300_v61 }
 0x3ec   : > { %v2235_v18 = vadd.f32 %v2234_v29, %v2233_v63  ;;  %v2184_v7 = vadd.f32 %v2136_v15, %v1999_v58  ;;  %v2185_v37 = vadd.f32 %v2149_v51, %v2000_v17  ;;  %2302 = vst [vmem:[%s4712_s19] sm:$0xff] %v2301_v19 }
 0x3ee   : > { %v2193_v48 = vmul.f32 %v4852_v46, %v2184_v7  ;;  %v2248_v38 = vpack.c.bf16 %v2184_v7, %v2183_v32  ;;  %v2194_v16 = vmul.f32 %v4854_v47, %v2185_v37 }
 0x3f0   : > { %v2207_v22 = vsel %vm2197_vm12, %v2193_v48, 0.0  ;;  %v2223_v23 = vmul.f32 %v2193_v48, %v2184_v7  ;;  %v2224_v54 = vmul.f32 %v2194_v16, %v2185_v37  ;;  %v2209_v24 = vsel %vm2197_vm12, %v2194_v16, 0.0 }
 0x3f1   : > { %v2208_v56 = vadd.f32 %v2207_v22, %v2206_v13  ;;  %v2259_v25 = vrot.slane %v2248_v38, 2 }
 0x3f2   : > { %v2236_v4 = vsel %vm2197_vm12, %v2223_v23, 0.0  ;;  %v2162_v26 = vpop.f32.mrf.mxu2  ;;  %v2175_v27 = vpop.f32.mrf.mxu3  ;;  %v2238_v31 = vsel %vm2197_vm12, %v2224_v54, 0.0 }
 0x3f3   : > { %v2186_v8 = vadd.f32 %v2162_v26, %v2001_v30  ;;  %v2187_v21 = vadd.f32 %v2175_v27, %v2002_v20  ;;  %v2138_v34 = vpop.f32.mrf.mxu0  ;;  %v2151_v35 = vpop.f32.mrf.mxu1  ;;  %v2210_v28 = vadd.f32 %v2209_v24, %v2208_v56  ;;  %v2237_v32 = vadd.f32 %v2236_v4, %v2235_v18 }
 0x3f4   : > { %v2274_v58 = vsel %vm2263_vm10, %v2248_v38, %v2259_v25 }
 0x3f5   : > { %v2195_v33 = vmul.f32 %v4856_v49, %v2186_v8  ;;  %v2249_v57 = vpack.c.bf16 %v2186_v8, %v2185_v37  ;;  %v2250_v59 = vpack.c.bf16 %v2187_v21, %v2187_v21  ;;  %v2196_v40 = vmul.f32 %v4858_v5, %v2187_v21 }
 0x3f6   : > { %v2239_v39 = vadd.f32 %v2238_v31, %v2237_v32 }
 0x3f7   : > { %v2225_v41 = vmul.f32 %v2195_v33, %v2186_v8  ;;  %v2260_v36 = vrot.slane %v2249_v57, 4  ;;  %v2261_v50 = vrot.slane %v2249_v57, 6  ;;  %v2262_v52 = vrot.slane %v2250_v59, 2 }
 0x3f8   : > { %v2211_v60 = vsel %vm2197_vm12, %v2195_v33, 0.0  ;;  %v2226_v61 = vmul.f32 %v2196_v40, %v2187_v21  ;;  %v2214_v12 = vsel %vm2213_vm4, %v2196_v40, 0.0 }
 0x3f9   : > { %v2277_v6 = vsel %vm2267_vm13, %v2260_v36, %v2261_v50  ;;  %v2281_v62 = vsel %vm2263_vm10, %v2250_v59, %v2262_v52  ;;  %v2212_v0 = vadd.f32 %v2211_v60, %v2210_v28  ;;  %v2240_v10 = vsel %vm2197_vm12, %v2225_v41, 0.0 }
 0x3fa   : > { %v2278_v17 = vsel %vm1499_vm15, %v2274_v58, %v2277_v6  ;;  %v2309_v63 = vsel %vm5352_vm7, %v2281_v62, %v2308_v55  ;;  %v2164_v11 = vpop.f32.mrf.mxu2  ;;  %v2177_v13 = vpop.f32.mrf.mxu3  ;;  %v2241_v14 = vadd.f32 %v2240_v10, %v2239_v39  ;;  %v2242_v51 = vsel %vm2213_vm4, %v2226_v61, 0.0 }
 0x3fb   : > { %v2304_v29 = vsel %vm2299_vm8, %v2278_v17, %v2303_v3  ;;  %2310 = vst [vmem:[%s4712_s19 + $0x10] sm:$0x3] %v2309_v63  ;;  %v2215_v15 = vadd.f32 %v2214_v12, %v2212_v0  ;;  %vm2311_vm15 = vcmask 7168  }
 0x3fc   : > { %2305 = vst [vmem:[%s4712_s19 + $0x8] sm:$0xff] %v2304_v29  ;;  %v2243_v19 = vadd.f32 %v2242_v51, %v2241_v14 }
 0x3fd   : > { %2216 = vadd.xlane.f32.xlu0 %v2215_v15 }
 0x3fe   : > { %2244 = vadd.xlane.f32.xlu1 %v2243_v19 }
 0x470   : > { %v2217_v18 = vpop.xlane.xlu0 %2216 }
 0x471   : > { %v2245_v7 = vpop.xlane.xlu1 %2244 }
 0x472   : > { %v2312_v37 = vsel %vm2311_vm15, %v2217_v18, %v2245_v7 }
 0x473   : > { %2314 = vst.msk [vmem:[%s4707_s9] sm:$0x7] %vm2313_vm5, %v2312_v37 }
 0x474 PF: > { %p4396_p9 = scmp.ne.s32.totalorder %s4561_s12, 2 }
 0x475   : > { %s4588_s28 = smov (!%p4396_p9), 93   ;;  %s4589_s30 = smov (!%p4396_p9), 94  }
 0x476   : > { %2318 = sbr.rel (%p4396_p9) target bundleno = 1670 (0x686), region = 40  ;;  %s4590_s4 = smov (!%p4396_p9), 60  }
 0x477   : > { %s4591_s5 = smov (!%p4396_p9), 59  }
 0x47b   : > { %v2320_v2 = vld [vmem:[%s4687_s26 + $0x8] sm:$0xff]  ;;  %v2319_v9 = vld [vmem:[%s4687_s26] sm:$0xff]  ;;  %v2321_v16 = vld [vmem:[%s4687_s26 + $0x10] sm:$0xff]  ;;  %vm2368_vm10 = vcmask 760832   ;;  %vm2381_vm12 = vcmask 1043456   ;;  %vm2377_vm13 = vcmask 64512  }
 0x47c   : > { %v2334_v48 = vunpack.c.l.b16 %v2320_v2  ;;  %v2332_v38 = vunpack.c.l.b16 %v2319_v9  ;;  %v2336_v22 = vunpack.c.l.b16 %v2321_v16  ;;  %v2335_v20 = vunpack.c.h.b16 %v2320_v2  ;;  %v2322_v4 = vld [vmem:[%s4687_s26 + $0x18] sm:$0xff]  ;;  %v2323_v21 = vld [vmem:[%s4687_s26 + $0x20] sm:$0xf] }
 0x47d   : > { %v2333_v56 = vunpack.c.h.b16 %v2319_v9  ;;  %v2338_v26 = vunpack.c.l.b16 %v2322_v4  ;;  %v2339_v34 = vunpack.c.h.b16 %v2322_v4  ;;  %v2337_v35 = vunpack.c.h.b16 %v2321_v16  ;;  %v2704_v33 = vld [vmem:[%s4687_s26 + $0x20] sm:$0xff] }
 0x47e   : > { %v2343_v23 = vpack.c.b16 %v2334_v48, %v2334_v48  ;;  %v2341_v54 = vpack.c.b16 %v2332_v38, %v2332_v38  ;;  %v2345_v30 = vpack.c.b16 %v2336_v22, %v2336_v22  ;;  %v2344_v27 = vpack.c.b16 %v2335_v20, %v2335_v20  ;;  %v4397_v63 = vld [vmem:[%s4692_s29 + $0x2] sm:$0x3] }
 0x47f   : > { %v2342_v24 = vpack.c.b16 %v2333_v56, %v2333_v56  ;;  %v2347_v8 = vpack.c.b16 %v2338_v26, %v2338_v26  ;;  %v2340_v28 = vunpack.c.l.b16 %v2323_v21  ;;  %v2348_v32 = vpack.c.b16 %v2339_v34, %v2339_v34 }
 0x480   : > { %2354 = vrot.lane.b32.xlu0 %v2343_v23, %s4588_s28  ;;  %2350 = vrot.lane.b32.xlu1 %v2341_v54, %s4588_s28  ;;  %v2346_v25 = vpack.c.b16 %v2337_v35, %v2337_v35  ;;  %v2720_v57 = vunpack.c.l.b16 %v2704_v33  ;;  %v2721_v59 = vunpack.c.h.b16 %v2704_v33  ;;  %vm2544_vm6 = vcmask 769024   ;;  %v2324_v33 = vld [vmem:[%s4692_s29] sm:$0x3] }
 0x481   : > { %2358 = vrot.lane.b32.xlu2 %v2345_v30, %s4588_s28  ;;  %v2349_v31 = vpack.c.b16 %v2340_v28, %v2340_v28  ;;  %vm2752_vm11 = vcmask 490496   ;;  %vm2940_vm14 = vcmask 482304   ;;  %vm3204_vm0 = vsmask.f32 1280 }
 0x482   : > { %v2730_v40 = vpack.c.b16 %v2720_v57, %v2720_v57  ;;  %v2731_v39 = vpack.c.b16 %v2721_v59, %v2721_v59  ;;  %vm3206_vm1 = vcmask 1043458   ;;  %vm3207_vm2 = vsmask.f32 3328 }
 0x483   : > { %vm3181_vm3 = vcmask 1041408   ;;  %vm3115_vm8 = vcmask 1042432   ;;  %vm3185_vm9 = vcmask 1045508   ;;  %vm3211_vm4 = vsmask.f32 5376  ;;  %vm5518_vm15 = vmand %vm3206_vm1, %vm3207_vm2 }
 0x484   : > { %vm5512_vm7 = vmand %vm3181_vm3, %vm3204_vm0  ;;  %vm3224_vm2 = vcmask 517120  }
 0x485   : > { %vm5525_vm5 = vmand %vm3185_vm9, %vm3211_vm4  ;;  %vm3131_vm4 = vcmask 518144  }
 0x488   : > { %2356 = vrot.lane.b32.xlu0 %v2344_v27, %s4588_s28  ;;  %2352 = vrot.lane.b32.xlu1 %v2342_v24, %s4588_s28 }
 0x489   : > { %2362 = vrot.lane.b32.xlu2 %v2347_v8, %s4588_s28 }
 0x490   : > { %2364 = vrot.lane.b32.xlu0 %v2348_v32, %s4588_s28  ;;  %2360 = vrot.lane.b32.xlu1 %v2346_v25, %s4588_s28 }
 0x491   : > { %2366 = vrot.lane.b32.xlu2 %v2349_v31, %s4588_s28 }
 0x498   : > { %2528 = vrot.lane.b32.xlu0 %v2342_v24, %s4589_s30  ;;  %2530 = vrot.lane.b32.xlu1 %v2343_v23, %s4589_s30 }
 0x499   : > { %2532 = vrot.lane.b32.xlu2 %v2344_v27, %s4589_s30 }
 0x4a0   : > { %2526 = vrot.lane.b32.xlu0 %v2341_v54, %s4589_s30  ;;  %2536 = vrot.lane.b32.xlu1 %v2346_v25, %s4589_s30 }
 0x4a1   : > { %2538 = vrot.lane.b32.xlu2 %v2347_v8, %s4589_s30 }
 0x4a8   : > { %2534 = vrot.lane.b32.xlu0 %v2345_v30, %s4589_s30  ;;  %2540 = vrot.lane.b32.xlu1 %v2348_v32, %s4589_s30 }
 0x4a9   : > { %2732 = vrot.lane.b32.xlu2 %v2341_v54, %s4590_s4 }
 0x4b0   : > { %2542 = vrot.lane.b32.xlu1 %v2349_v31, %s4589_s30  ;;  %2734 = vrot.lane.b32.xlu0 %v2342_v24, %s4590_s4 }
 0x4b1   : > { %2736 = vrot.lane.b32.xlu2 %v2343_v23, %s4590_s4 }
 0x4b8   : > { %2740 = vrot.lane.b32.xlu0 %v2345_v30, %s4590_s4  ;;  %2742 = vrot.lane.b32.xlu1 %v2346_v25, %s4590_s4 }
 0x4b9   : > { %2738 = vrot.lane.b32.xlu2 %v2344_v27, %s4590_s4 }
 0x4c0   : > { %2744 = vrot.lane.b32.xlu0 %v2347_v8, %s4590_s4  ;;  %2748 = vrot.lane.b32.xlu1 %v2730_v40, %s4590_s4 }
 0x4c1   : > { %2750 = vrot.lane.b32.xlu2 %v2731_v39, %s4590_s4 }
 0x4c8   : > { %2746 = vrot.lane.b32.xlu0 %v2348_v32, %s4590_s4  ;;  %2920 = vrot.lane.b32.xlu1 %v2341_v54, %s4591_s5 }
 0x4c9   : > { %2922 = vrot.lane.b32.xlu2 %v2342_v24, %s4591_s5 }
 0x4d0   : > { %2926 = vrot.lane.b32.xlu0 %v2344_v27, %s4591_s5  ;;  %2928 = vrot.lane.b32.xlu1 %v2345_v30, %s4591_s5 }
 0x4d1   : > { %2924 = vrot.lane.b32.xlu2 %v2343_v23, %s4591_s5 }
 0x4d8   : > { %2930 = vrot.lane.b32.xlu0 %v2346_v25, %s4591_s5  ;;  %2934 = vrot.lane.b32.xlu1 %v2348_v32, %s4591_s5 }
 0x4d9   : > { %2936 = vrot.lane.b32.xlu2 %v2730_v40, %s4591_s5 }
 0x4db   : > { %v2359_v41 = vpop.permute.xlu2 %2358 }
 0x4e0   : > { %2932 = vrot.lane.b32.xlu0 %v2347_v8, %s4591_s5  ;;  %2938 = vrot.lane.b32.xlu1 %v2731_v39, %s4591_s5 }
 0x4e3   : > { %v2363_v36 = vpop.permute.xlu2 %2362 }
 0x4eb   : > { %v2367_v6 = vpop.permute.xlu2 %2366 }
 0x4ec   : > { %v2407_v11 = vsel %vm2381_vm12, %v2367_v6, 0 }
 0x4f2   : > { %v2355_v50 = vpop.permute.xlu0 %2354  ;;  %v2351_v52 = vpop.permute.xlu1 %2350 }
 0x4f3   : > { %v2533_v19 = vpop.permute.xlu2 %2532 }
 0x4fa   : > { %v2357_v53 = vpop.permute.xlu0 %2356  ;;  %v2353_v55 = vpop.permute.xlu1 %2352 }
 0x4fb   : > { %v2369_v58 = vsel %vm2368_vm10, %v2351_v52, %v2353_v55  ;;  %v2370_v3 = vsel %vm2368_vm10, %v2353_v55, %v2355_v50  ;;  %v2371_v60 = vsel %vm2368_vm10, %v2355_v50, %v2357_v53  ;;  %v2372_v61 = vsel %vm2368_vm10, %v2357_v53, %v2359_v41  ;;  %v2539_v22 = vpop.permute.xlu2 %2538 }
 0x4fc   : > { %v2383_v62 = vsel %vm2381_vm12, %v2369_v58, 0  ;;  %v2386_v0 = vsel %vm2381_vm12, %v2370_v3, 0  ;;  %v2389_v10 = vsel %vm2381_vm12, %v2371_v60, 0  ;;  %v2392_v17 = vsel %vm2381_vm12, %v2372_v61, 0 }
 0x4fd   : > { %2416 = vmatpush.bf16.msra.mxu0 %v2383_v62  ;;  %2429 = vmatpush.bf16.msra.mxu1 %v2386_v0 }
 0x4fe   : > { %2442 = vmatpush.bf16.msra.mxu2 %v2389_v10  ;;  %2455 = vmatpush.bf16.msra.mxu3 %v2392_v17 }
 0x500   : > { %4398 = vmatmul.msk.bf16.vlgmr.msra.gmra.mxu0 %vm2377_vm13, %v4397_v63  ;;  %4399 = vmatmul.msk.bf16.vlgmr.msra.gmra.mxu1 %vm2377_vm13, %v4397_v63 }
 0x501   : > { %4400 = vmatmul.msk.bf16.vlgmr.msra.gmra.mxu2 %vm2377_vm13, %v4397_v63  ;;  %4401 = vmatmul.msk.bf16.vlgmr.msra.gmra.mxu3 %vm2377_vm13, %v4397_v63 }
 0x502   : > { %v2365_v13 = vpop.permute.xlu0 %2364  ;;  %v2361_v12 = vpop.permute.xlu1 %2360 }
 0x503   : > { %v2373_v14 = vsel %vm2368_vm10, %v2359_v41, %v2361_v12  ;;  %v2374_v29 = vsel %vm2368_vm10, %v2361_v12, %v2363_v36  ;;  %v2375_v15 = vsel %vm2368_vm10, %v2363_v36, %v2365_v13  ;;  %v2376_v51 = vsel %vm2368_vm10, %v2365_v13, %v2367_v6  ;;  %v2733_v24 = vpop.permute.xlu2 %2732  ;;  %vm3209_vm10 = vmor %vm5518_vm15, %vm5512_vm7 }
 0x504   : > { %v2395_v18 = vsel %vm2381_vm12, %v2373_v14, 0  ;;  %v2398_v7 = vsel %vm2381_vm12, %v2374_v29, 0  ;;  %v2401_v37 = vsel %vm2381_vm12, %v2375_v15, 0  ;;  %v2404_v2 = vsel %vm2381_vm12, %v2376_v51, 0  ;;  %vm5590_vm7 = vmand %vm3224_vm2, %vm3204_vm0 }
 0x505   : > { %2468 = vmatpush.bf16.msrb.mxu0 %v2395_v18  ;;  %2481 = vmatpush.bf16.msrb.mxu1 %v2398_v7  ;;  %vm3231_vm0 = vcmask 10240  }
 0x506   : > { %2494 = vmatpush.bf16.msrb.mxu2 %v2401_v37  ;;  %2507 = vmatpush.bf16.msrb.mxu3 %v2404_v2  ;;  %v4416_v2 = vld [vmem:[%s4692_s29 + $0x4] sm:$0x3] }
 0x509   : > { %2520 = vmatpush.bf16.msra.mxu0 %v2407_v11 }
 0x50a   : > { %v2529_v9 = vpop.permute.xlu0 %2528  ;;  %v2531_v48 = vpop.permute.xlu1 %2530 }
 0x50b   : > { %v2546_v38 = vsel %vm2544_vm6, %v2529_v9, %v2531_v48  ;;  %v2547_v16 = vsel %vm2544_vm6, %v2531_v48, %v2533_v19  ;;  %v2737_v57 = vpop.permute.xlu2 %2736 }
 0x50c   : > { %v2560_v23 = vsel %vm2381_vm12, %v2546_v38, 0  ;;  %v2563_v54 = vsel %vm2381_vm12, %v2547_v16, 0 }
 0x50d   : > { %2603 = vmatpush.bf16.msra.mxu2 %v2560_v23  ;;  %2616 = vmatpush.bf16.msra.mxu3 %v2563_v54 }
 0x510   : > { %4402 = vmatmul.msk.bf16.vlgmr.msrb.gmra.mxu0 %vm2377_vm13, %v4397_v63  ;;  %4403 = vmatmul.msk.bf16.vlgmr.msrb.gmra.mxu1 %vm2377_vm13, %v4397_v63 }
 0x511   : > { %4404 = vmatmul.msk.bf16.vlgmr.msrb.gmra.mxu2 %vm2377_vm13, %v4397_v63  ;;  %4405 = vmatmul.msk.bf16.vlgmr.msrb.gmra.mxu3 %vm2377_vm13, %v4397_v63 }
 0x512   : > { %v2527_v30 = vpop.permute.xlu0 %2526  ;;  %v2537_v20 = vpop.permute.xlu1 %2536 }
 0x513   : > { %v2545_v56 = vsel %vm2544_vm6, %v2527_v30, %v2529_v9  ;;  %v2550_v4 = vsel %vm2544_vm6, %v2537_v20, %v2539_v22  ;;  %v2739_v58 = vpop.permute.xlu2 %2738 }
 0x514   : > { %v2557_v26 = vsel %vm2381_vm12, %v2545_v56, 0  ;;  %v2572_v27 = vsel %vm2381_vm12, %v2550_v4, 0  ;;  %v2755_v61 = vsel %vm2752_vm11, %v2737_v57, %v2739_v58 }
 0x515   : > { %2590 = vmatpush.bf16.msra.mxu1 %v2557_v26  ;;  %2655 = vmatpush.bf16.msrb.mxu2 %v2572_v27  ;;  %v2772_v0 = vsel %vm2381_vm12, %v2755_v61, 0 }
 0x51a   : > { %v2535_v8 = vpop.permute.xlu0 %2534  ;;  %v2541_v21 = vpop.permute.xlu1 %2540 }
 0x51b   : > { %v2548_v34 = vsel %vm2544_vm6, %v2533_v19, %v2535_v8  ;;  %v2549_v35 = vsel %vm2544_vm6, %v2535_v8, %v2537_v20  ;;  %v2551_v28 = vsel %vm2544_vm6, %v2539_v22, %v2541_v21 }
 0x51c   : > { %v2566_v32 = vsel %vm2381_vm12, %v2548_v34, 0  ;;  %v2569_v25 = vsel %vm2381_vm12, %v2549_v35, 0  ;;  %v2575_v31 = vsel %vm2381_vm12, %v2551_v28, 0 }
 0x51d   : > { %2629 = vmatpush.bf16.msrb.mxu0 %v2566_v32  ;;  %2642 = vmatpush.bf16.msrb.mxu1 %v2569_v25 }
 0x51e   : > { %2668 = vmatpush.bf16.msrb.mxu3 %v2575_v31 }
 0x520   : > { %4406 = vmatmul.msk.bf16.vlgmr.msra.gmra.mxu0 %vm2377_vm13, %v4397_v63  ;;  %4407 = vmatmul.msk.bf16.vlgmr.msra.gmra.mxu1 %vm2377_vm13, %v2324_v33  ;;  %v2751_v63 = vpop.permute.xlu2 %2750 }
 0x521   : > { %4408 = vmatmul.msk.bf16.vlgmr.msra.gmra.mxu2 %vm2377_vm13, %v2324_v33  ;;  %4409 = vmatmul.msk.bf16.vlgmr.msra.gmra.mxu3 %vm2377_vm13, %v2324_v33 }
 0x522   : > { %v2543_v59 = vpop.permute.xlu1 %2542  ;;  %v2735_v40 = vpop.permute.xlu0 %2734 }
 0x523   : > { %v2552_v39 = vsel %vm2544_vm6, %v2541_v21, %v2543_v59  ;;  %v2581_v41 = vsel %vm2381_vm12, %v2543_v59, 0  ;;  %v2753_v36 = vsel %vm2752_vm11, %v2733_v24, %v2735_v40  ;;  %v2754_v50 = vsel %vm2752_vm11, %v2735_v40, %v2737_v57  ;;  %v4426_v59 = vld [vmem:[%s4692_s29 + $0x6] sm:$0x3] }
 0x524   : > { %v2578_v52 = vsel %vm2381_vm12, %v2552_v39, 0  ;;  %v2766_v53 = vsel %vm2381_vm12, %v2753_v36, 0  ;;  %v2769_v55 = vsel %vm2381_vm12, %v2754_v50, 0  ;;  %2694 = vmatpush.bf16.msra.mxu1 %v2581_v41  ;;  %vm3215_vm6 = vsmask.f32 7424 }
 0x525   : > { %2681 = vmatpush.bf16.msra.mxu0 %v2578_v52  ;;  %2799 = vmatpush.bf16.msra.mxu2 %v2766_v53 }
 0x526   : > { %2812 = vmatpush.bf16.msra.mxu3 %v2769_v55 }
 0x528   : > { %v2923_v19 = vpop.permute.xlu2 %2922 }
 0x52a   : > { %v2741_v3 = vpop.permute.xlu0 %2740  ;;  %v2743_v60 = vpop.permute.xlu1 %2742 }
 0x52b   : > { %v2756_v6 = vsel %vm2752_vm11, %v2739_v58, %v2741_v3  ;;  %v2757_v62 = vsel %vm2752_vm11, %v2741_v3, %v2743_v60 }
 0x52c   : > { %v2775_v10 = vsel %vm2381_vm12, %v2756_v6, 0  ;;  %v2778_v17 = vsel %vm2381_vm12, %v2757_v62, 0 }
 0x530   : > { %4410 = vmatmul.msk.bf16.vlgmr.msrb.gmra.mxu0 %vm2377_vm13, %v2324_v33  ;;  %4411 = vmatmul.msk.bf16.vlgmr.msrb.gmra.mxu1 %vm2377_vm13, %v2324_v33  ;;  %v2925_v54 = vpop.permute.xlu2 %2924 }
 0x531   : > { %4412 = vmatmul.msk.bf16.vlgmr.msrb.gmra.mxu2 %vm2377_vm13, %v2324_v33  ;;  %4413 = vmatmul.msk.bf16.vlgmr.msrb.gmra.mxu3 %vm2377_vm13, %v2324_v33  ;;  %v2942_v30 = vsel %vm2940_vm14, %v2923_v19, %v2925_v54 }
 0x532   : > { %2825 = vmatpush.bf16.msrb.mxu0 %v2772_v0  ;;  %v2745_v11 = vpop.permute.xlu0 %2744  ;;  %2838 = vmatpush.bf16.msrb.mxu1 %v2775_v10  ;;  %v2749_v13 = vpop.permute.xlu1 %2748  ;;  %v2957_v27 = vsel %vm2381_vm12, %v2942_v30, 0 }
 0x533   : > { %v2758_v12 = vsel %vm2752_vm11, %v2743_v60, %v2745_v11  ;;  %2851 = vmatpush.bf16.msrb.mxu2 %v2778_v17  ;;  %v2761_v7 = vsel %vm2752_vm11, %v2749_v13, %v2751_v63 }
 0x534   : > { %v2781_v14 = vsel %vm2381_vm12, %v2758_v12, 0  ;;  %v2790_v38 = vsel %vm2381_vm12, %v2761_v7, 0 }
 0x535   : > { %2864 = vmatpush.bf16.msrb.mxu3 %v2781_v14 }
 0x538   : > { %v2937_v28 = vpop.permute.xlu2 %2936 }
 0x53a   : > { %v2747_v29 = vpop.permute.xlu0 %2746  ;;  %v2921_v15 = vpop.permute.xlu1 %2920 }
 0x53b   : > { %v2759_v51 = vsel %vm2752_vm11, %v2745_v11, %v2747_v29  ;;  %v2760_v18 = vsel %vm2752_vm11, %v2747_v29, %v2749_v13  ;;  %v2941_v37 = vsel %vm2940_vm14, %v2921_v15, %v2923_v19  ;;  %vm5544_vm11 = vmor %vm5525_vm5, %vm3209_vm10 }
 0x53c   : > { %v2784_v9 = vsel %vm2381_vm12, %v2759_v51, 0  ;;  %v2787_v48 = vsel %vm2381_vm12, %v2760_v18, 0  ;;  %v2954_v16 = vsel %vm2381_vm12, %v2941_v37, 0 }
 0x540   : > { %4414 = vmatmul.msk.bf16.vlgmr.msra.gmra.mxu0 %vm2377_vm13, %v2324_v33  ;;  %4415 = vmatmul.msk.bf16.vlgmr.msra.gmra.mxu1 %vm2377_vm13, %v2324_v33 }
 0x541   : > { %4417 = vmatmul.msk.bf16.vlgmr.msra.gmra.mxu2 %vm2377_vm13, %v4416_v2  ;;  %4418 = vmatmul.msk.bf16.vlgmr.msra.gmra.mxu3 %vm2377_vm13, %v4416_v2 }
 0x542   : > { %2877 = vmatpush.bf16.msra.mxu0 %v2784_v9  ;;  %2890 = vmatpush.bf16.msra.mxu1 %v2787_v48  ;;  %v2927_v22 = vpop.permute.xlu0 %2926  ;;  %v2929_v23 = vpop.permute.xlu1 %2928 }
 0x543   : > { %2903 = vmatpush.bf16.msra.mxu2 %v2790_v38  ;;  %2987 = vmatpush.bf16.msra.mxu3 %v2954_v16  ;;  %v2943_v20 = vsel %vm2940_vm14, %v2925_v54, %v2927_v22  ;;  %v2944_v4 = vsel %vm2940_vm14, %v2927_v22, %v2929_v23 }
 0x544   : > { %v2960_v24 = vsel %vm2381_vm12, %v2943_v20, 0  ;;  %v2963_v8 = vsel %vm2381_vm12, %v2944_v4, 0 }
 0x54a   : > { %v2931_v56 = vpop.permute.xlu0 %2930  ;;  %v2935_v34 = vpop.permute.xlu1 %2934 }
 0x54b   : > { %v2945_v26 = vsel %vm2940_vm14, %v2929_v23, %v2931_v56  ;;  %v2948_v33 = vsel %vm2940_vm14, %v2935_v34, %v2937_v28 }
 0x54c   : > { %v2966_v21 = vsel %vm2381_vm12, %v2945_v26, 0  ;;  %v2975_v41 = vsel %vm2381_vm12, %v2948_v33, 0 }
 0x550   : > { %4419 = vmatmul.msk.bf16.vlgmr.msrb.gmra.mxu0 %vm2377_vm13, %v4416_v2  ;;  %4420 = vmatmul.msk.bf16.vlgmr.msrb.gmra.mxu1 %vm2377_vm13, %v4416_v2 }
 0x551   : > { %4421 = vmatmul.msk.bf16.vlgmr.msrb.gmra.mxu2 %vm2377_vm13, %v4416_v2  ;;  %4422 = vmatmul.msk.bf16.vlgmr.msrb.gmra.mxu3 %vm2377_vm13, %v4416_v2 }
 0x552   : > { %3000 = vmatpush.bf16.msrb.mxu0 %v2957_v27  ;;  %3013 = vmatpush.bf16.msrb.mxu1 %v2960_v24  ;;  %v2933_v35 = vpop.permute.xlu0 %2932  ;;  %v2939_v32 = vpop.permute.xlu1 %2938 }
 0x553   : > { %3026 = vmatpush.bf16.msrb.mxu2 %v2963_v8  ;;  %3039 = vmatpush.bf16.msrb.mxu3 %v2966_v21  ;;  %v2946_v25 = vsel %vm2940_vm14, %v2931_v56, %v2933_v35  ;;  %v2947_v31 = vsel %vm2940_vm14, %v2933_v35, %v2935_v34  ;;  %v2949_v57 = vsel %vm2940_vm14, %v2937_v28, %v2939_v32 }
 0x554   : > { %v2969_v40 = vsel %vm2381_vm12, %v2946_v25, 0  ;;  %v2972_v39 = vsel %vm2381_vm12, %v2947_v31, 0  ;;  %v2978_v36 = vsel %vm2381_vm12, %v2949_v57, 0 }
 0x560   : > { %4423 = vmatmul.msk.bf16.vlgmr.msra.gmra.mxu0 %vm2377_vm13, %v4416_v2  ;;  %4424 = vmatmul.msk.bf16.vlgmr.msra.gmra.mxu1 %vm2377_vm13, %v4416_v2 }
 0x561   : > { %4425 = vmatmul.msk.bf16.vlgmr.msra.gmra.mxu2 %vm2377_vm13, %v4416_v2  ;;  %4427 = vmatmul.msk.bf16.vlgmr.msra.gmra.mxu3 %vm2377_vm13, %v4426_v59 }
 0x562   : > { %3052 = vmatpush.bf16.msra.mxu0 %v2969_v40  ;;  %3065 = vmatpush.bf16.msra.mxu1 %v2972_v39 }
 0x563   : > { %3078 = vmatpush.bf16.msra.mxu2 %v2975_v41  ;;  %3091 = vmatpush.bf16.msra.mxu3 %v2978_v36 }
 0x570   : > { %4428 = vmatmul.msk.bf16.vlgmr.msrb.gmra.mxu0 %vm2377_vm13, %v4426_v59  ;;  %4429 = vmatmul.msk.bf16.vlgmr.msrb.gmra.mxu1 %vm2377_vm13, %v4426_v59 }
 0x571   : > { %4430 = vmatmul.msk.bf16.vlgmr.msrb.gmra.mxu2 %vm2377_vm13, %v4426_v59  ;;  %4431 = vmatmul.msk.bf16.vlgmr.msrb.gmra.mxu3 %vm2377_vm13, %v4426_v59 }
 0x57d   : > { %v2418_v50 = vpop.f32.mrf.mxu0  ;;  %v2431_v52 = vpop.f32.mrf.mxu1 }
 0x580   : > { %4432 = vmatmul.msk.bf16.vlgmr.msra.gmra.mxu0 %vm2377_vm13, %v4426_v59  ;;  %4433 = vmatmul.msk.bf16.vlgmr.msra.gmra.mxu1 %vm2377_vm13, %v4426_v59 }
 0x581   : > { %4434 = vmatmul.msk.bf16.vlgmr.msra.gmra.mxu2 %vm2377_vm13, %v4426_v59  ;;  %4435 = vmatmul.msk.bf16.vlgmr.msra.gmra.mxu3 %vm2377_vm13, %v4426_v59  ;;  %vm3214_vm13 = vcmask 1047558  }
 0x582   : > { %vm5550_vm14 = vmand %vm3214_vm13, %vm3215_vm6 }
 0x583   : > { %vm3217_vm1 = vmor %vm5550_vm14, %vm5544_vm11 }
 0x584   : > { %v2444_v53 = vpop.f32.mrf.mxu2  ;;  %v2457_v55 = vpop.f32.mrf.mxu3 }
 0x585   : > { %v2420_v58 = vpop.f32.mrf.mxu0  ;;  %v2433_v3 = vpop.f32.mrf.mxu1 }
 0x58c   : > { %v2446_v60 = vpop.f32.mrf.mxu2  ;;  %v2459_v61 = vpop.f32.mrf.mxu3 }
 0x58d   : > { %v2470_v6 = vpop.f32.mrf.mxu0  ;;  %v2483_v62 = vpop.f32.mrf.mxu1 }
 0x594   : > { %v2496_v0 = vpop.f32.mrf.mxu2  ;;  %v2509_v10 = vpop.f32.mrf.mxu3 }
 0x595   : > { %v2472_v17 = vpop.f32.mrf.mxu0  ;;  %v2485_v63 = vpop.f32.mrf.mxu1 }
 0x59c   : > { %v2498_v11 = vpop.f32.mrf.mxu2  ;;  %v2511_v13 = vpop.f32.mrf.mxu3 }
 0x59d   : > { %v2522_v12 = vpop.f32.mrf.mxu0  ;;  %v2592_v14 = vpop.f32.mrf.mxu1 }
 0x59e   : > { %v2593_v29 = vadd.f32 %v2592_v14, %v2418_v50 }
 0x5a4   : > { %v2605_v15 = vpop.f32.mrf.mxu2  ;;  %v2618_v51 = vpop.f32.mrf.mxu3 }
 0x5a5   : > { %v2606_v19 = vadd.f32 %v2605_v15, %v2431_v52  ;;  %v2619_v18 = vadd.f32 %v2618_v51, %v2444_v53  ;;  %v2524_v7 = vpop.f32.mrf.mxu0  ;;  %v2594_v37 = vpop.f32.mrf.mxu1 }
 0x5ac   : > { %v2607_v2 = vpop.f32.mrf.mxu2  ;;  %v2620_v9 = vpop.f32.mrf.mxu3 }
 0x5ad   : > { %v2631_v48 = vpop.f32.mrf.mxu0  ;;  %v2644_v38 = vpop.f32.mrf.mxu1 }
 0x5ae   : > { %v2632_v16 = vadd.f32 %v2631_v48, %v2457_v55  ;;  %v2645_v22 = vadd.f32 %v2644_v38, %v2470_v6 }
 0x5b4   : > { %v2657_v23 = vpop.f32.mrf.mxu2  ;;  %v2670_v54 = vpop.f32.mrf.mxu3 }
 0x5b5   : > { %v5493_v30 = vadd.f32 %v2657_v23, %v2483_v62  ;;  %v5495_v20 = vadd.f32 %v2670_v54, %v2496_v0  ;;  %v2633_v56 = vpop.f32.mrf.mxu0  ;;  %v2646_v4 = vpop.f32.mrf.mxu1 }
 0x5bc   : > { %v2659_v26 = vpop.f32.mrf.mxu2  ;;  %v2672_v27 = vpop.f32.mrf.mxu3 }
 0x5bd   : > { %v2683_v24 = vpop.f32.mrf.mxu0  ;;  %v2696_v8 = vpop.f32.mrf.mxu1 }
 0x5be   : > { %v5497_v21 = vadd.f32 %v2683_v24, %v2509_v10  ;;  %v5499_v34 = vadd.f32 %v2696_v8, %v2522_v12 }
 0x5c4   : > { %v2801_v35 = vpop.f32.mrf.mxu2  ;;  %v2814_v28 = vpop.f32.mrf.mxu3 }
 0x5c5   : > { %v2685_v32 = vpop.f32.mrf.mxu0  ;;  %v2698_v25 = vpop.f32.mrf.mxu1  ;;  %v2909_v6 = vadd.f32 %v2801_v35, %v2593_v29  ;;  %v2910_v0 = vadd.f32 %v2814_v28, %v2606_v19 }
 0x5cc   : > { %v2803_v31 = vpop.f32.mrf.mxu2  ;;  %v2816_v33 = vpop.f32.mrf.mxu3 }
 0x5cd   : > { %v2827_v57 = vpop.f32.mrf.mxu0  ;;  %v2840_v59 = vpop.f32.mrf.mxu1 }
 0x5ce   : > { %v2911_v10 = vadd.f32 %v2827_v57, %v2619_v18  ;;  %v2912_v2 = vadd.f32 %v2840_v59, %v2632_v16 }
 0x5d4   : > { %v2853_v40 = vpop.f32.mrf.mxu2  ;;  %v5501_v39 = vpop.f32.mrf.mxu3 }
 0x5d5   : > { %v2829_v41 = vpop.f32.mrf.mxu0  ;;  %v2842_v36 = vpop.f32.mrf.mxu1  ;;  %v2913_v54 = vadd.f32 %v2853_v40, %v2645_v22 }
 0x5dc   : > { %v2855_v50 = vpop.f32.mrf.mxu2  ;;  %v2868_v52 = vpop.f32.mrf.mxu3 }
 0x5dd   : > { %v5503_v53 = vpop.f32.mrf.mxu0  ;;  %v5505_v55 = vpop.f32.mrf.mxu1 }
 0x5e4   : > { %v5507_v58 = vpop.f32.mrf.mxu2  ;;  %v2989_v3 = vpop.f32.mrf.mxu3 }
 0x5e5   : > { %v2881_v60 = vpop.f32.mrf.mxu0  ;;  %v2894_v61 = vpop.f32.mrf.mxu1  ;;  %v3097_v62 = vadd.f32 %v2989_v3, %v2909_v6 }
 0x5e7   : > { %v3106_v17 = vmul.f32 %v4842_v42, %v3097_v62 }
 0x5e9   : > { %v3136_v51 = vmul.f32 %v3106_v17, %v3097_v62  ;;  %v3116_v9 = vsel %vm3115_vm8, %v3106_v17, 0.0  ;;  %v3218_v17 = vld [vmem:[%s4712_s19] sm:$0xff] }
 0x5eb   : > { %v3145_v16 = vsel %vm3115_vm8, %v3136_v51, 0.0 }
 0x5ec   : > { %v2907_v63 = vpop.f32.mrf.mxu2  ;;  %v2991_v11 = vpop.f32.mrf.mxu3 }
 0x5ed   : > { %v3002_v13 = vpop.f32.mrf.mxu0  ;;  %v3015_v12 = vpop.f32.mrf.mxu1 }
 0x5ee   : > { %v3098_v14 = vadd.f32 %v3002_v13, %v2910_v0  ;;  %v3099_v15 = vadd.f32 %v3015_v12, %v2911_v10 }
 0x5f0   : > { %v3107_v19 = vmul.f32 %v4844_v43, %v3098_v14  ;;  %v3164_v18 = vpack.c.bf16 %v3098_v14, %v3097_v62  ;;  %v3108_v7 = vmul.f32 %v4846_v1, %v3099_v15  ;;  %v2914_v62 = vadd.f32 %v5501_v39, %v5493_v30 }
 0x5f1   : > { %v2915_v30 = vadd.f32 %v5503_v53, %v5495_v20 }
 0x5f2   : > { %v3117_v48 = vsel %vm3115_vm8, %v3107_v19, 0.0  ;;  %v3137_v38 = vmul.f32 %v3107_v19, %v3098_v14  ;;  %v3138_v4 = vmul.f32 %v3108_v7, %v3099_v15  ;;  %v3119_v27 = vsel %vm3115_vm8, %v3108_v7, 0.0 }
 0x5f3   : > { %v3118_v56 = vadd.f32 %v3117_v48, %v3116_v9  ;;  %v3174_v59 = vrot.slane %v3164_v18, 2 }
 0x5f4   : > { %v3146_v26 = vsel %vm3115_vm8, %v3137_v38, 0.0  ;;  %v3028_v24 = vpop.f32.mrf.mxu2  ;;  %v3041_v8 = vpop.f32.mrf.mxu3  ;;  %v3148_v31 = vsel %vm3115_vm8, %v3138_v4, 0.0  ;;  %v2916_v4 = vadd.f32 %v5505_v55, %v5497_v21 }
 0x5f5   : > { %v3147_v35 = vadd.f32 %v3146_v26, %v3145_v16  ;;  %v3120_v28 = vadd.f32 %v3119_v27, %v3118_v56  ;;  %v3100_v22 = vadd.f32 %v3028_v24, %v2912_v2  ;;  %v3004_v32 = vpop.f32.mrf.mxu0  ;;  %v3017_v25 = vpop.f32.mrf.mxu1  ;;  %v3101_v33 = vadd.f32 %v3041_v8, %v2913_v54 }
 0x5f6   : > { %v3184_v63 = vsel %vm3181_vm3, %v3164_v18, %v3174_v59  ;;  %v2917_v16 = vadd.f32 %v5507_v58, %v5499_v34 }
 0x5f7   : > { %v3149_v40 = vadd.f32 %v3148_v31, %v3147_v35  ;;  %v3109_v41 = vmul.f32 %v4848_v44, %v3100_v22  ;;  %v3165_v36 = vpack.c.bf16 %v3100_v22, %v3099_v15  ;;  %v3110_v52 = vmul.f32 %v4850_v45, %v3101_v33 }
 0x5f9   : > { %v3121_v3 = vsel %vm3115_vm8, %v3109_v41, 0.0  ;;  %v3139_v60 = vmul.f32 %v3109_v41, %v3100_v22  ;;  %v3175_v61 = vrot.slane %v3165_v36, 4  ;;  %v3176_v6 = vrot.slane %v3165_v36, 6 }
 0x5fa   : > { %v3122_v0 = vadd.f32 %v3121_v3, %v3120_v28  ;;  %v3140_v10 = vmul.f32 %v3110_v52, %v3101_v33  ;;  %v3123_v12 = vsel %vm3115_vm8, %v3110_v52, 0.0 }
 0x5fb   : > { %v3150_v11 = vsel %vm3115_vm8, %v3139_v60, 0.0  ;;  %v3188_v13 = vsel %vm3185_vm9, %v3175_v61, %v3176_v6  ;;  %v3226_v6 = vld [vmem:[%s4712_s19 + $0x10] sm:$0x3] }
 0x5fc   : > { %v3151_v39 = vadd.f32 %v3150_v11, %v3149_v40  ;;  %v3189_v14 = vsel %vm2381_vm12, %v3184_v63, %v3188_v13  ;;  %v3124_v15 = vadd.f32 %v3123_v12, %v3122_v0  ;;  %v3030_v29 = vpop.f32.mrf.mxu2  ;;  %v3043_v51 = vpop.f32.mrf.mxu3  ;;  %v3152_v19 = vsel %vm3115_vm8, %v3140_v10, 0.0  ;;  %v3221_v0 = vld [vmem:[%s4712_s19 + $0x8] sm:$0xff] }
 0x5fd   : > { %v3054_v7 = vpop.f32.mrf.mxu0  ;;  %v3067_v18 = vpop.f32.mrf.mxu1  ;;  %v3219_v37 = vsel %vm3217_vm1, %v3189_v14, %v3218_v17 }
 0x5fe   : > { %v3153_v2 = vadd.f32 %v3152_v19, %v3151_v39  ;;  %v3102_v9 = vadd.f32 %v3054_v7, %v2914_v62  ;;  %v3103_v48 = vadd.f32 %v3067_v18, %v2915_v30  ;;  %3220 = vst [vmem:[%s4712_s19] sm:$0xff] %v3219_v37 }
 0x600   : > { %v3111_v20 = vmul.f32 %v4852_v46, %v3102_v9  ;;  %v3166_v53 = vpack.c.bf16 %v3102_v9, %v3101_v33  ;;  %v3112_v38 = vmul.f32 %v4854_v47, %v3103_v48 }
 0x602   : > { %v3125_v23 = vsel %vm3115_vm8, %v3111_v20, 0.0  ;;  %v3141_v54 = vmul.f32 %v3111_v20, %v3102_v9  ;;  %v3142_v56 = vmul.f32 %v3112_v38, %v3103_v48  ;;  %v3127_v35 = vsel %vm3115_vm8, %v3112_v38, 0.0 }
 0x603   : > { %v3126_v26 = vadd.f32 %v3125_v23, %v3124_v15  ;;  %v3177_v59 = vrot.slane %v3166_v53, 2 }
 0x604   : > { %v3154_v27 = vsel %vm3115_vm8, %v3141_v54, 0.0  ;;  %v3080_v24 = vpop.f32.mrf.mxu2  ;;  %v3093_v8 = vpop.f32.mrf.mxu3  ;;  %v3156_v21 = vsel %vm3115_vm8, %v3142_v56, 0.0 }
 0x605   : > { %v3104_v28 = vadd.f32 %v3080_v24, %v2916_v4  ;;  %v3105_v22 = vadd.f32 %v3093_v8, %v2917_v16  ;;  %v3056_v32 = vpop.f32.mrf.mxu0  ;;  %v3069_v25 = vpop.f32.mrf.mxu1  ;;  %v3128_v31 = vadd.f32 %v3127_v35, %v3126_v26  ;;  %v3155_v33 = vadd.f32 %v3154_v27, %v3153_v2 }
 0x606   : > { %v3192_v62 = vsel %vm3181_vm3, %v3166_v53, %v3177_v59 }
 0x607   : > { %v3113_v34 = vmul.f32 %v4856_v49, %v3104_v28  ;;  %v3167_v55 = vpack.c.bf16 %v3104_v28, %v3103_v48  ;;  %v3168_v58 = vpack.c.bf16 %v3105_v22, %v3105_v22  ;;  %v3114_v40 = vmul.f32 %v4858_v5, %v3105_v22 }
 0x608   : > { %v3157_v41 = vadd.f32 %v3156_v21, %v3155_v33 }
 0x609   : > { %v3143_v36 = vmul.f32 %v3113_v34, %v3104_v28  ;;  %v3178_v52 = vrot.slane %v3167_v55, 4  ;;  %v3179_v3 = vrot.slane %v3167_v55, 6  ;;  %v3180_v60 = vrot.slane %v3168_v58, 2 }
 0x60a   : > { %v3129_v10 = vsel %vm3115_vm8, %v3113_v34, 0.0  ;;  %v3144_v17 = vmul.f32 %v3114_v40, %v3105_v22  ;;  %v3132_v29 = vsel %vm3131_vm4, %v3114_v40, 0.0 }
 0x60b   : > { %v3195_v63 = vsel %vm3185_vm9, %v3178_v52, %v3179_v3  ;;  %v3199_v11 = vsel %vm3181_vm3, %v3168_v58, %v3180_v60  ;;  %v3130_v13 = vadd.f32 %v3129_v10, %v3128_v31  ;;  %v3158_v12 = vsel %vm3115_vm8, %v3143_v36, 0.0 }
 0x60c   : > { %v3196_v30 = vsel %vm2381_vm12, %v3192_v62, %v3195_v63  ;;  %v3227_v39 = vsel %vm5590_vm7, %v3199_v11, %v3226_v6  ;;  %v3082_v14 = vpop.f32.mrf.mxu2  ;;  %v3095_v15 = vpop.f32.mrf.mxu3  ;;  %v3159_v51 = vadd.f32 %v3158_v12, %v3157_v41  ;;  %v3160_v18 = vsel %vm3131_vm4, %v3144_v17, 0.0 }
 0x60d   : > { %v3222_v19 = vsel %vm3217_vm1, %v3196_v30, %v3221_v0  ;;  %3228 = vst [vmem:[%s4712_s19 + $0x10] sm:$0x3] %v3227_v39  ;;  %v3133_v7 = vadd.f32 %v3132_v29, %v3130_v13  ;;  %vm3229_vm12 = vcmask 7168  }
 0x60e   : > { %3223 = vst [vmem:[%s4712_s19 + $0x8] sm:$0xff] %v3222_v19  ;;  %v3161_v37 = vadd.f32 %v3160_v18, %v3159_v51 }
 0x60f   : > { %3134 = vadd.xlane.f32.xlu2 %v3133_v7 }
 0x610   : > { %3162 = vadd.xlane.f32.xlu0 %v3161_v37 }
 0x682   : > { %v3135_v2 = vpop.xlane.xlu2 %3134 }
 0x683   : > { %v3163_v9 = vpop.xlane.xlu0 %3162 }
 0x684   : > { %v3230_v48 = vsel %vm3229_vm12, %v3135_v2, %v3163_v9 }
 0x685   : > { %3232 = vst.msk [vmem:[%s4707_s9] sm:$0x7] %vm3231_vm0, %v3230_v48 }
 0x686 PF: > { %p4436_p10 = scmp.ne.s32.totalorder %s4561_s12, 3 }
 0x687   : > { %s4592_s6 = smov (!%p4436_p10), 92   ;;  %s4593_s12 = smov (!%p4436_p10), 93  }
 0x688   : > { %3236 = sbr.rel (%p4436_p10) target bundleno = 2200 (0x898), region = 44  ;;  %s4594_s7 = smov (!%p4436_p10), 59  }
 0x689   : > { %s4595_s8 = smov (!%p4436_p10), 58  }
 0x68d   : > { %v3238_v57 = vld [vmem:[%s4687_s26 + $0x8] sm:$0xff]  ;;  %v3237_v50 = vld [vmem:[%s4687_s26] sm:$0xff]  ;;  %v3239_v38 = vld [vmem:[%s4687_s26 + $0x10] sm:$0xff]  ;;  %vm3286_vm3 = vcmask 752640   ;;  %vm3299_vm8 = vcmask 1043456   ;;  %vm3295_vm9 = vcmask 64512  }
 0x68e   : > { %v3252_v20 = vunpack.c.l.b16 %v3238_v57  ;;  %v3250_v53 = vunpack.c.l.b16 %v3237_v50  ;;  %v3254_v23 = vunpack.c.l.b16 %v3239_v38  ;;  %v3253_v16 = vunpack.c.h.b16 %v3238_v57  ;;  %v3240_v27 = vld [vmem:[%s4687_s26 + $0x18] sm:$0xff]  ;;  %v3241_v22 = vld [vmem:[%s4687_s26 + $0x20] sm:$0xf] }
 0x68f   : > { %v3251_v26 = vunpack.c.h.b16 %v3237_v50  ;;  %v3256_v24 = vunpack.c.l.b16 %v3240_v27  ;;  %v3257_v32 = vunpack.c.h.b16 %v3240_v27  ;;  %v3255_v25 = vunpack.c.h.b16 %v3239_v38  ;;  %v3622_v34 = vld [vmem:[%s4687_s26 + $0x20] sm:$0xff] }
 0x690   : > { %v3261_v54 = vpack.c.b16 %v3252_v20, %v3252_v20  ;;  %v3259_v56 = vpack.c.b16 %v3250_v53, %v3250_v53  ;;  %v3263_v4 = vpack.c.b16 %v3254_v23, %v3254_v23  ;;  %v3262_v8 = vpack.c.b16 %v3253_v16, %v3253_v16  ;;  %v4437_v39 = vld [vmem:[%s4692_s29 + $0x2] sm:$0x3] }
 0x691   : > { %v3260_v35 = vpack.c.b16 %v3251_v26, %v3251_v26  ;;  %v3265_v28 = vpack.c.b16 %v3256_v24, %v3256_v24  ;;  %v3258_v31 = vunpack.c.l.b16 %v3241_v22  ;;  %v3266_v33 = vpack.c.b16 %v3257_v32, %v3257_v32 }
 0x692   : > { %3272 = vrot.lane.b32.xlu0 %v3261_v54, %s4592_s6  ;;  %3268 = vrot.lane.b32.xlu1 %v3259_v56, %s4592_s6  ;;  %v3264_v59 = vpack.c.b16 %v3255_v25, %v3255_v25  ;;  %v3638_v55 = vunpack.c.l.b16 %v3622_v34  ;;  %v3639_v58 = vunpack.c.h.b16 %v3622_v34  ;;  %vm3462_vm15 = vcmask 760832   ;;  %v3242_v34 = vld [vmem:[%s4692_s29] sm:$0x3] }
 0x693   : > { %3276 = vrot.lane.b32.xlu2 %v3263_v4, %s4592_s6  ;;  %v3267_v21 = vpack.c.b16 %v3258_v31, %v3258_v31  ;;  %vm3670_vm5 = vcmask 482304   ;;  %vm3858_vm10 = vcmask 474112   ;;  %vm4122_vm13 = vsmask.f32 1280 }
 0x694   : > { %v3648_v40 = vpack.c.b16 %v3638_v55, %v3638_v55  ;;  %v3649_v41 = vpack.c.b16 %v3639_v58, %v3639_v58  ;;  %vm4124_vm6 = vcmask 1043458   ;;  %vm4125_vm11 = vsmask.f32 3328 }
 0x695   : > { %vm4099_vm14 = vcmask 1041408   ;;  %vm4033_vm1 = vcmask 1042432   ;;  %vm4103_vm2 = vcmask 1045508   ;;  %vm4129_vm4 = vsmask.f32 5376  ;;  %vm5756_vm12 = vmand %vm4124_vm6, %vm4125_vm11 }
 0x696   : > { %vm5750_vm7 = vmand %vm4099_vm14, %vm4122_vm13  ;;  %vm4142_vm11 = vcmask 517120  }
 0x697   : > { %vm5763_vm0 = vmand %vm4103_vm2, %vm4129_vm4  ;;  %vm4049_vm4 = vcmask 518144  }
 0x69a   : > { %3274 = vrot.lane.b32.xlu0 %v3262_v8, %s4592_s6  ;;  %3270 = vrot.lane.b32.xlu1 %v3260_v35, %s4592_s6 }
 0x69b   : > { %3280 = vrot.lane.b32.xlu2 %v3265_v28, %s4592_s6 }
 0x6a2   : > { %3282 = vrot.lane.b32.xlu0 %v3266_v33, %s4592_s6  ;;  %3278 = vrot.lane.b32.xlu1 %v3264_v59, %s4592_s6 }
 0x6a3   : > { %3284 = vrot.lane.b32.xlu2 %v3267_v21, %s4592_s6 }
 0x6aa   : > { %3446 = vrot.lane.b32.xlu0 %v3260_v35, %s4593_s12  ;;  %3448 = vrot.lane.b32.xlu1 %v3261_v54, %s4593_s12 }
 0x6ab   : > { %3450 = vrot.lane.b32.xlu2 %v3262_v8, %s4593_s12 }
 0x6b2   : > { %3444 = vrot.lane.b32.xlu0 %v3259_v56, %s4593_s12  ;;  %3454 = vrot.lane.b32.xlu1 %v3264_v59, %s4593_s12 }
 0x6b3   : > { %3456 = vrot.lane.b32.xlu2 %v3265_v28, %s4593_s12 }
 0x6ba   : > { %3452 = vrot.lane.b32.xlu0 %v3263_v4, %s4593_s12  ;;  %3458 = vrot.lane.b32.xlu1 %v3266_v33, %s4593_s12 }
 0x6bb   : > { %3650 = vrot.lane.b32.xlu2 %v3259_v56, %s4594_s7 }
 0x6c2   : > { %3460 = vrot.lane.b32.xlu1 %v3267_v21, %s4593_s12  ;;  %3652 = vrot.lane.b32.xlu0 %v3260_v35, %s4594_s7 }
 0x6c3   : > { %3654 = vrot.lane.b32.xlu2 %v3261_v54, %s4594_s7 }
 0x6ca   : > { %3658 = vrot.lane.b32.xlu0 %v3263_v4, %s4594_s7  ;;  %3660 = vrot.lane.b32.xlu1 %v3264_v59, %s4594_s7 }
 0x6cb   : > { %3656 = vrot.lane.b32.xlu2 %v3262_v8, %s4594_s7 }
 0x6d2   : > { %3662 = vrot.lane.b32.xlu0 %v3265_v28, %s4594_s7  ;;  %3666 = vrot.lane.b32.xlu1 %v3648_v40, %s4594_s7 }
 0x6d3   : > { %3668 = vrot.lane.b32.xlu2 %v3649_v41, %s4594_s7 }
 0x6da   : > { %3664 = vrot.lane.b32.xlu0 %v3266_v33, %s4594_s7  ;;  %3838 = vrot.lane.b32.xlu1 %v3259_v56, %s4595_s8 }
 0x6db   : > { %3840 = vrot.lane.b32.xlu2 %v3260_v35, %s4595_s8 }
 0x6e2   : > { %3844 = vrot.lane.b32.xlu0 %v3262_v8, %s4595_s8  ;;  %3846 = vrot.lane.b32.xlu1 %v3263_v4, %s4595_s8 }
 0x6e3   : > { %3842 = vrot.lane.b32.xlu2 %v3261_v54, %s4595_s8 }
 0x6ea   : > { %3848 = vrot.lane.b32.xlu0 %v3264_v59, %s4595_s8  ;;  %3852 = vrot.lane.b32.xlu1 %v3266_v33, %s4595_s8 }
 0x6eb   : > { %3854 = vrot.lane.b32.xlu2 %v3648_v40, %s4595_s8 }
 0x6ed   : > { %v3277_v36 = vpop.permute.xlu2 %3276 }
 0x6f2   : > { %3850 = vrot.lane.b32.xlu0 %v3265_v28, %s4595_s8  ;;  %3856 = vrot.lane.b32.xlu1 %v3649_v41, %s4595_s8 }
 0x6f5   : > { %v3281_v52 = vpop.permute.xlu2 %3280 }
 0x6fd   : > { %v3285_v63 = vpop.permute.xlu2 %3284 }
 0x6fe   : > { %v3325_v14 = vsel %vm3299_vm8, %v3285_v63, 0 }
 0x704   : > { %v3273_v3 = vpop.permute.xlu0 %3272  ;;  %v3269_v60 = vpop.permute.xlu1 %3268 }
 0x705   : > { %v3451_v37 = vpop.permute.xlu2 %3450 }
 0x70c   : > { %v3275_v61 = vpop.permute.xlu0 %3274  ;;  %v3271_v6 = vpop.permute.xlu1 %3270 }
 0x70d   : > { %v3287_v62 = vsel %vm3286_vm3, %v3269_v60, %v3271_v6  ;;  %v3288_v0 = vsel %vm3286_vm3, %v3271_v6, %v3273_v3  ;;  %v3289_v10 = vsel %vm3286_vm3, %v3273_v3, %v3275_v61  ;;  %v3290_v17 = vsel %vm3286_vm3, %v3275_v61, %v3277_v36  ;;  %v3457_v23 = vpop.permute.xlu2 %3456 }
 0x70e   : > { %v3301_v11 = vsel %vm3299_vm8, %v3287_v62, 0  ;;  %v3304_v13 = vsel %vm3299_vm8, %v3288_v0, 0  ;;  %v3307_v12 = vsel %vm3299_vm8, %v3289_v10, 0  ;;  %v3310_v30 = vsel %vm3299_vm8, %v3290_v17, 0 }
 0x70f   : > { %3334 = vmatpush.bf16.msra.mxu0 %v3301_v11  ;;  %3347 = vmatpush.bf16.msra.mxu1 %v3304_v13 }
 0x710   : > { %3360 = vmatpush.bf16.msra.mxu2 %v3307_v12  ;;  %3373 = vmatpush.bf16.msra.mxu3 %v3310_v30 }
 0x712   : > { %4438 = vmatmul.msk.bf16.vlgmr.msra.gmra.mxu0 %vm3295_vm9, %v4437_v39  ;;  %4439 = vmatmul.msk.bf16.vlgmr.msra.gmra.mxu1 %vm3295_vm9, %v4437_v39 }
 0x713   : > { %4440 = vmatmul.msk.bf16.vlgmr.msra.gmra.mxu2 %vm3295_vm9, %v4437_v39  ;;  %4441 = vmatmul.msk.bf16.vlgmr.msra.gmra.mxu3 %vm3295_vm9, %v4437_v39 }
 0x714   : > { %v3283_v15 = vpop.permute.xlu0 %3282  ;;  %v3279_v29 = vpop.permute.xlu1 %3278 }
 0x715   : > { %v3291_v51 = vsel %vm3286_vm3, %v3277_v36, %v3279_v29  ;;  %v3292_v19 = vsel %vm3286_vm3, %v3279_v29, %v3281_v52  ;;  %v3293_v7 = vsel %vm3286_vm3, %v3281_v52, %v3283_v15  ;;  %v3294_v18 = vsel %vm3286_vm3, %v3283_v15, %v3285_v63  ;;  %v3651_v35 = vpop.permute.xlu2 %3650  ;;  %vm4127_vm3 = vmor %vm5756_vm12, %vm5750_vm7 }
 0x716   : > { %v3313_v2 = vsel %vm3299_vm8, %v3291_v51, 0  ;;  %v3316_v9 = vsel %vm3299_vm8, %v3292_v19, 0  ;;  %v3319_v48 = vsel %vm3299_vm8, %v3293_v7, 0  ;;  %v3322_v57 = vsel %vm3299_vm8, %v3294_v18, 0  ;;  %vm5828_vm7 = vmand %vm4142_vm11, %vm4122_vm13 }
 0x717   : > { %3386 = vmatpush.bf16.msrb.mxu0 %v3313_v2  ;;  %3399 = vmatpush.bf16.msrb.mxu1 %v3316_v9  ;;  %vm4149_vm13 = vcmask 10240  }
 0x718   : > { %3412 = vmatpush.bf16.msrb.mxu2 %v3319_v48  ;;  %3425 = vmatpush.bf16.msrb.mxu3 %v3322_v57  ;;  %v4456_v57 = vld [vmem:[%s4692_s29 + $0x4] sm:$0x3] }
 0x71b   : > { %3438 = vmatpush.bf16.msra.mxu0 %v3325_v14 }
 0x71c   : > { %v3447_v50 = vpop.permute.xlu0 %3446  ;;  %v3449_v20 = vpop.permute.xlu1 %3448 }
 0x71d   : > { %v3464_v53 = vsel %vm3462_vm15, %v3447_v50, %v3449_v20  ;;  %v3465_v38 = vsel %vm3462_vm15, %v3449_v20, %v3451_v37  ;;  %v3655_v55 = vpop.permute.xlu2 %3654 }
 0x71e   : > { %v3478_v54 = vsel %vm3299_vm8, %v3464_v53, 0  ;;  %v3481_v56 = vsel %vm3299_vm8, %v3465_v38, 0 }
 0x71f   : > { %3521 = vmatpush.bf16.msra.mxu2 %v3478_v54  ;;  %3534 = vmatpush.bf16.msra.mxu3 %v3481_v56 }
 0x722   : > { %4442 = vmatmul.msk.bf16.vlgmr.msrb.gmra.mxu0 %vm3295_vm9, %v4437_v39  ;;  %4443 = vmatmul.msk.bf16.vlgmr.msrb.gmra.mxu1 %vm3295_vm9, %v4437_v39 }
 0x723   : > { %4444 = vmatmul.msk.bf16.vlgmr.msrb.gmra.mxu2 %vm3295_vm9, %v4437_v39  ;;  %4445 = vmatmul.msk.bf16.vlgmr.msrb.gmra.mxu3 %vm3295_vm9, %v4437_v39 }
 0x724   : > { %v3445_v4 = vpop.permute.xlu0 %3444  ;;  %v3455_v16 = vpop.permute.xlu1 %3454 }
 0x725   : > { %v3463_v26 = vsel %vm3462_vm15, %v3445_v4, %v3447_v50  ;;  %v3468_v27 = vsel %vm3462_vm15, %v3455_v16, %v3457_v23  ;;  %v3657_v62 = vpop.permute.xlu2 %3656 }
 0x726   : > { %v3475_v24 = vsel %vm3299_vm8, %v3463_v26, 0  ;;  %v3490_v8 = vsel %vm3299_vm8, %v3468_v27, 0  ;;  %v3673_v17 = vsel %vm3670_vm5, %v3655_v55, %v3657_v62 }
 0x727   : > { %3508 = vmatpush.bf16.msra.mxu1 %v3475_v24  ;;  %3573 = vmatpush.bf16.msrb.mxu2 %v3490_v8  ;;  %v3690_v13 = vsel %vm3299_vm8, %v3673_v17, 0 }
 0x72c   : > { %v3453_v28 = vpop.permute.xlu0 %3452  ;;  %v3459_v22 = vpop.permute.xlu1 %3458 }
 0x72d   : > { %v3466_v32 = vsel %vm3462_vm15, %v3451_v37, %v3453_v28  ;;  %v3467_v25 = vsel %vm3462_vm15, %v3453_v28, %v3455_v16  ;;  %v3469_v31 = vsel %vm3462_vm15, %v3457_v23, %v3459_v22 }
 0x72e   : > { %v3484_v33 = vsel %vm3299_vm8, %v3466_v32, 0  ;;  %v3487_v59 = vsel %vm3299_vm8, %v3467_v25, 0  ;;  %v3493_v21 = vsel %vm3299_vm8, %v3469_v31, 0 }
 0x72f   : > { %3547 = vmatpush.bf16.msrb.mxu0 %v3484_v33  ;;  %3560 = vmatpush.bf16.msrb.mxu1 %v3487_v59 }
 0x730   : > { %3586 = vmatpush.bf16.msrb.mxu3 %v3493_v21 }
 0x732   : > { %4446 = vmatmul.msk.bf16.vlgmr.msra.gmra.mxu0 %vm3295_vm9, %v4437_v39  ;;  %4447 = vmatmul.msk.bf16.vlgmr.msra.gmra.mxu1 %vm3295_vm9, %v3242_v34  ;;  %v3669_v39 = vpop.permute.xlu2 %3668 }
 0x733   : > { %4448 = vmatmul.msk.bf16.vlgmr.msra.gmra.mxu2 %vm3295_vm9, %v3242_v34  ;;  %4449 = vmatmul.msk.bf16.vlgmr.msra.gmra.mxu3 %vm3295_vm9, %v3242_v34 }
 0x734   : > { %v3461_v58 = vpop.permute.xlu1 %3460  ;;  %v3653_v40 = vpop.permute.xlu0 %3652 }
 0x735   : > { %v3470_v41 = vsel %vm3462_vm15, %v3459_v22, %v3461_v58  ;;  %v3499_v36 = vsel %vm3299_vm8, %v3461_v58, 0  ;;  %v3671_v52 = vsel %vm3670_vm5, %v3651_v35, %v3653_v40  ;;  %v3672_v3 = vsel %vm3670_vm5, %v3653_v40, %v3655_v55  ;;  %v4466_v58 = vld [vmem:[%s4692_s29 + $0x6] sm:$0x3] }
 0x736   : > { %v3496_v60 = vsel %vm3299_vm8, %v3470_v41, 0  ;;  %v3684_v61 = vsel %vm3299_vm8, %v3671_v52, 0  ;;  %v3687_v6 = vsel %vm3299_vm8, %v3672_v3, 0  ;;  %3612 = vmatpush.bf16.msra.mxu1 %v3499_v36  ;;  %vm4133_vm15 = vsmask.f32 7424 }
 0x737   : > { %3599 = vmatpush.bf16.msra.mxu0 %v3496_v60  ;;  %3717 = vmatpush.bf16.msra.mxu2 %v3684_v61 }
 0x738   : > { %3730 = vmatpush.bf16.msra.mxu3 %v3687_v6 }
 0x73a   : > { %v3841_v37 = vpop.permute.xlu2 %3840 }
 0x73c   : > { %v3659_v0 = vpop.permute.xlu0 %3658  ;;  %v3661_v10 = vpop.permute.xlu1 %3660 }
 0x73d   : > { %v3674_v63 = vsel %vm3670_vm5, %v3657_v62, %v3659_v0  ;;  %v3675_v11 = vsel %vm3670_vm5, %v3659_v0, %v3661_v10 }
 0x73e   : > { %v3693_v12 = vsel %vm3299_vm8, %v3674_v63, 0  ;;  %v3696_v30 = vsel %vm3299_vm8, %v3675_v11, 0 }
 0x742   : > { %4450 = vmatmul.msk.bf16.vlgmr.msrb.gmra.mxu0 %vm3295_vm9, %v3242_v34  ;;  %4451 = vmatmul.msk.bf16.vlgmr.msrb.gmra.mxu1 %vm3295_vm9, %v3242_v34  ;;  %v3843_v56 = vpop.permute.xlu2 %3842 }
 0x743   : > { %4452 = vmatmul.msk.bf16.vlgmr.msrb.gmra.mxu2 %vm3295_vm9, %v3242_v34  ;;  %4453 = vmatmul.msk.bf16.vlgmr.msrb.gmra.mxu3 %vm3295_vm9, %v3242_v34  ;;  %v3860_v4 = vsel %vm3858_vm10, %v3841_v37, %v3843_v56 }
 0x744   : > { %3743 = vmatpush.bf16.msrb.mxu0 %v3690_v13  ;;  %v3663_v14 = vpop.permute.xlu0 %3662  ;;  %3756 = vmatpush.bf16.msrb.mxu1 %v3693_v12  ;;  %v3667_v15 = vpop.permute.xlu1 %3666  ;;  %v3875_v8 = vsel %vm3299_vm8, %v3860_v4, 0 }
 0x745   : > { %v3676_v29 = vsel %vm3670_vm5, %v3661_v10, %v3663_v14  ;;  %3769 = vmatpush.bf16.msrb.mxu2 %v3696_v30  ;;  %v3679_v9 = vsel %vm3670_vm5, %v3667_v15, %v3669_v39 }
 0x746   : > { %v3699_v51 = vsel %vm3299_vm8, %v3676_v29, 0  ;;  %v3708_v53 = vsel %vm3299_vm8, %v3679_v9, 0 }
 0x747   : > { %3782 = vmatpush.bf16.msrb.mxu3 %v3699_v51 }
 0x74a   : > { %v3855_v31 = vpop.permute.xlu2 %3854 }
 0x74c   : > { %v3665_v19 = vpop.permute.xlu0 %3664  ;;  %v3839_v7 = vpop.permute.xlu1 %3838 }
 0x74d   : > { %v3677_v18 = vsel %vm3670_vm5, %v3663_v14, %v3665_v19  ;;  %v3678_v2 = vsel %vm3670_vm5, %v3665_v19, %v3667_v15  ;;  %v3859_v48 = vsel %vm3858_vm10, %v3839_v7, %v3841_v37  ;;  %vm5782_vm5 = vmor %vm5763_vm0, %vm4127_vm3 }
 0x74e   : > { %v3702_v50 = vsel %vm3299_vm8, %v3677_v18, 0  ;;  %v3705_v20 = vsel %vm3299_vm8, %v3678_v2, 0  ;;  %v3872_v38 = vsel %vm3299_vm8, %v3859_v48, 0 }
 0x752   : > { %4454 = vmatmul.msk.bf16.vlgmr.msra.gmra.mxu0 %vm3295_vm9, %v3242_v34  ;;  %4455 = vmatmul.msk.bf16.vlgmr.msra.gmra.mxu1 %vm3295_vm9, %v3242_v34 }
 0x753   : > { %4457 = vmatmul.msk.bf16.vlgmr.msra.gmra.mxu2 %vm3295_vm9, %v4456_v57  ;;  %4458 = vmatmul.msk.bf16.vlgmr.msra.gmra.mxu3 %vm3295_vm9, %v4456_v57 }
 0x754   : > { %3795 = vmatpush.bf16.msra.mxu0 %v3702_v50  ;;  %3808 = vmatpush.bf16.msra.mxu1 %v3705_v20  ;;  %v3845_v23 = vpop.permute.xlu0 %3844  ;;  %v3847_v54 = vpop.permute.xlu1 %3846 }
 0x755   : > { %3821 = vmatpush.bf16.msra.mxu2 %v3708_v53  ;;  %3905 = vmatpush.bf16.msra.mxu3 %v3872_v38  ;;  %v3861_v16 = vsel %vm3858_vm10, %v3843_v56, %v3845_v23  ;;  %v3862_v27 = vsel %vm3858_vm10, %v3845_v23, %v3847_v54 }
 0x756   : > { %v3878_v35 = vsel %vm3299_vm8, %v3861_v16, 0  ;;  %v3881_v28 = vsel %vm3299_vm8, %v3862_v27, 0 }
 0x75c   : > { %v3849_v26 = vpop.permute.xlu0 %3848  ;;  %v3853_v32 = vpop.permute.xlu1 %3852 }
 0x75d   : > { %v3863_v24 = vsel %vm3858_vm10, %v3847_v54, %v3849_v26  ;;  %v3866_v34 = vsel %vm3858_vm10, %v3853_v32, %v3855_v31 }
 0x75e   : > { %v3884_v22 = vsel %vm3299_vm8, %v3863_v24, 0  ;;  %v3893_v36 = vsel %vm3299_vm8, %v3866_v34, 0 }
 0x762   : > { %4459 = vmatmul.msk.bf16.vlgmr.msrb.gmra.mxu0 %vm3295_vm9, %v4456_v57  ;;  %4460 = vmatmul.msk.bf16.vlgmr.msrb.gmra.mxu1 %vm3295_vm9, %v4456_v57 }
 0x763   : > { %4461 = vmatmul.msk.bf16.vlgmr.msrb.gmra.mxu2 %vm3295_vm9, %v4456_v57  ;;  %4462 = vmatmul.msk.bf16.vlgmr.msrb.gmra.mxu3 %vm3295_vm9, %v4456_v57 }
 0x764   : > { %3918 = vmatpush.bf16.msrb.mxu0 %v3875_v8  ;;  %3931 = vmatpush.bf16.msrb.mxu1 %v3878_v35  ;;  %v3851_v25 = vpop.permute.xlu0 %3850  ;;  %v3857_v33 = vpop.permute.xlu1 %3856 }
 0x765   : > { %3944 = vmatpush.bf16.msrb.mxu2 %v3881_v28  ;;  %3957 = vmatpush.bf16.msrb.mxu3 %v3884_v22  ;;  %v3864_v59 = vsel %vm3858_vm10, %v3849_v26, %v3851_v25  ;;  %v3865_v21 = vsel %vm3858_vm10, %v3851_v25, %v3853_v32  ;;  %v3867_v55 = vsel %vm3858_vm10, %v3855_v31, %v3857_v33 }
 0x766   : > { %v3887_v40 = vsel %vm3299_vm8, %v3864_v59, 0  ;;  %v3890_v41 = vsel %vm3299_vm8, %v3865_v21, 0  ;;  %v3896_v52 = vsel %vm3299_vm8, %v3867_v55, 0 }
 0x772   : > { %4463 = vmatmul.msk.bf16.vlgmr.msra.gmra.mxu0 %vm3295_vm9, %v4456_v57  ;;  %4464 = vmatmul.msk.bf16.vlgmr.msra.gmra.mxu1 %vm3295_vm9, %v4456_v57 }
 0x773   : > { %4465 = vmatmul.msk.bf16.vlgmr.msra.gmra.mxu2 %vm3295_vm9, %v4456_v57  ;;  %4467 = vmatmul.msk.bf16.vlgmr.msra.gmra.mxu3 %vm3295_vm9, %v4466_v58 }
 0x774   : > { %3970 = vmatpush.bf16.msra.mxu0 %v3887_v40  ;;  %3983 = vmatpush.bf16.msra.mxu1 %v3890_v41 }
 0x775   : > { %3996 = vmatpush.bf16.msra.mxu2 %v3893_v36  ;;  %4009 = vmatpush.bf16.msra.mxu3 %v3896_v52 }
 0x782   : > { %4468 = vmatmul.msk.bf16.vlgmr.msrb.gmra.mxu0 %vm3295_vm9, %v4466_v58  ;;  %4469 = vmatmul.msk.bf16.vlgmr.msrb.gmra.mxu1 %vm3295_vm9, %v4466_v58 }
 0x783   : > { %4470 = vmatmul.msk.bf16.vlgmr.msrb.gmra.mxu2 %vm3295_vm9, %v4466_v58  ;;  %4471 = vmatmul.msk.bf16.vlgmr.msrb.gmra.mxu3 %vm3295_vm9, %v4466_v58 }
 0x78f   : > { %v3336_v3 = vpop.f32.mrf.mxu0  ;;  %v3349_v60 = vpop.f32.mrf.mxu1 }
 0x792   : > { %4472 = vmatmul.msk.bf16.vlgmr.msra.gmra.mxu0 %vm3295_vm9, %v4466_v58  ;;  %4473 = vmatmul.msk.bf16.vlgmr.msra.gmra.mxu1 %vm3295_vm9, %v4466_v58 }
 0x793   : > { %4474 = vmatmul.msk.bf16.vlgmr.msra.gmra.mxu2 %vm3295_vm9, %v4466_v58  ;;  %4475 = vmatmul.msk.bf16.vlgmr.msra.gmra.mxu3 %vm3295_vm9, %v4466_v58  ;;  %vm4132_vm9 = vcmask 1047558  }
 0x794   : > { %vm5788_vm10 = vmand %vm4132_vm9, %vm4133_vm15 }
 0x795   : > { %vm4135_vm6 = vmor %vm5788_vm10, %vm5782_vm5 }
 0x796   : > { %v3362_v61 = vpop.f32.mrf.mxu2  ;;  %v3375_v6 = vpop.f32.mrf.mxu3 }
 0x797   : > { %v3338_v62 = vpop.f32.mrf.mxu0  ;;  %v3351_v0 = vpop.f32.mrf.mxu1 }
 0x79e   : > { %v3364_v10 = vpop.f32.mrf.mxu2  ;;  %v3377_v17 = vpop.f32.mrf.mxu3 }
 0x79f   : > { %v3388_v63 = vpop.f32.mrf.mxu0  ;;  %v3401_v11 = vpop.f32.mrf.mxu1 }
 0x7a6   : > { %v3414_v13 = vpop.f32.mrf.mxu2  ;;  %v3427_v12 = vpop.f32.mrf.mxu3 }
 0x7a7   : > { %v3390_v30 = vpop.f32.mrf.mxu0  ;;  %v3403_v39 = vpop.f32.mrf.mxu1 }
 0x7ae   : > { %v3416_v14 = vpop.f32.mrf.mxu2  ;;  %v3429_v15 = vpop.f32.mrf.mxu3 }
 0x7af   : > { %v3440_v29 = vpop.f32.mrf.mxu0  ;;  %v3510_v51 = vpop.f32.mrf.mxu1 }
 0x7b0   : > { %v3511_v19 = vadd.f32 %v3510_v51, %v3336_v3 }
 0x7b6   : > { %v3523_v7 = vpop.f32.mrf.mxu2  ;;  %v3536_v18 = vpop.f32.mrf.mxu3 }
 0x7b7   : > { %v3524_v37 = vadd.f32 %v3523_v7, %v3349_v60  ;;  %v3537_v2 = vadd.f32 %v3536_v18, %v3362_v61  ;;  %v3442_v9 = vpop.f32.mrf.mxu0  ;;  %v3512_v48 = vpop.f32.mrf.mxu1 }
 0x7be   : > { %v3525_v57 = vpop.f32.mrf.mxu2  ;;  %v3538_v50 = vpop.f32.mrf.mxu3 }
 0x7bf   : > { %v3549_v20 = vpop.f32.mrf.mxu0  ;;  %v3562_v53 = vpop.f32.mrf.mxu1 }
 0x7c0   : > { %v3550_v38 = vadd.f32 %v3549_v20, %v3375_v6  ;;  %v3563_v23 = vadd.f32 %v3562_v53, %v3388_v63 }
 0x7c6   : > { %v3575_v54 = vpop.f32.mrf.mxu2  ;;  %v3588_v56 = vpop.f32.mrf.mxu3 }
 0x7c7   : > { %v5731_v4 = vadd.f32 %v3575_v54, %v3401_v11  ;;  %v5733_v16 = vadd.f32 %v3588_v56, %v3414_v13  ;;  %v3551_v26 = vpop.f32.mrf.mxu0  ;;  %v3564_v27 = vpop.f32.mrf.mxu1 }
 0x7ce   : > { %v3577_v24 = vpop.f32.mrf.mxu2  ;;  %v3590_v8 = vpop.f32.mrf.mxu3 }
 0x7cf   : > { %v3601_v35 = vpop.f32.mrf.mxu0  ;;  %v3614_v28 = vpop.f32.mrf.mxu1 }
 0x7d0   : > { %v5735_v22 = vadd.f32 %v3601_v35, %v3427_v12  ;;  %v5737_v32 = vadd.f32 %v3614_v28, %v3440_v29 }
 0x7d6   : > { %v3719_v25 = vpop.f32.mrf.mxu2  ;;  %v3732_v31 = vpop.f32.mrf.mxu3 }
 0x7d7   : > { %v3603_v33 = vpop.f32.mrf.mxu0  ;;  %v3616_v59 = vpop.f32.mrf.mxu1  ;;  %v3827_v63 = vadd.f32 %v3719_v25, %v3511_v19  ;;  %v3828_v13 = vadd.f32 %v3732_v31, %v3524_v37 }
 0x7de   : > { %v3721_v21 = vpop.f32.mrf.mxu2  ;;  %v3734_v34 = vpop.f32.mrf.mxu3 }
 0x7df   : > { %v3745_v55 = vpop.f32.mrf.mxu0  ;;  %v3758_v58 = vpop.f32.mrf.mxu1 }
 0x7e0   : > { %v3829_v12 = vadd.f32 %v3745_v55, %v3537_v2  ;;  %v3830_v48 = vadd.f32 %v3758_v58, %v3550_v38 }
 0x7e6   : > { %v3771_v40 = vpop.f32.mrf.mxu2  ;;  %v5739_v41 = vpop.f32.mrf.mxu3 }
 0x7e7   : > { %v3747_v36 = vpop.f32.mrf.mxu0  ;;  %v3760_v52 = vpop.f32.mrf.mxu1  ;;  %v3831_v54 = vadd.f32 %v3771_v40, %v3563_v23 }
 0x7ee   : > { %v3773_v3 = vpop.f32.mrf.mxu2  ;;  %v3786_v60 = vpop.f32.mrf.mxu3 }
 0x7ef   : > { %v5741_v61 = vpop.f32.mrf.mxu0  ;;  %v5743_v6 = vpop.f32.mrf.mxu1 }
 0x7f6   : > { %v5745_v62 = vpop.f32.mrf.mxu2  ;;  %v3907_v0 = vpop.f32.mrf.mxu3 }
 0x7f7   : > { %v3799_v10 = vpop.f32.mrf.mxu0  ;;  %v3812_v17 = vpop.f32.mrf.mxu1  ;;  %v4015_v11 = vadd.f32 %v3907_v0, %v3827_v63 }
 0x7f8   : > { %v3832_v10 = vadd.f32 %v5739_v41, %v5731_v4  ;;  %v3833_v4 = vadd.f32 %v5741_v61, %v5733_v16 }
 0x7f9   : > { %v4024_v30 = vmul.f32 %v4842_v42, %v4015_v11 }
 0x7fb   : > { %v4054_v42 = vmul.f32 %v4024_v30, %v4015_v11  ;;  %v4034_v57 = vsel %vm4033_vm1, %v4024_v30, 0.0 }
 0x7fe   : > { %v3825_v39 = vpop.f32.mrf.mxu2  ;;  %v3909_v14 = vpop.f32.mrf.mxu3 }
 0x7ff   : > { %v3920_v15 = vpop.f32.mrf.mxu0  ;;  %v3933_v29 = vpop.f32.mrf.mxu1 }
 0x800   : > { %v4016_v51 = vadd.f32 %v3920_v15, %v3828_v13  ;;  %v4017_v7 = vadd.f32 %v3933_v29, %v3829_v12 }
 0x802   : > { %v4025_v18 = vmul.f32 %v4844_v43, %v4016_v51  ;;  %v4082_v37 = vpack.c.bf16 %v4016_v51, %v4015_v11  ;;  %v4026_v2 = vmul.f32 %v4846_v1, %v4017_v7  ;;  %v4063_v1 = vsel %vm4033_vm1, %v4054_v42, 0.0 }
 0x804   : > { %v4035_v50 = vsel %vm4033_vm1, %v4025_v18, 0.0  ;;  %v4055_v20 = vmul.f32 %v4025_v18, %v4016_v51  ;;  %v4056_v56 = vmul.f32 %v4026_v2, %v4017_v7  ;;  %v4037_v26 = vsel %vm4033_vm1, %v4026_v2, 0.0 }
 0x805   : > { %v4036_v43 = vadd.f32 %v4035_v50, %v4034_v57  ;;  %v4092_v21 = vrot.slane %v4082_v37, 2  ;;  %v3834_v50 = vadd.f32 %v5743_v6, %v5735_v22 }
 0x806   : > { %v4064_v38 = vsel %vm4033_vm1, %v4055_v20, 0.0  ;;  %v3946_v27 = vpop.f32.mrf.mxu2  ;;  %v3959_v24 = vpop.f32.mrf.mxu3  ;;  %v4066_v31 = vsel %vm4033_vm1, %v4056_v56, 0.0  ;;  %v3835_v20 = vadd.f32 %v5745_v62, %v5737_v32 }
 0x807   : > { %v4065_v8 = vadd.f32 %v4064_v38, %v4063_v1  ;;  %v4038_v35 = vadd.f32 %v4037_v26, %v4036_v43  ;;  %v4018_v23 = vadd.f32 %v3946_v27, %v3830_v48  ;;  %v3922_v28 = vpop.f32.mrf.mxu0  ;;  %v3935_v25 = vpop.f32.mrf.mxu1  ;;  %v4019_v33 = vadd.f32 %v3959_v24, %v3831_v54 }
 0x808   : > { %v4102_v11 = vsel %vm4099_vm14, %v4082_v37, %v4092_v21 }
 0x809   : > { %v4067_v34 = vadd.f32 %v4066_v31, %v4065_v8  ;;  %v4027_v55 = vmul.f32 %v4848_v44, %v4018_v23  ;;  %v4083_v58 = vpack.c.bf16 %v4018_v23, %v4017_v7  ;;  %v4028_v36 = vmul.f32 %v4850_v45, %v4019_v33  ;;  %v4136_v44 = vld [vmem:[%s4712_s19] sm:$0xff] }
 0x80b   : > { %v4039_v52 = vsel %vm4033_vm1, %v4027_v55, 0.0  ;;  %v4057_v3 = vmul.f32 %v4027_v55, %v4018_v23  ;;  %v4093_v60 = vrot.slane %v4083_v58, 4  ;;  %v4094_v0 = vrot.slane %v4083_v58, 6 }
 0x80c   : > { %v4040_v17 = vadd.f32 %v4039_v52, %v4038_v35  ;;  %v4058_v63 = vmul.f32 %v4028_v36, %v4019_v33  ;;  %v4041_v12 = vsel %vm4033_vm1, %v4028_v36, 0.0 }
 0x80d   : > { %v4068_v45 = vsel %vm4033_vm1, %v4057_v3, 0.0  ;;  %v4106_v13 = vsel %vm4103_vm2, %v4093_v60, %v4094_v0 }
 0x80e   : > { %v4069_v41 = vadd.f32 %v4068_v45, %v4067_v34  ;;  %v4107_v30 = vsel %vm3299_vm8, %v4102_v11, %v4106_v13  ;;  %v4042_v39 = vadd.f32 %v4041_v12, %v4040_v17  ;;  %v3948_v14 = vpop.f32.mrf.mxu2  ;;  %v3961_v15 = vpop.f32.mrf.mxu3  ;;  %v4070_v29 = vsel %vm4033_vm1, %v4058_v63, 0.0  ;;  %v4144_v34 = vld [vmem:[%s4712_s19 + $0x10] sm:$0x3] }
 0x80f   : > { %v3972_v51 = vpop.f32.mrf.mxu0  ;;  %v3985_v7 = vpop.f32.mrf.mxu1  ;;  %v4137_v19 = vsel %vm4135_vm6, %v4107_v30, %v4136_v44 }
 0x810   : > { %v4071_v42 = vadd.f32 %v4070_v29, %v4069_v41  ;;  %v4020_v18 = vadd.f32 %v3972_v51, %v3832_v10  ;;  %v4021_v37 = vadd.f32 %v3985_v7, %v3833_v4  ;;  %4138 = vst [vmem:[%s4712_s19] sm:$0xff] %v4137_v19 }
 0x812   : > { %v4029_v16 = vmul.f32 %v4852_v46, %v4020_v18  ;;  %v4084_v61 = vpack.c.bf16 %v4020_v18, %v4019_v33  ;;  %v4030_v2 = vmul.f32 %v4854_v47, %v4021_v37 }
 0x814   : > { %v4043_v9 = vsel %vm4033_vm1, %v4029_v16, 0.0  ;;  %v4059_v48 = vmul.f32 %v4029_v16, %v4020_v18  ;;  %v4060_v57 = vmul.f32 %v4030_v2, %v4021_v37  ;;  %v4045_v46 = vsel %vm4033_vm1, %v4030_v2, 0.0 }
 0x815   : > { %v4044_v53 = vadd.f32 %v4043_v9, %v4042_v39  ;;  %v4095_v8 = vrot.slane %v4084_v61, 2 }
 0x816   : > { %v4072_v54 = vsel %vm4033_vm1, %v4059_v48, 0.0  ;;  %v3998_v43 = vpop.f32.mrf.mxu2  ;;  %v4011_v56 = vpop.f32.mrf.mxu3  ;;  %v4074_v22 = vsel %vm4033_vm1, %v4060_v57, 0.0 }
 0x817   : > { %v4022_v1 = vadd.f32 %v3998_v43, %v3834_v50  ;;  %v4023_v38 = vadd.f32 %v4011_v56, %v3835_v20  ;;  %v3974_v47 = vpop.f32.mrf.mxu0  ;;  %v3987_v26 = vpop.f32.mrf.mxu1  ;;  %v4046_v27 = vadd.f32 %v4045_v46, %v4044_v53  ;;  %v4073_v24 = vadd.f32 %v4072_v54, %v4071_v42 }
 0x818   : > { %v4110_v55 = vsel %vm4099_vm14, %v4084_v61, %v4095_v8 }
 0x819   : > { %v4031_v32 = vmul.f32 %v4856_v49, %v4022_v1  ;;  %v4085_v6 = vpack.c.bf16 %v4022_v1, %v4021_v37  ;;  %v4086_v62 = vpack.c.bf16 %v4023_v38, %v4023_v38  ;;  %v4032_v35 = vmul.f32 %v4858_v5, %v4023_v38  ;;  %v4139_v49 = vld [vmem:[%s4712_s19 + $0x8] sm:$0xff] }
 0x81a   : > { %v4075_v23 = vadd.f32 %v4074_v22, %v4073_v24 }
 0x81b   : > { %v4061_v28 = vmul.f32 %v4031_v32, %v4022_v1  ;;  %v4096_v25 = vrot.slane %v4085_v6, 4  ;;  %v4097_v31 = vrot.slane %v4085_v6, 6  ;;  %v4098_v33 = vrot.slane %v4086_v62, 2 }
 0x81c   : > { %v4047_v58 = vsel %vm4033_vm1, %v4031_v32, 0.0  ;;  %v4062_v5 = vmul.f32 %v4032_v35, %v4023_v38  ;;  %v4050_v44 = vsel %vm4049_vm4, %v4032_v35, 0.0 }
 0x81d   : > { %v4113_v36 = vsel %vm4103_vm2, %v4096_v25, %v4097_v31  ;;  %v4117_v52 = vsel %vm4099_vm14, %v4086_v62, %v4098_v33  ;;  %v4048_v3 = vadd.f32 %v4047_v58, %v4046_v27  ;;  %v4076_v60 = vsel %vm4033_vm1, %v4061_v28, 0.0 }
 0x81e   : > { %v4114_v0 = vsel %vm3299_vm8, %v4110_v55, %v4113_v36  ;;  %v4145_v10 = vsel %vm5828_vm7, %v4117_v52, %v4144_v34  ;;  %v4000_v17 = vpop.f32.mrf.mxu2  ;;  %v4013_v63 = vpop.f32.mrf.mxu3  ;;  %v4077_v11 = vadd.f32 %v4076_v60, %v4075_v23  ;;  %v4078_v12 = vsel %vm4049_vm4, %v4062_v5, 0.0 }
 0x81f   : > { %v4140_v45 = vsel %vm4135_vm6, %v4114_v0, %v4139_v49  ;;  %4146 = vst [vmem:[%s4712_s19 + $0x10] sm:$0x3] %v4145_v10  ;;  %v4051_v13 = vadd.f32 %v4050_v44, %v4048_v3  ;;  %vm4147_vm8 = vcmask 7168  }
 0x820   : > { %4141 = vst [vmem:[%s4712_s19 + $0x8] sm:$0xff] %v4140_v45  ;;  %v4079_v4 = vadd.f32 %v4078_v12, %v4077_v11 }
 0x821   : > { %4052 = vadd.xlane.f32.xlu2 %v4051_v13 }
 0x822   : > { %4080 = vadd.xlane.f32.xlu0 %v4079_v4 }
 0x894   : > { %v4053_v41 = vpop.xlane.xlu2 %4052 }
 0x895   : > { %v4081_v30 = vpop.xlane.xlu0 %4080 }
 0x896   : > { %v4148_v39 = vsel %vm4147_vm8, %v4053_v41, %v4081_v30 }
 0x897   : > { %4150 = vst.msk [vmem:[%s4707_s9] sm:$0x7] %vm4149_vm13, %v4148_v39 }
 0x898 PF: > { %s14_s16 = sadd.s32 1, %s4577_s16   ;;  %s5933_s12 = smov %s4569_s14 }
 0x899   : > { %p11_p11 = scmp.ge.s32.totalorder %s14_s16, 10   ;;  %s5934_s13 = smov %s4573_s15 }
 0x89a   : > { %s5935_s14 = smov %s5938_s17  ;;  %s5936_s15 = smov %s5942_s18 }
 0x89b   :  { %13 = sbr.rel (!%p11_p11) target bundleno = 3 (0x3), region = 101 }

</bundles_post_ra>
